<compile_context>
chip_gen: v5e
topology: v5e:2x2
jax: 0.10.0
libtpu: 0.0.40
codegen_flags: <defaults>
</compile_context>

<pallas_src>
import functools
import numpy as np
import jax
import jax.numpy as jnp
from jax.experimental import pallas as pl
from jax.experimental.pallas import tpu as pltpu


# ---------------------------------------------------------------------------
# Fused conv stack (3x3 same conv x3, ReLU) + 2x2 maxpool, one batch element per grid step
# ---------------------------------------------------------------------------
def _conv_stack_pool_kernel(xp_ref, w1_ref, b1_ref, w2_ref, b2_ref, w3_ref, b3_ref,
                            ce_ref, co_ref, o_ref, a1_ref, a2_ref, y_ref, *, H, W, C):
    Ho, Wo = H // 2, W // 2

    # Zero the padded scratch slabs (only the 1-px borders actually need to be zero,
    # but zeroing every step keeps the "parallel" grid axis free of cross-step deps).
    a1_ref[...] = jnp.zeros_like(a1_ref)
    a2_ref[...] = jnp.zeros_like(a2_ref)

    xp = xp_ref[0]                                        # (H+2, W+2) padded input

    # ---- conv1: 1 -> C channels (VPU shifted multiply-adds, scalar weights from SMEM) ----
    for co_i in range(C):
        acc = jnp.zeros((H, W), jnp.float32)
        for kh in range(3):
            for kw in range(3):
                acc = acc + xp[kh:kh + H, kw:kw + W] * w1_ref[(co_i * 3 + kh) * 3 + kw]
        a1_ref[co_i, 1:H + 1, 1:W + 1] = jnp.maximum(acc + b1_ref[co_i], 0.0)

    # ---- conv2: C -> C channels ----
    accs = [jnp.zeros((H, W), jnp.float32) for _ in range(C)]
    for ci in range(C):
        slab = a1_ref[ci]                                 # (H+2, W+2) padded activation
        for kh in range(3):
            for kw in range(3):
                xs = slab[kh:kh + H, kw:kw + W]
                for co_i in range(C):
                    accs[co_i] = accs[co_i] + xs * w2_ref[((co_i * C + ci) * 3 + kh) * 3 + kw]
    for co_i in range(C):
        a2_ref[co_i, 1:H + 1, 1:W + 1] = jnp.maximum(accs[co_i] + b2_ref[co_i], 0.0)

    # ---- conv3: C -> 1 channel ----
    acc = jnp.zeros((H, W), jnp.float32)
    for ci in range(C):
        slab = a2_ref[ci]
        for kh in range(3):
            for kw in range(3):
                acc = acc + slab[kh:kh + H, kw:kw + W] * w3_ref[(ci * 3 + kh) * 3 + kw]
    y_ref[...] = jnp.maximum(acc + b3_ref[0], 0.0)        # (H, W) pre-pool map

    # ---- 2x2 maxpool, stride 2 ----
    # rows: even/odd row pairs via strided sublane loads + VPU max
    r = jnp.maximum(y_ref[pl.ds(0, Ho, 2), :], y_ref[pl.ds(1, Ho, 2), :])     # (Ho, W)
    # columns: even/odd column compaction via two tiny 0/1 selection matmuls
    o_ref[0] = jnp.maximum(
        jnp.dot(r, ce_ref[...], preferred_element_type=jnp.float32),
        jnp.dot(r, co_ref[...], preferred_element_type=jnp.float32))          # (Ho, Wo)


def conv_stack_pool(x_nchw, p):
    N, _, H, W = x_nchw.shape
    C = p['conv1_w'].shape[0]
    Ho, Wo = H // 2, W // 2

    xp = jnp.pad(x_nchw[:, 0, :, :].astype(jnp.float32), ((0, 0), (1, 1), (1, 1)))
    w1 = p['conv1_w'].reshape(-1).astype(jnp.float32)     # (C*1*9,)  OIHW row-major flat
    w2 = p['conv2_w'].reshape(-1).astype(jnp.float32)     # (C*C*9,)
    w3 = p['conv3_w'].reshape(-1).astype(jnp.float32)     # (1*C*9,)
    b1 = p['conv1_b'].astype(jnp.float32)
    b2 = p['conv2_b'].astype(jnp.float32)
    b3 = p['conv3_b'].astype(jnp.float32)
    ce = (jnp.arange(W)[:, None] == 2 * jnp.arange(Wo)[None, :]).astype(jnp.float32)
    co = (jnp.arange(W)[:, None] == 2 * jnp.arange(Wo)[None, :] + 1).astype(jnp.float32)

    smem = pl.BlockSpec(memory_space=pltpu.MemorySpace.SMEM)
    kern = functools.partial(_conv_stack_pool_kernel, H=H, W=W, C=C)
    return pl.pallas_call(
        kern,
        out_shape=jax.ShapeDtypeStruct((N, Ho, Wo), jnp.float32),
        grid=(N,),
        in_specs=[
            pl.BlockSpec((1, H + 2, W + 2), lambda n: (n, 0, 0)),
            smem, smem, smem, smem, smem, smem,
            pl.BlockSpec((W, Wo), lambda n: (0, 0)),
            pl.BlockSpec((W, Wo), lambda n: (0, 0)),
        ],
        out_specs=pl.BlockSpec((1, Ho, Wo), lambda n: (n, 0, 0)),
        scratch_shapes=[
            pltpu.VMEM((C, H + 2, W + 2), jnp.float32),   # conv1 activation (padded)
            pltpu.VMEM((C, H + 2, W + 2), jnp.float32),   # conv2 activation (padded)
            pltpu.VMEM((H, W), jnp.float32),              # conv3 activation (pre-pool)
        ],
        compiler_params=pltpu.CompilerParams(dimension_semantics=("parallel",)),
    )(xp, w1, b1, w2, b2, w3, b3, ce, co)


# ---------------------------------------------------------------------------
# Fused multi-layer GRU (PyTorch semantics, gate order r,z,n, h0 = 0, batch = 1)
# ---------------------------------------------------------------------------
def _gru_kernel(*refs, T, Hd, n_layers, blk):
    x_ref = refs[0]
    layer_refs = [refs[1 + 4 * l:1 + 4 * (l + 1)] for l in range(n_layers)]
    base = 1 + 4 * n_layers
    o_ref = refs[base]           # (T, Hd) output of the final GRU layer
    gi_ref = refs[base + 1]      # (T, 3*Hd) scratch: concatenated input projection

    def run_layer(x_val, wih_ref, whh_ref, bih_ref, bhh_ref):
        # One concatenated input projection for all gates / all timesteps.
        gi_ref[...] = (jnp.dot(x_val, wih_ref[...],
                               preferred_element_type=jnp.float32) + bih_ref[...])
        whh = whh_ref[...]
        bhh = bhh_ref[...]
        nblk = T // blk

        def block_body(bi, h):
            t0 = pl.multiple_of(bi * blk, blk)
            rows = []
            for k in range(blk):                           # short static unroll inside the block
                gi_t = gi_ref[pl.ds(t0 + k, 1), :]         # (1, 3*Hd)
                gh = jnp.dot(h, whh, preferred_element_type=jnp.float32) + bhh
                r = jax.nn.sigmoid(gi_t[:, 0:Hd] + gh[:, 0:Hd])
                z = jax.nn.sigmoid(gi_t[:, Hd:2 * Hd] + gh[:, Hd:2 * Hd])
                n = jnp.tanh(gi_t[:, 2 * Hd:3 * Hd] + r * gh[:, 2 * Hd:3 * Hd])
                h = (1.0 - z) * n + z * h
                rows.append(h)
            o_ref[pl.ds(t0, blk), :] = jnp.concatenate(rows, axis=0)   # blocked store
            return h

        jax.lax.fori_loop(0, nblk, block_body, jnp.zeros((1, Hd), jnp.float32))

    run_layer(x_ref[...], *layer_refs[0])
    for l in range(1, n_layers):
        # input projection reads the previous layer's full output (as a value) before overwriting
        run_layer(o_ref[...], *layer_refs[l])


def gru_stack(x_seq, gru_params):
    T, F = x_seq.shape
    Hd = gru_params[0][1].shape[1]          # w_hh: (3*Hd, Hd)
    n_layers = len(gru_params)
    blk = 8 if T % 8 == 0 else 1

    inputs = [x_seq.astype(jnp.float32)]
    in_specs = [pl.BlockSpec((T, F), lambda i: (0, 0))]
    for (w_ih, w_hh, b_ih, b_hh) in gru_params:
        Fin = w_ih.shape[1]
        inputs += [w_ih.T.astype(jnp.float32), w_hh.T.astype(jnp.float32),
                   b_ih.reshape(1, 3 * Hd).astype(jnp.float32),
                   b_hh.reshape(1, 3 * Hd).astype(jnp.float32)]
        in_specs += [pl.BlockSpec((Fin, 3 * Hd), lambda i: (0, 0)),
                     pl.BlockSpec((Hd, 3 * Hd), lambda i: (0, 0)),
                     pl.BlockSpec((1, 3 * Hd), lambda i: (0, 0)),
                     pl.BlockSpec((1, 3 * Hd), lambda i: (0, 0))]

    kern = functools.partial(_gru_kernel, T=T, Hd=Hd, n_layers=n_layers, blk=blk)
    return pl.pallas_call(
        kern,
        out_shape=jax.ShapeDtypeStruct((T, Hd), jnp.float32),
        grid=(1,),
        in_specs=in_specs,
        out_specs=pl.BlockSpec((T, Hd), lambda i: (0, 0)),
        scratch_shapes=[pltpu.VMEM((T, 3 * Hd), jnp.float32)],
        compiler_params=pltpu.CompilerParams(dimension_semantics=("arbitrary",)),
    )(*inputs)


# ---------------------------------------------------------------------------
# Final Linear, tiled over lane-dense 128-wide output-column blocks ("parallel" grid)
# ---------------------------------------------------------------------------
def _fc_kernel(seq_ref, w_ref, b_ref, o_ref):
    o_ref[...] = (jnp.dot(seq_ref[...].astype(jnp.bfloat16), w_ref[...],
                          preferred_element_type=jnp.float32) + b_ref[...])


def linear(seq, fc_w, fc_b):
    T, Hd = seq.shape
    OUT = fc_w.shape[0]
    tile_out = 128 if OUT % 128 == 0 else OUT
    return pl.pallas_call(
        _fc_kernel,
        out_shape=jax.ShapeDtypeStruct((T, OUT), jnp.float32),
        grid=(OUT // tile_out,),
        in_specs=[pl.BlockSpec((T, Hd), lambda j: (0, 0)),
                  pl.BlockSpec((Hd, tile_out), lambda j: (0, j)),
                  pl.BlockSpec((1, tile_out), lambda j: (0, j))],
        out_specs=pl.BlockSpec((T, tile_out), lambda j: (0, j)),
        compiler_params=pltpu.CompilerParams(dimension_semantics=("parallel",)),
    )(seq.astype(jnp.float32), fc_w.T.astype(jnp.bfloat16),
      fc_b.reshape(1, OUT).astype(jnp.float32))


# ---------------------------------------------------------------------------
# Full WaveNet forward (glue in JAX, compute in the Pallas kernels)
# ---------------------------------------------------------------------------
def wavenet_forward(params, x_nchw):
    N, _, H, W = x_nchw.shape
    pooled = conv_stack_pool(x_nchw, params)                 # (N, H/2, W/2)
    x = pooled.reshape(N, -1)                                # Flatten (== PyTorch Flatten of (N,1,H/2,W/2))
    # PyTorch: print(x.size()); x = x.unsqueeze(0) -> (1, N, feat); batch_first GRU over seq len N
    # TODO(synk): the in-forward print(x.size()) debug side effect is intentionally omitted.
    seq = gru_stack(x, params['gru'])                        # (N, rnn_hidden)
    y = linear(seq, params['fc_w'], params['fc_b'])          # (N, H*W)
    return y.reshape(N, H, W)                                # analog of .view(80, 720, 320)


# ---------------------------------------------------------------------------
# Deterministic parameter init (PyTorch-like uniform bounds)
# ---------------------------------------------------------------------------
def init_params(key, cnn_channels, rnn_hidden, rnn_layers, in_feat, out_feat):
    keys = jax.random.split(key, 32)

    def u(k, shape, fan_in):
        bound = 1.0 / np.sqrt(fan_in)
        return jax.random.uniform(k, shape, jnp.float32, -bound, bound)

    C = cnn_channels
    p = {}
    p['conv1_w'] = u(keys[0], (C, 1, 3, 3), 9)
    p['conv1_b'] = u(keys[1], (C,), 9)
    p['conv2_w'] = u(keys[2], (C, C, 3, 3), 9 * C)
    p['conv2_b'] = u(keys[3], (C,), 9 * C)
    p['conv3_w'] = u(keys[4], (1, C, 3, 3), 9 * C)
    p['conv3_b'] = u(keys[5], (1,), 9 * C)
    gru = []
    ki = 6
    for l in range(rnn_layers):
        fin = in_feat if l == 0 else rnn_hidden
        gru.append((u(keys[ki + 0], (3 * rnn_hidden, fin), rnn_hidden),
                    u(keys[ki + 1], (3 * rnn_hidden, rnn_hidden), rnn_hidden),
                    u(keys[ki + 2], (3 * rnn_hidden,), rnn_hidden),
                    u(keys[ki + 3], (3 * rnn_hidden,), rnn_hidden)))
        ki += 4
    p['gru'] = gru
    p['fc_w'] = u(keys[ki + 0], (out_feat, rnn_hidden), rnn_hidden)
    p['fc_b'] = u(keys[ki + 1], (out_feat,), rnn_hidden)
    return p


# ---------------------------------------------------------------------------
# Pure-JAX reference (uses the original concatenated PyTorch parameter layout)
# ---------------------------------------------------------------------------
def reference_forward(params, x_nchw):
    def conv(x, Wt, b):
        y = jax.lax.conv_general_dilated(
            x, Wt, (1, 1), ((1, 1), (1, 1)),
            dimension_numbers=('NCHW', 'OIHW', 'NCHW'))
        return jax.nn.relu(y + b[None, :, None, None])

    N, _, H, W = x_nchw.shape
    x = conv(x_nchw, params['conv1_w'], params['conv1_b'])
    x = conv(x, params['conv2_w'], params['conv2_b'])
    x = conv(x, params['conv3_w'], params['conv3_b'])
    x = jax.lax.reduce_window(x, -jnp.inf, jax.lax.max,
                              (1, 1, 2, 2), (1, 1, 2, 2), 'VALID')
    x = x.reshape(N, -1)
    for (w_ih, w_hh, b_ih, b_hh) in params['gru']:
        Hd = w_hh.shape[1]
        h = jnp.zeros((Hd,), jnp.float32)
        outs = []
        for t in range(x.shape[0]):
            gi = w_ih @ x[t] + b_ih
            gh = w_hh @ h + b_hh
            r = jax.nn.sigmoid(gi[:Hd] + gh[:Hd])
            z = jax.nn.sigmoid(gi[Hd:2 * Hd] + gh[Hd:2 * Hd])
            n = jnp.tanh(gi[2 * Hd:] + r * gh[2 * Hd:])
            h = (1.0 - z) * n + z * h
            outs.append(h)
        x = jnp.stack(outs)
    x = x @ params['fc_w'].T + params['fc_b']
    return x.reshape(N, H, W)


if __name__ == "__main__":
    # Scaled-down analog of the original (80, 1, 720, 320) input.
    N, H, W = 8, 24, 16
    cnn_channels, rnn_hidden, rnn_layers = 4, 32, 2
    in_feat = (H // 2) * (W // 2)     # 96   (original: 57600)
    out_feat = H * W                  # 384  (original: 230400), multiple of 128 -> 3 FC tiles

    key = jax.random.PRNGKey(0)
    kx, kp = jax.random.split(key)
    x = jax.random.normal(kx, (N, 1, H, W), jnp.float32)
    params = init_params(kp, cnn_channels, rnn_hidden, rnn_layers, in_feat, out_feat)

    out = jax.block_until_ready(wavenet_forward(params, x))
    assert out.shape == (N, H, W)

    ref = reference_forward(params, x)
    np.testing.assert_allclose(np.asarray(out), np.asarray(ref), rtol=2e-2, atol=2e-2)

    print("KERNEL_OK")
</pallas_src>

<mosaic_0001>
module attributes {stable_mosaic.version = 11 : i64} {
  func.func @_conv_stack_pool_kernel(%arg0: i32, %arg1: memref<1x26x18xf32, #tpu.memory_space<vmem>>, %arg2: memref<36xf32, #tpu.memory_space<smem>>, %arg3: memref<4xf32, #tpu.memory_space<smem>>, %arg4: memref<144xf32, #tpu.memory_space<smem>>, %arg5: memref<4xf32, #tpu.memory_space<smem>>, %arg6: memref<36xf32, #tpu.memory_space<smem>>, %arg7: memref<1xf32, #tpu.memory_space<smem>>, %arg8: memref<16x8xf32, #tpu.memory_space<vmem>>, %arg9: memref<16x8xf32, #tpu.memory_space<vmem>>, %arg10: memref<1x12x8xf32, #tpu.memory_space<vmem>>, %arg11: memref<4x26x18xf32, #tpu.memory_space<vmem>>, %arg12: memref<4x26x18xf32, #tpu.memory_space<vmem>>, %arg13: memref<24x16xf32, #tpu.memory_space<vmem>>) attributes {dimension_semantics = [#tpu.dimension_semantics<parallel>], iteration_bounds = array<i64: 8>, scalar_prefetch = 0 : i64, scratch_operands = 3 : i64, tpu.core_type = #tpu.core_type<tc>, window_params = [{transform_indices = @transform_0, window_bounds = array<i64: 1, 26, 18>}, {transform_indices = @transform_1, window_bounds = array<i64: 36>}, {transform_indices = @transform_2, window_bounds = array<i64: 4>}, {transform_indices = @transform_3, window_bounds = array<i64: 144>}, {transform_indices = @transform_4, window_bounds = array<i64: 4>}, {transform_indices = @transform_5, window_bounds = array<i64: 36>}, {transform_indices = @transform_6, window_bounds = array<i64: 1>}, {pipeline_mode = #tpu.pipeline_mode<synchronous>, transform_indices = @transform_7, window_bounds = array<i64: 16, 8>}, {pipeline_mode = #tpu.pipeline_mode<synchronous>, transform_indices = @transform_8, window_bounds = array<i64: 16, 8>}, {transform_indices = @transform_9, window_bounds = array<i64: 1, 12, 8>}]} {
    %cst = arith.constant 0.000000e+00 : f32
    %0 = vector.broadcast %cst : f32 to vector<4x26x18xf32>
    %c0 = arith.constant 0 : index
    %c0_0 = arith.constant 0 : index
    %c0_1 = arith.constant 0 : index
    %1 = vector.load %arg11[%c0, %c0_0, %c0_1] : memref<4x26x18xf32, #tpu.memory_space<vmem>>, vector<4x26x18xf32>
    tpu.vector_store %arg11[%c0, %c0_0, %c0_1], %0 {strides = array<i32>} : memref<4x26x18xf32, #tpu.memory_space<vmem>>, vector<4x26x18xf32>,
    %cst_2 = arith.constant 0.000000e+00 : f32
    %2 = vector.broadcast %cst_2 : f32 to vector<4x26x18xf32>
    %c0_3 = arith.constant 0 : index
    %c0_4 = arith.constant 0 : index
    %c0_5 = arith.constant 0 : index
    %3 = vector.load %arg12[%c0_3, %c0_4, %c0_5] : memref<4x26x18xf32, #tpu.memory_space<vmem>>, vector<4x26x18xf32>
    tpu.vector_store %arg12[%c0_3, %c0_4, %c0_5], %2 {strides = array<i32>} : memref<4x26x18xf32, #tpu.memory_space<vmem>>, vector<4x26x18xf32>,
    %c0_6 = arith.constant 0 : index
    %c0_7 = arith.constant 0 : index
    %c0_8 = arith.constant 0 : index
    %4 = vector.load %arg1[%c0_6, %c0_7, %c0_8] : memref<1x26x18xf32, #tpu.memory_space<vmem>>, vector<1x26x18xf32>
    %5 = vector.shape_cast %4 : vector<1x26x18xf32> to vector<26x18xf32>
    %cst_9 = arith.constant 0.000000e+00 : f32
    %6 = vector.broadcast %cst_9 : f32 to vector<24x16xf32>
    %7 = vector.extract_strided_slice %5 {offsets = [0, 0], sizes = [24, 16], strides = [1, 1]} : vector<26x18xf32> to vector<24x16xf32>
    %c0_10 = arith.constant 0 : index
    %8 = memref.load %arg2[%c0_10] : memref<36xf32, #tpu.memory_space<smem>>
    %9 = vector.broadcast %8 : f32 to vector<24x16xf32>
    %10 = arith.mulf %7, %9 : vector<24x16xf32>
    %11 = arith.addf %6, %10 : vector<24x16xf32>
    %12 = vector.extract_strided_slice %5 {offsets = [0, 1], sizes = [24, 16], strides = [1, 1]} : vector<26x18xf32> to vector<24x16xf32>
    %c1 = arith.constant 1 : index
    %13 = memref.load %arg2[%c1] : memref<36xf32, #tpu.memory_space<smem>>
    %14 = vector.broadcast %13 : f32 to vector<24x16xf32>
    %15 = arith.mulf %12, %14 : vector<24x16xf32>
    %16 = arith.addf %11, %15 : vector<24x16xf32>
    %17 = vector.extract_strided_slice %5 {offsets = [0, 2], sizes = [24, 16], strides = [1, 1]} : vector<26x18xf32> to vector<24x16xf32>
    %c2 = arith.constant 2 : index
    %18 = memref.load %arg2[%c2] : memref<36xf32, #tpu.memory_space<smem>>
    %19 = vector.broadcast %18 : f32 to vector<24x16xf32>
    %20 = arith.mulf %17, %19 : vector<24x16xf32>
    %21 = arith.addf %16, %20 : vector<24x16xf32>
    %22 = vector.extract_strided_slice %5 {offsets = [1, 0], sizes = [24, 16], strides = [1, 1]} : vector<26x18xf32> to vector<24x16xf32>
    %c3 = arith.constant 3 : index
    %23 = memref.load %arg2[%c3] : memref<36xf32, #tpu.memory_space<smem>>
    %24 = vector.broadcast %23 : f32 to vector<24x16xf32>
    %25 = arith.mulf %22, %24 : vector<24x16xf32>
    %26 = arith.addf %21, %25 : vector<24x16xf32>
    %27 = vector.extract_strided_slice %5 {offsets = [1, 1], sizes = [24, 16], strides = [1, 1]} : vector<26x18xf32> to vector<24x16xf32>
    %c4 = arith.constant 4 : index
    %28 = memref.load %arg2[%c4] : memref<36xf32, #tpu.memory_space<smem>>
    %29 = vector.broadcast %28 : f32 to vector<24x16xf32>
    %30 = arith.mulf %27, %29 : vector<24x16xf32>
    %31 = arith.addf %26, %30 : vector<24x16xf32>
    %32 = vector.extract_strided_slice %5 {offsets = [1, 2], sizes = [24, 16], strides = [1, 1]} : vector<26x18xf32> to vector<24x16xf32>
    %c5 = arith.constant 5 : index
    %33 = memref.load %arg2[%c5] : memref<36xf32, #tpu.memory_space<smem>>
    %34 = vector.broadcast %33 : f32 to vector<24x16xf32>
    %35 = arith.mulf %32, %34 : vector<24x16xf32>
    %36 = arith.addf %31, %35 : vector<24x16xf32>
    %37 = vector.extract_strided_slice %5 {offsets = [2, 0], sizes = [24, 16], strides = [1, 1]} : vector<26x18xf32> to vector<24x16xf32>
    %c6 = arith.constant 6 : index
    %38 = memref.load %arg2[%c6] : memref<36xf32, #tpu.memory_space<smem>>
    %39 = vector.broadcast %38 : f32 to vector<24x16xf32>
    %40 = arith.mulf %37, %39 : vector<24x16xf32>
    %41 = arith.addf %36, %40 : vector<24x16xf32>
    %42 = vector.extract_strided_slice %5 {offsets = [2, 1], sizes = [24, 16], strides = [1, 1]} : vector<26x18xf32> to vector<24x16xf32>
    %c7 = arith.constant 7 : index
    %43 = memref.load %arg2[%c7] : memref<36xf32, #tpu.memory_space<smem>>
    %44 = vector.broadcast %43 : f32 to vector<24x16xf32>
    %45 = arith.mulf %42, %44 : vector<24x16xf32>
    %46 = arith.addf %41, %45 : vector<24x16xf32>
    %47 = vector.extract_strided_slice %5 {offsets = [2, 2], sizes = [24, 16], strides = [1, 1]} : vector<26x18xf32> to vector<24x16xf32>
    %c8 = arith.constant 8 : index
    %48 = memref.load %arg2[%c8] : memref<36xf32, #tpu.memory_space<smem>>
    %49 = vector.broadcast %48 : f32 to vector<24x16xf32>
    %50 = arith.mulf %47, %49 : vector<24x16xf32>
    %51 = arith.addf %46, %50 : vector<24x16xf32>
    %c0_11 = arith.constant 0 : index
    %52 = memref.load %arg3[%c0_11] : memref<4xf32, #tpu.memory_space<smem>>
    %53 = vector.broadcast %52 : f32 to vector<24x16xf32>
    %54 = arith.addf %51, %53 : vector<24x16xf32>
    %cst_12 = arith.constant 0.000000e+00 : f32
    %55 = vector.broadcast %cst_12 : f32 to vector<24x16xf32>
    %56 = arith.maximumf %54, %55 : vector<24x16xf32>
    %c0_13 = arith.constant 0 : index
    %c1_14 = arith.constant 1 : index
    %c1_15 = arith.constant 1 : index
    %57 = vector.load %arg11[%c0_13, %c1_14, %c1_15] : memref<4x26x18xf32, #tpu.memory_space<vmem>>, vector<1x24x16xf32>
    %58 = vector.shape_cast %57 : vector<1x24x16xf32> to vector<24x16xf32>
    %59 = vector.shape_cast %56 : vector<24x16xf32> to vector<1x24x16xf32>
    tpu.vector_store %arg11[%c0_13, %c1_14, %c1_15], %59 {strides = array<i32>} : memref<4x26x18xf32, #tpu.memory_space<vmem>>, vector<1x24x16xf32>,
    %cst_16 = arith.constant 0.000000e+00 : f32
    %60 = vector.broadcast %cst_16 : f32 to vector<24x16xf32>
    %61 = vector.extract_strided_slice %5 {offsets = [0, 0], sizes = [24, 16], strides = [1, 1]} : vector<26x18xf32> to vector<24x16xf32>
    %c9 = arith.constant 9 : index
    %62 = memref.load %arg2[%c9] : memref<36xf32, #tpu.memory_space<smem>>
    %63 = vector.broadcast %62 : f32 to vector<24x16xf32>
    %64 = arith.mulf %61, %63 : vector<24x16xf32>
    %65 = arith.addf %60, %64 : vector<24x16xf32>
    %66 = vector.extract_strided_slice %5 {offsets = [0, 1], sizes = [24, 16], strides = [1, 1]} : vector<26x18xf32> to vector<24x16xf32>
    %c10 = arith.constant 10 : index
    %67 = memref.load %arg2[%c10] : memref<36xf32, #tpu.memory_space<smem>>
    %68 = vector.broadcast %67 : f32 to vector<24x16xf32>
    %69 = arith.mulf %66, %68 : vector<24x16xf32>
    %70 = arith.addf %65, %69 : vector<24x16xf32>
    %71 = vector.extract_strided_slice %5 {offsets = [0, 2], sizes = [24, 16], strides = [1, 1]} : vector<26x18xf32> to vector<24x16xf32>
    %c11 = arith.constant 11 : index
    %72 = memref.load %arg2[%c11] : memref<36xf32, #tpu.memory_space<smem>>
    %73 = vector.broadcast %72 : f32 to vector<24x16xf32>
    %74 = arith.mulf %71, %73 : vector<24x16xf32>
    %75 = arith.addf %70, %74 : vector<24x16xf32>
    %76 = vector.extract_strided_slice %5 {offsets = [1, 0], sizes = [24, 16], strides = [1, 1]} : vector<26x18xf32> to vector<24x16xf32>
    %c12 = arith.constant 12 : index
    %77 = memref.load %arg2[%c12] : memref<36xf32, #tpu.memory_space<smem>>
    %78 = vector.broadcast %77 : f32 to vector<24x16xf32>
    %79 = arith.mulf %76, %78 : vector<24x16xf32>
    %80 = arith.addf %75, %79 : vector<24x16xf32>
    %81 = vector.extract_strided_slice %5 {offsets = [1, 1], sizes = [24, 16], strides = [1, 1]} : vector<26x18xf32> to vector<24x16xf32>
    %c13 = arith.constant 13 : index
    %82 = memref.load %arg2[%c13] : memref<36xf32, #tpu.memory_space<smem>>
    %83 = vector.broadcast %82 : f32 to vector<24x16xf32>
    %84 = arith.mulf %81, %83 : vector<24x16xf32>
    %85 = arith.addf %80, %84 : vector<24x16xf32>
    %86 = vector.extract_strided_slice %5 {offsets = [1, 2], sizes = [24, 16], strides = [1, 1]} : vector<26x18xf32> to vector<24x16xf32>
    %c14 = arith.constant 14 : index
    %87 = memref.load %arg2[%c14] : memref<36xf32, #tpu.memory_space<smem>>
    %88 = vector.broadcast %87 : f32 to vector<24x16xf32>
    %89 = arith.mulf %86, %88 : vector<24x16xf32>
    %90 = arith.addf %85, %89 : vector<24x16xf32>
    %91 = vector.extract_strided_slice %5 {offsets = [2, 0], sizes = [24, 16], strides = [1, 1]} : vector<26x18xf32> to vector<24x16xf32>
    %c15 = arith.constant 15 : index
    %92 = memref.load %arg2[%c15] : memref<36xf32, #tpu.memory_space<smem>>
    %93 = vector.broadcast %92 : f32 to vector<24x16xf32>
    %94 = arith.mulf %91, %93 : vector<24x16xf32>
    %95 = arith.addf %90, %94 : vector<24x16xf32>
    %96 = vector.extract_strided_slice %5 {offsets = [2, 1], sizes = [24, 16], strides = [1, 1]} : vector<26x18xf32> to vector<24x16xf32>
    %c16 = arith.constant 16 : index
    %97 = memref.load %arg2[%c16] : memref<36xf32, #tpu.memory_space<smem>>
    %98 = vector.broadcast %97 : f32 to vector<24x16xf32>
    %99 = arith.mulf %96, %98 : vector<24x16xf32>
    %100 = arith.addf %95, %99 : vector<24x16xf32>
    %101 = vector.extract_strided_slice %5 {offsets = [2, 2], sizes = [24, 16], strides = [1, 1]} : vector<26x18xf32> to vector<24x16xf32>
    %c17 = arith.constant 17 : index
    %102 = memref.load %arg2[%c17] : memref<36xf32, #tpu.memory_space<smem>>
    %103 = vector.broadcast %102 : f32 to vector<24x16xf32>
    %104 = arith.mulf %101, %103 : vector<24x16xf32>
    %105 = arith.addf %100, %104 : vector<24x16xf32>
    %c1_17 = arith.constant 1 : index
    %106 = memref.load %arg3[%c1_17] : memref<4xf32, #tpu.memory_space<smem>>
    %107 = vector.broadcast %106 : f32 to vector<24x16xf32>
    %108 = arith.addf %105, %107 : vector<24x16xf32>
    %cst_18 = arith.constant 0.000000e+00 : f32
    %109 = vector.broadcast %cst_18 : f32 to vector<24x16xf32>
    %110 = arith.maximumf %108, %109 : vector<24x16xf32>
    %c1_19 = arith.constant 1 : index
    %c1_20 = arith.constant 1 : index
    %c1_21 = arith.constant 1 : index
    %111 = vector.load %arg11[%c1_19, %c1_20, %c1_21] : memref<4x26x18xf32, #tpu.memory_space<vmem>>, vector<1x24x16xf32>
    %112 = vector.shape_cast %111 : vector<1x24x16xf32> to vector<24x16xf32>
    %113 = vector.shape_cast %110 : vector<24x16xf32> to vector<1x24x16xf32>
    tpu.vector_store %arg11[%c1_19, %c1_20, %c1_21], %113 {strides = array<i32>} : memref<4x26x18xf32, #tpu.memory_space<vmem>>, vector<1x24x16xf32>,
    %cst_22 = arith.constant 0.000000e+00 : f32
    %114 = vector.broadcast %cst_22 : f32 to vector<24x16xf32>
    %115 = vector.extract_strided_slice %5 {offsets = [0, 0], sizes = [24, 16], strides = [1, 1]} : vector<26x18xf32> to vector<24x16xf32>
    %c18 = arith.constant 18 : index
    %116 = memref.load %arg2[%c18] : memref<36xf32, #tpu.memory_space<smem>>
    %117 = vector.broadcast %116 : f32 to vector<24x16xf32>
    %118 = arith.mulf %115, %117 : vector<24x16xf32>
    %119 = arith.addf %114, %118 : vector<24x16xf32>
    %120 = vector.extract_strided_slice %5 {offsets = [0, 1], sizes = [24, 16], strides = [1, 1]} : vector<26x18xf32> to vector<24x16xf32>
    %c19 = arith.constant 19 : index
    %121 = memref.load %arg2[%c19] : memref<36xf32, #tpu.memory_space<smem>>
    %122 = vector.broadcast %121 : f32 to vector<24x16xf32>
    %123 = arith.mulf %120, %122 : vector<24x16xf32>
    %124 = arith.addf %119, %123 : vector<24x16xf32>
    %125 = vector.extract_strided_slice %5 {offsets = [0, 2], sizes = [24, 16], strides = [1, 1]} : vector<26x18xf32> to vector<24x16xf32>
    %c20 = arith.constant 20 : index
    %126 = memref.load %arg2[%c20] : memref<36xf32, #tpu.memory_space<smem>>
    %127 = vector.broadcast %126 : f32 to vector<24x16xf32>
    %128 = arith.mulf %125, %127 : vector<24x16xf32>
    %129 = arith.addf %124, %128 : vector<24x16xf32>
    %130 = vector.extract_strided_slice %5 {offsets = [1, 0], sizes = [24, 16], strides = [1, 1]} : vector<26x18xf32> to vector<24x16xf32>
    %c21 = arith.constant 21 : index
    %131 = memref.load %arg2[%c21] : memref<36xf32, #tpu.memory_space<smem>>
    %132 = vector.broadcast %131 : f32 to vector<24x16xf32>
    %133 = arith.mulf %130, %132 : vector<24x16xf32>
    %134 = arith.addf %129, %133 : vector<24x16xf32>
    %135 = vector.extract_strided_slice %5 {offsets = [1, 1], sizes = [24, 16], strides = [1, 1]} : vector<26x18xf32> to vector<24x16xf32>
    %c22 = arith.constant 22 : index
    %136 = memref.load %arg2[%c22] : memref<36xf32, #tpu.memory_space<smem>>
    %137 = vector.broadcast %136 : f32 to vector<24x16xf32>
    %138 = arith.mulf %135, %137 : vector<24x16xf32>
    %139 = arith.addf %134, %138 : vector<24x16xf32>
    %140 = vector.extract_strided_slice %5 {offsets = [1, 2], sizes = [24, 16], strides = [1, 1]} : vector<26x18xf32> to vector<24x16xf32>
    %c23 = arith.constant 23 : index
    %141 = memref.load %arg2[%c23] : memref<36xf32, #tpu.memory_space<smem>>
    %142 = vector.broadcast %141 : f32 to vector<24x16xf32>
    %143 = arith.mulf %140, %142 : vector<24x16xf32>
    %144 = arith.addf %139, %143 : vector<24x16xf32>
    %145 = vector.extract_strided_slice %5 {offsets = [2, 0], sizes = [24, 16], strides = [1, 1]} : vector<26x18xf32> to vector<24x16xf32>
    %c24 = arith.constant 24 : index
    %146 = memref.load %arg2[%c24] : memref<36xf32, #tpu.memory_space<smem>>
    %147 = vector.broadcast %146 : f32 to vector<24x16xf32>
    %148 = arith.mulf %145, %147 : vector<24x16xf32>
    %149 = arith.addf %144, %148 : vector<24x16xf32>
    %150 = vector.extract_strided_slice %5 {offsets = [2, 1], sizes = [24, 16], strides = [1, 1]} : vector<26x18xf32> to vector<24x16xf32>
    %c25 = arith.constant 25 : index
    %151 = memref.load %arg2[%c25] : memref<36xf32, #tpu.memory_space<smem>>
    %152 = vector.broadcast %151 : f32 to vector<24x16xf32>
    %153 = arith.mulf %150, %152 : vector<24x16xf32>
    %154 = arith.addf %149, %153 : vector<24x16xf32>
    %155 = vector.extract_strided_slice %5 {offsets = [2, 2], sizes = [24, 16], strides = [1, 1]} : vector<26x18xf32> to vector<24x16xf32>
    %c26 = arith.constant 26 : index
    %156 = memref.load %arg2[%c26] : memref<36xf32, #tpu.memory_space<smem>>
    %157 = vector.broadcast %156 : f32 to vector<24x16xf32>
    %158 = arith.mulf %155, %157 : vector<24x16xf32>
    %159 = arith.addf %154, %158 : vector<24x16xf32>
    %c2_23 = arith.constant 2 : index
    %160 = memref.load %arg3[%c2_23] : memref<4xf32, #tpu.memory_space<smem>>
    %161 = vector.broadcast %160 : f32 to vector<24x16xf32>
    %162 = arith.addf %159, %161 : vector<24x16xf32>
    %cst_24 = arith.constant 0.000000e+00 : f32
    %163 = vector.broadcast %cst_24 : f32 to vector<24x16xf32>
    %164 = arith.maximumf %162, %163 : vector<24x16xf32>
    %c2_25 = arith.constant 2 : index
    %c1_26 = arith.constant 1 : index
    %c1_27 = arith.constant 1 : index
    %165 = vector.load %arg11[%c2_25, %c1_26, %c1_27] : memref<4x26x18xf32, #tpu.memory_space<vmem>>, vector<1x24x16xf32>
    %166 = vector.shape_cast %165 : vector<1x24x16xf32> to vector<24x16xf32>
    %167 = vector.shape_cast %164 : vector<24x16xf32> to vector<1x24x16xf32>
    tpu.vector_store %arg11[%c2_25, %c1_26, %c1_27], %167 {strides = array<i32>} : memref<4x26x18xf32, #tpu.memory_space<vmem>>, vector<1x24x16xf32>,
    %cst_28 = arith.constant 0.000000e+00 : f32
    %168 = vector.broadcast %cst_28 : f32 to vector<24x16xf32>
    %169 = vector.extract_strided_slice %5 {offsets = [0, 0], sizes = [24, 16], strides = [1, 1]} : vector<26x18xf32> to vector<24x16xf32>
    %c27 = arith.constant 27 : index
    %170 = memref.load %arg2[%c27] : memref<36xf32, #tpu.memory_space<smem>>
    %171 = vector.broadcast %170 : f32 to vector<24x16xf32>
    %172 = arith.mulf %169, %171 : vector<24x16xf32>
    %173 = arith.addf %168, %172 : vector<24x16xf32>
    %174 = vector.extract_strided_slice %5 {offsets = [0, 1], sizes = [24, 16], strides = [1, 1]} : vector<26x18xf32> to vector<24x16xf32>
    %c28 = arith.constant 28 : index
    %175 = memref.load %arg2[%c28] : memref<36xf32, #tpu.memory_space<smem>>
    %176 = vector.broadcast %175 : f32 to vector<24x16xf32>
    %177 = arith.mulf %174, %176 : vector<24x16xf32>
    %178 = arith.addf %173, %177 : vector<24x16xf32>
    %179 = vector.extract_strided_slice %5 {offsets = [0, 2], sizes = [24, 16], strides = [1, 1]} : vector<26x18xf32> to vector<24x16xf32>
    %c29 = arith.constant 29 : index
    %180 = memref.load %arg2[%c29] : memref<36xf32, #tpu.memory_space<smem>>
    %181 = vector.broadcast %180 : f32 to vector<24x16xf32>
    %182 = arith.mulf %179, %181 : vector<24x16xf32>
    %183 = arith.addf %178, %182 : vector<24x16xf32>
    %184 = vector.extract_strided_slice %5 {offsets = [1, 0], sizes = [24, 16], strides = [1, 1]} : vector<26x18xf32> to vector<24x16xf32>
    %c30 = arith.constant 30 : index
    %185 = memref.load %arg2[%c30] : memref<36xf32, #tpu.memory_space<smem>>
    %186 = vector.broadcast %185 : f32 to vector<24x16xf32>
    %187 = arith.mulf %184, %186 : vector<24x16xf32>
    %188 = arith.addf %183, %187 : vector<24x16xf32>
    %189 = vector.extract_strided_slice %5 {offsets = [1, 1], sizes = [24, 16], strides = [1, 1]} : vector<26x18xf32> to vector<24x16xf32>
    %c31 = arith.constant 31 : index
    %190 = memref.load %arg2[%c31] : memref<36xf32, #tpu.memory_space<smem>>
    %191 = vector.broadcast %190 : f32 to vector<24x16xf32>
    %192 = arith.mulf %189, %191 : vector<24x16xf32>
    %193 = arith.addf %188, %192 : vector<24x16xf32>
    %194 = vector.extract_strided_slice %5 {offsets = [1, 2], sizes = [24, 16], strides = [1, 1]} : vector<26x18xf32> to vector<24x16xf32>
    %c32 = arith.constant 32 : index
    %195 = memref.load %arg2[%c32] : memref<36xf32, #tpu.memory_space<smem>>
    %196 = vector.broadcast %195 : f32 to vector<24x16xf32>
    %197 = arith.mulf %194, %196 : vector<24x16xf32>
    %198 = arith.addf %193, %197 : vector<24x16xf32>
    %199 = vector.extract_strided_slice %5 {offsets = [2, 0], sizes = [24, 16], strides = [1, 1]} : vector<26x18xf32> to vector<24x16xf32>
    %c33 = arith.constant 33 : index
    %200 = memref.load %arg2[%c33] : memref<36xf32, #tpu.memory_space<smem>>
    %201 = vector.broadcast %200 : f32 to vector<24x16xf32>
    %202 = arith.mulf %199, %201 : vector<24x16xf32>
    %203 = arith.addf %198, %202 : vector<24x16xf32>
    %204 = vector.extract_strided_slice %5 {offsets = [2, 1], sizes = [24, 16], strides = [1, 1]} : vector<26x18xf32> to vector<24x16xf32>
    %c34 = arith.constant 34 : index
    %205 = memref.load %arg2[%c34] : memref<36xf32, #tpu.memory_space<smem>>
    %206 = vector.broadcast %205 : f32 to vector<24x16xf32>
    %207 = arith.mulf %204, %206 : vector<24x16xf32>
    %208 = arith.addf %203, %207 : vector<24x16xf32>
    %209 = vector.extract_strided_slice %5 {offsets = [2, 2], sizes = [24, 16], strides = [1, 1]} : vector<26x18xf32> to vector<24x16xf32>
    %c35 = arith.constant 35 : index
    %210 = memref.load %arg2[%c35] : memref<36xf32, #tpu.memory_space<smem>>
    %211 = vector.broadcast %210 : f32 to vector<24x16xf32>
    %212 = arith.mulf %209, %211 : vector<24x16xf32>
    %213 = arith.addf %208, %212 : vector<24x16xf32>
    %c3_29 = arith.constant 3 : index
    %214 = memref.load %arg3[%c3_29] : memref<4xf32, #tpu.memory_space<smem>>
    %215 = vector.broadcast %214 : f32 to vector<24x16xf32>
    %216 = arith.addf %213, %215 : vector<24x16xf32>
    %cst_30 = arith.constant 0.000000e+00 : f32
    %217 = vector.broadcast %cst_30 : f32 to vector<24x16xf32>
    %218 = arith.maximumf %216, %217 : vector<24x16xf32>
    %c3_31 = arith.constant 3 : index
    %c1_32 = arith.constant 1 : index
    %c1_33 = arith.constant 1 : index
    %219 = vector.load %arg11[%c3_31, %c1_32, %c1_33] : memref<4x26x18xf32, #tpu.memory_space<vmem>>, vector<1x24x16xf32>
    %220 = vector.shape_cast %219 : vector<1x24x16xf32> to vector<24x16xf32>
    %221 = vector.shape_cast %218 : vector<24x16xf32> to vector<1x24x16xf32>
    tpu.vector_store %arg11[%c3_31, %c1_32, %c1_33], %221 {strides = array<i32>} : memref<4x26x18xf32, #tpu.memory_space<vmem>>, vector<1x24x16xf32>,
    %cst_34 = arith.constant 0.000000e+00 : f32
    %222 = vector.broadcast %cst_34 : f32 to vector<24x16xf32>
    %cst_35 = arith.constant 0.000000e+00 : f32
    %223 = vector.broadcast %cst_35 : f32 to vector<24x16xf32>
    %cst_36 = arith.constant 0.000000e+00 : f32
    %224 = vector.broadcast %cst_36 : f32 to vector<24x16xf32>
    %cst_37 = arith.constant 0.000000e+00 : f32
    %225 = vector.broadcast %cst_37 : f32 to vector<24x16xf32>
    %c0_38 = arith.constant 0 : index
    %c0_39 = arith.constant 0 : index
    %c0_40 = arith.constant 0 : index
    %226 = vector.load %arg11[%c0_38, %c0_39, %c0_40] : memref<4x26x18xf32, #tpu.memory_space<vmem>>, vector<1x26x18xf32>
    %227 = vector.shape_cast %226 : vector<1x26x18xf32> to vector<26x18xf32>
    %228 = vector.extract_strided_slice %227 {offsets = [0, 0], sizes = [24, 16], strides = [1, 1]} : vector<26x18xf32> to vector<24x16xf32>
    %c0_41 = arith.constant 0 : index
    %229 = memref.load %arg4[%c0_41] : memref<144xf32, #tpu.memory_space<smem>>
    %230 = vector.broadcast %229 : f32 to vector<24x16xf32>
    %231 = arith.mulf %228, %230 : vector<24x16xf32>
    %232 = arith.addf %222, %231 : vector<24x16xf32>
    %c36 = arith.constant 36 : index
    %233 = memref.load %arg4[%c36] : memref<144xf32, #tpu.memory_space<smem>>
    %234 = vector.broadcast %233 : f32 to vector<24x16xf32>
    %235 = arith.mulf %228, %234 : vector<24x16xf32>
    %236 = arith.addf %223, %235 : vector<24x16xf32>
    %c72 = arith.constant 72 : index
    %237 = memref.load %arg4[%c72] : memref<144xf32, #tpu.memory_space<smem>>
    %238 = vector.broadcast %237 : f32 to vector<24x16xf32>
    %239 = arith.mulf %228, %238 : vector<24x16xf32>
    %240 = arith.addf %224, %239 : vector<24x16xf32>
    %c108 = arith.constant 108 : index
    %241 = memref.load %arg4[%c108] : memref<144xf32, #tpu.memory_space<smem>>
    %242 = vector.broadcast %241 : f32 to vector<24x16xf32>
    %243 = arith.mulf %228, %242 : vector<24x16xf32>
    %244 = arith.addf %225, %243 : vector<24x16xf32>
    %245 = vector.extract_strided_slice %227 {offsets = [0, 1], sizes = [24, 16], strides = [1, 1]} : vector<26x18xf32> to vector<24x16xf32>
    %c1_42 = arith.constant 1 : index
    %246 = memref.load %arg4[%c1_42] : memref<144xf32, #tpu.memory_space<smem>>
    %247 = vector.broadcast %246 : f32 to vector<24x16xf32>
    %248 = arith.mulf %245, %247 : vector<24x16xf32>
    %249 = arith.addf %232, %248 : vector<24x16xf32>
    %c37 = arith.constant 37 : index
    %250 = memref.load %arg4[%c37] : memref<144xf32, #tpu.memory_space<smem>>
    %251 = vector.broadcast %250 : f32 to vector<24x16xf32>
    %252 = arith.mulf %245, %251 : vector<24x16xf32>
    %253 = arith.addf %236, %252 : vector<24x16xf32>
    %c73 = arith.constant 73 : index
    %254 = memref.load %arg4[%c73] : memref<144xf32, #tpu.memory_space<smem>>
    %255 = vector.broadcast %254 : f32 to vector<24x16xf32>
    %256 = arith.mulf %245, %255 : vector<24x16xf32>
    %257 = arith.addf %240, %256 : vector<24x16xf32>
    %c109 = arith.constant 109 : index
    %258 = memref.load %arg4[%c109] : memref<144xf32, #tpu.memory_space<smem>>
    %259 = vector.broadcast %258 : f32 to vector<24x16xf32>
    %260 = arith.mulf %245, %259 : vector<24x16xf32>
    %261 = arith.addf %244, %260 : vector<24x16xf32>
    %262 = vector.extract_strided_slice %227 {offsets = [0, 2], sizes = [24, 16], strides = [1, 1]} : vector<26x18xf32> to vector<24x16xf32>
    %c2_43 = arith.constant 2 : index
    %263 = memref.load %arg4[%c2_43] : memref<144xf32, #tpu.memory_space<smem>>
    %264 = vector.broadcast %263 : f32 to vector<24x16xf32>
    %265 = arith.mulf %262, %264 : vector<24x16xf32>
    %266 = arith.addf %249, %265 : vector<24x16xf32>
    %c38 = arith.constant 38 : index
    %267 = memref.load %arg4[%c38] : memref<144xf32, #tpu.memory_space<smem>>
    %268 = vector.broadcast %267 : f32 to vector<24x16xf32>
    %269 = arith.mulf %262, %268 : vector<24x16xf32>
    %270 = arith.addf %253, %269 : vector<24x16xf32>
    %c74 = arith.constant 74 : index
    %271 = memref.load %arg4[%c74] : memref<144xf32, #tpu.memory_space<smem>>
    %272 = vector.broadcast %271 : f32 to vector<24x16xf32>
    %273 = arith.mulf %262, %272 : vector<24x16xf32>
    %274 = arith.addf %257, %273 : vector<24x16xf32>
    %c110 = arith.constant 110 : index
    %275 = memref.load %arg4[%c110] : memref<144xf32, #tpu.memory_space<smem>>
    %276 = vector.broadcast %275 : f32 to vector<24x16xf32>
    %277 = arith.mulf %262, %276 : vector<24x16xf32>
    %278 = arith.addf %261, %277 : vector<24x16xf32>
    %279 = vector.extract_strided_slice %227 {offsets = [1, 0], sizes = [24, 16], strides = [1, 1]} : vector<26x18xf32> to vector<24x16xf32>
    %c3_44 = arith.constant 3 : index
    %280 = memref.load %arg4[%c3_44] : memref<144xf32, #tpu.memory_space<smem>>
    %281 = vector.broadcast %280 : f32 to vector<24x16xf32>
    %282 = arith.mulf %279, %281 : vector<24x16xf32>
    %283 = arith.addf %266, %282 : vector<24x16xf32>
    %c39 = arith.constant 39 : index
    %284 = memref.load %arg4[%c39] : memref<144xf32, #tpu.memory_space<smem>>
    %285 = vector.broadcast %284 : f32 to vector<24x16xf32>
    %286 = arith.mulf %279, %285 : vector<24x16xf32>
    %287 = arith.addf %270, %286 : vector<24x16xf32>
    %c75 = arith.constant 75 : index
    %288 = memref.load %arg4[%c75] : memref<144xf32, #tpu.memory_space<smem>>
    %289 = vector.broadcast %288 : f32 to vector<24x16xf32>
    %290 = arith.mulf %279, %289 : vector<24x16xf32>
    %291 = arith.addf %274, %290 : vector<24x16xf32>
    %c111 = arith.constant 111 : index
    %292 = memref.load %arg4[%c111] : memref<144xf32, #tpu.memory_space<smem>>
    %293 = vector.broadcast %292 : f32 to vector<24x16xf32>
    %294 = arith.mulf %279, %293 : vector<24x16xf32>
    %295 = arith.addf %278, %294 : vector<24x16xf32>
    %296 = vector.extract_strided_slice %227 {offsets = [1, 1], sizes = [24, 16], strides = [1, 1]} : vector<26x18xf32> to vector<24x16xf32>
    %c4_45 = arith.constant 4 : index
    %297 = memref.load %arg4[%c4_45] : memref<144xf32, #tpu.memory_space<smem>>
    %298 = vector.broadcast %297 : f32 to vector<24x16xf32>
    %299 = arith.mulf %296, %298 : vector<24x16xf32>
    %300 = arith.addf %283, %299 : vector<24x16xf32>
    %c40 = arith.constant 40 : index
    %301 = memref.load %arg4[%c40] : memref<144xf32, #tpu.memory_space<smem>>
    %302 = vector.broadcast %301 : f32 to vector<24x16xf32>
    %303 = arith.mulf %296, %302 : vector<24x16xf32>
    %304 = arith.addf %287, %303 : vector<24x16xf32>
    %c76 = arith.constant 76 : index
    %305 = memref.load %arg4[%c76] : memref<144xf32, #tpu.memory_space<smem>>
    %306 = vector.broadcast %305 : f32 to vector<24x16xf32>
    %307 = arith.mulf %296, %306 : vector<24x16xf32>
    %308 = arith.addf %291, %307 : vector<24x16xf32>
    %c112 = arith.constant 112 : index
    %309 = memref.load %arg4[%c112] : memref<144xf32, #tpu.memory_space<smem>>
    %310 = vector.broadcast %309 : f32 to vector<24x16xf32>
    %311 = arith.mulf %296, %310 : vector<24x16xf32>
    %312 = arith.addf %295, %311 : vector<24x16xf32>
    %313 = vector.extract_strided_slice %227 {offsets = [1, 2], sizes = [24, 16], strides = [1, 1]} : vector<26x18xf32> to vector<24x16xf32>
    %c5_46 = arith.constant 5 : index
    %314 = memref.load %arg4[%c5_46] : memref<144xf32, #tpu.memory_space<smem>>
    %315 = vector.broadcast %314 : f32 to vector<24x16xf32>
    %316 = arith.mulf %313, %315 : vector<24x16xf32>
    %317 = arith.addf %300, %316 : vector<24x16xf32>
    %c41 = arith.constant 41 : index
    %318 = memref.load %arg4[%c41] : memref<144xf32, #tpu.memory_space<smem>>
    %319 = vector.broadcast %318 : f32 to vector<24x16xf32>
    %320 = arith.mulf %313, %319 : vector<24x16xf32>
    %321 = arith.addf %304, %320 : vector<24x16xf32>
    %c77 = arith.constant 77 : index
    %322 = memref.load %arg4[%c77] : memref<144xf32, #tpu.memory_space<smem>>
    %323 = vector.broadcast %322 : f32 to vector<24x16xf32>
    %324 = arith.mulf %313, %323 : vector<24x16xf32>
    %325 = arith.addf %308, %324 : vector<24x16xf32>
    %c113 = arith.constant 113 : index
    %326 = memref.load %arg4[%c113] : memref<144xf32, #tpu.memory_space<smem>>
    %327 = vector.broadcast %326 : f32 to vector<24x16xf32>
    %328 = arith.mulf %313, %327 : vector<24x16xf32>
    %329 = arith.addf %312, %328 : vector<24x16xf32>
    %330 = vector.extract_strided_slice %227 {offsets = [2, 0], sizes = [24, 16], strides = [1, 1]} : vector<26x18xf32> to vector<24x16xf32>
    %c6_47 = arith.constant 6 : index
    %331 = memref.load %arg4[%c6_47] : memref<144xf32, #tpu.memory_space<smem>>
    %332 = vector.broadcast %331 : f32 to vector<24x16xf32>
    %333 = arith.mulf %330, %332 : vector<24x16xf32>
    %334 = arith.addf %317, %333 : vector<24x16xf32>
    %c42 = arith.constant 42 : index
    %335 = memref.load %arg4[%c42] : memref<144xf32, #tpu.memory_space<smem>>
    %336 = vector.broadcast %335 : f32 to vector<24x16xf32>
    %337 = arith.mulf %330, %336 : vector<24x16xf32>
    %338 = arith.addf %321, %337 : vector<24x16xf32>
    %c78 = arith.constant 78 : index
    %339 = memref.load %arg4[%c78] : memref<144xf32, #tpu.memory_space<smem>>
    %340 = vector.broadcast %339 : f32 to vector<24x16xf32>
    %341 = arith.mulf %330, %340 : vector<24x16xf32>
    %342 = arith.addf %325, %341 : vector<24x16xf32>
    %c114 = arith.constant 114 : index
    %343 = memref.load %arg4[%c114] : memref<144xf32, #tpu.memory_space<smem>>
    %344 = vector.broadcast %343 : f32 to vector<24x16xf32>
    %345 = arith.mulf %330, %344 : vector<24x16xf32>
    %346 = arith.addf %329, %345 : vector<24x16xf32>
    %347 = vector.extract_strided_slice %227 {offsets = [2, 1], sizes = [24, 16], strides = [1, 1]} : vector<26x18xf32> to vector<24x16xf32>
    %c7_48 = arith.constant 7 : index
    %348 = memref.load %arg4[%c7_48] : memref<144xf32, #tpu.memory_space<smem>>
    %349 = vector.broadcast %348 : f32 to vector<24x16xf32>
    %350 = arith.mulf %347, %349 : vector<24x16xf32>
    %351 = arith.addf %334, %350 : vector<24x16xf32>
    %c43 = arith.constant 43 : index
    %352 = memref.load %arg4[%c43] : memref<144xf32, #tpu.memory_space<smem>>
    %353 = vector.broadcast %352 : f32 to vector<24x16xf32>
    %354 = arith.mulf %347, %353 : vector<24x16xf32>
    %355 = arith.addf %338, %354 : vector<24x16xf32>
    %c79 = arith.constant 79 : index
    %356 = memref.load %arg4[%c79] : memref<144xf32, #tpu.memory_space<smem>>
    %357 = vector.broadcast %356 : f32 to vector<24x16xf32>
    %358 = arith.mulf %347, %357 : vector<24x16xf32>
    %359 = arith.addf %342, %358 : vector<24x16xf32>
    %c115 = arith.constant 115 : index
    %360 = memref.load %arg4[%c115] : memref<144xf32, #tpu.memory_space<smem>>
    %361 = vector.broadcast %360 : f32 to vector<24x16xf32>
    %362 = arith.mulf %347, %361 : vector<24x16xf32>
    %363 = arith.addf %346, %362 : vector<24x16xf32>
    %364 = vector.extract_strided_slice %227 {offsets = [2, 2], sizes = [24, 16], strides = [1, 1]} : vector<26x18xf32> to vector<24x16xf32>
    %c8_49 = arith.constant 8 : index
    %365 = memref.load %arg4[%c8_49] : memref<144xf32, #tpu.memory_space<smem>>
    %366 = vector.broadcast %365 : f32 to vector<24x16xf32>
    %367 = arith.mulf %364, %366 : vector<24x16xf32>
    %368 = arith.addf %351, %367 : vector<24x16xf32>
    %c44 = arith.constant 44 : index
    %369 = memref.load %arg4[%c44] : memref<144xf32, #tpu.memory_space<smem>>
    %370 = vector.broadcast %369 : f32 to vector<24x16xf32>
    %371 = arith.mulf %364, %370 : vector<24x16xf32>
    %372 = arith.addf %355, %371 : vector<24x16xf32>
    %c80 = arith.constant 80 : index
    %373 = memref.load %arg4[%c80] : memref<144xf32, #tpu.memory_space<smem>>
    %374 = vector.broadcast %373 : f32 to vector<24x16xf32>
    %375 = arith.mulf %364, %374 : vector<24x16xf32>
    %376 = arith.addf %359, %375 : vector<24x16xf32>
    %c116 = arith.constant 116 : index
    %377 = memref.load %arg4[%c116] : memref<144xf32, #tpu.memory_space<smem>>
    %378 = vector.broadcast %377 : f32 to vector<24x16xf32>
    %379 = arith.mulf %364, %378 : vector<24x16xf32>
    %380 = arith.addf %363, %379 : vector<24x16xf32>
    %c1_50 = arith.constant 1 : index
    %c0_51 = arith.constant 0 : index
    %c0_52 = arith.constant 0 : index
    %381 = vector.load %arg11[%c1_50, %c0_51, %c0_52] : memref<4x26x18xf32, #tpu.memory_space<vmem>>, vector<1x26x18xf32>
    %382 = vector.shape_cast %381 : vector<1x26x18xf32> to vector<26x18xf32>
    %383 = vector.extract_strided_slice %382 {offsets = [0, 0], sizes = [24, 16], strides = [1, 1]} : vector<26x18xf32> to vector<24x16xf32>
    %c9_53 = arith.constant 9 : index
    %384 = memref.load %arg4[%c9_53] : memref<144xf32, #tpu.memory_space<smem>>
    %385 = vector.broadcast %384 : f32 to vector<24x16xf32>
    %386 = arith.mulf %383, %385 : vector<24x16xf32>
    %387 = arith.addf %368, %386 : vector<24x16xf32>
    %c45 = arith.constant 45 : index
    %388 = memref.load %arg4[%c45] : memref<144xf32, #tpu.memory_space<smem>>
    %389 = vector.broadcast %388 : f32 to vector<24x16xf32>
    %390 = arith.mulf %383, %389 : vector<24x16xf32>
    %391 = arith.addf %372, %390 : vector<24x16xf32>
    %c81 = arith.constant 81 : index
    %392 = memref.load %arg4[%c81] : memref<144xf32, #tpu.memory_space<smem>>
    %393 = vector.broadcast %392 : f32 to vector<24x16xf32>
    %394 = arith.mulf %383, %393 : vector<24x16xf32>
    %395 = arith.addf %376, %394 : vector<24x16xf32>
    %c117 = arith.constant 117 : index
    %396 = memref.load %arg4[%c117] : memref<144xf32, #tpu.memory_space<smem>>
    %397 = vector.broadcast %396 : f32 to vector<24x16xf32>
    %398 = arith.mulf %383, %397 : vector<24x16xf32>
    %399 = arith.addf %380, %398 : vector<24x16xf32>
    %400 = vector.extract_strided_slice %382 {offsets = [0, 1], sizes = [24, 16], strides = [1, 1]} : vector<26x18xf32> to vector<24x16xf32>
    %c10_54 = arith.constant 10 : index
    %401 = memref.load %arg4[%c10_54] : memref<144xf32, #tpu.memory_space<smem>>
    %402 = vector.broadcast %401 : f32 to vector<24x16xf32>
    %403 = arith.mulf %400, %402 : vector<24x16xf32>
    %404 = arith.addf %387, %403 : vector<24x16xf32>
    %c46 = arith.constant 46 : index
    %405 = memref.load %arg4[%c46] : memref<144xf32, #tpu.memory_space<smem>>
    %406 = vector.broadcast %405 : f32 to vector<24x16xf32>
    %407 = arith.mulf %400, %406 : vector<24x16xf32>
    %408 = arith.addf %391, %407 : vector<24x16xf32>
    %c82 = arith.constant 82 : index
    %409 = memref.load %arg4[%c82] : memref<144xf32, #tpu.memory_space<smem>>
    %410 = vector.broadcast %409 : f32 to vector<24x16xf32>
    %411 = arith.mulf %400, %410 : vector<24x16xf32>
    %412 = arith.addf %395, %411 : vector<24x16xf32>
    %c118 = arith.constant 118 : index
    %413 = memref.load %arg4[%c118] : memref<144xf32, #tpu.memory_space<smem>>
    %414 = vector.broadcast %413 : f32 to vector<24x16xf32>
    %415 = arith.mulf %400, %414 : vector<24x16xf32>
    %416 = arith.addf %399, %415 : vector<24x16xf32>
    %417 = vector.extract_strided_slice %382 {offsets = [0, 2], sizes = [24, 16], strides = [1, 1]} : vector<26x18xf32> to vector<24x16xf32>
    %c11_55 = arith.constant 11 : index
    %418 = memref.load %arg4[%c11_55] : memref<144xf32, #tpu.memory_space<smem>>
    %419 = vector.broadcast %418 : f32 to vector<24x16xf32>
    %420 = arith.mulf %417, %419 : vector<24x16xf32>
    %421 = arith.addf %404, %420 : vector<24x16xf32>
    %c47 = arith.constant 47 : index
    %422 = memref.load %arg4[%c47] : memref<144xf32, #tpu.memory_space<smem>>
    %423 = vector.broadcast %422 : f32 to vector<24x16xf32>
    %424 = arith.mulf %417, %423 : vector<24x16xf32>
    %425 = arith.addf %408, %424 : vector<24x16xf32>
    %c83 = arith.constant 83 : index
    %426 = memref.load %arg4[%c83] : memref<144xf32, #tpu.memory_space<smem>>
    %427 = vector.broadcast %426 : f32 to vector<24x16xf32>
    %428 = arith.mulf %417, %427 : vector<24x16xf32>
    %429 = arith.addf %412, %428 : vector<24x16xf32>
    %c119 = arith.constant 119 : index
    %430 = memref.load %arg4[%c119] : memref<144xf32, #tpu.memory_space<smem>>
    %431 = vector.broadcast %430 : f32 to vector<24x16xf32>
    %432 = arith.mulf %417, %431 : vector<24x16xf32>
    %433 = arith.addf %416, %432 : vector<24x16xf32>
    %434 = vector.extract_strided_slice %382 {offsets = [1, 0], sizes = [24, 16], strides = [1, 1]} : vector<26x18xf32> to vector<24x16xf32>
    %c12_56 = arith.constant 12 : index
    %435 = memref.load %arg4[%c12_56] : memref<144xf32, #tpu.memory_space<smem>>
    %436 = vector.broadcast %435 : f32 to vector<24x16xf32>
    %437 = arith.mulf %434, %436 : vector<24x16xf32>
    %438 = arith.addf %421, %437 : vector<24x16xf32>
    %c48 = arith.constant 48 : index
    %439 = memref.load %arg4[%c48] : memref<144xf32, #tpu.memory_space<smem>>
    %440 = vector.broadcast %439 : f32 to vector<24x16xf32>
    %441 = arith.mulf %434, %440 : vector<24x16xf32>
    %442 = arith.addf %425, %441 : vector<24x16xf32>
    %c84 = arith.constant 84 : index
    %443 = memref.load %arg4[%c84] : memref<144xf32, #tpu.memory_space<smem>>
    %444 = vector.broadcast %443 : f32 to vector<24x16xf32>
    %445 = arith.mulf %434, %444 : vector<24x16xf32>
    %446 = arith.addf %429, %445 : vector<24x16xf32>
    %c120 = arith.constant 120 : index
    %447 = memref.load %arg4[%c120] : memref<144xf32, #tpu.memory_space<smem>>
    %448 = vector.broadcast %447 : f32 to vector<24x16xf32>
    %449 = arith.mulf %434, %448 : vector<24x16xf32>
    %450 = arith.addf %433, %449 : vector<24x16xf32>
    %451 = vector.extract_strided_slice %382 {offsets = [1, 1], sizes = [24, 16], strides = [1, 1]} : vector<26x18xf32> to vector<24x16xf32>
    %c13_57 = arith.constant 13 : index
    %452 = memref.load %arg4[%c13_57] : memref<144xf32, #tpu.memory_space<smem>>
    %453 = vector.broadcast %452 : f32 to vector<24x16xf32>
    %454 = arith.mulf %451, %453 : vector<24x16xf32>
    %455 = arith.addf %438, %454 : vector<24x16xf32>
    %c49 = arith.constant 49 : index
    %456 = memref.load %arg4[%c49] : memref<144xf32, #tpu.memory_space<smem>>
    %457 = vector.broadcast %456 : f32 to vector<24x16xf32>
    %458 = arith.mulf %451, %457 : vector<24x16xf32>
    %459 = arith.addf %442, %458 : vector<24x16xf32>
    %c85 = arith.constant 85 : index
    %460 = memref.load %arg4[%c85] : memref<144xf32, #tpu.memory_space<smem>>
    %461 = vector.broadcast %460 : f32 to vector<24x16xf32>
    %462 = arith.mulf %451, %461 : vector<24x16xf32>
    %463 = arith.addf %446, %462 : vector<24x16xf32>
    %c121 = arith.constant 121 : index
    %464 = memref.load %arg4[%c121] : memref<144xf32, #tpu.memory_space<smem>>
    %465 = vector.broadcast %464 : f32 to vector<24x16xf32>
    %466 = arith.mulf %451, %465 : vector<24x16xf32>
    %467 = arith.addf %450, %466 : vector<24x16xf32>
    %468 = vector.extract_strided_slice %382 {offsets = [1, 2], sizes = [24, 16], strides = [1, 1]} : vector<26x18xf32> to vector<24x16xf32>
    %c14_58 = arith.constant 14 : index
    %469 = memref.load %arg4[%c14_58] : memref<144xf32, #tpu.memory_space<smem>>
    %470 = vector.broadcast %469 : f32 to vector<24x16xf32>
    %471 = arith.mulf %468, %470 : vector<24x16xf32>
    %472 = arith.addf %455, %471 : vector<24x16xf32>
    %c50 = arith.constant 50 : index
    %473 = memref.load %arg4[%c50] : memref<144xf32, #tpu.memory_space<smem>>
    %474 = vector.broadcast %473 : f32 to vector<24x16xf32>
    %475 = arith.mulf %468, %474 : vector<24x16xf32>
    %476 = arith.addf %459, %475 : vector<24x16xf32>
    %c86 = arith.constant 86 : index
    %477 = memref.load %arg4[%c86] : memref<144xf32, #tpu.memory_space<smem>>
    %478 = vector.broadcast %477 : f32 to vector<24x16xf32>
    %479 = arith.mulf %468, %478 : vector<24x16xf32>
    %480 = arith.addf %463, %479 : vector<24x16xf32>
    %c122 = arith.constant 122 : index
    %481 = memref.load %arg4[%c122] : memref<144xf32, #tpu.memory_space<smem>>
    %482 = vector.broadcast %481 : f32 to vector<24x16xf32>
    %483 = arith.mulf %468, %482 : vector<24x16xf32>
    %484 = arith.addf %467, %483 : vector<24x16xf32>
    %485 = vector.extract_strided_slice %382 {offsets = [2, 0], sizes = [24, 16], strides = [1, 1]} : vector<26x18xf32> to vector<24x16xf32>
    %c15_59 = arith.constant 15 : index
    %486 = memref.load %arg4[%c15_59] : memref<144xf32, #tpu.memory_space<smem>>
    %487 = vector.broadcast %486 : f32 to vector<24x16xf32>
    %488 = arith.mulf %485, %487 : vector<24x16xf32>
    %489 = arith.addf %472, %488 : vector<24x16xf32>
    %c51 = arith.constant 51 : index
    %490 = memref.load %arg4[%c51] : memref<144xf32, #tpu.memory_space<smem>>
    %491 = vector.broadcast %490 : f32 to vector<24x16xf32>
    %492 = arith.mulf %485, %491 : vector<24x16xf32>
    %493 = arith.addf %476, %492 : vector<24x16xf32>
    %c87 = arith.constant 87 : index
    %494 = memref.load %arg4[%c87] : memref<144xf32, #tpu.memory_space<smem>>
    %495 = vector.broadcast %494 : f32 to vector<24x16xf32>
    %496 = arith.mulf %485, %495 : vector<24x16xf32>
    %497 = arith.addf %480, %496 : vector<24x16xf32>
    %c123 = arith.constant 123 : index
    %498 = memref.load %arg4[%c123] : memref<144xf32, #tpu.memory_space<smem>>
    %499 = vector.broadcast %498 : f32 to vector<24x16xf32>
    %500 = arith.mulf %485, %499 : vector<24x16xf32>
    %501 = arith.addf %484, %500 : vector<24x16xf32>
    %502 = vector.extract_strided_slice %382 {offsets = [2, 1], sizes = [24, 16], strides = [1, 1]} : vector<26x18xf32> to vector<24x16xf32>
    %c16_60 = arith.constant 16 : index
    %503 = memref.load %arg4[%c16_60] : memref<144xf32, #tpu.memory_space<smem>>
    %504 = vector.broadcast %503 : f32 to vector<24x16xf32>
    %505 = arith.mulf %502, %504 : vector<24x16xf32>
    %506 = arith.addf %489, %505 : vector<24x16xf32>
    %c52 = arith.constant 52 : index
    %507 = memref.load %arg4[%c52] : memref<144xf32, #tpu.memory_space<smem>>
    %508 = vector.broadcast %507 : f32 to vector<24x16xf32>
    %509 = arith.mulf %502, %508 : vector<24x16xf32>
    %510 = arith.addf %493, %509 : vector<24x16xf32>
    %c88 = arith.constant 88 : index
    %511 = memref.load %arg4[%c88] : memref<144xf32, #tpu.memory_space<smem>>
    %512 = vector.broadcast %511 : f32 to vector<24x16xf32>
    %513 = arith.mulf %502, %512 : vector<24x16xf32>
    %514 = arith.addf %497, %513 : vector<24x16xf32>
    %c124 = arith.constant 124 : index
    %515 = memref.load %arg4[%c124] : memref<144xf32, #tpu.memory_space<smem>>
    %516 = vector.broadcast %515 : f32 to vector<24x16xf32>
    %517 = arith.mulf %502, %516 : vector<24x16xf32>
    %518 = arith.addf %501, %517 : vector<24x16xf32>
    %519 = vector.extract_strided_slice %382 {offsets = [2, 2], sizes = [24, 16], strides = [1, 1]} : vector<26x18xf32> to vector<24x16xf32>
    %c17_61 = arith.constant 17 : index
    %520 = memref.load %arg4[%c17_61] : memref<144xf32, #tpu.memory_space<smem>>
    %521 = vector.broadcast %520 : f32 to vector<24x16xf32>
    %522 = arith.mulf %519, %521 : vector<24x16xf32>
    %523 = arith.addf %506, %522 : vector<24x16xf32>
    %c53 = arith.constant 53 : index
    %524 = memref.load %arg4[%c53] : memref<144xf32, #tpu.memory_space<smem>>
    %525 = vector.broadcast %524 : f32 to vector<24x16xf32>
    %526 = arith.mulf %519, %525 : vector<24x16xf32>
    %527 = arith.addf %510, %526 : vector<24x16xf32>
    %c89 = arith.constant 89 : index
    %528 = memref.load %arg4[%c89] : memref<144xf32, #tpu.memory_space<smem>>
    %529 = vector.broadcast %528 : f32 to vector<24x16xf32>
    %530 = arith.mulf %519, %529 : vector<24x16xf32>
    %531 = arith.addf %514, %530 : vector<24x16xf32>
    %c125 = arith.constant 125 : index
    %532 = memref.load %arg4[%c125] : memref<144xf32, #tpu.memory_space<smem>>
    %533 = vector.broadcast %532 : f32 to vector<24x16xf32>
    %534 = arith.mulf %519, %533 : vector<24x16xf32>
    %535 = arith.addf %518, %534 : vector<24x16xf32>
    %c2_62 = arith.constant 2 : index
    %c0_63 = arith.constant 0 : index
    %c0_64 = arith.constant 0 : index
    %536 = vector.load %arg11[%c2_62, %c0_63, %c0_64] : memref<4x26x18xf32, #tpu.memory_space<vmem>>, vector<1x26x18xf32>
    %537 = vector.shape_cast %536 : vector<1x26x18xf32> to vector<26x18xf32>
    %538 = vector.extract_strided_slice %537 {offsets = [0, 0], sizes = [24, 16], strides = [1, 1]} : vector<26x18xf32> to vector<24x16xf32>
    %c18_65 = arith.constant 18 : index
    %539 = memref.load %arg4[%c18_65] : memref<144xf32, #tpu.memory_space<smem>>
    %540 = vector.broadcast %539 : f32 to vector<24x16xf32>
    %541 = arith.mulf %538, %540 : vector<24x16xf32>
    %542 = arith.addf %523, %541 : vector<24x16xf32>
    %c54 = arith.constant 54 : index
    %543 = memref.load %arg4[%c54] : memref<144xf32, #tpu.memory_space<smem>>
    %544 = vector.broadcast %543 : f32 to vector<24x16xf32>
    %545 = arith.mulf %538, %544 : vector<24x16xf32>
    %546 = arith.addf %527, %545 : vector<24x16xf32>
    %c90 = arith.constant 90 : index
    %547 = memref.load %arg4[%c90] : memref<144xf32, #tpu.memory_space<smem>>
    %548 = vector.broadcast %547 : f32 to vector<24x16xf32>
    %549 = arith.mulf %538, %548 : vector<24x16xf32>
    %550 = arith.addf %531, %549 : vector<24x16xf32>
    %c126 = arith.constant 126 : index
    %551 = memref.load %arg4[%c126] : memref<144xf32, #tpu.memory_space<smem>>
    %552 = vector.broadcast %551 : f32 to vector<24x16xf32>
    %553 = arith.mulf %538, %552 : vector<24x16xf32>
    %554 = arith.addf %535, %553 : vector<24x16xf32>
    %555 = vector.extract_strided_slice %537 {offsets = [0, 1], sizes = [24, 16], strides = [1, 1]} : vector<26x18xf32> to vector<24x16xf32>
    %c19_66 = arith.constant 19 : index
    %556 = memref.load %arg4[%c19_66] : memref<144xf32, #tpu.memory_space<smem>>
    %557 = vector.broadcast %556 : f32 to vector<24x16xf32>
    %558 = arith.mulf %555, %557 : vector<24x16xf32>
    %559 = arith.addf %542, %558 : vector<24x16xf32>
    %c55 = arith.constant 55 : index
    %560 = memref.load %arg4[%c55] : memref<144xf32, #tpu.memory_space<smem>>
    %561 = vector.broadcast %560 : f32 to vector<24x16xf32>
    %562 = arith.mulf %555, %561 : vector<24x16xf32>
    %563 = arith.addf %546, %562 : vector<24x16xf32>
    %c91 = arith.constant 91 : index
    %564 = memref.load %arg4[%c91] : memref<144xf32, #tpu.memory_space<smem>>
    %565 = vector.broadcast %564 : f32 to vector<24x16xf32>
    %566 = arith.mulf %555, %565 : vector<24x16xf32>
    %567 = arith.addf %550, %566 : vector<24x16xf32>
    %c127 = arith.constant 127 : index
    %568 = memref.load %arg4[%c127] : memref<144xf32, #tpu.memory_space<smem>>
    %569 = vector.broadcast %568 : f32 to vector<24x16xf32>
    %570 = arith.mulf %555, %569 : vector<24x16xf32>
    %571 = arith.addf %554, %570 : vector<24x16xf32>
    %572 = vector.extract_strided_slice %537 {offsets = [0, 2], sizes = [24, 16], strides = [1, 1]} : vector<26x18xf32> to vector<24x16xf32>
    %c20_67 = arith.constant 20 : index
    %573 = memref.load %arg4[%c20_67] : memref<144xf32, #tpu.memory_space<smem>>
    %574 = vector.broadcast %573 : f32 to vector<24x16xf32>
    %575 = arith.mulf %572, %574 : vector<24x16xf32>
    %576 = arith.addf %559, %575 : vector<24x16xf32>
    %c56 = arith.constant 56 : index
    %577 = memref.load %arg4[%c56] : memref<144xf32, #tpu.memory_space<smem>>
    %578 = vector.broadcast %577 : f32 to vector<24x16xf32>
    %579 = arith.mulf %572, %578 : vector<24x16xf32>
    %580 = arith.addf %563, %579 : vector<24x16xf32>
    %c92 = arith.constant 92 : index
    %581 = memref.load %arg4[%c92] : memref<144xf32, #tpu.memory_space<smem>>
    %582 = vector.broadcast %581 : f32 to vector<24x16xf32>
    %583 = arith.mulf %572, %582 : vector<24x16xf32>
    %584 = arith.addf %567, %583 : vector<24x16xf32>
    %c128 = arith.constant 128 : index
    %585 = memref.load %arg4[%c128] : memref<144xf32, #tpu.memory_space<smem>>
    %586 = vector.broadcast %585 : f32 to vector<24x16xf32>
    %587 = arith.mulf %572, %586 : vector<24x16xf32>
    %588 = arith.addf %571, %587 : vector<24x16xf32>
    %589 = vector.extract_strided_slice %537 {offsets = [1, 0], sizes = [24, 16], strides = [1, 1]} : vector<26x18xf32> to vector<24x16xf32>
    %c21_68 = arith.constant 21 : index
    %590 = memref.load %arg4[%c21_68] : memref<144xf32, #tpu.memory_space<smem>>
    %591 = vector.broadcast %590 : f32 to vector<24x16xf32>
    %592 = arith.mulf %589, %591 : vector<24x16xf32>
    %593 = arith.addf %576, %592 : vector<24x16xf32>
    %c57 = arith.constant 57 : index
    %594 = memref.load %arg4[%c57] : memref<144xf32, #tpu.memory_space<smem>>
    %595 = vector.broadcast %594 : f32 to vector<24x16xf32>
    %596 = arith.mulf %589, %595 : vector<24x16xf32>
    %597 = arith.addf %580, %596 : vector<24x16xf32>
    %c93 = arith.constant 93 : index
    %598 = memref.load %arg4[%c93] : memref<144xf32, #tpu.memory_space<smem>>
    %599 = vector.broadcast %598 : f32 to vector<24x16xf32>
    %600 = arith.mulf %589, %599 : vector<24x16xf32>
    %601 = arith.addf %584, %600 : vector<24x16xf32>
    %c129 = arith.constant 129 : index
    %602 = memref.load %arg4[%c129] : memref<144xf32, #tpu.memory_space<smem>>
    %603 = vector.broadcast %602 : f32 to vector<24x16xf32>
    %604 = arith.mulf %589, %603 : vector<24x16xf32>
    %605 = arith.addf %588, %604 : vector<24x16xf32>
    %606 = vector.extract_strided_slice %537 {offsets = [1, 1], sizes = [24, 16], strides = [1, 1]} : vector<26x18xf32> to vector<24x16xf32>
    %c22_69 = arith.constant 22 : index
    %607 = memref.load %arg4[%c22_69] : memref<144xf32, #tpu.memory_space<smem>>
    %608 = vector.broadcast %607 : f32 to vector<24x16xf32>
    %609 = arith.mulf %606, %608 : vector<24x16xf32>
    %610 = arith.addf %593, %609 : vector<24x16xf32>
    %c58 = arith.constant 58 : index
    %611 = memref.load %arg4[%c58] : memref<144xf32, #tpu.memory_space<smem>>
    %612 = vector.broadcast %611 : f32 to vector<24x16xf32>
    %613 = arith.mulf %606, %612 : vector<24x16xf32>
    %614 = arith.addf %597, %613 : vector<24x16xf32>
    %c94 = arith.constant 94 : index
    %615 = memref.load %arg4[%c94] : memref<144xf32, #tpu.memory_space<smem>>
    %616 = vector.broadcast %615 : f32 to vector<24x16xf32>
    %617 = arith.mulf %606, %616 : vector<24x16xf32>
    %618 = arith.addf %601, %617 : vector<24x16xf32>
    %c130 = arith.constant 130 : index
    %619 = memref.load %arg4[%c130] : memref<144xf32, #tpu.memory_space<smem>>
    %620 = vector.broadcast %619 : f32 to vector<24x16xf32>
    %621 = arith.mulf %606, %620 : vector<24x16xf32>
    %622 = arith.addf %605, %621 : vector<24x16xf32>
    %623 = vector.extract_strided_slice %537 {offsets = [1, 2], sizes = [24, 16], strides = [1, 1]} : vector<26x18xf32> to vector<24x16xf32>
    %c23_70 = arith.constant 23 : index
    %624 = memref.load %arg4[%c23_70] : memref<144xf32, #tpu.memory_space<smem>>
    %625 = vector.broadcast %624 : f32 to vector<24x16xf32>
    %626 = arith.mulf %623, %625 : vector<24x16xf32>
    %627 = arith.addf %610, %626 : vector<24x16xf32>
    %c59 = arith.constant 59 : index
    %628 = memref.load %arg4[%c59] : memref<144xf32, #tpu.memory_space<smem>>
    %629 = vector.broadcast %628 : f32 to vector<24x16xf32>
    %630 = arith.mulf %623, %629 : vector<24x16xf32>
    %631 = arith.addf %614, %630 : vector<24x16xf32>
    %c95 = arith.constant 95 : index
    %632 = memref.load %arg4[%c95] : memref<144xf32, #tpu.memory_space<smem>>
    %633 = vector.broadcast %632 : f32 to vector<24x16xf32>
    %634 = arith.mulf %623, %633 : vector<24x16xf32>
    %635 = arith.addf %618, %634 : vector<24x16xf32>
    %c131 = arith.constant 131 : index
    %636 = memref.load %arg4[%c131] : memref<144xf32, #tpu.memory_space<smem>>
    %637 = vector.broadcast %636 : f32 to vector<24x16xf32>
    %638 = arith.mulf %623, %637 : vector<24x16xf32>
    %639 = arith.addf %622, %638 : vector<24x16xf32>
    %640 = vector.extract_strided_slice %537 {offsets = [2, 0], sizes = [24, 16], strides = [1, 1]} : vector<26x18xf32> to vector<24x16xf32>
    %c24_71 = arith.constant 24 : index
    %641 = memref.load %arg4[%c24_71] : memref<144xf32, #tpu.memory_space<smem>>
    %642 = vector.broadcast %641 : f32 to vector<24x16xf32>
    %643 = arith.mulf %640, %642 : vector<24x16xf32>
    %644 = arith.addf %627, %643 : vector<24x16xf32>
    %c60 = arith.constant 60 : index
    %645 = memref.load %arg4[%c60] : memref<144xf32, #tpu.memory_space<smem>>
    %646 = vector.broadcast %645 : f32 to vector<24x16xf32>
    %647 = arith.mulf %640, %646 : vector<24x16xf32>
    %648 = arith.addf %631, %647 : vector<24x16xf32>
    %c96 = arith.constant 96 : index
    %649 = memref.load %arg4[%c96] : memref<144xf32, #tpu.memory_space<smem>>
    %650 = vector.broadcast %649 : f32 to vector<24x16xf32>
    %651 = arith.mulf %640, %650 : vector<24x16xf32>
    %652 = arith.addf %635, %651 : vector<24x16xf32>
    %c132 = arith.constant 132 : index
    %653 = memref.load %arg4[%c132] : memref<144xf32, #tpu.memory_space<smem>>
    %654 = vector.broadcast %653 : f32 to vector<24x16xf32>
    %655 = arith.mulf %640, %654 : vector<24x16xf32>
    %656 = arith.addf %639, %655 : vector<24x16xf32>
    %657 = vector.extract_strided_slice %537 {offsets = [2, 1], sizes = [24, 16], strides = [1, 1]} : vector<26x18xf32> to vector<24x16xf32>
    %c25_72 = arith.constant 25 : index
    %658 = memref.load %arg4[%c25_72] : memref<144xf32, #tpu.memory_space<smem>>
    %659 = vector.broadcast %658 : f32 to vector<24x16xf32>
    %660 = arith.mulf %657, %659 : vector<24x16xf32>
    %661 = arith.addf %644, %660 : vector<24x16xf32>
    %c61 = arith.constant 61 : index
    %662 = memref.load %arg4[%c61] : memref<144xf32, #tpu.memory_space<smem>>
    %663 = vector.broadcast %662 : f32 to vector<24x16xf32>
    %664 = arith.mulf %657, %663 : vector<24x16xf32>
    %665 = arith.addf %648, %664 : vector<24x16xf32>
    %c97 = arith.constant 97 : index
    %666 = memref.load %arg4[%c97] : memref<144xf32, #tpu.memory_space<smem>>
    %667 = vector.broadcast %666 : f32 to vector<24x16xf32>
    %668 = arith.mulf %657, %667 : vector<24x16xf32>
    %669 = arith.addf %652, %668 : vector<24x16xf32>
    %c133 = arith.constant 133 : index
    %670 = memref.load %arg4[%c133] : memref<144xf32, #tpu.memory_space<smem>>
    %671 = vector.broadcast %670 : f32 to vector<24x16xf32>
    %672 = arith.mulf %657, %671 : vector<24x16xf32>
    %673 = arith.addf %656, %672 : vector<24x16xf32>
    %674 = vector.extract_strided_slice %537 {offsets = [2, 2], sizes = [24, 16], strides = [1, 1]} : vector<26x18xf32> to vector<24x16xf32>
    %c26_73 = arith.constant 26 : index
    %675 = memref.load %arg4[%c26_73] : memref<144xf32, #tpu.memory_space<smem>>
    %676 = vector.broadcast %675 : f32 to vector<24x16xf32>
    %677 = arith.mulf %674, %676 : vector<24x16xf32>
    %678 = arith.addf %661, %677 : vector<24x16xf32>
    %c62 = arith.constant 62 : index
    %679 = memref.load %arg4[%c62] : memref<144xf32, #tpu.memory_space<smem>>
    %680 = vector.broadcast %679 : f32 to vector<24x16xf32>
    %681 = arith.mulf %674, %680 : vector<24x16xf32>
    %682 = arith.addf %665, %681 : vector<24x16xf32>
    %c98 = arith.constant 98 : index
    %683 = memref.load %arg4[%c98] : memref<144xf32, #tpu.memory_space<smem>>
    %684 = vector.broadcast %683 : f32 to vector<24x16xf32>
    %685 = arith.mulf %674, %684 : vector<24x16xf32>
    %686 = arith.addf %669, %685 : vector<24x16xf32>
    %c134 = arith.constant 134 : index
    %687 = memref.load %arg4[%c134] : memref<144xf32, #tpu.memory_space<smem>>
    %688 = vector.broadcast %687 : f32 to vector<24x16xf32>
    %689 = arith.mulf %674, %688 : vector<24x16xf32>
    %690 = arith.addf %673, %689 : vector<24x16xf32>
    %c3_74 = arith.constant 3 : index
    %c0_75 = arith.constant 0 : index
    %c0_76 = arith.constant 0 : index
    %691 = vector.load %arg11[%c3_74, %c0_75, %c0_76] : memref<4x26x18xf32, #tpu.memory_space<vmem>>, vector<1x26x18xf32>
    %692 = vector.shape_cast %691 : vector<1x26x18xf32> to vector<26x18xf32>
    %693 = vector.extract_strided_slice %692 {offsets = [0, 0], sizes = [24, 16], strides = [1, 1]} : vector<26x18xf32> to vector<24x16xf32>
    %c27_77 = arith.constant 27 : index
    %694 = memref.load %arg4[%c27_77] : memref<144xf32, #tpu.memory_space<smem>>
    %695 = vector.broadcast %694 : f32 to vector<24x16xf32>
    %696 = arith.mulf %693, %695 : vector<24x16xf32>
    %697 = arith.addf %678, %696 : vector<24x16xf32>
    %c63 = arith.constant 63 : index
    %698 = memref.load %arg4[%c63] : memref<144xf32, #tpu.memory_space<smem>>
    %699 = vector.broadcast %698 : f32 to vector<24x16xf32>
    %700 = arith.mulf %693, %699 : vector<24x16xf32>
    %701 = arith.addf %682, %700 : vector<24x16xf32>
    %c99 = arith.constant 99 : index
    %702 = memref.load %arg4[%c99] : memref<144xf32, #tpu.memory_space<smem>>
    %703 = vector.broadcast %702 : f32 to vector<24x16xf32>
    %704 = arith.mulf %693, %703 : vector<24x16xf32>
    %705 = arith.addf %686, %704 : vector<24x16xf32>
    %c135 = arith.constant 135 : index
    %706 = memref.load %arg4[%c135] : memref<144xf32, #tpu.memory_space<smem>>
    %707 = vector.broadcast %706 : f32 to vector<24x16xf32>
    %708 = arith.mulf %693, %707 : vector<24x16xf32>
    %709 = arith.addf %690, %708 : vector<24x16xf32>
    %710 = vector.extract_strided_slice %692 {offsets = [0, 1], sizes = [24, 16], strides = [1, 1]} : vector<26x18xf32> to vector<24x16xf32>
    %c28_78 = arith.constant 28 : index
    %711 = memref.load %arg4[%c28_78] : memref<144xf32, #tpu.memory_space<smem>>
    %712 = vector.broadcast %711 : f32 to vector<24x16xf32>
    %713 = arith.mulf %710, %712 : vector<24x16xf32>
    %714 = arith.addf %697, %713 : vector<24x16xf32>
    %c64 = arith.constant 64 : index
    %715 = memref.load %arg4[%c64] : memref<144xf32, #tpu.memory_space<smem>>
    %716 = vector.broadcast %715 : f32 to vector<24x16xf32>
    %717 = arith.mulf %710, %716 : vector<24x16xf32>
    %718 = arith.addf %701, %717 : vector<24x16xf32>
    %c100 = arith.constant 100 : index
    %719 = memref.load %arg4[%c100] : memref<144xf32, #tpu.memory_space<smem>>
    %720 = vector.broadcast %719 : f32 to vector<24x16xf32>
    %721 = arith.mulf %710, %720 : vector<24x16xf32>
    %722 = arith.addf %705, %721 : vector<24x16xf32>
    %c136 = arith.constant 136 : index
    %723 = memref.load %arg4[%c136] : memref<144xf32, #tpu.memory_space<smem>>
    %724 = vector.broadcast %723 : f32 to vector<24x16xf32>
    %725 = arith.mulf %710, %724 : vector<24x16xf32>
    %726 = arith.addf %709, %725 : vector<24x16xf32>
    %727 = vector.extract_strided_slice %692 {offsets = [0, 2], sizes = [24, 16], strides = [1, 1]} : vector<26x18xf32> to vector<24x16xf32>
    %c29_79 = arith.constant 29 : index
    %728 = memref.load %arg4[%c29_79] : memref<144xf32, #tpu.memory_space<smem>>
    %729 = vector.broadcast %728 : f32 to vector<24x16xf32>
    %730 = arith.mulf %727, %729 : vector<24x16xf32>
    %731 = arith.addf %714, %730 : vector<24x16xf32>
    %c65 = arith.constant 65 : index
    %732 = memref.load %arg4[%c65] : memref<144xf32, #tpu.memory_space<smem>>
    %733 = vector.broadcast %732 : f32 to vector<24x16xf32>
    %734 = arith.mulf %727, %733 : vector<24x16xf32>
    %735 = arith.addf %718, %734 : vector<24x16xf32>
    %c101 = arith.constant 101 : index
    %736 = memref.load %arg4[%c101] : memref<144xf32, #tpu.memory_space<smem>>
    %737 = vector.broadcast %736 : f32 to vector<24x16xf32>
    %738 = arith.mulf %727, %737 : vector<24x16xf32>
    %739 = arith.addf %722, %738 : vector<24x16xf32>
    %c137 = arith.constant 137 : index
    %740 = memref.load %arg4[%c137] : memref<144xf32, #tpu.memory_space<smem>>
    %741 = vector.broadcast %740 : f32 to vector<24x16xf32>
    %742 = arith.mulf %727, %741 : vector<24x16xf32>
    %743 = arith.addf %726, %742 : vector<24x16xf32>
    %744 = vector.extract_strided_slice %692 {offsets = [1, 0], sizes = [24, 16], strides = [1, 1]} : vector<26x18xf32> to vector<24x16xf32>
    %c30_80 = arith.constant 30 : index
    %745 = memref.load %arg4[%c30_80] : memref<144xf32, #tpu.memory_space<smem>>
    %746 = vector.broadcast %745 : f32 to vector<24x16xf32>
    %747 = arith.mulf %744, %746 : vector<24x16xf32>
    %748 = arith.addf %731, %747 : vector<24x16xf32>
    %c66 = arith.constant 66 : index
    %749 = memref.load %arg4[%c66] : memref<144xf32, #tpu.memory_space<smem>>
    %750 = vector.broadcast %749 : f32 to vector<24x16xf32>
    %751 = arith.mulf %744, %750 : vector<24x16xf32>
    %752 = arith.addf %735, %751 : vector<24x16xf32>
    %c102 = arith.constant 102 : index
    %753 = memref.load %arg4[%c102] : memref<144xf32, #tpu.memory_space<smem>>
    %754 = vector.broadcast %753 : f32 to vector<24x16xf32>
    %755 = arith.mulf %744, %754 : vector<24x16xf32>
    %756 = arith.addf %739, %755 : vector<24x16xf32>
    %c138 = arith.constant 138 : index
    %757 = memref.load %arg4[%c138] : memref<144xf32, #tpu.memory_space<smem>>
    %758 = vector.broadcast %757 : f32 to vector<24x16xf32>
    %759 = arith.mulf %744, %758 : vector<24x16xf32>
    %760 = arith.addf %743, %759 : vector<24x16xf32>
    %761 = vector.extract_strided_slice %692 {offsets = [1, 1], sizes = [24, 16], strides = [1, 1]} : vector<26x18xf32> to vector<24x16xf32>
    %c31_81 = arith.constant 31 : index
    %762 = memref.load %arg4[%c31_81] : memref<144xf32, #tpu.memory_space<smem>>
    %763 = vector.broadcast %762 : f32 to vector<24x16xf32>
    %764 = arith.mulf %761, %763 : vector<24x16xf32>
    %765 = arith.addf %748, %764 : vector<24x16xf32>
    %c67 = arith.constant 67 : index
    %766 = memref.load %arg4[%c67] : memref<144xf32, #tpu.memory_space<smem>>
    %767 = vector.broadcast %766 : f32 to vector<24x16xf32>
    %768 = arith.mulf %761, %767 : vector<24x16xf32>
    %769 = arith.addf %752, %768 : vector<24x16xf32>
    %c103 = arith.constant 103 : index
    %770 = memref.load %arg4[%c103] : memref<144xf32, #tpu.memory_space<smem>>
    %771 = vector.broadcast %770 : f32 to vector<24x16xf32>
    %772 = arith.mulf %761, %771 : vector<24x16xf32>
    %773 = arith.addf %756, %772 : vector<24x16xf32>
    %c139 = arith.constant 139 : index
    %774 = memref.load %arg4[%c139] : memref<144xf32, #tpu.memory_space<smem>>
    %775 = vector.broadcast %774 : f32 to vector<24x16xf32>
    %776 = arith.mulf %761, %775 : vector<24x16xf32>
    %777 = arith.addf %760, %776 : vector<24x16xf32>
    %778 = vector.extract_strided_slice %692 {offsets = [1, 2], sizes = [24, 16], strides = [1, 1]} : vector<26x18xf32> to vector<24x16xf32>
    %c32_82 = arith.constant 32 : index
    %779 = memref.load %arg4[%c32_82] : memref<144xf32, #tpu.memory_space<smem>>
    %780 = vector.broadcast %779 : f32 to vector<24x16xf32>
    %781 = arith.mulf %778, %780 : vector<24x16xf32>
    %782 = arith.addf %765, %781 : vector<24x16xf32>
    %c68 = arith.constant 68 : index
    %783 = memref.load %arg4[%c68] : memref<144xf32, #tpu.memory_space<smem>>
    %784 = vector.broadcast %783 : f32 to vector<24x16xf32>
    %785 = arith.mulf %778, %784 : vector<24x16xf32>
    %786 = arith.addf %769, %785 : vector<24x16xf32>
    %c104 = arith.constant 104 : index
    %787 = memref.load %arg4[%c104] : memref<144xf32, #tpu.memory_space<smem>>
    %788 = vector.broadcast %787 : f32 to vector<24x16xf32>
    %789 = arith.mulf %778, %788 : vector<24x16xf32>
    %790 = arith.addf %773, %789 : vector<24x16xf32>
    %c140 = arith.constant 140 : index
    %791 = memref.load %arg4[%c140] : memref<144xf32, #tpu.memory_space<smem>>
    %792 = vector.broadcast %791 : f32 to vector<24x16xf32>
    %793 = arith.mulf %778, %792 : vector<24x16xf32>
    %794 = arith.addf %777, %793 : vector<24x16xf32>
    %795 = vector.extract_strided_slice %692 {offsets = [2, 0], sizes = [24, 16], strides = [1, 1]} : vector<26x18xf32> to vector<24x16xf32>
    %c33_83 = arith.constant 33 : index
    %796 = memref.load %arg4[%c33_83] : memref<144xf32, #tpu.memory_space<smem>>
    %797 = vector.broadcast %796 : f32 to vector<24x16xf32>
    %798 = arith.mulf %795, %797 : vector<24x16xf32>
    %799 = arith.addf %782, %798 : vector<24x16xf32>
    %c69 = arith.constant 69 : index
    %800 = memref.load %arg4[%c69] : memref<144xf32, #tpu.memory_space<smem>>
    %801 = vector.broadcast %800 : f32 to vector<24x16xf32>
    %802 = arith.mulf %795, %801 : vector<24x16xf32>
    %803 = arith.addf %786, %802 : vector<24x16xf32>
    %c105 = arith.constant 105 : index
    %804 = memref.load %arg4[%c105] : memref<144xf32, #tpu.memory_space<smem>>
    %805 = vector.broadcast %804 : f32 to vector<24x16xf32>
    %806 = arith.mulf %795, %805 : vector<24x16xf32>
    %807 = arith.addf %790, %806 : vector<24x16xf32>
    %c141 = arith.constant 141 : index
    %808 = memref.load %arg4[%c141] : memref<144xf32, #tpu.memory_space<smem>>
    %809 = vector.broadcast %808 : f32 to vector<24x16xf32>
    %810 = arith.mulf %795, %809 : vector<24x16xf32>
    %811 = arith.addf %794, %810 : vector<24x16xf32>
    %812 = vector.extract_strided_slice %692 {offsets = [2, 1], sizes = [24, 16], strides = [1, 1]} : vector<26x18xf32> to vector<24x16xf32>
    %c34_84 = arith.constant 34 : index
    %813 = memref.load %arg4[%c34_84] : memref<144xf32, #tpu.memory_space<smem>>
    %814 = vector.broadcast %813 : f32 to vector<24x16xf32>
    %815 = arith.mulf %812, %814 : vector<24x16xf32>
    %816 = arith.addf %799, %815 : vector<24x16xf32>
    %c70 = arith.constant 70 : index
    %817 = memref.load %arg4[%c70] : memref<144xf32, #tpu.memory_space<smem>>
    %818 = vector.broadcast %817 : f32 to vector<24x16xf32>
    %819 = arith.mulf %812, %818 : vector<24x16xf32>
    %820 = arith.addf %803, %819 : vector<24x16xf32>
    %c106 = arith.constant 106 : index
    %821 = memref.load %arg4[%c106] : memref<144xf32, #tpu.memory_space<smem>>
    %822 = vector.broadcast %821 : f32 to vector<24x16xf32>
    %823 = arith.mulf %812, %822 : vector<24x16xf32>
    %824 = arith.addf %807, %823 : vector<24x16xf32>
    %c142 = arith.constant 142 : index
    %825 = memref.load %arg4[%c142] : memref<144xf32, #tpu.memory_space<smem>>
    %826 = vector.broadcast %825 : f32 to vector<24x16xf32>
    %827 = arith.mulf %812, %826 : vector<24x16xf32>
    %828 = arith.addf %811, %827 : vector<24x16xf32>
    %829 = vector.extract_strided_slice %692 {offsets = [2, 2], sizes = [24, 16], strides = [1, 1]} : vector<26x18xf32> to vector<24x16xf32>
    %c35_85 = arith.constant 35 : index
    %830 = memref.load %arg4[%c35_85] : memref<144xf32, #tpu.memory_space<smem>>
    %831 = vector.broadcast %830 : f32 to vector<24x16xf32>
    %832 = arith.mulf %829, %831 : vector<24x16xf32>
    %833 = arith.addf %816, %832 : vector<24x16xf32>
    %c71 = arith.constant 71 : index
    %834 = memref.load %arg4[%c71] : memref<144xf32, #tpu.memory_space<smem>>
    %835 = vector.broadcast %834 : f32 to vector<24x16xf32>
    %836 = arith.mulf %829, %835 : vector<24x16xf32>
    %837 = arith.addf %820, %836 : vector<24x16xf32>
    %c107 = arith.constant 107 : index
    %838 = memref.load %arg4[%c107] : memref<144xf32, #tpu.memory_space<smem>>
    %839 = vector.broadcast %838 : f32 to vector<24x16xf32>
    %840 = arith.mulf %829, %839 : vector<24x16xf32>
    %841 = arith.addf %824, %840 : vector<24x16xf32>
    %c143 = arith.constant 143 : index
    %842 = memref.load %arg4[%c143] : memref<144xf32, #tpu.memory_space<smem>>
    %843 = vector.broadcast %842 : f32 to vector<24x16xf32>
    %844 = arith.mulf %829, %843 : vector<24x16xf32>
    %845 = arith.addf %828, %844 : vector<24x16xf32>
    %c0_86 = arith.constant 0 : index
    %846 = memref.load %arg5[%c0_86] : memref<4xf32, #tpu.memory_space<smem>>
    %847 = vector.broadcast %846 : f32 to vector<24x16xf32>
    %848 = arith.addf %833, %847 : vector<24x16xf32>
    %cst_87 = arith.constant 0.000000e+00 : f32
    %849 = vector.broadcast %cst_87 : f32 to vector<24x16xf32>
    %850 = arith.maximumf %848, %849 : vector<24x16xf32>
    %c0_88 = arith.constant 0 : index
    %c1_89 = arith.constant 1 : index
    %c1_90 = arith.constant 1 : index
    %851 = vector.load %arg12[%c0_88, %c1_89, %c1_90] : memref<4x26x18xf32, #tpu.memory_space<vmem>>, vector<1x24x16xf32>
    %852 = vector.shape_cast %851 : vector<1x24x16xf32> to vector<24x16xf32>
    %853 = vector.shape_cast %850 : vector<24x16xf32> to vector<1x24x16xf32>
    tpu.vector_store %arg12[%c0_88, %c1_89, %c1_90], %853 {strides = array<i32>} : memref<4x26x18xf32, #tpu.memory_space<vmem>>, vector<1x24x16xf32>,
    %c1_91 = arith.constant 1 : index
    %854 = memref.load %arg5[%c1_91] : memref<4xf32, #tpu.memory_space<smem>>
    %855 = vector.broadcast %854 : f32 to vector<24x16xf32>
    %856 = arith.addf %837, %855 : vector<24x16xf32>
    %cst_92 = arith.constant 0.000000e+00 : f32
    %857 = vector.broadcast %cst_92 : f32 to vector<24x16xf32>
    %858 = arith.maximumf %856, %857 : vector<24x16xf32>
    %c1_93 = arith.constant 1 : index
    %c1_94 = arith.constant 1 : index
    %c1_95 = arith.constant 1 : index
    %859 = vector.load %arg12[%c1_93, %c1_94, %c1_95] : memref<4x26x18xf32, #tpu.memory_space<vmem>>, vector<1x24x16xf32>
    %860 = vector.shape_cast %859 : vector<1x24x16xf32> to vector<24x16xf32>
    %861 = vector.shape_cast %858 : vector<24x16xf32> to vector<1x24x16xf32>
    tpu.vector_store %arg12[%c1_93, %c1_94, %c1_95], %861 {strides = array<i32>} : memref<4x26x18xf32, #tpu.memory_space<vmem>>, vector<1x24x16xf32>,
    %c2_96 = arith.constant 2 : index
    %862 = memref.load %arg5[%c2_96] : memref<4xf32, #tpu.memory_space<smem>>
    %863 = vector.broadcast %862 : f32 to vector<24x16xf32>
    %864 = arith.addf %841, %863 : vector<24x16xf32>
    %cst_97 = arith.constant 0.000000e+00 : f32
    %865 = vector.broadcast %cst_97 : f32 to vector<24x16xf32>
    %866 = arith.maximumf %864, %865 : vector<24x16xf32>
    %c2_98 = arith.constant 2 : index
    %c1_99 = arith.constant 1 : index
    %c1_100 = arith.constant 1 : index
    %867 = vector.load %arg12[%c2_98, %c1_99, %c1_100] : memref<4x26x18xf32, #tpu.memory_space<vmem>>, vector<1x24x16xf32>
    %868 = vector.shape_cast %867 : vector<1x24x16xf32> to vector<24x16xf32>
    %869 = vector.shape_cast %866 : vector<24x16xf32> to vector<1x24x16xf32>
    tpu.vector_store %arg12[%c2_98, %c1_99, %c1_100], %869 {strides = array<i32>} : memref<4x26x18xf32, #tpu.memory_space<vmem>>, vector<1x24x16xf32>,
    %c3_101 = arith.constant 3 : index
    %870 = memref.load %arg5[%c3_101] : memref<4xf32, #tpu.memory_space<smem>>
    %871 = vector.broadcast %870 : f32 to vector<24x16xf32>
    %872 = arith.addf %845, %871 : vector<24x16xf32>
    %cst_102 = arith.constant 0.000000e+00 : f32
    %873 = vector.broadcast %cst_102 : f32 to vector<24x16xf32>
    %874 = arith.maximumf %872, %873 : vector<24x16xf32>
    %c3_103 = arith.constant 3 : index
    %c1_104 = arith.constant 1 : index
    %c1_105 = arith.constant 1 : index
    %875 = vector.load %arg12[%c3_103, %c1_104, %c1_105] : memref<4x26x18xf32, #tpu.memory_space<vmem>>, vector<1x24x16xf32>
    %876 = vector.shape_cast %875 : vector<1x24x16xf32> to vector<24x16xf32>
    %877 = vector.shape_cast %874 : vector<24x16xf32> to vector<1x24x16xf32>
    tpu.vector_store %arg12[%c3_103, %c1_104, %c1_105], %877 {strides = array<i32>} : memref<4x26x18xf32, #tpu.memory_space<vmem>>, vector<1x24x16xf32>,
    %cst_106 = arith.constant 0.000000e+00 : f32
    %878 = vector.broadcast %cst_106 : f32 to vector<24x16xf32>
    %c0_107 = arith.constant 0 : index
    %c0_108 = arith.constant 0 : index
    %c0_109 = arith.constant 0 : index
    %879 = vector.load %arg12[%c0_107, %c0_108, %c0_109] : memref<4x26x18xf32, #tpu.memory_space<vmem>>, vector<1x26x18xf32>
    %880 = vector.shape_cast %879 : vector<1x26x18xf32> to vector<26x18xf32>
    %881 = vector.extract_strided_slice %880 {offsets = [0, 0], sizes = [24, 16], strides = [1, 1]} : vector<26x18xf32> to vector<24x16xf32>
    %c0_110 = arith.constant 0 : index
    %882 = memref.load %arg6[%c0_110] : memref<36xf32, #tpu.memory_space<smem>>
    %883 = vector.broadcast %882 : f32 to vector<24x16xf32>
    %884 = arith.mulf %881, %883 : vector<24x16xf32>
    %885 = arith.addf %878, %884 : vector<24x16xf32>
    %886 = vector.extract_strided_slice %880 {offsets = [0, 1], sizes = [24, 16], strides = [1, 1]} : vector<26x18xf32> to vector<24x16xf32>
    %c1_111 = arith.constant 1 : index
    %887 = memref.load %arg6[%c1_111] : memref<36xf32, #tpu.memory_space<smem>>
    %888 = vector.broadcast %887 : f32 to vector<24x16xf32>
    %889 = arith.mulf %886, %888 : vector<24x16xf32>
    %890 = arith.addf %885, %889 : vector<24x16xf32>
    %891 = vector.extract_strided_slice %880 {offsets = [0, 2], sizes = [24, 16], strides = [1, 1]} : vector<26x18xf32> to vector<24x16xf32>
    %c2_112 = arith.constant 2 : index
    %892 = memref.load %arg6[%c2_112] : memref<36xf32, #tpu.memory_space<smem>>
    %893 = vector.broadcast %892 : f32 to vector<24x16xf32>
    %894 = arith.mulf %891, %893 : vector<24x16xf32>
    %895 = arith.addf %890, %894 : vector<24x16xf32>
    %896 = vector.extract_strided_slice %880 {offsets = [1, 0], sizes = [24, 16], strides = [1, 1]} : vector<26x18xf32> to vector<24x16xf32>
    %c3_113 = arith.constant 3 : index
    %897 = memref.load %arg6[%c3_113] : memref<36xf32, #tpu.memory_space<smem>>
    %898 = vector.broadcast %897 : f32 to vector<24x16xf32>
    %899 = arith.mulf %896, %898 : vector<24x16xf32>
    %900 = arith.addf %895, %899 : vector<24x16xf32>
    %901 = vector.extract_strided_slice %880 {offsets = [1, 1], sizes = [24, 16], strides = [1, 1]} : vector<26x18xf32> to vector<24x16xf32>
    %c4_114 = arith.constant 4 : index
    %902 = memref.load %arg6[%c4_114] : memref<36xf32, #tpu.memory_space<smem>>
    %903 = vector.broadcast %902 : f32 to vector<24x16xf32>
    %904 = arith.mulf %901, %903 : vector<24x16xf32>
    %905 = arith.addf %900, %904 : vector<24x16xf32>
    %906 = vector.extract_strided_slice %880 {offsets = [1, 2], sizes = [24, 16], strides = [1, 1]} : vector<26x18xf32> to vector<24x16xf32>
    %c5_115 = arith.constant 5 : index
    %907 = memref.load %arg6[%c5_115] : memref<36xf32, #tpu.memory_space<smem>>
    %908 = vector.broadcast %907 : f32 to vector<24x16xf32>
    %909 = arith.mulf %906, %908 : vector<24x16xf32>
    %910 = arith.addf %905, %909 : vector<24x16xf32>
    %911 = vector.extract_strided_slice %880 {offsets = [2, 0], sizes = [24, 16], strides = [1, 1]} : vector<26x18xf32> to vector<24x16xf32>
    %c6_116 = arith.constant 6 : index
    %912 = memref.load %arg6[%c6_116] : memref<36xf32, #tpu.memory_space<smem>>
    %913 = vector.broadcast %912 : f32 to vector<24x16xf32>
    %914 = arith.mulf %911, %913 : vector<24x16xf32>
    %915 = arith.addf %910, %914 : vector<24x16xf32>
    %916 = vector.extract_strided_slice %880 {offsets = [2, 1], sizes = [24, 16], strides = [1, 1]} : vector<26x18xf32> to vector<24x16xf32>
    %c7_117 = arith.constant 7 : index
    %917 = memref.load %arg6[%c7_117] : memref<36xf32, #tpu.memory_space<smem>>
    %918 = vector.broadcast %917 : f32 to vector<24x16xf32>
    %919 = arith.mulf %916, %918 : vector<24x16xf32>
    %920 = arith.addf %915, %919 : vector<24x16xf32>
    %921 = vector.extract_strided_slice %880 {offsets = [2, 2], sizes = [24, 16], strides = [1, 1]} : vector<26x18xf32> to vector<24x16xf32>
    %c8_118 = arith.constant 8 : index
    %922 = memref.load %arg6[%c8_118] : memref<36xf32, #tpu.memory_space<smem>>
    %923 = vector.broadcast %922 : f32 to vector<24x16xf32>
    %924 = arith.mulf %921, %923 : vector<24x16xf32>
    %925 = arith.addf %920, %924 : vector<24x16xf32>
    %c1_119 = arith.constant 1 : index
    %c0_120 = arith.constant 0 : index
    %c0_121 = arith.constant 0 : index
    %926 = vector.load %arg12[%c1_119, %c0_120, %c0_121] : memref<4x26x18xf32, #tpu.memory_space<vmem>>, vector<1x26x18xf32>
    %927 = vector.shape_cast %926 : vector<1x26x18xf32> to vector<26x18xf32>
    %928 = vector.extract_strided_slice %927 {offsets = [0, 0], sizes = [24, 16], strides = [1, 1]} : vector<26x18xf32> to vector<24x16xf32>
    %c9_122 = arith.constant 9 : index
    %929 = memref.load %arg6[%c9_122] : memref<36xf32, #tpu.memory_space<smem>>
    %930 = vector.broadcast %929 : f32 to vector<24x16xf32>
    %931 = arith.mulf %928, %930 : vector<24x16xf32>
    %932 = arith.addf %925, %931 : vector<24x16xf32>
    %933 = vector.extract_strided_slice %927 {offsets = [0, 1], sizes = [24, 16], strides = [1, 1]} : vector<26x18xf32> to vector<24x16xf32>
    %c10_123 = arith.constant 10 : index
    %934 = memref.load %arg6[%c10_123] : memref<36xf32, #tpu.memory_space<smem>>
    %935 = vector.broadcast %934 : f32 to vector<24x16xf32>
    %936 = arith.mulf %933, %935 : vector<24x16xf32>
    %937 = arith.addf %932, %936 : vector<24x16xf32>
    %938 = vector.extract_strided_slice %927 {offsets = [0, 2], sizes = [24, 16], strides = [1, 1]} : vector<26x18xf32> to vector<24x16xf32>
    %c11_124 = arith.constant 11 : index
    %939 = memref.load %arg6[%c11_124] : memref<36xf32, #tpu.memory_space<smem>>
    %940 = vector.broadcast %939 : f32 to vector<24x16xf32>
    %941 = arith.mulf %938, %940 : vector<24x16xf32>
    %942 = arith.addf %937, %941 : vector<24x16xf32>
    %943 = vector.extract_strided_slice %927 {offsets = [1, 0], sizes = [24, 16], strides = [1, 1]} : vector<26x18xf32> to vector<24x16xf32>
    %c12_125 = arith.constant 12 : index
    %944 = memref.load %arg6[%c12_125] : memref<36xf32, #tpu.memory_space<smem>>
    %945 = vector.broadcast %944 : f32 to vector<24x16xf32>
    %946 = arith.mulf %943, %945 : vector<24x16xf32>
    %947 = arith.addf %942, %946 : vector<24x16xf32>
    %948 = vector.extract_strided_slice %927 {offsets = [1, 1], sizes = [24, 16], strides = [1, 1]} : vector<26x18xf32> to vector<24x16xf32>
    %c13_126 = arith.constant 13 : index
    %949 = memref.load %arg6[%c13_126] : memref<36xf32, #tpu.memory_space<smem>>
    %950 = vector.broadcast %949 : f32 to vector<24x16xf32>
    %951 = arith.mulf %948, %950 : vector<24x16xf32>
    %952 = arith.addf %947, %951 : vector<24x16xf32>
    %953 = vector.extract_strided_slice %927 {offsets = [1, 2], sizes = [24, 16], strides = [1, 1]} : vector<26x18xf32> to vector<24x16xf32>
    %c14_127 = arith.constant 14 : index
    %954 = memref.load %arg6[%c14_127] : memref<36xf32, #tpu.memory_space<smem>>
    %955 = vector.broadcast %954 : f32 to vector<24x16xf32>
    %956 = arith.mulf %953, %955 : vector<24x16xf32>
    %957 = arith.addf %952, %956 : vector<24x16xf32>
    %958 = vector.extract_strided_slice %927 {offsets = [2, 0], sizes = [24, 16], strides = [1, 1]} : vector<26x18xf32> to vector<24x16xf32>
    %c15_128 = arith.constant 15 : index
    %959 = memref.load %arg6[%c15_128] : memref<36xf32, #tpu.memory_space<smem>>
    %960 = vector.broadcast %959 : f32 to vector<24x16xf32>
    %961 = arith.mulf %958, %960 : vector<24x16xf32>
    %962 = arith.addf %957, %961 : vector<24x16xf32>
    %963 = vector.extract_strided_slice %927 {offsets = [2, 1], sizes = [24, 16], strides = [1, 1]} : vector<26x18xf32> to vector<24x16xf32>
    %c16_129 = arith.constant 16 : index
    %964 = memref.load %arg6[%c16_129] : memref<36xf32, #tpu.memory_space<smem>>
    %965 = vector.broadcast %964 : f32 to vector<24x16xf32>
    %966 = arith.mulf %963, %965 : vector<24x16xf32>
    %967 = arith.addf %962, %966 : vector<24x16xf32>
    %968 = vector.extract_strided_slice %927 {offsets = [2, 2], sizes = [24, 16], strides = [1, 1]} : vector<26x18xf32> to vector<24x16xf32>
    %c17_130 = arith.constant 17 : index
    %969 = memref.load %arg6[%c17_130] : memref<36xf32, #tpu.memory_space<smem>>
    %970 = vector.broadcast %969 : f32 to vector<24x16xf32>
    %971 = arith.mulf %968, %970 : vector<24x16xf32>
    %972 = arith.addf %967, %971 : vector<24x16xf32>
    %c2_131 = arith.constant 2 : index
    %c0_132 = arith.constant 0 : index
    %c0_133 = arith.constant 0 : index
    %973 = vector.load %arg12[%c2_131, %c0_132, %c0_133] : memref<4x26x18xf32, #tpu.memory_space<vmem>>, vector<1x26x18xf32>
    %974 = vector.shape_cast %973 : vector<1x26x18xf32> to vector<26x18xf32>
    %975 = vector.extract_strided_slice %974 {offsets = [0, 0], sizes = [24, 16], strides = [1, 1]} : vector<26x18xf32> to vector<24x16xf32>
    %c18_134 = arith.constant 18 : index
    %976 = memref.load %arg6[%c18_134] : memref<36xf32, #tpu.memory_space<smem>>
    %977 = vector.broadcast %976 : f32 to vector<24x16xf32>
    %978 = arith.mulf %975, %977 : vector<24x16xf32>
    %979 = arith.addf %972, %978 : vector<24x16xf32>
    %980 = vector.extract_strided_slice %974 {offsets = [0, 1], sizes = [24, 16], strides = [1, 1]} : vector<26x18xf32> to vector<24x16xf32>
    %c19_135 = arith.constant 19 : index
    %981 = memref.load %arg6[%c19_135] : memref<36xf32, #tpu.memory_space<smem>>
    %982 = vector.broadcast %981 : f32 to vector<24x16xf32>
    %983 = arith.mulf %980, %982 : vector<24x16xf32>
    %984 = arith.addf %979, %983 : vector<24x16xf32>
    %985 = vector.extract_strided_slice %974 {offsets = [0, 2], sizes = [24, 16], strides = [1, 1]} : vector<26x18xf32> to vector<24x16xf32>
    %c20_136 = arith.constant 20 : index
    %986 = memref.load %arg6[%c20_136] : memref<36xf32, #tpu.memory_space<smem>>
    %987 = vector.broadcast %986 : f32 to vector<24x16xf32>
    %988 = arith.mulf %985, %987 : vector<24x16xf32>
    %989 = arith.addf %984, %988 : vector<24x16xf32>
    %990 = vector.extract_strided_slice %974 {offsets = [1, 0], sizes = [24, 16], strides = [1, 1]} : vector<26x18xf32> to vector<24x16xf32>
    %c21_137 = arith.constant 21 : index
    %991 = memref.load %arg6[%c21_137] : memref<36xf32, #tpu.memory_space<smem>>
    %992 = vector.broadcast %991 : f32 to vector<24x16xf32>
    %993 = arith.mulf %990, %992 : vector<24x16xf32>
    %994 = arith.addf %989, %993 : vector<24x16xf32>
    %995 = vector.extract_strided_slice %974 {offsets = [1, 1], sizes = [24, 16], strides = [1, 1]} : vector<26x18xf32> to vector<24x16xf32>
    %c22_138 = arith.constant 22 : index
    %996 = memref.load %arg6[%c22_138] : memref<36xf32, #tpu.memory_space<smem>>
    %997 = vector.broadcast %996 : f32 to vector<24x16xf32>
    %998 = arith.mulf %995, %997 : vector<24x16xf32>
    %999 = arith.addf %994, %998 : vector<24x16xf32>
    %1000 = vector.extract_strided_slice %974 {offsets = [1, 2], sizes = [24, 16], strides = [1, 1]} : vector<26x18xf32> to vector<24x16xf32>
    %c23_139 = arith.constant 23 : index
    %1001 = memref.load %arg6[%c23_139] : memref<36xf32, #tpu.memory_space<smem>>
    %1002 = vector.broadcast %1001 : f32 to vector<24x16xf32>
    %1003 = arith.mulf %1000, %1002 : vector<24x16xf32>
    %1004 = arith.addf %999, %1003 : vector<24x16xf32>
    %1005 = vector.extract_strided_slice %974 {offsets = [2, 0], sizes = [24, 16], strides = [1, 1]} : vector<26x18xf32> to vector<24x16xf32>
    %c24_140 = arith.constant 24 : index
    %1006 = memref.load %arg6[%c24_140] : memref<36xf32, #tpu.memory_space<smem>>
    %1007 = vector.broadcast %1006 : f32 to vector<24x16xf32>
    %1008 = arith.mulf %1005, %1007 : vector<24x16xf32>
    %1009 = arith.addf %1004, %1008 : vector<24x16xf32>
    %1010 = vector.extract_strided_slice %974 {offsets = [2, 1], sizes = [24, 16], strides = [1, 1]} : vector<26x18xf32> to vector<24x16xf32>
    %c25_141 = arith.constant 25 : index
    %1011 = memref.load %arg6[%c25_141] : memref<36xf32, #tpu.memory_space<smem>>
    %1012 = vector.broadcast %1011 : f32 to vector<24x16xf32>
    %1013 = arith.mulf %1010, %1012 : vector<24x16xf32>
    %1014 = arith.addf %1009, %1013 : vector<24x16xf32>
    %1015 = vector.extract_strided_slice %974 {offsets = [2, 2], sizes = [24, 16], strides = [1, 1]} : vector<26x18xf32> to vector<24x16xf32>
    %c26_142 = arith.constant 26 : index
    %1016 = memref.load %arg6[%c26_142] : memref<36xf32, #tpu.memory_space<smem>>
    %1017 = vector.broadcast %1016 : f32 to vector<24x16xf32>
    %1018 = arith.mulf %1015, %1017 : vector<24x16xf32>
    %1019 = arith.addf %1014, %1018 : vector<24x16xf32>
    %c3_143 = arith.constant 3 : index
    %c0_144 = arith.constant 0 : index
    %c0_145 = arith.constant 0 : index
    %1020 = vector.load %arg12[%c3_143, %c0_144, %c0_145] : memref<4x26x18xf32, #tpu.memory_space<vmem>>, vector<1x26x18xf32>
    %1021 = vector.shape_cast %1020 : vector<1x26x18xf32> to vector<26x18xf32>
    %1022 = vector.extract_strided_slice %1021 {offsets = [0, 0], sizes = [24, 16], strides = [1, 1]} : vector<26x18xf32> to vector<24x16xf32>
    %c27_146 = arith.constant 27 : index
    %1023 = memref.load %arg6[%c27_146] : memref<36xf32, #tpu.memory_space<smem>>
    %1024 = vector.broadcast %1023 : f32 to vector<24x16xf32>
    %1025 = arith.mulf %1022, %1024 : vector<24x16xf32>
    %1026 = arith.addf %1019, %1025 : vector<24x16xf32>
    %1027 = vector.extract_strided_slice %1021 {offsets = [0, 1], sizes = [24, 16], strides = [1, 1]} : vector<26x18xf32> to vector<24x16xf32>
    %c28_147 = arith.constant 28 : index
    %1028 = memref.load %arg6[%c28_147] : memref<36xf32, #tpu.memory_space<smem>>
    %1029 = vector.broadcast %1028 : f32 to vector<24x16xf32>
    %1030 = arith.mulf %1027, %1029 : vector<24x16xf32>
    %1031 = arith.addf %1026, %1030 : vector<24x16xf32>
    %1032 = vector.extract_strided_slice %1021 {offsets = [0, 2], sizes = [24, 16], strides = [1, 1]} : vector<26x18xf32> to vector<24x16xf32>
    %c29_148 = arith.constant 29 : index
    %1033 = memref.load %arg6[%c29_148] : memref<36xf32, #tpu.memory_space<smem>>
    %1034 = vector.broadcast %1033 : f32 to vector<24x16xf32>
    %1035 = arith.mulf %1032, %1034 : vector<24x16xf32>
    %1036 = arith.addf %1031, %1035 : vector<24x16xf32>
    %1037 = vector.extract_strided_slice %1021 {offsets = [1, 0], sizes = [24, 16], strides = [1, 1]} : vector<26x18xf32> to vector<24x16xf32>
    %c30_149 = arith.constant 30 : index
    %1038 = memref.load %arg6[%c30_149] : memref<36xf32, #tpu.memory_space<smem>>
    %1039 = vector.broadcast %1038 : f32 to vector<24x16xf32>
    %1040 = arith.mulf %1037, %1039 : vector<24x16xf32>
    %1041 = arith.addf %1036, %1040 : vector<24x16xf32>
    %1042 = vector.extract_strided_slice %1021 {offsets = [1, 1], sizes = [24, 16], strides = [1, 1]} : vector<26x18xf32> to vector<24x16xf32>
    %c31_150 = arith.constant 31 : index
    %1043 = memref.load %arg6[%c31_150] : memref<36xf32, #tpu.memory_space<smem>>
    %1044 = vector.broadcast %1043 : f32 to vector<24x16xf32>
    %1045 = arith.mulf %1042, %1044 : vector<24x16xf32>
    %1046 = arith.addf %1041, %1045 : vector<24x16xf32>
    %1047 = vector.extract_strided_slice %1021 {offsets = [1, 2], sizes = [24, 16], strides = [1, 1]} : vector<26x18xf32> to vector<24x16xf32>
    %c32_151 = arith.constant 32 : index
    %1048 = memref.load %arg6[%c32_151] : memref<36xf32, #tpu.memory_space<smem>>
    %1049 = vector.broadcast %1048 : f32 to vector<24x16xf32>
    %1050 = arith.mulf %1047, %1049 : vector<24x16xf32>
    %1051 = arith.addf %1046, %1050 : vector<24x16xf32>
    %1052 = vector.extract_strided_slice %1021 {offsets = [2, 0], sizes = [24, 16], strides = [1, 1]} : vector<26x18xf32> to vector<24x16xf32>
    %c33_152 = arith.constant 33 : index
    %1053 = memref.load %arg6[%c33_152] : memref<36xf32, #tpu.memory_space<smem>>
    %1054 = vector.broadcast %1053 : f32 to vector<24x16xf32>
    %1055 = arith.mulf %1052, %1054 : vector<24x16xf32>
    %1056 = arith.addf %1051, %1055 : vector<24x16xf32>
    %1057 = vector.extract_strided_slice %1021 {offsets = [2, 1], sizes = [24, 16], strides = [1, 1]} : vector<26x18xf32> to vector<24x16xf32>
    %c34_153 = arith.constant 34 : index
    %1058 = memref.load %arg6[%c34_153] : memref<36xf32, #tpu.memory_space<smem>>
    %1059 = vector.broadcast %1058 : f32 to vector<24x16xf32>
    %1060 = arith.mulf %1057, %1059 : vector<24x16xf32>
    %1061 = arith.addf %1056, %1060 : vector<24x16xf32>
    %1062 = vector.extract_strided_slice %1021 {offsets = [2, 2], sizes = [24, 16], strides = [1, 1]} : vector<26x18xf32> to vector<24x16xf32>
    %c35_154 = arith.constant 35 : index
    %1063 = memref.load %arg6[%c35_154] : memref<36xf32, #tpu.memory_space<smem>>
    %1064 = vector.broadcast %1063 : f32 to vector<24x16xf32>
    %1065 = arith.mulf %1062, %1064 : vector<24x16xf32>
    %1066 = arith.addf %1061, %1065 : vector<24x16xf32>
    %c0_155 = arith.constant 0 : index
    %1067 = memref.load %arg7[%c0_155] : memref<1xf32, #tpu.memory_space<smem>>
    %1068 = vector.broadcast %1067 : f32 to vector<24x16xf32>
    %1069 = arith.addf %1066, %1068 : vector<24x16xf32>
    %cst_156 = arith.constant 0.000000e+00 : f32
    %1070 = vector.broadcast %cst_156 : f32 to vector<24x16xf32>
    %1071 = arith.maximumf %1069, %1070 : vector<24x16xf32>
    %c0_157 = arith.constant 0 : index
    %c0_158 = arith.constant 0 : index
    %1072 = vector.load %arg13[%c0_157, %c0_158] : memref<24x16xf32, #tpu.memory_space<vmem>>, vector<24x16xf32>
    tpu.vector_store %arg13[%c0_157, %c0_158], %1071 {strides = array<i32>} : memref<24x16xf32, #tpu.memory_space<vmem>>, vector<24x16xf32>,
    %c0_159 = arith.constant 0 : index
    %c0_160 = arith.constant 0 : index
    %1073 = tpu.strided_load %arg13[%c0_159, %c0_160] {strides = array<i32: 2, 1>} : memref<24x16xf32, #tpu.memory_space<vmem>>, vector<12x16xf32>
    %c1_161 = arith.constant 1 : index
    %c0_162 = arith.constant 0 : index
    %1074 = tpu.strided_load %arg13[%c1_161, %c0_162] {strides = array<i32: 2, 1>} : memref<24x16xf32, #tpu.memory_space<vmem>>, vector<12x16xf32>
    %1075 = arith.maximumf %1073, %1074 : vector<12x16xf32>
    %c0_163 = arith.constant 0 : index
    %c0_164 = arith.constant 0 : index
    %1076 = vector.load %arg8[%c0_163, %c0_164] : memref<16x8xf32, #tpu.memory_space<vmem>>, vector<16x8xf32>
    %cst_165 = arith.constant dense<0.000000e+00> : vector<12x8xf32>
    %1077 = tpu.matmul %1075, %1076, %cst_165 {dimension_numbers = #tpu.dot_dimension_numbers<[1], [0], [0], [1], [0, 0, 1, 1], [], []>} : vector<12x16xf32>, vector<16x8xf32>, vector<12x8xf32> -> vector<12x8xf32>
    %c0_166 = arith.constant 0 : index
    %c0_167 = arith.constant 0 : index
    %1078 = vector.load %arg9[%c0_166, %c0_167] : memref<16x8xf32, #tpu.memory_space<vmem>>, vector<16x8xf32>
    %cst_168 = arith.constant dense<0.000000e+00> : vector<12x8xf32>
    %1079 = tpu.matmul %1075, %1078, %cst_168 {dimension_numbers = #tpu.dot_dimension_numbers<[1], [0], [0], [1], [0, 0, 1, 1], [], []>} : vector<12x16xf32>, vector<16x8xf32>, vector<12x8xf32> -> vector<12x8xf32>
    %1080 = arith.maximumf %1077, %1079 : vector<12x8xf32>
    %c0_169 = arith.constant 0 : index
    %c0_170 = arith.constant 0 : index
    %c0_171 = arith.constant 0 : index
    %1081 = vector.load %arg10[%c0_169, %c0_170, %c0_171] : memref<1x12x8xf32, #tpu.memory_space<vmem>>, vector<1x12x8xf32>
    %1082 = vector.shape_cast %1081 : vector<1x12x8xf32> to vector<12x8xf32>
    %1083 = vector.shape_cast %1080 : vector<12x8xf32> to vector<1x12x8xf32>
    tpu.vector_store %arg10[%c0_169, %c0_170, %c0_171], %1083 {strides = array<i32>} : memref<1x12x8xf32, #tpu.memory_space<vmem>>, vector<1x12x8xf32>,
    return
  }
  func.func @transform_0(%arg0: i32) -> (i32, i32, i32) {
    %c0_i32 = arith.constant 0 : i32
    %c0_i32_0 = arith.constant 0 : i32
    %c0_i32_1 = arith.constant 0 : i32
    return %arg0, %c0_i32, %c0_i32_0 : i32, i32, i32
  }
  func.func @transform_1(%arg0: i32) -> i32 {
    %c0_i32 = arith.constant 0 : i32
    %c0_i32_0 = arith.constant 0 : i32
    return %c0_i32 : i32
  }
  func.func @transform_2(%arg0: i32) -> i32 {
    %c0_i32 = arith.constant 0 : i32
    %c0_i32_0 = arith.constant 0 : i32
    return %c0_i32 : i32
  }
  func.func @transform_3(%arg0: i32) -> i32 {
    %c0_i32 = arith.constant 0 : i32
    %c0_i32_0 = arith.constant 0 : i32
    return %c0_i32 : i32
  }
  func.func @transform_4(%arg0: i32) -> i32 {
    %c0_i32 = arith.constant 0 : i32
    %c0_i32_0 = arith.constant 0 : i32
    return %c0_i32 : i32
  }
  func.func @transform_5(%arg0: i32) -> i32 {
    %c0_i32 = arith.constant 0 : i32
    %c0_i32_0 = arith.constant 0 : i32
    return %c0_i32 : i32
  }
  func.func @transform_6(%arg0: i32) -> i32 {
    %c0_i32 = arith.constant 0 : i32
    %c0_i32_0 = arith.constant 0 : i32
    return %c0_i32 : i32
  }
  func.func @transform_7(%arg0: i32) -> (i32, i32) {
    %c0_i32 = arith.constant 0 : i32
    %c0_i32_0 = arith.constant 0 : i32
    %c0_i32_1 = arith.constant 0 : i32
    return %c0_i32, %c0_i32_0 : i32, i32
  }
  func.func @transform_8(%arg0: i32) -> (i32, i32) {
    %c0_i32 = arith.constant 0 : i32
    %c0_i32_0 = arith.constant 0 : i32
    %c0_i32_1 = arith.constant 0 : i32
    return %c0_i32, %c0_i32_0 : i32, i32
  }
  func.func @transform_9(%arg0: i32) -> (i32, i32, i32) {
    %c0_i32 = arith.constant 0 : i32
    %c0_i32_0 = arith.constant 0 : i32
    %c0_i32_1 = arith.constant 0 : i32
    return %arg0, %c0_i32, %c0_i32_0 : i32, i32, i32
  }
}

</mosaic_0001>

<bundles_post_ra>
// kernel: tpu_custom_call.1
= control target key start
LH: loop header
LB: loop body
LE: loop exit
PB: predicated region body
PF: predicated region fallthrough
CT: control target
= control target key end

     0   :  { %s11806_s0 = inlined_call_operand.vmem [shape: f32[8,26,18], index: 0, kind: input, shape index: {}]   ;;  %s11807_s1 = inlined_call_operand.vmem [shape: f32[36], index: 1, kind: input, shape index: {}]   ;;  %s11808_s2 = inlined_call_operand.vmem [shape: f32[4], index: 2, kind: input, shape index: {}]   ;;  %s11809_s3 = inlined_call_operand.vmem [shape: f32[144], index: 3, kind: input, shape index: {}]   ;;  %s11810_s4 = inlined_call_operand.vmem [shape: f32[4], index: 4, kind: input, shape index: {}]   ;;  %s11811_s5 = inlined_call_operand.vmem [shape: f32[36], index: 5, kind: input, shape index: {}]   ;;  %s11812_s6 = inlined_call_operand.<no memory space> [shape: f32[1], index: 6, kind: input, shape index: {}]   ;;  %s11813_s7 = inlined_call_operand.vmem [shape: f32[16,8], index: 7, kind: input, shape index: {}]   ;;  %s11814_s8 = inlined_call_operand.vmem [shape: f32[16,8], index: 8, kind: input, shape index: {}]   ;;  %s11815_s9 = inlined_call_operand.vmem [shape: f32[8,12,8], index: 9, kind: output, shape index: {}]  }
   0x1   :  { %14 = sst [smem:[#allocation5]] %s11812_s6 }
   0x2   :  { %15 = vsyncpa [#allocation7], 0 }
   0x3   :  { %16 = vsyncpa [#allocation9], 0 }
   0x4   :  { %17 = vsyncpa [#allocation12], 0  ;;  %s6393_s11 = smov 0  }
   0x5 LB: > { %s270_s14 = sshll.u32 %s11808_s2, 4  ;;  %s6402_s15 = sadd.s32 4294967295, %s6329_s11   ;;  %s6329_s11 = sphi %s6393_s11, %s23_s11   ;;  %s271_s14 = int_to_ptr.vmem [resolvable:$true] %s270_s14 }
   0x6   : > { %p5891_p0 = scmp.ge.s32.totalorder %s6329_s11, 1  ;;  %p248_p1 = scmp.lt.s32.totalorder %s6329_s11, 9 }
   0x7   : > { %p6175_p2 = scmp.eq.s32.totalorder %s6402_s15, 0  ;;  %s290_s18 = sshll.u32 %s11810_s4, 4  ;;  %s291_s18 = int_to_ptr.vmem [resolvable:$true] %s290_s18 }
   0x8   : > { %p6407_p3 = pnand %p5891_p0, %p248_p1  ;;  %s260_s21 = sshll.u32 %s11807_s1, 4  ;;  %s261_s21 = int_to_ptr.vmem [resolvable:$true] %s260_s21 }
   0x9   : > { %s280_s25 = sshll.u32 %s11809_s3, 4  ;;  %s300_s28 = sshll.u32 %s11811_s5, 4  ;;  %s281_s25 = int_to_ptr.vmem [resolvable:$true] %s280_s25  ;;  %s301_s28 = int_to_ptr.vmem [resolvable:$true] %s300_s28 }
   0xa   : > { %p6159_p4 = pneg %p6407_p3  ;;  %s6331_s29 = smov [#allocation8]  }
   0xb   : > { %s6332_s30 = smov [#allocation11]   ;;  %s6333_s10 = smov [#allocation6]  }
   0xc   : > { %p6421_p5 = pnand %p6175_p2, %p6159_p4  ;;  %s6334_s12 = smov [#allocation10]  }
   0xd   : > { %s6335_s13 = smov [#allocation13]  }
   0xe   : > { %6165 = dma.vmem_to_smem (!%p6421_p5), %s271_s14, 16, %s6331_s29, [#allocation9]  }
   0xf   : > { %6171 = dma.vmem_to_smem (!%p6421_p5), %s291_s18, 16, %s6332_s30, [#allocation12]  }
  0x10   : > { %6162 = dma.vmem_to_smem (!%p6421_p5), %s261_s21, 16, %s6333_s10, [#allocation7]  }
  0x11   : > { %6168 = dma.vmem_to_smem (!%p6421_p5), %s281_s25, 32, %s6334_s12, [#allocation9]  }
  0x12   : > { %6174 = dma.vmem_to_smem (!%p6421_p5), %s301_s28, 16, %s6335_s13, [#allocation12]  }
  0x13   : > { %330 = sbr.rel (%p6407_p3) target bundleno = 1952 (0x7a0), region = 56 }
  0x18   : > { %6316 = dma.done.wait (%p6175_p2), [#allocation7], 16  }
  0x19   : > { %6318 = vsyncadd (%p6175_p2), [#allocation7], 4294967280 }
  0x1a   : > { %6320 = dma.done.wait (%p6175_p2), [#allocation9], 48  }
  0x1b   : > { %6322 = vsyncadd (%p6175_p2), [#allocation9], 4294967248 }
  0x1c   : > { %6324 = dma.done.wait (%p6175_p2), [#allocation12], 32  }
  0x1d   : > { %6326 = vsyncadd (%p6175_p2), [#allocation12], 4294967264 }
  0x1e   : > { %357 = sfence }
  0x1f   : > { %p388_p6 = scmp.lt.s32.totalorder %s6402_s15, 7  ;;  %s5908_s14 = sld [smem:[#allocation6 + $0x1]]  ;;  %vm494_vm0 = vcmask 1046528   ;;  %vm576_vm1 = vcmask 1045504   ;;  %vm398_vm2 = vcmask 146432   ;;  %vm402_vm3 = vcmask 140288  }
  0x20   : > { %s5909_s6 = sld [smem:[#allocation6 + $0x2]]  ;;  %s6336_s21 = smov 127   ;;  %vm668_vm4 = vcmask 138248   ;;  %vm5709_vm5 = vcmask 130048   ;;  %vm5782_vm6 = vcmask 60416   ;;  %vm5780_vm7 = vcmask 64512  }
  0x21   : > { %s13183_s15 = smov (!%p388_p6, %s6402_s15), 7  ;;  %s5911_s16 = sld [smem:[#allocation6 + $0x4]] }
  0x22   : > { %s6133_s17 = sshll.u32 %s13183_s15, 5  ;;  %s6337_s22 = smov 126  }
  0x23   : > { %s6463_s20 = scalar_lea.vmem %s11806_s0, %s6133_s17  ;;  %s5912_s23 = sld [smem:[#allocation6 + $0x5]] }
  0x24   : > { %v6466_v0 = vld [vmem:[%s6463_s20 + $0x10] sm:$0xff]  ;;  %v6469_v2 = vld [vmem:[%s6463_s20 + $0x8] sm:$0xff]  ;;  %v6472_v3 = vld [vmem:[%s6463_s20] sm:$0xff]  ;;  %s5914_s24 = sld [smem:[#allocation6 + $0x7]] }
  0x25   : > { %v445_v1 = vstv %s5908_s14  ;;  %v6481_v9 = vld [vmem:[%s6463_s20 + $0x18] sm:$0x3]  ;;  %s5915_s25 = sld [smem:[#allocation6 + $0x8]] }
  0x26   : > { %v448_v4 = vmul.f32 %v445_v1, %v6466_v0  ;;  %v465_v5 = vstv %s5909_s6  ;;  %v446_v6 = vmul.f32 %v445_v1, %v6472_v3  ;;  %v447_v11 = vmul.f32 %v445_v1, %v6469_v2  ;;  %s5917_s26 = sld [smem:[#allocation6 + $0xa]] }
  0x27   : > { %v467_v7 = vmul.f32 %v465_v5, %v6469_v2  ;;  %v509_v8 = vstv %s5911_s16  ;;  %v466_v10 = vmul.f32 %v465_v5, %v6472_v3  ;;  %v468_v12 = vmul.f32 %v465_v5, %v6466_v0  ;;  %s5918_s27 = sld [smem:[#allocation6 + $0xb]] }
  0x28   : > { %456 = vrot.lane.b32.xlu1 %v448_v4, %s6336_s21  ;;  %452 = vrot.lane.b32.xlu0 %v446_v6, %s6336_s21  ;;  %v512_v13 = vmul.f32 %v509_v8, %v6466_v0  ;;  %v511_v14 = vmul.f32 %v509_v8, %v6469_v2  ;;  %v510_v15 = vmul.f32 %v509_v8, %v6472_v3  ;;  %s5920_s28 = sld [smem:[#allocation6 + $0xd]] }
  0x29   : > { %474 = vrot.lane.b32.xlu2 %v467_v7, %s6337_s22  ;;  %v513_v16 = vmul.f32 %v509_v8, %v6481_v9  ;;  %v538_v20 = vstv %s5912_s23  ;;  %s5921_s29 = sld [smem:[#allocation6 + $0xe]] }
  0x2a   : > { %v521_v17 = vrot.slane %v512_v13, 1  ;;  %v519_v18 = vrot.slane %v511_v14, 1  ;;  %v518_v19 = vrot.slane %v510_v15, 1  ;;  %v541_v22 = vmul.f32 %v538_v20, %v6466_v0  ;;  %s5923_s30 = sld [smem:[#allocation6 + $0x10]] }
  0x2b   : > { %v523_v21 = vrot.slane %v513_v16, 1  ;;  %v540_v25 = vmul.f32 %v538_v20, %v6469_v2  ;;  %v539_v26 = vmul.f32 %v538_v20, %v6472_v3  ;;  %v542_v28 = vmul.f32 %v538_v20, %v6481_v9  ;;  %s5924_s10 = sld [smem:[#allocation6 + $0x11]] }
  0x2c   : > { %v522_v23 = vsel %vm494_vm0, %v519_v18, %v521_v17  ;;  %v520_v24 = vsel %vm494_vm0, %v518_v19, %v519_v18  ;;  %v550_v29 = vrot.slane %v541_v22, 1  ;;  %v591_v32 = vstv %s5914_s24  ;;  %s5927_s12 = sld [smem:[#allocation6 + $0x13]]  ;;  %s6338_s24 = smov 1  }
  0x2d   : > { %v524_v27 = vsel %vm494_vm0, %v521_v17, %v523_v21  ;;  %v548_v30 = vrot.slane %v540_v25, 1  ;;  %v547_v31 = vrot.slane %v539_v26, 1  ;;  %v552_v33 = vrot.slane %v542_v28, 1  ;;  %s5928_s13 = sld [smem:[#allocation6 + $0x14]] }
  0x2e   : > { %v594_v34 = vmul.f32 %v591_v32, %v6466_v0  ;;  %v593_v37 = vmul.f32 %v591_v32, %v6469_v2  ;;  %v592_v38 = vmul.f32 %v591_v32, %v6472_v3  ;;  %v595_v40 = vmul.f32 %v591_v32, %v6481_v9  ;;  %s5930_s14 = sld [smem:[#allocation6 + $0x16]] }
  0x2f   : > { %v551_v35 = vsel %vm494_vm0, %v548_v30, %v550_v29  ;;  %v549_v36 = vsel %vm494_vm0, %v547_v31, %v548_v30  ;;  %v553_v39 = vsel %vm494_vm0, %v550_v29, %v552_v33  ;;  %v620_v44 = vstv %s5915_s25  ;;  %s5910_s6 = sld [smem:[#allocation6 + $0x3]] }
  0x30   : > { %472 = vrot.lane.b32.xlu1 %v466_v10, %s6337_s22  ;;  %454 = vrot.lane.b32.xlu0 %v447_v11, %s6336_s21  ;;  %v603_v41 = vrot.slane %v594_v34, 2  ;;  %v601_v42 = vrot.slane %v593_v37, 2  ;;  %v600_v43 = vrot.slane %v592_v38, 2  ;;  %v605_v45 = vrot.slane %v595_v40, 2  ;;  %s5931_s16 = sld [smem:[#allocation6 + $0x17]] }
  0x31   : > { %476 = vrot.lane.b32.xlu2 %v468_v12, %s6337_s22  ;;  %v623_v46 = vmul.f32 %v620_v44, %v6466_v0  ;;  %v622_v49 = vmul.f32 %v620_v44, %v6469_v2  ;;  %v621_v50 = vmul.f32 %v620_v44, %v6472_v3  ;;  %v624_v52 = vmul.f32 %v620_v44, %v6481_v9  ;;  %s436_s17 = sld [smem:[#allocation6]] }
  0x32   : > { %v604_v47 = vsel %vm576_vm1, %v601_v42, %v603_v41  ;;  %v602_v48 = vsel %vm576_vm1, %v600_v43, %v601_v42  ;;  %v606_v51 = vsel %vm576_vm1, %v603_v41, %v605_v45  ;;  %v681_v60 = vstv %s5917_s26  ;;  %s5913_s18 = sld [smem:[#allocation6 + $0x6]] }
  0x33   : > { %v632_v53 = vrot.slane %v623_v46, 2  ;;  %v630_v54 = vrot.slane %v622_v49, 2  ;;  %v629_v55 = vrot.slane %v621_v50, 2  ;;  %v634_v56 = vrot.slane %v624_v52, 2  ;;  %s5933_s19 = sld [smem:[#allocation6 + $0x19]] }
  0x34   : > { %v683_v61 = vmul.f32 %v681_v60, %v6469_v2  ;;  %v682_v62 = vmul.f32 %v681_v60, %v6472_v3  ;;  %v684_v63 = vmul.f32 %v681_v60, %v6466_v0  ;;  %v701_v1 = vstv %s5918_s27  ;;  %s648_s23 = sld [smem:[#allocation8]] }
  0x35   : > { %v633_v57 = vsel %vm576_vm1, %v630_v54, %v632_v53  ;;  %v631_v58 = vsel %vm576_vm1, %v629_v55, %v630_v54  ;;  %v635_v59 = vsel %vm576_vm1, %v632_v53, %v634_v56  ;;  %v744_v4 = vstv %s5920_s28  ;;  %s5919_s25 = sld [smem:[#allocation6 + $0xc]] }
  0x36   : > { %v703_v5 = vmul.f32 %v701_v1, %v6469_v2  ;;  %v702_v6 = vmul.f32 %v701_v1, %v6472_v3  ;;  %v747_v7 = vmul.f32 %v744_v4, %v6466_v0  ;;  %v746_v8 = vmul.f32 %v744_v4, %v6469_v2  ;;  %s5916_s26 = sld [smem:[#allocation6 + $0x9]] }
  0x37   : > { %v704_v10 = vmul.f32 %v701_v1, %v6466_v0  ;;  %v745_v11 = vmul.f32 %v744_v4, %v6472_v3  ;;  %v748_v12 = vmul.f32 %v744_v4, %v6481_v9  ;;  %v773_v17 = vstv %s5921_s29  ;;  %s5922_s27 = sld [smem:[#allocation6 + $0xf]] }
  0x38   : > { %527 = vrot.lane.b32.xlu1 %v522_v23, %s6336_s21  ;;  %525 = vrot.lane.b32.xlu0 %v520_v24, %s6336_s21  ;;  %v756_v13 = vrot.slane %v747_v7, 1  ;;  %v754_v14 = vrot.slane %v746_v8, 1  ;;  %v776_v20 = vmul.f32 %v773_v17, %v6466_v0  ;;  %v775_v21 = vmul.f32 %v773_v17, %v6469_v2  ;;  %s5925_s28 = sld [smem:[#allocation8 + $0x1]] }
  0x39   : > { %529 = vrot.lane.b32.xlu2 %v524_v27, %s6336_s21  ;;  %v753_v15 = vrot.slane %v745_v11, 1  ;;  %v758_v16 = vrot.slane %v748_v12, 1  ;;  %v774_v22 = vmul.f32 %v773_v17, %v6472_v3  ;;  %v777_v24 = vmul.f32 %v773_v17, %v6481_v9  ;;  %s5934_s29 = sld [smem:[#allocation6 + $0x1a]] }
  0x3a   : > { %v757_v18 = vsel %vm494_vm0, %v754_v14, %v756_v13  ;;  %v785_v25 = vrot.slane %v776_v20, 1  ;;  %v783_v26 = vrot.slane %v775_v21, 1  ;;  %v825_v28 = vstv %s5923_s30  ;;  %s5926_s30 = sld [smem:[#allocation6 + $0x12]] }
  0x3b   : > { %v755_v19 = vsel %vm494_vm0, %v753_v15, %v754_v14  ;;  %v759_v23 = vsel %vm494_vm0, %v756_v13, %v758_v16  ;;  %v782_v27 = vrot.slane %v774_v22, 1  ;;  %v787_v29 = vrot.slane %v777_v24, 1 }
  0x3c   : > { %v828_v30 = vmul.f32 %v825_v28, %v6466_v0  ;;  %v827_v31 = vmul.f32 %v825_v28, %v6469_v2  ;;  %v786_v32 = vsel %vm494_vm0, %v783_v26, %v785_v25  ;;  %v826_v34 = vmul.f32 %v825_v28, %v6472_v3 }
  0x3d   : > { %v784_v33 = vsel %vm494_vm0, %v782_v27, %v783_v26  ;;  %v854_v41 = vstv %s5924_s10  ;;  %v915_v56 = vstv %s5927_s12  ;;  %v6596_v11 = vstv %s5910_s6  ;;  %s5929_s10 = sld [smem:[#allocation6 + $0x15]] }
  0x3e   : > { %v837_v37 = vrot.slane %v828_v30, 2  ;;  %v835_v38 = vrot.slane %v827_v31, 2  ;;  %v857_v44 = vmul.f32 %v854_v41, %v6466_v0  ;;  %v856_v45 = vmul.f32 %v854_v41, %v6469_v2  ;;  %s5932_s12 = sld [smem:[#allocation6 + $0x18]] }
  0x3f   : > { %v855_v46 = vmul.f32 %v854_v41, %v6472_v3  ;;  %v918_v60 = vmul.f32 %v915_v56, %v6466_v0  ;;  %v1007_v12 = vstv %s5931_s16  ;;  %v437_v26 = vstv %s436_s17  ;;  %s6841_s6 = sld [smem:[#allocation10 + $0x7]] }
  0x40   : > { %556 = vrot.lane.b32.xlu1 %v551_v35, %s6337_s22  ;;  %554 = vrot.lane.b32.xlu0 %v549_v36, %s6337_s22  ;;  %v788_v35 = vsel %vm494_vm0, %v785_v25, %v787_v29  ;;  %v829_v36 = vmul.f32 %v825_v28, %v6481_v9  ;;  %v838_v42 = vsel %vm576_vm1, %v835_v38, %v837_v37  ;;  %v866_v49 = vrot.slane %v857_v44, 2  ;;  %s5937_s16 = sld [smem:[#allocation6 + $0x1c]] }
  0x41   : > { %558 = vrot.lane.b32.xlu2 %v553_v39, %s6337_s22  ;;  %v834_v39 = vrot.slane %v826_v34, 2  ;;  %v864_v50 = vrot.slane %v856_v45, 2  ;;  %v1010_v20 = vmul.f32 %v1007_v12, %v6466_v0  ;;  %v1011_v21 = vmul.f32 %v1007_v12, %v6481_v9  ;;  %s6845_s17 = sld [smem:[#allocation10 + $0x2b]] }
  0x42   : > { %v839_v40 = vrot.slane %v829_v36, 2  ;;  %v1009_v22 = vmul.f32 %v1007_v12, %v6469_v2  ;;  %v1008_v25 = vmul.f32 %v1007_v12, %v6472_v3  ;;  %v440_v28 = vmul.f32 %v437_v26, %v6466_v0 }
  0x43   : > { %v836_v43 = vsel %vm576_vm1, %v834_v39, %v835_v38  ;;  %v867_v53 = vsel %vm576_vm1, %v864_v50, %v866_v49  ;;  %v6616_v30 = vstv %s5913_s18  ;;  %s5948_s18 = sld [smem:[#allocation10 + $0x6c]] }
  0x44   : > { %v1017_v34 = vrot.slane %v1009_v22, 1  ;;  %v6623_v38 = vmul.f32 %v6616_v30, %v6466_v0  ;;  %v571_v39 = vmul.f32 %v6616_v30, %v6481_v9 }
  0x48   : > { %609 = vrot.lane.b32.xlu1 %v604_v47, %s6336_s21  ;;  %607 = vrot.lane.b32.xlu0 %v602_v48, %s6336_s21  ;;  %v840_v47 = vsel %vm576_vm1, %v837_v37, %v839_v40  ;;  %v858_v48 = vmul.f32 %v854_v41, %v6481_v9 }
  0x49   : > { %611 = vrot.lane.b32.xlu2 %v606_v51, %s6336_s21  ;;  %v863_v51 = vrot.slane %v855_v46, 2 }
  0x4a   : > { %v868_v52 = vrot.slane %v858_v48, 2 }
  0x4b   : > { %v865_v54 = vsel %vm576_vm1, %v863_v51, %v864_v50  ;;  %v580_v50 = vrot.slane %v6623_v38, 2  ;;  %v582_v51 = vrot.slane %v571_v39, 2 }
  0x4c   : > { %v869_v55 = vsel %vm576_vm1, %v866_v49, %v868_v52 }
  0x50   : > { %638 = vrot.lane.b32.xlu1 %v633_v57, %s6337_s22  ;;  %636 = vrot.lane.b32.xlu0 %v631_v58, %s6337_s22  ;;  %v917_v58 = vmul.f32 %v915_v56, %v6469_v2 }
  0x51   : > { %640 = vrot.lane.b32.xlu2 %v635_v59, %s6337_s22  ;;  %v916_v59 = vmul.f32 %v915_v56, %v6472_v3 }
  0x58   : > { %690 = vrot.lane.b32.xlu1 %v683_v61, %s6336_s21  ;;  %688 = vrot.lane.b32.xlu0 %v682_v62, %s6336_s21  ;;  %v935_v61 = vstv %s5928_s13  ;;  %s5935_s13 = sld [smem:[#allocation8 + $0x2]] }
  0x59   : > { %692 = vrot.lane.b32.xlu2 %v684_v63, %s6336_s21  ;;  %v978_v63 = vstv %s5930_s14  ;;  %v937_v1 = vmul.f32 %v935_v61, %v6469_v2  ;;  %v936_v4 = vmul.f32 %v935_v61, %v6472_v3  ;;  %s6839_s14 = sld [smem:[#allocation10 + $0x4]] }
  0x5a   : > { %v979_v7 = vmul.f32 %v978_v63, %v6472_v3  ;;  %v981_v8 = vmul.f32 %v978_v63, %v6466_v0 }
  0x5c   : > { %v987_v14 = vrot.slane %v979_v7, 1  ;;  %v990_v15 = vrot.slane %v981_v8, 1 }
  0x60   : > { %710 = vrot.lane.b32.xlu1 %v703_v5, %s6337_s22  ;;  %708 = vrot.lane.b32.xlu0 %v702_v6, %s6337_s22  ;;  %v938_v5 = vmul.f32 %v935_v61, %v6466_v0  ;;  %v980_v6 = vmul.f32 %v978_v63, %v6469_v2 }
  0x61   : > { %712 = vrot.lane.b32.xlu2 %v704_v10, %s6337_s22  ;;  %v982_v10 = vmul.f32 %v978_v63, %v6481_v9 }
  0x62   : > { %v988_v13 = vrot.slane %v980_v6, 1 }
  0x63   : > { %v992_v16 = vrot.slane %v982_v10, 1 }
  0x64   : > { %v989_v24 = vsel %vm494_vm0, %v987_v14, %v988_v13  ;;  %v439_v14 = vmul.f32 %v437_v26, %v6469_v2 }
  0x65   : > { %v993_v27 = vsel %vm494_vm0, %v990_v15, %v992_v16 }
  0x68   : > { %762 = vrot.lane.b32.xlu1 %v757_v18, %s6336_s21  ;;  %760 = vrot.lane.b32.xlu0 %v755_v19, %s6336_s21  ;;  %v6603_v18 = vmul.f32 %v6596_v11, %v6466_v0  ;;  %v489_v19 = vmul.f32 %v6596_v11, %v6481_v9 }
  0x69   : > { %764 = vrot.lane.b32.xlu2 %v759_v23, %s6336_s21  ;;  %v991_v23 = vsel %vm494_vm0, %v988_v13, %v990_v15  ;;  %v649_v15 = vstv %s648_s23  ;;  %s6852_s23 = sld [smem:[#allocation10 + $0x73]] }
  0x6a   : > { %v498_v29 = vrot.slane %v6603_v18, 1  ;;  %v500_v31 = vrot.slane %v489_v19, 1  ;;  %v487_v19 = vmul.f32 %v6596_v11, %v6469_v2  ;;  %v673_v18 = vstv %s5916_s26  ;;  %s6860_s26 = sld [smem:[#allocation10 + $0x8]] }
  0x70   : > { %791 = vrot.lane.b32.xlu1 %v786_v32, %s6337_s22  ;;  %789 = vrot.lane.b32.xlu0 %v784_v33, %s6337_s22  ;;  %v1019_v32 = vrot.slane %v1010_v20, 1  ;;  %v1021_v33 = vrot.slane %v1011_v21, 1  ;;  %v486_v20 = vmul.f32 %v6596_v11, %v6472_v3  ;;  %v438_v21 = vmul.f32 %v437_v26, %v6472_v3 }
  0x71   : > { %793 = vrot.lane.b32.xlu2 %v788_v35, %s6337_s22  ;;  %v1016_v35 = vrot.slane %v1008_v25, 1 }
  0x72   : > { %v1022_v44 = vsel %vm494_vm0, %v1019_v32, %v1021_v33  ;;  %v1020_v45 = vsel %vm494_vm0, %v1017_v34, %v1019_v32  ;;  %v495_v25 = vrot.slane %v486_v20, 1 }
  0x78   : > { %843 = vrot.lane.b32.xlu1 %v838_v42, %s6336_s21  ;;  %841 = vrot.lane.b32.xlu0 %v836_v43, %s6336_s21  ;;  %v1059_v42 = vstv %s5933_s19  ;;  %v501_v43 = vsel %vm494_vm0, %v498_v29, %v500_v31  ;;  %s6848_s19 = sld [smem:[#allocation10 + $0x4f]] }
  0x79   : > { %845 = vrot.lane.b32.xlu2 %v840_v47, %s6336_s21  ;;  %v1018_v47 = vsel %vm494_vm0, %v1016_v35, %v1017_v34  ;;  %v1061_v48 = vmul.f32 %v1059_v42, %v6469_v2  ;;  %v1060_v49 = vmul.f32 %v1059_v42, %v6472_v3  ;;  %v1062_v52 = vmul.f32 %v1059_v42, %v6466_v0 }
  0x7b   : > { %v1069_v56 = vrot.slane %v1061_v48, 2 }
  0x80   : > { %872 = vrot.lane.b32.xlu1 %v867_v53, %s6337_s22  ;;  %870 = vrot.lane.b32.xlu0 %v865_v54, %s6337_s22  ;;  %v1063_v53 = vmul.f32 %v1059_v42, %v6481_v9 }
  0x81   : > { %874 = vrot.lane.b32.xlu2 %v869_v55, %s6337_s22 }
  0x82   : > { %v1073_v63 = vrot.slane %v1063_v53, 2 }
  0x83   : > { %v6581_v57 = vpop.permute.xlu2 %474 }
  0x88   : > { %924 = vrot.lane.b32.xlu1 %v917_v58, %s6336_s21  ;;  %922 = vrot.lane.b32.xlu0 %v916_v59, %s6336_s21  ;;  %v1068_v58 = vrot.slane %v1060_v49, 2  ;;  %v583_v59 = vsel %vm576_vm1, %v580_v50, %v582_v51  ;;  %v676_v49 = vmul.f32 %v673_v18, %v6466_v0 }
  0x89   : > { %926 = vrot.lane.b32.xlu2 %v918_v60, %s6336_s21 }
  0x8a   : > { %v1070_v7 = vsel %vm576_vm1, %v1068_v58, %v1069_v56 }
  0x8b   : > { %v477_v62 = vpop.permute.xlu2 %476 }
  0x90   : > { %944 = vrot.lane.b32.xlu1 %v937_v1, %s6337_s22  ;;  %942 = vrot.lane.b32.xlu0 %v936_v4, %s6337_s22 }
  0x91   : > { %946 = vrot.lane.b32.xlu2 %v938_v5, %s6337_s22 }
  0x93   : > { %v530_v17 = vpop.permute.xlu2 %529 }
  0x98   : > { %996 = vrot.lane.b32.xlu1 %v991_v23, %s6336_s21  ;;  %994 = vrot.lane.b32.xlu0 %v989_v24, %s6336_s21  ;;  %v496_v24 = vrot.slane %v487_v19, 1 }
  0x99   : > { %998 = vrot.lane.b32.xlu2 %v993_v27, %s6336_s21 }
  0x9a   : > { %v457_v36 = vpop.permute.xlu1 %456  ;;  %v453_v37 = vpop.permute.xlu0 %452  ;;  %v499_v11 = vsel %vm494_vm0, %v496_v24, %v498_v29  ;;  %v497_v26 = vsel %vm494_vm0, %v495_v25, %v496_v24 }
  0x9b   : > { %v463_v40 = vadd.f32 %v457_v36, %v440_v28  ;;  %v559_v41 = vpop.permute.xlu2 %558  ;;  %v461_v28 = vadd.f32 %v453_v37, %v438_v21  ;;  %v569_v36 = vmul.f32 %v6616_v30, %v6469_v2  ;;  %v568_v37 = vmul.f32 %v6616_v30, %v6472_v3 }
  0x9d   : > { %v483_v46 = vadd.f32 %v477_v62, %v463_v40  ;;  %v1071_v62 = vrot.slane %v1062_v52, 2  ;;  %v577_v42 = vrot.slane %v568_v37, 2 }
  0x9f   : > { %v507_v54 = vadd.f32 %v501_v43, %v483_v46  ;;  %v1072_v6 = vsel %vm576_vm1, %v1069_v56, %v1071_v62  ;;  %v1074_v8 = vsel %vm576_vm1, %v1071_v62, %v1073_v63  ;;  %v721_v46 = vstv %s5919_s25  ;;  %s6854_s25 = sld [smem:[#allocation10 + $0x3]] }
  0xa0   : > { %1025 = vrot.lane.b32.xlu1 %v1020_v45, %s6337_s22  ;;  %1023 = vrot.lane.b32.xlu0 %v1018_v47, %s6337_s22  ;;  %v724_v52 = vmul.f32 %v721_v46, %v6466_v0  ;;  %v725_v53 = vmul.f32 %v721_v46, %v6481_v9  ;;  %v722_v37 = vmul.f32 %v721_v46, %v6472_v3 }
  0xa1   : > { %v536_v55 = vadd.f32 %v530_v17, %v507_v54  ;;  %1027 = vrot.lane.b32.xlu2 %v1022_v44, %s6337_s22 }
  0xa2   : > { %v473_v60 = vpop.permute.xlu1 %472  ;;  %v455_v61 = vpop.permute.xlu0 %454 }
  0xa3   : > { %v565_v1 = vadd.f32 %v559_v41, %v536_v55  ;;  %v612_v4 = vpop.permute.xlu2 %611  ;;  %v462_v23 = vadd.f32 %v455_v61, %v439_v14  ;;  %v481_v33 = vadd.f32 %v473_v60, %v461_v28  ;;  %v578_v41 = vrot.slane %v569_v36, 2 }
  0xa4   : > { %v733_v60 = vrot.slane %v724_v52, 1  ;;  %v735_v61 = vrot.slane %v725_v53, 1 }
  0xa5   : > { %v589_v5 = vadd.f32 %v583_v59, %v565_v1  ;;  %v482_v34 = vadd.f32 %v6581_v57, %v462_v23  ;;  %v505_v40 = vadd.f32 %v497_v26, %v481_v33  ;;  %v581_v51 = vsel %vm576_vm1, %v578_v41, %v580_v50 }
  0xa6   : > { %v579_v30 = vsel %vm576_vm1, %v577_v42, %v578_v41  ;;  %v723_v33 = vmul.f32 %v721_v46, %v6469_v2  ;;  %v674_v41 = vmul.f32 %v673_v18, %v6472_v3 }
  0xa7   : > { %v618_v10 = vadd.f32 %v612_v4, %v589_v5  ;;  %v506_v39 = vadd.f32 %v499_v11, %v482_v34  ;;  %v736_v5 = vsel %vm494_vm0, %v733_v60, %v735_v61  ;;  %v6685_v11 = vstv %s5925_s28  ;;  %s6867_s28 = sld [smem:[#allocation6 + $0x1f]] }
  0xa8   : > { %1077 = vrot.lane.b32.xlu1 %v1072_v6, %s6336_s21  ;;  %1075 = vrot.lane.b32.xlu0 %v1070_v7, %s6336_s21 }
  0xa9   : > { %1079 = vrot.lane.b32.xlu2 %v1074_v8, %s6336_s21  ;;  %v802_v8 = vstv %s5922_s27  ;;  %s6863_s27 = sld [smem:[#allocation6 + $0x1d]] }
  0xaa   : > { %v528_v12 = vpop.permute.xlu1 %527  ;;  %v526_v13 = vpop.permute.xlu0 %525  ;;  %v6677_v14 = vmul.f32 %v802_v8, %v6466_v0 }
  0xab   : > { %v641_v16 = vpop.permute.xlu2 %640  ;;  %v535_v43 = vadd.f32 %v528_v12, %v506_v39  ;;  %v534_v57 = vadd.f32 %v526_v13, %v505_v40  ;;  %v6688_v39 = vstv %s5934_s29  ;;  %v675_v40 = vmul.f32 %v673_v18, %v6469_v2  ;;  %s6901_s29 = sld [smem:[#allocation10 + $0x27]] }
  0xac   : > { %v647_v17 = vadd.f32 %v641_v16, %v618_v10  ;;  %v806_v16 = vmul.f32 %v802_v8, %v6481_v9 }
  0xae   : > { %v652_v22 = vadd.f32 %v649_v15, %v647_v17 }
  0xb0   : > { %v655_v27 = vmax.f32 %v652_v22, 0.0  ;;  %v814_v22 = vrot.slane %v6677_v14, 2 }
  0xb2   : > { %v557_v31 = vpop.permute.xlu1 %556  ;;  %v555_v32 = vpop.permute.xlu0 %554  ;;  %663 = vrot.lane.b32.xlu2 %v655_v27, %s6338_s24 }
  0xb3   : > { %v693_v35 = vpop.permute.xlu2 %692  ;;  %v564_v47 = vadd.f32 %v557_v31, %v535_v43  ;;  %v563_v29 = vadd.f32 %v555_v32, %v534_v57  ;;  %v731_v43 = vrot.slane %v723_v33, 1  ;;  %v6695_v57 = vmul.f32 %v6688_v39, %v6466_v0 }
  0xb4   : > { %v699_v56 = vadd.f32 %v693_v35, %v676_v49 }
  0xb5   : > { %v588_v54 = vadd.f32 %v581_v51, %v564_v47  ;;  %v587_v55 = vadd.f32 %v579_v30, %v563_v29  ;;  %v1100_v53 = vrot.slane %v6695_v57, 2  ;;  %v907_v57 = vstv %s5926_s30  ;;  %s6916_s30 = sld [smem:[#allocation10 + $0x2c]] }
  0xba   : > { %v610_v44 = vpop.permute.xlu1 %609  ;;  %v608_v45 = vpop.permute.xlu0 %607 }
  0xbb   : > { %v713_v48 = vpop.permute.xlu2 %712  ;;  %v617_v58 = vadd.f32 %v610_v44, %v588_v54  ;;  %v616_v59 = vadd.f32 %v608_v45, %v587_v55  ;;  %v1092_v44 = vmul.f32 %v6688_v39, %v6481_v9  ;;  %v730_v45 = vrot.slane %v722_v37, 1 }
  0xbc   : > { %v719_v50 = vadd.f32 %v713_v48, %v699_v56  ;;  %v734_v48 = vsel %vm494_vm0, %v731_v43, %v733_v60  ;;  %v804_v56 = vmul.f32 %v802_v8, %v6469_v2 }
  0xbd   : > { %v1102_v54 = vrot.slane %v1092_v44, 2  ;;  %v732_v55 = vsel %vm494_vm0, %v730_v45, %v731_v43  ;;  %v955_v44 = vstv %s5929_s10  ;;  %v910_v45 = vmul.f32 %v907_v57, %v6466_v0  ;;  %s6928_s10 = sld [smem:[#allocation10 + $0x4b]] }
  0xbe   : > { %v742_v13 = vadd.f32 %v736_v5, %v719_v50 }
  0xc2   : > { %v639_v62 = vpop.permute.xlu1 %638  ;;  %v637_v63 = vpop.permute.xlu0 %636 }
  0xc3   : > { %v765_v1 = vpop.permute.xlu2 %764  ;;  %v646_v38 = vadd.f32 %v639_v62, %v617_v58  ;;  %v645_v4 = vadd.f32 %v637_v63, %v616_v59  ;;  %v803_v58 = vmul.f32 %v802_v8, %v6472_v3  ;;  %v6339_v59 = vmov 0.0  }
  0xc4   : > { %v771_v21 = vadd.f32 %v765_v1, %v742_v13  ;;  %401 = vst.msk [vmem:[#allocation2 + $0x10] sm:$0xff] %vm398_vm2, %v6339_v59  ;;  %v1103_v62 = vsel %vm576_vm1, %v1100_v53, %v1102_v54  ;;  %v812_v63 = vrot.slane %v804_v56, 2  ;;  %v1036_v54 = vstv %s5932_s12  ;;  %s6941_s12 = sld [smem:[#allocation10 + $0x50]] }
  0xc5   : > { %v651_v6 = vadd.f32 %v649_v15, %v646_v38  ;;  %v650_v7 = vadd.f32 %v649_v15, %v645_v4  ;;  %v816_v15 = vrot.slane %v806_v16, 2  ;;  %403 = vst.msk [vmem:[#allocation2 + $0x18] sm:$0x3] %vm402_vm3, %v6339_v59  ;;  %v811_v1 = vrot.slane %v803_v58, 2 }
  0xc6   : > { %399 = vst.msk [vmem:[#allocation2] sm:$0xff] %vm398_vm2, %v6339_v59 }
  0xc7   : > { %v654_v10 = vmax.f32 %v651_v6, 0.0  ;;  %v653_v12 = vmax.f32 %v650_v7, 0.0  ;;  %v817_v24 = vsel %vm576_vm1, %v814_v22, %v816_v15  ;;  %400 = vst.msk [vmem:[#allocation2 + $0x8] sm:$0xff] %vm398_vm2, %v6339_v59 }
  0xc8   : > { %404 = vst.msk [vmem:[#allocation2 + $0x20] sm:$0xff] %vm398_vm2, %v6339_v59 }
  0xc9   : > { %661 = vrot.lane.b32.xlu1 %v654_v10, %s6338_s24  ;;  %659 = vrot.lane.b32.xlu0 %v653_v12, %s6338_s24  ;;  %405 = vst.msk [vmem:[#allocation2 + $0x28] sm:$0xff] %vm398_vm2, %v6339_v59  ;;  %v815_v10 = vsel %vm576_vm1, %v812_v63, %v814_v22  ;;  %v813_v12 = vsel %vm576_vm1, %v811_v1, %v812_v63 }
  0xca   : > { %v691_v17 = vpop.permute.xlu1 %690  ;;  %v689_v19 = vpop.permute.xlu0 %688  ;;  %406 = vst.msk [vmem:[#allocation2 + $0x30] sm:$0xff] %vm398_vm2, %v6339_v59 }
  0xcb   : > { %v794_v20 = vpop.permute.xlu2 %793  ;;  %v698_v29 = vadd.f32 %v691_v17, %v675_v40  ;;  %v697_v46 = vadd.f32 %v689_v19, %v674_v41  ;;  %407 = vst.msk [vmem:[#allocation2 + $0x38] sm:$0x3] %vm402_vm3, %v6339_v59 }
  0xcc   : > { %v800_v23 = vadd.f32 %v794_v20, %v771_v21  ;;  %408 = vst.msk [vmem:[#allocation2 + $0x40] sm:$0xff] %vm398_vm2, %v6339_v59 }
  0xcd   : > { %409 = vst.msk [vmem:[#allocation2 + $0x48] sm:$0xff] %vm398_vm2, %v6339_v59 }
  0xce   : > { %v823_v31 = vadd.f32 %v817_v24, %v800_v23  ;;  %410 = vst.msk [vmem:[#allocation2 + $0x50] sm:$0xff] %vm398_vm2, %v6339_v59 }
  0xcf   : > { %411 = vst.msk [vmem:[#allocation2 + $0x58] sm:$0x3] %vm402_vm3, %v6339_v59 }
  0xd0   : > { %412 = vst.msk [vmem:[#allocation2 + $0x60] sm:$0xff] %vm398_vm2, %v6339_v59 }
  0xd1   : > { %413 = vst.msk [vmem:[#allocation2 + $0x68] sm:$0xff] %vm398_vm2, %v6339_v59 }
  0xd2   : > { %v711_v25 = vpop.permute.xlu1 %710  ;;  %v709_v27 = vpop.permute.xlu0 %708  ;;  %414 = vst.msk [vmem:[#allocation2 + $0x70] sm:$0xff] %vm398_vm2, %v6339_v59 }
  0xd3   : > { %v846_v28 = vpop.permute.xlu2 %845  ;;  %v718_v51 = vadd.f32 %v711_v25, %v698_v29  ;;  %v717_v30 = vadd.f32 %v709_v27, %v697_v46  ;;  %415 = vst.msk [vmem:[#allocation2 + $0x78] sm:$0x3] %vm402_vm3, %v6339_v59  ;;  %v1090_v25 = vmul.f32 %v6688_v39, %v6469_v2  ;;  %v1089_v27 = vmul.f32 %v6688_v39, %v6472_v3 }
  0xd4   : > { %v852_v32 = vadd.f32 %v846_v28, %v823_v31  ;;  %416 = vst.msk [vmem:[#allocation3] sm:$0xff] %vm398_vm2, %v6339_v59  ;;  %v959_v29 = vmul.f32 %v955_v44, %v6481_v9 }
  0xd5   : > { %v741_v60 = vadd.f32 %v734_v48, %v718_v51  ;;  %v740_v61 = vadd.f32 %v732_v55, %v717_v30  ;;  %417 = vst.msk [vmem:[#allocation3 + $0x8] sm:$0xff] %vm398_vm2, %v6339_v59  ;;  %v1097_v33 = vrot.slane %v1089_v27, 2  ;;  %v6885_v27 = vstv %s6841_s6  ;;  %s6998_s6 = sld [smem:[#allocation10 + $0x74]] }
  0xd6   : > { %418 = vst.msk [vmem:[#allocation3 + $0x10] sm:$0xff] %vm398_vm2, %v6339_v59  ;;  %v969_v51 = vrot.slane %v959_v29, 1 }
  0xd7   : > { %419 = vst.msk [vmem:[#allocation3 + $0x18] sm:$0x3] %vm402_vm3, %v6339_v59 }
  0xd8   : > { %420 = vst.msk [vmem:[#allocation3 + $0x20] sm:$0xff] %vm398_vm2, %v6339_v59 }
  0xd9   : > { %421 = vst.msk [vmem:[#allocation3 + $0x28] sm:$0xff] %vm398_vm2, %v6339_v59 }
  0xda   : > { %v763_v34 = vpop.permute.xlu1 %762  ;;  %v761_v35 = vpop.permute.xlu0 %760  ;;  %422 = vst.msk [vmem:[#allocation3 + $0x30] sm:$0xff] %vm398_vm2, %v6339_v59 }
  0xdb   : > { %v875_v26 = vpop.permute.xlu2 %874  ;;  %v770_v38 = vadd.f32 %v763_v34, %v741_v60  ;;  %v769_v4 = vadd.f32 %v761_v35, %v740_v61  ;;  %423 = vst.msk [vmem:[#allocation3 + $0x38] sm:$0x3] %vm402_vm3, %v6339_v59  ;;  %v1040_v60 = vmul.f32 %v1036_v54, %v6481_v9 }
  0xdc   : > { %v881_v36 = vadd.f32 %v875_v26, %v852_v32  ;;  %v1098_v32 = vrot.slane %v1090_v25, 2  ;;  %424 = vst.msk [vmem:[#allocation3 + $0x40] sm:$0xff] %vm398_vm2, %v6339_v59  ;;  %v6882_v25 = vstv %s5948_s18  ;;  %s5969_s18 = sld [smem:[#allocation10 + $0x6]] }
  0xdd   : > { %425 = vst.msk [vmem:[#allocation3 + $0x48] sm:$0xff] %vm398_vm2, %v6339_v59 }
  0xde   : > { %v886_v42 = vadd.f32 %v6685_v11, %v881_v36  ;;  %v1101_v35 = vsel %vm576_vm1, %v1098_v32, %v1100_v53  ;;  %426 = vst.msk [vmem:[#allocation3 + $0x50] sm:$0xff] %vm398_vm2, %v6339_v59 }
  0xdf   : > { %427 = vst.msk [vmem:[#allocation3 + $0x58] sm:$0x3] %vm402_vm3, %v6339_v59 }
  0xe0   : > { %v889_v47 = vmax.f32 %v886_v42, 0.0  ;;  %428 = vst.msk [vmem:[#allocation3 + $0x60] sm:$0xff] %vm398_vm2, %v6339_v59 }
  0xe1   : > { %429 = vst.msk [vmem:[#allocation3 + $0x68] sm:$0xff] %vm398_vm2, %v6339_v59 }
  0xe2   : > { %897 = vrot.lane.b32.xlu2 %v889_v47, %s6338_s24  ;;  %v792_v49 = vpop.permute.xlu1 %791  ;;  %v790_v18 = vpop.permute.xlu0 %789  ;;  %430 = vst.msk [vmem:[#allocation3 + $0x70] sm:$0xff] %vm398_vm2, %v6339_v59  ;;  %v6812_v47 = vmul.f32 %v955_v44, %v6466_v0 }
  0xe3   : > { %v6701_v52 = vpop.permute.xlu2 %926  ;;  %v799_v6 = vadd.f32 %v792_v49, %v770_v38  ;;  %v798_v7 = vadd.f32 %v790_v18, %v769_v4  ;;  %431 = vst.msk [vmem:[#allocation3 + $0x78] sm:$0x3] %vm402_vm3, %v6339_v59  ;;  %v6828_v59 = vmul.f32 %v1036_v54, %v6466_v0 }
  0xe4   : > { %v933_v49 = vadd.f32 %v6701_v52, %v910_v45  ;;  %v967_v18 = vrot.slane %v6812_v47, 1  ;;  %12157 = vst [vmem:[#allocation17_spill] sm:$0xff] %v6882_v25 }
  0xe5   : > { %v822_v13 = vadd.f32 %v815_v10, %v799_v6  ;;  %v821_v16 = vadd.f32 %v813_v12, %v798_v7  ;;  %v11821_v61 = vrot.slane %v6828_v59, 2  ;;  %v957_v10 = vmul.f32 %v955_v44, %v6469_v2 }
  0xe6   : > { %v970_v53 = vsel %vm494_vm0, %v967_v18, %v969_v51  ;;  %v956_v12 = vmul.f32 %v955_v44, %v6472_v3  ;;  %v6945_v51 = vstv %s6863_s27  ;;  %s5999_s27 = sld [smem:[#allocation10 + $0x55]] }
  0xe8   : > { %v964_v3 = vrot.slane %v956_v12, 1 }
  0xea   : > { %1108 = vrot.lane.b32.xlu2 %v1103_v62, %s6337_s22  ;;  %v844_v50 = vpop.permute.xlu1 %843  ;;  %v842_v5 = vpop.permute.xlu0 %841  ;;  %v1050_v62 = vrot.slane %v1040_v60, 2 }
  0xeb   : > { %v6721_v8 = vpop.permute.xlu2 %946  ;;  %v851_v14 = vadd.f32 %v844_v50, %v822_v13  ;;  %v850_v17 = vadd.f32 %v842_v5, %v821_v16  ;;  %v6843_v5 = vstv %s5935_s13  ;;  %v909_v16 = vmul.f32 %v907_v57, %v6469_v2  ;;  %s6958_s13 = sld [smem:[#allocation6 + $0x20]] }
  0xec   : > { %v953_v30 = vadd.f32 %v6721_v8, %v933_v49  ;;  %v1051_v1 = vsel %vm576_vm1, %v11821_v61, %v1050_v62  ;;  %v6936_v49 = vstv %s6854_s25  ;;  %s5972_s25 = sld [smem:[#allocation10 + $0x72]] }
  0xed   : > { %12160 = vst [vmem:[#allocation20_spill] sm:$0xff] %v6936_v49 }
  0xee   : > { %v976_v55 = vadd.f32 %v970_v53, %v953_v30 }
  0xf2   : > { %v873_v19 = vpop.permute.xlu1 %872  ;;  %v871_v20 = vpop.permute.xlu0 %870 }
  0xf3   : > { %v880_v21 = vadd.f32 %v873_v19, %v851_v14  ;;  %v879_v22 = vadd.f32 %v871_v20, %v850_v17  ;;  %v6743_v15 = vpop.permute.xlu2 %998  ;;  %v6858_v14 = vmul.f32 %v1036_v54, %v6469_v2  ;;  %v965_v17 = vrot.slane %v957_v10, 1  ;;  %v6870_v20 = vld [vmem:[%s6463_s20] sm:$0xff] }
  0xf4   : > { %v1005_v52 = vadd.f32 %v6743_v15, %v976_v55  ;;  %v6865_v19 = vstv %s5937_s16  ;;  %v908_v2 = vmul.f32 %v6870_v20, %v907_v57  ;;  %s7049_s16 = sld [smem:[#allocation6 + $0x22]] }
  0xf5   : > { %v885_v23 = vadd.f32 %v6685_v11, %v880_v21  ;;  %v884_v24 = vadd.f32 %v6685_v11, %v879_v22  ;;  %v1099_v11 = vsel %vm576_vm1, %v1097_v33, %v1098_v32  ;;  %v6874_v21 = vmul.f32 %v6870_v20, %v1036_v54 }
  0xf6   : > { %v6896_v33 = vstv %s6839_s14  ;;  %v6956_v54 = vstv %s6867_s28  ;;  %s6980_s14 = sld [smem:[#allocation10 + $0x6f]] }
  0xf7   : > { %v888_v28 = vmax.f32 %v885_v23, 0.0  ;;  %v887_v31 = vmax.f32 %v884_v24, 0.0  ;;  %s6000_s28 = sld [smem:[#allocation10 + $0x79]] }
  0xf9   : > { %895 = vrot.lane.b32.xlu1 %v888_v28, %s6338_s24  ;;  %893 = vrot.lane.b32.xlu0 %v887_v31, %s6338_s24  ;;  %v6888_v28 = vsel %vm494_vm0, %v965_v17, %v967_v18  ;;  %v6891_v31 = vld [vmem:[%s6463_s20 + $0x10] sm:$0xff]  ;;  %v6939_v18 = vstv %s6860_s26  ;;  %s5998_s26 = sld [smem:[#allocation10 + $0x31]] }
  0xfa   : > { %v6797_v36 = vpop.permute.xlu1 %924  ;;  %v6799_v37 = vpop.permute.xlu0 %922  ;;  %v1152_v32 = vmul.f32 %v6891_v31, %v6865_v19  ;;  %12161 = vst [vmem:[#allocation21_spill] sm:$0xff] %v6939_v18 }
  0xfb   : > { %v1028_v34 = vpop.permute.xlu2 %1027  ;;  %v932_v23 = vadd.f32 %v6797_v36, %v909_v16  ;;  %v6914_v36 = vstv %s6852_s23  ;;  %s5971_s23 = sld [smem:[#allocation10 + $0x4e]] }
  0xfc   : > { %v1034_v63 = vadd.f32 %v1028_v34, %v1005_v52  ;;  %v6899_v34 = vstv %s6845_s17  ;;  %12159 = vst [vmem:[#allocation19_spill] sm:$0xff] %v6914_v36  ;;  %v7067_v61 = vstv %s6980_s14  ;;  %s7131_s17 = sld [smem:[#allocation6 + $0x23]] }
  0xfd   : > { %12172 = vst [vmem:[#allocation32_spill] sm:$0xff] %v7067_v61  ;;  %s5942_s14 = sld [smem:[#allocation6 + $0x21]] }
  0xfe   : > { %v1057_v0 = vadd.f32 %v1051_v1, %v1034_v63 }
 0x101   : > { %1106 = vrot.lane.b32.xlu1 %v1101_v35, %s6337_s22  ;;  %1104 = vrot.lane.b32.xlu0 %v1099_v11, %s6337_s22  ;;  %v6904_v35 = vsel %vm494_vm0, %v964_v3, %v965_v17 }
 0x102   : > { %v6802_v40 = vpop.permute.xlu1 %944  ;;  %v6804_v41 = vpop.permute.xlu0 %942 }
 0x103   : > { %v1080_v26 = vpop.permute.xlu2 %1079  ;;  %v6931_v29 = vadd.f32 %v6802_v40, %v932_v23  ;;  %v7015_v23 = vstv %s6901_s29  ;;  %s5936_s29 = sld [smem:[#allocation6 + $0x1b]] }
 0x104   : > { %v1086_v9 = vadd.f32 %v1080_v26, %v1057_v0  ;;  %v6911_v26 = vstv %s6848_s19  ;;  %12165 = vst [vmem:[#allocation25_spill] sm:$0xff] %v7015_v23  ;;  %s5970_s19 = sld [smem:[#allocation10 + $0x2a]] }
 0x105   : > { %12158 = vst [vmem:[#allocation18_spill] sm:$0xff] %v6911_v26 }
 0x10a   : > { %v6806_v42 = vpop.permute.xlu1 %996  ;;  %v6808_v43 = vpop.permute.xlu0 %994 }
 0x10c   : > { %v664_v39 = vpop.permute.xlu2 %663 }
 0x10d   : > { %671 = vst.msk [vmem:[#allocation2 + $0x11] sm:$0xff] %vm668_vm4, %v664_v39  ;;  %v931_v39 = vadd.f32 %v6799_v37, %v908_v2 }
 0x10f   : > { %v951_v2 = vadd.f32 %v6804_v41, %v931_v39 }
 0x112   : > { %v6815_v46 = vpop.permute.xlu1 %1025  ;;  %v6817_v48 = vpop.permute.xlu0 %1023 }
 0x114   : > { %v6878_v15 = vld [vmem:[#allocation2 + $0x18] sm:$0x3] }
 0x115   : > { %v1991_v47 = vmul.f32 %v6885_v27, %v6878_v15  ;;  %v2020_v37 = vmul.f32 %v6899_v34, %v6878_v15  ;;  %v2049_v40 = vmul.f32 %v6911_v26, %v6878_v15  ;;  %v2078_v53 = vmul.f32 %v6914_v36, %v6878_v15 }
 0x117   : > { %v2001_v63 = vrot.slane %v1991_v47, 2  ;;  %v2059_v3 = vrot.slane %v2049_v40, 2  ;;  %v7021_v47 = vstv %s6928_s10  ;;  %s6001_s10 = sld [smem:[#allocation10 + $0xe]] }
 0x118   : > { %12167 = vst [vmem:[#allocation27_spill] sm:$0xff] %v7021_v47 }
 0x11a   : > { %v6823_v56 = vpop.permute.xlu1 %1077  ;;  %v6825_v58 = vpop.permute.xlu0 %1075 }
 0x13b   : > { %v662_v38 = vpop.permute.xlu1 %661  ;;  %v660_v4 = vpop.permute.xlu0 %659 }
 0x13c   : > { %v898_v50 = vpop.permute.xlu2 %897  ;;  %670 = vst.msk [vmem:[#allocation2 + $0x9] sm:$0xff] %vm668_vm4, %v662_v38  ;;  %v1575_v38 = vmul.f32 %v6936_v49, %v6878_v15 }
 0x13d   : > { %905 = vst.msk [vmem:[#allocation2 + $0x31] sm:$0xff] %vm668_vm4, %v898_v50  ;;  %v2030_v50 = vrot.slane %v2020_v37, 2 }
 0x13e   : > { %669 = vst.msk [vmem:[#allocation2 + $0x1] sm:$0xff] %vm668_vm4, %v660_v4  ;;  %v1585_v40 = vrot.slane %v1575_v38, 1 }
 0x143   : > { %v6876_v22 = vld [vmem:[#allocation2 + $0x10] sm:$0xff] }
 0x144   : > { %v1109_v6 = vpop.permute.xlu2 %1108  ;;  %v6908_v11 = vmul.f32 %v6896_v33, %v6876_v22  ;;  %v6924_v45 = vmul.f32 %v6882_v25, %v6876_v22  ;;  %v6949_v30 = vmul.f32 %v6885_v27, %v6876_v22  ;;  %v6963_v60 = vmul.f32 %v6899_v34, %v6876_v22 }
 0x145   : > { %v1115_v7 = vadd.f32 %v1109_v6, %v1086_v9  ;;  %v6920_v44 = vld [vmem:[#allocation2 + $0x8] sm:$0xff]  ;;  %v6972_v1 = vmul.f32 %v6911_v26, %v6876_v22  ;;  %v2107_v9 = vmul.f32 %v6939_v18, %v6878_v15  ;;  %v1172_v6 = vmul.f32 %v6891_v31, %v6945_v51 }
 0x146   : > { %12162 = vst [vmem:[#allocation22_spill] sm:$0xff] %v6949_v30  ;;  %v11820_v55 = vrot.slane %v6908_v11, 1  ;;  %v6967_v52 = vmul.f32 %v6896_v33, %v6920_v44  ;;  %v11817_v62 = vrot.slane %v6949_v30, 2  ;;  %v11816_v4 = vrot.slane %v6963_v60, 2 }
 0x147   : > { %v1120_v8 = vadd.f32 %v6843_v5, %v1115_v7  ;;  %12163 = vst [vmem:[#allocation23_spill] sm:$0xff] %v6963_v60  ;;  %v6986_v7 = vmul.f32 %v6891_v31, %v6956_v54  ;;  %v11819_v17 = vrot.slane %v6972_v1, 2 }
 0x148   : > { %12164 = vst [vmem:[#allocation24_spill] sm:$0xff] %v6972_v1  ;;  %v11818_v0 = vrot.slane %v6967_v52, 1  ;;  %v6996_v12 = vsel %vm576_vm1, %v11817_v62, %v2001_v63  ;;  %v7030_v63 = vmul.f32 %v6914_v36, %v6876_v22  ;;  %v2117_v62 = vrot.slane %v2107_v9, 2 }
 0x149   : > { %v1123_v13 = vmax.f32 %v1120_v8, 0.0  ;;  %v6989_v8 = vld [vmem:[%s6463_s20 + $0x18] sm:$0x3]  ;;  %v7026_v37 = vsel %vm576_vm1, %v11819_v17, %v2059_v3  ;;  %v11829_v41 = vrot.slane %v6986_v7, 1  ;;  %v7043_v17 = vmul.f32 %v6936_v49, %v6876_v22 }
 0x14a   : > { %v1216_v10 = vmul.f32 %v6989_v8, %v6956_v54  ;;  %v7010_v16 = vsel %vm494_vm0, %v11818_v0, %v11820_v55  ;;  %12168 = vst [vmem:[#allocation28_spill] sm:$0xff] %v7030_v63  ;;  %v7038_v0 = vstv %s6958_s13  ;;  %v11828_v3 = vrot.slane %v7030_v63, 2  ;;  %s6003_s13 = sld [smem:[#allocation10 + $0x56]] }
 0x14b   : > { %1131 = vrot.lane.b32.xlu2 %v1123_v13, %s6338_s24  ;;  %v7003_v13 = vsel %vm576_vm1, %v11816_v4, %v2030_v50  ;;  %v2088_v50 = vrot.slane %v2078_v53, 2  ;;  %v7033_v4 = vstv %s6941_s12  ;;  %12170 = vst [vmem:[#allocation30_spill] sm:$0xff] %v7043_v17  ;;  %v7047_v53 = vmul.f32 %v6939_v18, %v6876_v22  ;;  %s6002_s12 = sld [smem:[#allocation10 + $0x32]] }
 0x14c   : > { %12169 = vst [vmem:[#allocation29_spill] sm:$0xff] %v7033_v4  ;;  %v1226_v39 = vrot.slane %v1216_v10, 1  ;;  %v1621_v9 = vmul.f32 %v7021_v47, %v6878_v15  ;;  %v2165_v10 = vmul.f32 %v7033_v4, %v6878_v15  ;;  %v11837_v57 = vrot.slane %v7043_v17, 1 }
 0x14d   : > { %12171 = vst [vmem:[#allocation31_spill] sm:$0xff] %v7047_v53  ;;  %v7062_v55 = vsel %vm576_vm1, %v11828_v3, %v2088_v50  ;;  %v7074_v25 = vmul.f32 %v6891_v31, %v7038_v0  ;;  %v7078_v18 = vmul.f32 %v7015_v23, %v6876_v22  ;;  %v7081_v50 = vstv %s6998_s6  ;;  %s6004_s6 = sld [smem:[#allocation10 + $0x7a]] }
 0x14e   : > { %v1227_v49 = vsel %vm494_vm0, %v11829_v41, %v1226_v39  ;;  %12174 = vst [vmem:[#allocation34_spill] sm:$0xff] %v7081_v50  ;;  %v1245_v3 = vmul.f32 %v6989_v8, %v7038_v0  ;;  %v7088_v24 = vsel %vm494_vm0, %v11837_v57, %v1585_v40  ;;  %v12175_v39 = vrot.slane %v7047_v53, 2 }
 0x14f   : > { %12173 = vst [vmem:[#allocation33_spill] sm:$0xff] %v7078_v18  ;;  %v974_v1 = vadd.f32 %v6904_v35, %v951_v2  ;;  %v11839_v17 = vrot.slane %v7078_v18, 1  ;;  %v1631_v53 = vrot.slane %v1621_v9, 1  ;;  %v7118_v35 = vmul.f32 %v7033_v4, %v6876_v22 }
 0x150   : > { %v7093_v41 = vsel %vm576_vm1, %v12175_v39, %v2117_v62  ;;  %v1644_v62 = vmul.f32 %v7067_v61, %v6878_v15  ;;  %v7137_v18 = vmul.f32 %v7067_v61, %v6876_v22 }
 0x151   : > { %12178 = vst [vmem:[#allocation37_spill] sm:$0xff] %v7118_v35  ;;  %v1003_v2 = vadd.f32 %v6808_v43, %v974_v1  ;;  %v12181_v43 = vrot.slane %v7074_v25, 1 }
 0x152   : > { %12179 = vst [vmem:[#allocation38_spill] sm:$0xff] %v7137_v18 }
 0x153   : > { %1160 = vrot.lane.b32.xlu2 %v1152_v32, %s6336_s21  ;;  %v7018_v32 = vstv %s6916_s30  ;;  %s5939_s30 = sld [smem:[#allocation6 + $0x1e]] }
 0x154   : > { %12166 = vst [vmem:[#allocation26_spill] sm:$0xff] %v7018_v32  ;;  %v2136_v38 = vmul.f32 %v7018_v32, %v6878_v15  ;;  %v7097_v63 = vmul.f32 %v7018_v32, %v6876_v22 }
 0x156   : > { %12176 = vst [vmem:[#allocation35_spill] sm:$0xff] %v7097_v63  ;;  %v11843_v40 = vrot.slane %v7097_v63, 2  ;;  %v2146_v57 = vrot.slane %v2136_v38, 2  ;;  %v7129_v38 = vstv %s7049_s16  ;;  %s5996_s16 = sld [smem:[#allocation10 + $0x78]] }
 0x15b   : > { %1180 = vrot.lane.b32.xlu2 %v1172_v6, %s6337_s22  ;;  %v1598_v6 = vmul.f32 %v7015_v23, %v6878_v15  ;;  %v975_v23 = vadd.f32 %v6888_v28, %v6931_v29  ;;  %v7114_v28 = vmul.f32 %v7021_v47, %v6876_v22  ;;  %v2194_v29 = vmul.f32 %v7081_v50, %v6878_v15 }
 0x15c   : > { %v1654_v47 = vrot.slane %v1644_v62, 1  ;;  %v7161_v62 = vmul.f32 %v6891_v31, %v7129_v38 }
 0x15d   : > { %v1608_v36 = vrot.slane %v1598_v6, 1  ;;  %12177 = vst [vmem:[#allocation36_spill] sm:$0xff] %v7114_v28  ;;  %v1255_v6 = vrot.slane %v1245_v3, 1  ;;  %v11844_v9 = vrot.slane %v7114_v28, 1  ;;  %v1004_v3 = vadd.f32 %v6806_v42, %v975_v23 }
 0x15e   : > { %v11850_v42 = vrot.slane %v7137_v18, 1  ;;  %v2204_v23 = vrot.slane %v2194_v29, 2  ;;  %v12183_v28 = vrot.slane %v6858_v14, 2 }
 0x15f   : > { %v7110_v39 = vsel %vm494_vm0, %v11839_v17, %v1608_v36  ;;  %v2175_v36 = vrot.slane %v2165_v10, 2  ;;  %v11845_v17 = vrot.slane %v7118_v35, 2  ;;  %v7148_v10 = vsel %vm494_vm0, %v11844_v9, %v1631_v53 }
 0x160   : > { %v1256_v1 = vsel %vm494_vm0, %v12181_v43, %v1255_v6  ;;  %v1297_v53 = vmul.f32 %v6989_v8, %v7129_v38  ;;  %v1033_v29 = vadd.f32 %v6815_v46, %v1004_v3  ;;  %v12182_v43 = vrot.slane %v6828_v59, 2 }
 0x161   : > { %v12184_v18 = vmov %v12183_v28  ;;  %v7193_v3 = vstv %s7131_s17  ;;  %s6009_s17 = sld [smem:[#allocation10 + $0x10]] }
 0x162   : > { %v1307_v59 = vrot.slane %v1297_v53, 2 }
 0x163   : > { %1232 = vrot.lane.b32.xlu2 %v1227_v49, %s6336_s21  ;;  %v7126_v49 = vsel %vm576_vm1, %v11843_v40, %v2146_v57  ;;  %v7143_v57 = vmul.f32 %v7081_v50, %v6876_v22  ;;  %v7153_v40 = vsel %vm576_vm1, %v11845_v17, %v2175_v36  ;;  %v7169_v36 = vsel %vm494_vm0, %v11850_v42, %v1654_v47 }
 0x164   : > { %v1032_v17 = vadd.f32 %v6817_v48, %v1003_v2  ;;  %v1049_v50 = vsel %vm576_vm1, %v12183_v28, %v12182_v43  ;;  %v12185_v47 = vrot.slane %v6874_v21, 2  ;;  %v11852_v2 = vrot.slane %v7161_v62, 2 }
 0x165   : > { %12180 = vst [vmem:[#allocation39_spill] sm:$0xff] %v7143_v57  ;;  %v11851_v9 = vrot.slane %v7143_v57, 2  ;;  %v1056_v28 = vadd.f32 %v1049_v50, %v1033_v29 }
 0x166   : > { %v1047_v42 = vsel %vm576_vm1, %v12185_v47, %v12184_v18  ;;  %v1308_v21 = vsel %vm576_vm1, %v11852_v2, %v1307_v59  ;;  %v7202_v18 = vmul.f32 %v6891_v31, %v7193_v3  ;;  %v7215_v47 = vstv %s5970_s19  ;;  %s6011_s19 = sld [smem:[#allocation10 + $0x58]] }
 0x167   : > { %v7176_v6 = vsel %vm576_vm1, %v11851_v9, %v2204_v23  ;;  %v1055_v14 = vadd.f32 %v1047_v42, %v1032_v17  ;;  %v7195_v23 = vstv %s5969_s18  ;;  %v1085_v17 = vadd.f32 %v6823_v56, %v1056_v28  ;;  %12188 = vst [vmem:[#allocation42_spill] sm:$0xff] %v7215_v47  ;;  %s6010_s18 = sld [smem:[#allocation10 + $0x34]] }
 0x168   : > { %12186 = vst [vmem:[#allocation40_spill] sm:$0xff] %v7195_v23  ;;  %v1899_v53 = vmul.f32 %v7195_v23, %v6878_v15  ;;  %v7212_v42 = vmul.f32 %v7195_v23, %v6876_v22  ;;  %v11855_v59 = vrot.slane %v7202_v18, 2  ;;  %v1242_v23 = vmul.f32 %v6870_v20, %v7038_v0 }
 0x169   : > { %v1084_v50 = vadd.f32 %v6825_v58, %v1055_v14  ;;  %v1922_v14 = vmul.f32 %v7215_v47, %v6878_v15 }
 0x16a   : > { %12187 = vst [vmem:[#allocation41_spill] sm:$0xff] %v7212_v42  ;;  %v11853_v2 = vrot.slane %v7212_v42, 2  ;;  %v1909_v56 = vrot.slane %v1899_v53, 2  ;;  %v1170_v42 = vmul.f32 %v6870_v20, %v6945_v51 }
 0x16b   : > { %1261 = vrot.lane.b32.xlu2 %v1256_v1, %s6337_s22  ;;  %v896_v46 = vpop.permute.xlu1 %895  ;;  %v894_v48 = vpop.permute.xlu0 %893  ;;  %v1326_v1 = vmul.f32 %v6989_v8, %v7193_v3 }
 0x16c   : > { %904 = vst.msk [vmem:[#allocation2 + $0x29] sm:$0xff] %vm668_vm4, %v896_v46 }
 0x16d   : > { %903 = vst.msk [vmem:[#allocation2 + $0x21] sm:$0xff] %vm668_vm4, %v894_v48  ;;  %v1336_v9 = vrot.slane %v1326_v1, 2  ;;  %v7498_v57 = vstv %s6010_s18  ;;  %s5962_s18 = sld [smem:[#allocation10 + $0x28]] }
 0x16e   : > { %12237 = vst [vmem:[#allocation82_spill] sm:$0xff] %v7498_v57 }
 0x16f   : > { %v1337_v1 = vsel %vm576_vm1, %v11855_v59, %v1336_v9 }
 0x173   : > { %1313 = vrot.lane.b32.xlu2 %v1308_v21, %s6336_s21  ;;  %v1107_v29 = vpop.permute.xlu1 %1106  ;;  %v1105_v43 = vpop.permute.xlu0 %1104  ;;  %v7223_v21 = vstv %s5971_s23  ;;  %s6012_s23 = sld [smem:[#allocation10 + $0x7c]] }
 0x174   : > { %v1114_v46 = vadd.f32 %v1107_v29, %v1085_v17  ;;  %v1113_v48 = vadd.f32 %v1105_v43, %v1084_v50  ;;  %12189 = vst [vmem:[#allocation43_spill] sm:$0xff] %v7223_v21  ;;  %v7228_v17 = vsel %vm576_vm1, %v11853_v2, %v1909_v56  ;;  %v1945_v29 = vmul.f32 %v7223_v21, %v6878_v15 }
 0x175   : > { %v7239_v43 = vstv %s5972_s25  ;;  %v7246_v9 = vmul.f32 %v7223_v21, %v6876_v22  ;;  %v1150_v2 = vmul.f32 %v6870_v20, %v6865_v19  ;;  %v7391_v21 = vstv %s6001_s10  ;;  %s6013_s25 = sld [smem:[#allocation10 + $0x11]] }
 0x176   : > { %v1119_v58 = vadd.f32 %v6843_v5, %v1114_v46  ;;  %v1118_v28 = vadd.f32 %v6843_v5, %v1113_v48  ;;  %v7235_v5 = vmul.f32 %v7215_v47, %v6876_v22  ;;  %12191 = vst [vmem:[#allocation45_spill] sm:$0xff] %v7239_v43  ;;  %v1932_v48 = vrot.slane %v1922_v14, 2  ;;  %s5950_s10 = sld [smem:[#allocation10 + $0x25]] }
 0x177   : > { %12192 = vst [vmem:[#allocation46_spill] sm:$0xff] %v7246_v9 }
 0x178   : > { %v1122_v53 = vmax.f32 %v1119_v58, 0.0  ;;  %v1121_v50 = vmax.f32 %v1118_v28, 0.0  ;;  %12190 = vst [vmem:[#allocation44_spill] sm:$0xff] %v7235_v5  ;;  %v11854_v46 = vrot.slane %v7235_v5, 2  ;;  %v1968_v58 = vmul.f32 %v7239_v43, %v6878_v15 }
 0x179   : > { %v11857_v28 = vrot.slane %v7246_v9, 2  ;;  %12214 = vst [vmem:[#allocation64_spill] sm:$0xff] %v7391_v21 }
 0x17a   : > { %1129 = vrot.lane.b32.xlu1 %v1122_v53, %s6338_s24  ;;  %1127 = vrot.lane.b32.xlu0 %v1121_v50, %s6338_s24  ;;  %v7252_v56 = vsel %vm576_vm1, %v11854_v46, %v1932_v48  ;;  %v1955_v53 = vrot.slane %v1945_v29, 2  ;;  %v7258_v50 = vld [vmem:[%s6463_s20 + $0x8] sm:$0xff]  ;;  %v1978_v29 = vrot.slane %v1968_v58, 2  ;;  %v1213_v58 = vmul.f32 %v6870_v20, %v6956_v54  ;;  %s5997_s20 = sld [smem:[#allocation10 + $0xd]] }
 0x17b   : > { %1342 = vrot.lane.b32.xlu2 %v1337_v1, %s6337_s22  ;;  %12193 = vst [vmem:[#allocation47_spill] sm:$0xff] %v7252_v56  ;;  %v1151_v14 = vmul.f32 %v7258_v50, %v6865_v19  ;;  %v7266_v1 = vmul.f32 %v7239_v43, %v6876_v22  ;;  %v1171_v59 = vmul.f32 %v7258_v50, %v6945_v51 }
 0x17c   : > { %v7271_v48 = vsel %vm576_vm1, %v11857_v28, %v1955_v53  ;;  %v1214_v53 = vmul.f32 %v7258_v50, %v6956_v54  ;;  %v1243_v51 = vmul.f32 %v7258_v50, %v7038_v0 }
 0x17d   : > { %12194 = vst [vmem:[#allocation48_spill] sm:$0xff] %v7266_v1  ;;  %v11858_v46 = vrot.slane %v7266_v1, 2 }
 0x17e   : > { %12195 = vst [vmem:[#allocation49_spill] sm:$0xff] %v7271_v48  ;;  %v1251_v54 = vrot.slane %v1243_v51, 1 }
 0x17f   : > { %v7279_v19 = vsel %vm576_vm1, %v11858_v46, %v1978_v29  ;;  %v12197_v29 = vrot.slane %v6986_v7, 1 }
 0x180   : > { %12196 = vst [vmem:[#allocation50_spill] sm:$0xff] %v7279_v19 }
 0x182   : > { %1158 = vrot.lane.b32.xlu1 %v1151_v14, %s6336_s21  ;;  %1156 = vrot.lane.b32.xlu0 %v1150_v2, %s6336_s21  ;;  %v1222_v2 = vrot.slane %v1214_v53, 1  ;;  %v1221_v14 = vrot.slane %v1213_v58, 1  ;;  %v1295_v58 = vmul.f32 %v7258_v50, %v7129_v38 }
 0x184   : > { %v1225_v28 = vsel %vm494_vm0, %v1222_v2, %v12197_v29  ;;  %v1223_v46 = vsel %vm494_vm0, %v1221_v14, %v1222_v2  ;;  %v1294_v2 = vmul.f32 %v6870_v20, %v7129_v38  ;;  %v1303_v0 = vrot.slane %v1295_v58, 2 }
 0x185   : > { %v1324_v14 = vmul.f32 %v7258_v50, %v7193_v3  ;;  %v1323_v29 = vmul.f32 %v6870_v20, %v7193_v3  ;;  %v7334_v58 = vstv %s5998_s26  ;;  %s5945_s26 = sld [smem:[#allocation8 + $0x3]] }
 0x186   : > { %12203 = vst [vmem:[#allocation53_spill] sm:$0xff] %v7334_v58 }
 0x187   : > { %v1332_v38 = vrot.slane %v1324_v14, 2  ;;  %v1331_v51 = vrot.slane %v1323_v29, 2 }
 0x189   : > { %v1333_v3 = vsel %vm576_vm1, %v1331_v51, %v1332_v38 }
 0x18a   : > { %1178 = vrot.lane.b32.xlu1 %v1171_v59, %s6337_s22  ;;  %1176 = vrot.lane.b32.xlu0 %v1170_v42, %s6337_s22  ;;  %v1250_v42 = vrot.slane %v1242_v23, 1  ;;  %v12198_v59 = vrot.slane %v7074_v25, 1  ;;  %v12199_v23 = vrot.slane %v7161_v62, 2  ;;  %v7323_v62 = vstv %s5997_s20  ;;  %s6014_s20 = sld [smem:[#allocation10 + $0x35]] }
 0x18b   : > { %12200 = vst [vmem:[#allocation51_spill] sm:$0xff] %v7323_v62 }
 0x18c   : > { %v1254_v7 = vsel %vm494_vm0, %v1251_v54, %v12198_v59  ;;  %v1252_v53 = vsel %vm494_vm0, %v1250_v42, %v1251_v54  ;;  %v1306_v25 = vsel %vm576_vm1, %v1303_v0, %v12199_v23  ;;  %v7321_v54 = vld [vmem:[#allocation2 + $0x30] sm:$0xff]  ;;  %v12201_v59 = vrot.slane %v7202_v18, 2 }
 0x18d   : > { %v7342_v18 = vmul.f32 %v7334_v58, %v7321_v54  ;;  %v7349_v23 = vstv %s5999_s27  ;;  %s6015_s27 = sld [smem:[#allocation10 + $0x59]] }
 0x18e   : > { %12206 = vst [vmem:[#allocation56_spill] sm:$0xff] %v7349_v23 }
 0x18f   : > { %12204 = vst [vmem:[#allocation54_spill] sm:$0xff] %v7342_v18  ;;  %v11870_v29 = vrot.slane %v7342_v18, 1 }
 0x192   : > { %1230 = vrot.lane.b32.xlu1 %v1225_v28, %s6336_s21  ;;  %1228 = vrot.lane.b32.xlu0 %v1223_v46, %s6336_s21  ;;  %v1302_v46 = vrot.slane %v1294_v2, 2  ;;  %v7336_v2 = vld [vmem:[#allocation2 + $0x28] sm:$0xff] }
 0x193   : > { %v7354_v14 = vmul.f32 %v7334_v58, %v7336_v2 }
 0x194   : > { %v1304_v28 = vsel %vm576_vm1, %v1302_v46, %v1303_v0  ;;  %v7347_v46 = vmul.f32 %v7323_v62, %v7336_v2 }
 0x195   : > { %12207 = vst [vmem:[#allocation57_spill] sm:$0xff] %v7354_v14 }
 0x196   : > { %12205 = vst [vmem:[#allocation55_spill] sm:$0xff] %v7347_v46 }
 0x19a   : > { %1259 = vrot.lane.b32.xlu1 %v1254_v7, %s6337_s22  ;;  %1257 = vrot.lane.b32.xlu0 %v1252_v53, %s6337_s22  ;;  %v1335_v7 = vsel %vm576_vm1, %v1332_v38, %v12201_v59  ;;  %v7332_v53 = vmul.f32 %v7323_v62, %v7321_v54  ;;  %v7359_v38 = vmul.f32 %v7349_v23, %v7321_v54  ;;  %v7369_v59 = vstv %s6000_s28  ;;  %s6016_s28 = sld [smem:[#allocation10 + $0x7d]] }
 0x19b   : > { %12210 = vst [vmem:[#allocation60_spill] sm:$0xff] %v7369_v59  ;;  %v7389_v5 = vmul.f32 %v7369_v59, %v7321_v54  ;;  %v7416_v43 = vmul.f32 %v7369_v59, %v7336_v2 }
 0x19c   : > { %12202 = vst [vmem:[#allocation52_spill] sm:$0xff] %v7332_v53  ;;  %v11863_v0 = vrot.slane %v7332_v53, 1  ;;  %v7444_v53 = vstv %s5942_s14  ;;  %s5953_s14 = sld [smem:[#allocation10 + $0x2]] }
 0x19d   : > { %12208 = vst [vmem:[#allocation58_spill] sm:$0xff] %v7359_v38  ;;  %v11890_v58 = vrot.slane %v7416_v43, 1 }
 0x19e   : > { %12213 = vst [vmem:[#allocation63_spill] sm:$0xff] %v7389_v5 }
 0x19f   : > { %12218 = vst [vmem:[#allocation67_spill] sm:$0xff] %v7416_v43 }
 0x1a2   : > { %1311 = vrot.lane.b32.xlu1 %v1306_v25, %s6336_s21  ;;  %1309 = vrot.lane.b32.xlu0 %v1304_v28, %s6336_s21  ;;  %v11862_v28 = vrot.slane %v7347_v46, 1 }
 0x1a4   : > { %v7366_v51 = vsel %vm494_vm0, %v11862_v28, %v11863_v0  ;;  %v7383_v28 = vmul.f32 %v7349_v23, %v7336_v2  ;;  %v7385_v0 = vstv %s5939_s30  ;;  %v7418_v23 = vstv %s6002_s12  ;;  %s5949_s30 = sld [smem:[#allocation10 + $0x1]] }
 0x1a5   : > { %v1132_v42 = vpop.permute.xlu2 %1131  ;;  %12209 = vst [vmem:[#allocation59_spill] sm:$0xff] %v7366_v51  ;;  %v7398_v9 = vmul.f32 %v6891_v31, %v7385_v0  ;;  %v1193_v1 = vmul.f32 %v6989_v8, %v7385_v0  ;;  %v7429_v46 = vmul.f32 %v7418_v23, %v7321_v54  ;;  %s5951_s12 = sld [smem:[#allocation10 + $0x49]] }
 0x1a6   : > { %1139 = vst.msk [vmem:[#allocation2 + $0x51] sm:$0xff] %vm668_vm4, %v1132_v42  ;;  %v11869_v42 = vrot.slane %v7354_v14, 1  ;;  %v12216_v14 = vrot.slane %v7359_v38, 1  ;;  %v7439_v38 = vstv %s6003_s13  ;;  %s5952_s13 = sld [smem:[#allocation10 + $0x6d]] }
 0x1a7   : > { %12212 = vst [vmem:[#allocation62_spill] sm:$0xff] %v7383_v28 }
 0x1a8   : > { %12219 = vst [vmem:[#allocation68_spill] sm:$0xff] %v7418_v23 }
 0x1a9   : > { %12221 = vst [vmem:[#allocation70_spill] sm:$0xff] %v7429_v46 }
 0x1aa   : > { %1340 = vrot.lane.b32.xlu1 %v1335_v7, %s6337_s22  ;;  %1338 = vrot.lane.b32.xlu0 %v1333_v3, %s6337_s22  ;;  %v7376_v7 = vsel %vm494_vm0, %v11869_v42, %v11870_v29  ;;  %v7378_v3 = vstv %s5936_s29  ;;  %v11883_v42 = vrot.slane %v7383_v28, 1  ;;  %v1203_v28 = vrot.slane %v1193_v1, 1  ;;  %12224 = vst [vmem:[#allocation72_spill] sm:$0xff] %v7439_v38  ;;  %s6008_s29 = sld [smem:[#allocation10 + $0x7b]] }
 0x1ab   : > { %12211 = vst [vmem:[#allocation61_spill] sm:$0xff] %v7376_v7  ;;  %v1144_v29 = vmul.f32 %v6891_v31, %v7378_v3  ;;  %v7404_v7 = vmul.f32 %v7391_v21, %v7321_v54 }
 0x1ac   : > { %v7411_v51 = vsel %vm494_vm0, %v11883_v42, %v12216_v14  ;;  %v7425_v42 = vmul.f32 %v7391_v21, %v7336_v2  ;;  %v12225_v21 = vrot.slane %v7398_v9, 1 }
 0x1ad   : > { %v1161_v25 = vpop.permute.xlu2 %1160  ;;  %12215 = vst [vmem:[#allocation65_spill] sm:$0xff] %v7404_v7 }
 0x1ae   : > { %12217 = vst [vmem:[#allocation66_spill] sm:$0xff] %v7411_v51  ;;  %v1167_v18 = vadd.f32 %v1161_v25, %v1144_v29  ;;  %v12222_v51 = vrot.slane %v7389_v5, 1  ;;  %v11891_v1 = vrot.slane %v7425_v42, 1  ;;  %v1204_v59 = vsel %vm494_vm0, %v12225_v21, %v1203_v28 }
 0x1af   : > { %12220 = vst [vmem:[#allocation69_spill] sm:$0xff] %v7425_v42  ;;  %v12226_v5 = vrot.slane %v7404_v7, 1  ;;  %v7464_v21 = vmul.f32 %v7439_v38, %v7321_v54  ;;  %v7466_v28 = vstv %s5996_s16  ;;  %v1274_v42 = vmul.f32 %v6989_v8, %v7444_v53  ;;  %s5955_s16 = sld [smem:[#allocation10 + $0x4a]] }
 0x1b0   : > { %v7436_v25 = vsel %vm494_vm0, %v11890_v58, %v12222_v51  ;;  %v7453_v58 = vld [vmem:[#allocation2 + $0x38] sm:$0x3] }
 0x1b1   : > { %12223 = vst [vmem:[#allocation71_spill] sm:$0xff] %v7436_v25  ;;  %v7451_v51 = vsel %vm494_vm0, %v11891_v1, %v12226_v5  ;;  %v7470_v1 = vmul.f32 %v6891_v31, %v7444_v53  ;;  %v7472_v25 = vstv %s6009_s17  ;;  %v2488_v31 = vmul.f32 %v7466_v28, %v7453_v58  ;;  %s5956_s17 = sld [smem:[#allocation10 + $0x6e]] }
 0x1b2   : > { %12227 = vst [vmem:[#allocation73_spill] sm:$0xff] %v7451_v51  ;;  %v7496_v7 = vmul.f32 %v7472_v25, %v7321_v54 }
 0x1b3   : > { %12230 = vst [vmem:[#allocation76_spill] sm:$0xff] %v7464_v21  ;;  %v2498_v35 = vrot.slane %v2488_v31, 1  ;;  %v7515_v31 = vmul.f32 %v7498_v57, %v7321_v54 }
 0x1b4   : > { %12231 = vst [vmem:[#allocation77_spill] sm:$0xff] %v7472_v25 }
 0x1b5   : > { %v1181_v47 = vpop.permute.xlu2 %1180  ;;  %12236 = vst [vmem:[#allocation81_spill] sm:$0xff] %v7496_v7 }
 0x1b6   : > { %v1187_v14 = vadd.f32 %v1181_v47, %v1167_v18  ;;  %v7456_v47 = vstv %s6004_s6  ;;  %v7460_v18 = vmul.f32 %v7418_v23, %v7336_v2  ;;  %v7483_v23 = vmul.f32 %v7466_v28, %v7321_v54  ;;  %12240 = vst [vmem:[#allocation85_spill] sm:$0xff] %v7515_v31  ;;  %s5954_s6 = sld [smem:[#allocation10 + $0x26]] }
 0x1b7   : > { %12228 = vst [vmem:[#allocation74_spill] sm:$0xff] %v7456_v47  ;;  %v7479_v43 = vmul.f32 %v7456_v47, %v7321_v54 }
 0x1b8   : > { %12229 = vst [vmem:[#allocation75_spill] sm:$0xff] %v7460_v18  ;;  %v1210_v5 = vadd.f32 %v1204_v59, %v1187_v14  ;;  %v11905_v51 = vrot.slane %v7460_v18, 1  ;;  %v12234_v59 = vrot.slane %v7429_v46, 1  ;;  %v11907_v62 = vrot.slane %v7483_v23, 1 }
 0x1b9   : > { %12232 = vst [vmem:[#allocation78_spill] sm:$0xff] %v7479_v43  ;;  %v7504_v46 = vmul.f32 %v7439_v38, %v7336_v2  ;;  %v12288_v38 = vrot.slane %v7398_v9, 1 }
 0x1ba   : > { %12233 = vst [vmem:[#allocation79_spill] sm:$0xff] %v7483_v23  ;;  %v7492_v14 = vsel %vm494_vm0, %v11905_v51, %v12234_v59  ;;  %v1284_v51 = vrot.slane %v1274_v42, 2  ;;  %v7511_v18 = vsel %vm494_vm0, %v11907_v62, %v2498_v35  ;;  %v7522_v59 = vmul.f32 %v7456_v47, %v7336_v2 }
 0x1bb   : > { %12235 = vst [vmem:[#allocation80_spill] sm:$0xff] %v7492_v14  ;;  %v7525_v14 = vstv %s6012_s23  ;;  %v12244_v35 = vrot.slane %v7464_v21, 1  ;;  %v12247_v47 = vrot.slane %v7470_v1, 2  ;;  %s5964_s23 = sld [smem:[#allocation10 + $0x70]] }
 0x1bc   : > { %12238 = vst [vmem:[#allocation83_spill] sm:$0xff] %v7504_v46  ;;  %v11916_v23 = vrot.slane %v7522_v59, 1 }
 0x1bd   : > { %v1233_v29 = vpop.permute.xlu2 %1232  ;;  %12239 = vst [vmem:[#allocation84_spill] sm:$0xff] %v7511_v18  ;;  %v7537_v18 = vmul.f32 %v7472_v25, %v7336_v2  ;;  %v1285_v42 = vsel %vm576_vm1, %v12247_v47, %v1284_v51  ;;  %v7559_v51 = vmul.f32 %v7498_v57, %v7336_v2  ;;  %v7563_v25 = vmul.f32 %v7525_v14, %v7321_v54 }
 0x1be   : > { %v1239_v63 = vadd.f32 %v1233_v29, %v1210_v5  ;;  %v7517_v29 = vstv %s6011_s19  ;;  %v11912_v5 = vrot.slane %v7504_v46, 1  ;;  %12242 = vst [vmem:[#allocation87_spill] sm:$0xff] %v7522_v59  ;;  %v12259_v57 = vrot.slane %v7515_v31, 2  ;;  %s5963_s19 = sld [smem:[#allocation10 + $0x4c]] }
 0x1bf   : > { %12241 = vst [vmem:[#allocation86_spill] sm:$0xff] %v7517_v29  ;;  %v7595_v59 = vmul.f32 %v7525_v14, %v7336_v2 }
 0x1c0   : > { %12243 = vst [vmem:[#allocation88_spill] sm:$0xff] %v7525_v14  ;;  %v7532_v62 = vsel %vm494_vm0, %v11912_v5, %v12244_v35  ;;  %v12250_v35 = vrot.slane %v7479_v43, 1  ;;  %v7624_v14 = vstv %s6015_s27  ;;  %s6033_s27 = sld [smem:[#allocation10 + $0x16]] }
 0x1c1   : > { %12245 = vst [vmem:[#allocation89_spill] sm:$0xff] %v7532_v62  ;;  %v11921_v62 = vrot.slane %v7537_v18, 2 }
 0x1c2   : > { %12246 = vst [vmem:[#allocation90_spill] sm:$0xff] %v7537_v18  ;;  %v7554_v5 = vsel %vm494_vm0, %v11916_v23, %v12250_v35  ;;  %v12255_v35 = vrot.slane %v7496_v7, 2 }
 0x1c3   : > { %12251 = vst [vmem:[#allocation93_spill] sm:$0xff] %v7554_v5  ;;  %v11925_v5 = vrot.slane %v7559_v51, 2 }
 0x1c4   : > { %12252 = vst [vmem:[#allocation94_spill] sm:$0xff] %v7559_v51  ;;  %v7574_v23 = vsel %vm576_vm1, %v11921_v62, %v12255_v35  ;;  %v12266_v51 = vrot.slane %v7563_v25, 2 }
 0x1c5   : > { %v1262_v8 = vpop.permute.xlu2 %1261  ;;  %12253 = vst [vmem:[#allocation95_spill] sm:$0xff] %v7563_v25  ;;  %v7589_v18 = vsel %vm576_vm1, %v11925_v5, %v12259_v57 }
 0x1c6   : > { %v1268_v4 = vadd.f32 %v1262_v8, %v1239_v63  ;;  %v7544_v63 = vmul.f32 %v7517_v29, %v7321_v54  ;;  %v7546_v8 = vstv %s6013_s25  ;;  %12256 = vst [vmem:[#allocation97_spill] sm:$0xff] %v7574_v23  ;;  %s5965_s25 = sld [smem:[#allocation10 + $0x5]] }
 0x1c7   : > { %12249 = vst [vmem:[#allocation92_spill] sm:$0xff] %v7546_v8  ;;  %v7567_v43 = vmul.f32 %v7546_v8, %v7321_v54  ;;  %v7600_v31 = vmul.f32 %v7546_v8, %v7336_v2 }
 0x1c8   : > { %12248 = vst [vmem:[#allocation91_spill] sm:$0xff] %v7544_v63  ;;  %v1291_v46 = vadd.f32 %v1285_v42, %v1268_v4  ;;  %v7580_v4 = vmul.f32 %v7517_v29, %v7336_v2  ;;  %v7582_v42 = vstv %s6014_s20  ;;  %v12264_v5 = vrot.slane %v7544_v63, 2  ;;  %s5966_s20 = sld [smem:[#allocation10 + $0x29]] }
 0x1c9   : > { %12254 = vst [vmem:[#allocation96_spill] sm:$0xff] %v7567_v43  ;;  %v7604_v57 = vmul.f32 %v7582_v42, %v7321_v54 }
 0x1ca   : > { %12257 = vst [vmem:[#allocation98_spill] sm:$0xff] %v7580_v4  ;;  %v11932_v62 = vrot.slane %v7580_v4, 2  ;;  %v7634_v4 = vstv %s6016_s28  ;;  %s6034_s28 = sld [smem:[#allocation10 + $0x3a]] }
 0x1cb   : > { %12258 = vst [vmem:[#allocation99_spill] sm:$0xff] %v7582_v42 }
 0x1cc   : > { %12260 = vst [vmem:[#allocation100_spill] sm:$0xff] %v7589_v18  ;;  %v7611_v35 = vsel %vm576_vm1, %v11932_v62, %v12264_v5  ;;  %v11935_v18 = vrot.slane %v7595_v59, 2  ;;  %v12269_v5 = vrot.slane %v7567_v43, 2 }
 0x1cd   : > { %v1314_v47 = vpop.permute.xlu2 %1313  ;;  %12261 = vst [vmem:[#allocation101_spill] sm:$0xff] %v7595_v59  ;;  %v7638_v59 = vmul.f32 %v7582_v42, %v7336_v2 }
 0x1ce   : > { %v1320_v23 = vadd.f32 %v1314_v47, %v1291_v46  ;;  %12262 = vst [vmem:[#allocation102_spill] sm:$0xff] %v7600_v31  ;;  %v11936_v46 = vrot.slane %v7600_v31, 2  ;;  %v7615_v47 = vstv %s5945_s26  ;;  %v7622_v8 = vsel %vm576_vm1, %v11935_v18, %v12266_v51  ;;  %s5967_s26 = sld [smem:[#allocation10 + $0x4d]] }
 0x1cf   : > { %12263 = vst [vmem:[#allocation103_spill] sm:$0xff] %v7604_v57  ;;  %v11942_v51 = vrot.slane %v7638_v59, 2  ;;  %v2808_v18 = vstv %s6008_s29  ;;  %s6035_s29 = sld [smem:[#allocation10 + $0x5e]] }
 0x1d0   : > { %12265 = vst [vmem:[#allocation104_spill] sm:$0xff] %v7611_v35  ;;  %v7631_v62 = vsel %vm576_vm1, %v11936_v46, %v12269_v5  ;;  %v7648_v46 = vmul.f32 %v7634_v4, %v7321_v54  ;;  %v7651_v35 = vmul.f32 %v2808_v18, %v7321_v54  ;;  %v2812_v31 = vmul.f32 %v2808_v18, %v7453_v58 }
 0x1d1   : > { %12267 = vst [vmem:[#allocation105_spill] sm:$0xff] %v7622_v8 }
 0x1d2   : > { %12268 = vst [vmem:[#allocation106_spill] sm:$0xff] %v7624_v14  ;;  %v2822_v42 = vrot.slane %v2812_v31, 2 }
 0x1d3   : > { %12270 = vst [vmem:[#allocation107_spill] sm:$0xff] %v7631_v62  ;;  %v12276_v62 = vrot.slane %v7604_v57, 2 }
 0x1d4   : > { %12271 = vst [vmem:[#allocation108_spill] sm:$0xff] %v7634_v4 }
 0x1d5   : > { %v1343_v29 = vpop.permute.xlu2 %1342  ;;  %12272 = vst [vmem:[#allocation109_spill] sm:$0xff] %v7638_v59  ;;  %v7671_v59 = vmul.f32 %v7634_v4, %v7336_v2 }
 0x1d6   : > { %v1349_v63 = vadd.f32 %v1343_v29, %v1320_v23  ;;  %v7643_v29 = vmul.f32 %v7624_v14, %v7321_v54  ;;  %12274 = vst [vmem:[#allocation111_spill] sm:$0xff] %v7648_v46  ;;  %v7666_v54 = vmul.f32 %v7624_v14, %v7336_v2 }
 0x1d7   : > { %12275 = vst [vmem:[#allocation112_spill] sm:$0xff] %v7651_v35 }
 0x1d8   : > { %v1354_v23 = vadd.f32 %v7615_v47, %v1349_v63  ;;  %12273 = vst [vmem:[#allocation110_spill] sm:$0xff] %v7643_v29  ;;  %v7658_v63 = vsel %vm576_vm1, %v11942_v51, %v12276_v62  ;;  %v11947_v8 = vrot.slane %v7643_v29, 2  ;;  %v7673_v62 = vstv %s5949_s30  ;;  %v2218_v51 = vld [vmem:[#allocation2 + $0x20] sm:$0xff]  ;;  %s5968_s30 = sld [smem:[#allocation10 + $0x71]] }
 0x1d9   : > { %12277 = vst [vmem:[#allocation113_spill] sm:$0xff] %v7658_v63  ;;  %v11946_v31 = vrot.slane %v7666_v54, 2  ;;  %v1414_v63 = vmul.f32 %v7673_v62, %v6876_v22 }
 0x1da   : > { %v1357_v5 = vmax.f32 %v1354_v23, 0.0  ;;  %v11944_v23 = vrot.slane %v7651_v35, 2  ;;  %12278 = vst [vmem:[#allocation114_spill] sm:$0xff] %v7666_v54  ;;  %v12282_v35 = vrot.slane %v7648_v46, 2  ;;  %v2485_v54 = vmul.f32 %v7466_v28, %v2218_v51 }
 0x1db   : > { %12279 = vst [vmem:[#allocation115_spill] sm:$0xff] %v7671_v59  ;;  %v7687_v57 = vsel %vm576_vm1, %v11946_v31, %v11947_v8  ;;  %v7749_v46 = vstv %s5954_s6  ;;  %s7959_s6 = sld [smem:[#allocation10 + $0x24]] }
 0x1dc   : > { %1365 = vrot.lane.b32.xlu2 %v1357_v5, %s6338_s24  ;;  %v7678_v58 = vsel %vm576_vm1, %v11944_v23, %v2822_v42  ;;  %v11949_v5 = vrot.slane %v7671_v59, 2  ;;  %12281 = vst [vmem:[#allocation117_spill] sm:$0xff] %v7687_v57  ;;  %v7700_v23 = vmul.f32 %v7466_v28, %v7336_v2  ;;  %v2493_v8 = vrot.slane %v2485_v54, 1 }
 0x1dd   : > { %12280 = vst [vmem:[#allocation116_spill] sm:$0xff] %v7678_v58  ;;  %v7705_v57 = vstv %s5950_s10  ;;  %s6036_s10 = sld [smem:[#allocation10 + $0x82]] }
 0x1de   : > { %v7696_v42 = vsel %vm576_vm1, %v11949_v5, %v12282_v35  ;;  %12284 = vst [vmem:[#allocation119_spill] sm:$0xff] %v7700_v23  ;;  %v11950_v31 = vrot.slane %v7700_v23, 1  ;;  %v7713_v35 = vmul.f32 %v2808_v18, %v7336_v2  ;;  %v1434_v5 = vmul.f32 %v7705_v57, %v6876_v22 }
 0x1df   : > { %12283 = vst [vmem:[#allocation118_spill] sm:$0xff] %v7696_v42  ;;  %v1191_v23 = vmul.f32 %v7258_v50, %v7385_v0 }
 0x1e0   : > { %v7710_v59 = vsel %vm494_vm0, %v2493_v8, %v11950_v31  ;;  %12286 = vst [vmem:[#allocation121_spill] sm:$0xff] %v7713_v35  ;;  %v11952_v28 = vrot.slane %v7713_v35, 2  ;;  %v7721_v8 = vstv %s5951_s12  ;;  %v7731_v31 = vstv %s5952_s13  ;;  %s6037_s12 = sld [smem:[#allocation10 + $0x17]] }
 0x1e1   : > { %12285 = vst [vmem:[#allocation120_spill] sm:$0xff] %v7710_v59  ;;  %v7736_v35 = vstv %s5953_s14  ;;  %v1142_v59 = vmul.f32 %v6870_v20, %v7378_v3  ;;  %v1199_v4 = vrot.slane %v1191_v23, 1  ;;  %v1272_v23 = vmul.f32 %v7258_v50, %v7444_v53  ;;  %s7928_s13 = sld [smem:[#allocation10 + $0x3b]] }
 0x1e2   : > { %s7934_s14 = sld [smem:[#allocation10]] }
 0x1e3   : > { %v7947_v32 = vstv %s6036_s10  ;;  %s6044_s10 = sld [smem:[#allocation10 + $0x84]] }
 0x1e4   : > { %1422 = vrot.lane.b32.xlu2 %v1414_v63, %s6336_s21  ;;  %v2809_v63 = vmul.f32 %v2808_v18, %v2218_v51  ;;  %v1454_v18 = vmul.f32 %v7721_v8, %v6876_v22  ;;  %12299 = vst [vmem:[#allocation131_spill] sm:$0xff] %v7947_v32 }
 0x1e6   : > { %v2817_v58 = vrot.slane %v2809_v63, 2 }
 0x1e8   : > { %v7726_v2 = vsel %vm576_vm1, %v2817_v58, %v11952_v28  ;;  %v1494_v58 = vmul.f32 %v7736_v35, %v6876_v22 }
 0x1e9   : > { %12287 = vst [vmem:[#allocation122_spill] sm:$0xff] %v7726_v2  ;;  %v1190_v2 = vmul.f32 %v6870_v20, %v7385_v0 }
 0x1eb   : > { %v1198_v29 = vrot.slane %v1190_v2, 1  ;;  %v1271_v2 = vmul.f32 %v6870_v20, %v7444_v53  ;;  %v12289_v20 = vrot.slane %v7470_v1, 2 }
 0x1ec   : > { %1442 = vrot.lane.b32.xlu2 %v1434_v5, %s6336_s21  ;;  %v1130_v54 = vpop.permute.xlu1 %1129  ;;  %v1128_v42 = vpop.permute.xlu0 %1127 }
 0x1ed   : > { %1138 = vst.msk [vmem:[#allocation2 + $0x49] sm:$0xff] %vm668_vm4, %v1130_v54  ;;  %v1200_v61 = vsel %vm494_vm0, %v1198_v29, %v1199_v4  ;;  %v1279_v9 = vrot.slane %v1271_v2, 2 }
 0x1ee   : > { %1137 = vst.msk [vmem:[#allocation2 + $0x41] sm:$0xff] %vm668_vm4, %v1128_v42  ;;  %v1474_v42 = vmul.f32 %v7731_v31, %v6876_v22 }
 0x1f4   : > { %1462 = vrot.lane.b32.xlu2 %v1454_v18, %s6336_s21  ;;  %v1159_v51 = vpop.permute.xlu1 %1158  ;;  %v1157_v5 = vpop.permute.xlu0 %1156 }
 0x1f5   : > { %v1165_v43 = vadd.f32 %v1157_v5, %v1142_v59 }
 0x1fc   : > { %1482 = vrot.lane.b32.xlu2 %v1474_v42, %s6336_s21  ;;  %v1179_v63 = vpop.permute.xlu1 %1178  ;;  %v1177_v54 = vpop.permute.xlu0 %1176  ;;  %v1143_v42 = vmul.f32 %v7258_v50, %v7378_v3  ;;  %v1202_v3 = vsel %vm494_vm0, %v1199_v4, %v12288_v38 }
 0x1fd   : > { %v1185_v21 = vadd.f32 %v1177_v54, %v1165_v43 }
 0x1fe   : > { %v1166_v14 = vadd.f32 %v1159_v51, %v1143_v42  ;;  %v7762_v51 = vstv %s5955_s16  ;;  %s7990_s16 = sld [smem:[#allocation10 + $0x81]] }
 0x1ff   : > { %v1208_v5 = vadd.f32 %v1200_v61, %v1185_v21  ;;  %v1534_v43 = vmul.f32 %v7762_v51, %v6876_v22  ;;  %v7771_v61 = vstv %s5956_s17  ;;  %s7996_s17 = sld [smem:[#allocation10 + $0x5f]] }
 0x200   : > { %v1186_v7 = vadd.f32 %v1179_v63, %v1166_v14  ;;  %v1280_v14 = vrot.slane %v1272_v23, 2  ;;  %v1667_v23 = vmul.f32 %v6896_v33, %v6878_v15 }
 0x202   : > { %v1209_v59 = vadd.f32 %v1202_v3, %v1186_v7  ;;  %v1283_v53 = vsel %vm576_vm1, %v1280_v14, %v12289_v20  ;;  %v1281_v7 = vsel %vm576_vm1, %v1279_v9, %v1280_v14  ;;  %v7780_v9 = vstv %s5962_s18  ;;  %s8010_s18 = sld [smem:[#allocation10 + $0x83]] }
 0x204   : > { %1502 = vrot.lane.b32.xlu2 %v1494_v58, %s6337_s22  ;;  %v1231_v18 = vpop.permute.xlu1 %1230  ;;  %v1229_v28 = vpop.permute.xlu0 %1228  ;;  %v1514_v58 = vmul.f32 %v7749_v46, %v6876_v22 }
 0x205   : > { %v1238_v63 = vadd.f32 %v1231_v18, %v1209_v59  ;;  %v1237_v38 = vadd.f32 %v1229_v28, %v1208_v5  ;;  %v1554_v18 = vmul.f32 %v7771_v61, %v6876_v22  ;;  %v1677_v5 = vrot.slane %v1667_v23, 1 }
 0x20c   : > { %1522 = vrot.lane.b32.xlu2 %v1514_v58, %s6337_s22  ;;  %v1260_v25 = vpop.permute.xlu1 %1259  ;;  %v1258_v0 = vpop.permute.xlu0 %1257 }
 0x20d   : > { %v1267_v50 = vadd.f32 %v1260_v25, %v1238_v63  ;;  %v1266_v54 = vadd.f32 %v1258_v0, %v1237_v38  ;;  %v12290_v63 = vrot.slane %v6908_v11, 1 }
 0x20f   : > { %v1290_v21 = vadd.f32 %v1283_v53, %v1267_v50  ;;  %v1289_v42 = vadd.f32 %v1281_v7, %v1266_v54  ;;  %v1678_v38 = vsel %vm494_vm0, %v12290_v63, %v1677_v5  ;;  %v1413_v54 = vmul.f32 %v7673_v62, %v6920_v44 }
 0x210   : > { %v7801_v53 = vstv %s5963_s19  ;;  %s8026_s19 = sld [smem:[#allocation10 + $0x19]] }
 0x214   : > { %1542 = vrot.lane.b32.xlu2 %v1534_v43, %s6337_s22  ;;  %v1312_v4 = vpop.permute.xlu1 %1311  ;;  %v1310_v29 = vpop.permute.xlu0 %1309 }
 0x215   : > { %v1319_v28 = vadd.f32 %v1312_v4, %v1290_v21  ;;  %v1318_v58 = vadd.f32 %v1310_v29, %v1289_v42  ;;  %v7789_v4 = vmul.f32 %v7780_v9, %v6876_v22  ;;  %v7794_v29 = vld [vmem:[#allocation2] sm:$0xff]  ;;  %v7810_v21 = vmul.f32 %v7801_v53, %v6876_v22 }
 0x216   : > { %v1412_v20 = vmul.f32 %v7673_v62, %v7794_v29  ;;  %v1725_v62 = vmul.f32 %v7801_v53, %v6878_v15  ;;  %v1452_v5 = vmul.f32 %v7721_v8, %v7794_v29 }
 0x217   : > { %v11972_v50 = vrot.slane %v7789_v4, 1  ;;  %v11971_v42 = vrot.slane %v7810_v21, 1 }
 0x21c   : > { %1562 = vrot.lane.b32.xlu2 %v1554_v18, %s6337_s22  ;;  %v1341_v25 = vpop.permute.xlu1 %1340  ;;  %v1339_v0 = vpop.permute.xlu0 %1338  ;;  %v1735_v18 = vrot.slane %v1725_v62, 1 }
 0x21d   : > { %v1348_v3 = vadd.f32 %v1341_v25, %v1319_v28  ;;  %v1347_v1 = vadd.f32 %v1339_v0, %v1318_v58  ;;  %v1433_v28 = vmul.f32 %v7705_v57, %v6920_v44  ;;  %v1432_v58 = vmul.f32 %v7705_v57, %v7794_v29  ;;  %v7834_v57 = vld [vmem:[#allocation2 + $0x18] sm:$0x3] }
 0x21e   : > { %v7820_v25 = vstv %s5964_s23  ;;  %v1736_v22 = vsel %vm494_vm0, %v11971_v42, %v1735_v18  ;;  %s8052_s23 = sld [smem:[#allocation10 + $0x3d]] }
 0x21f   : > { %v1353_v2 = vadd.f32 %v7615_v47, %v1348_v3  ;;  %v1352_v59 = vadd.f32 %v7615_v47, %v1347_v1  ;;  %v1696_v47 = vmul.f32 %v7780_v9, %v6878_v15  ;;  %v7827_v15 = vld [vmem:[#allocation2 + $0x10] sm:$0xff]  ;;  %v1754_v3 = vmul.f32 %v7834_v57, %v7820_v25 }
 0x220   : > { %v7831_v0 = vmul.f32 %v7827_v15, %v7820_v25 }
 0x221   : > { %v1356_v43 = vmax.f32 %v1353_v2, 0.0  ;;  %v1355_v14 = vmax.f32 %v1352_v59, 0.0  ;;  %v1706_v11 = vrot.slane %v1696_v47, 1  ;;  %v1764_v2 = vrot.slane %v1754_v3, 1 }
 0x222   : > { %v11970_v23 = vrot.slane %v7831_v0, 1  ;;  %v1453_v59 = vmul.f32 %v7721_v8, %v6920_v44 }
 0x223   : > { %1363 = vrot.lane.b32.xlu1 %v1356_v43, %s6338_s24  ;;  %1361 = vrot.lane.b32.xlu0 %v1355_v14, %s6338_s24  ;;  %v1707_v7 = vsel %vm494_vm0, %v11972_v50, %v1706_v11  ;;  %v7844_v43 = vstv %s5965_s25  ;;  %v7861_v11 = vld [vmem:[#allocation2 + $0x8] sm:$0xff]  ;;  %s8073_s25 = sld [smem:[#allocation10 + $0x61]] }
 0x224   : > { %1683 = vrot.lane.b32.xlu2 %v1678_v38, %s6336_s21  ;;  %v1765_v14 = vsel %vm494_vm0, %v11970_v23, %v1764_v2  ;;  %v7853_v63 = vmul.f32 %v7827_v15, %v7844_v43  ;;  %v1783_v44 = vmul.f32 %v7834_v57, %v7844_v43  ;;  %v1492_v2 = vmul.f32 %v7736_v35, %v7794_v29 }
 0x225   : > { %v7936_v23 = vstv %s5968_s30  ;;  %s8239_s30 = sld [smem:[#allocation10 + $0x86]] }
 0x226   : > { %v11969_v38 = vrot.slane %v7853_v63, 1  ;;  %v1793_v47 = vrot.slane %v1783_v44, 1 }
 0x228   : > { %v1794_v62 = vsel %vm494_vm0, %v11969_v38, %v1793_v47  ;;  %v7907_v47 = vstv %s6034_s28  ;;  %s8164_s28 = sld [smem:[#allocation10 + $0x3e]] }
 0x229   : > { %12293 = vst [vmem:[#allocation125_spill] sm:$0xff] %v7907_v47 }
 0x22b   : > { %1420 = vrot.lane.b32.xlu1 %v1413_v54, %s6336_s21  ;;  %1418 = vrot.lane.b32.xlu0 %v1412_v20, %s6336_s21  ;;  %v1473_v54 = vmul.f32 %v7861_v11, %v7731_v31  ;;  %v1472_v20 = vmul.f32 %v7731_v31, %v7794_v29 }
 0x22c   : > { %1712 = vrot.lane.b32.xlu2 %v1707_v7, %s6336_s21  ;;  %v7867_v7 = vstv %s5966_s20  ;;  %s8088_s20 = sld [smem:[#allocation10 + $0x85]] }
 0x22d   : > { %v7876_v18 = vmul.f32 %v7827_v15, %v7867_v7  ;;  %v1812_v31 = vmul.f32 %v7834_v57, %v7867_v7 }
 0x22f   : > { %v1822_v3 = vrot.slane %v1812_v31, 1 }
 0x233   : > { %1440 = vrot.lane.b32.xlu1 %v1433_v28, %s6336_s21  ;;  %1438 = vrot.lane.b32.xlu0 %v1432_v58, %s6336_s21  ;;  %v11968_v58 = vrot.slane %v7876_v18, 1 }
 0x234   : > { %1741 = vrot.lane.b32.xlu2 %v1736_v22, %s6336_s21  ;;  %v7884_v22 = vld [vmem:[#allocation2 + $0x50] sm:$0xff] }
 0x235   : > { %v7956_v42 = vmul.f32 %v7947_v32, %v7884_v22 }
 0x236   : > { %v1366_v1 = vpop.permute.xlu2 %1365 }
 0x237   : > { %1373 = vst.msk [vmem:[#allocation2 + $0x71] sm:$0xff] %vm668_vm4, %v1366_v1  ;;  %v1493_v1 = vmul.f32 %v7861_v11, %v7736_v35 }
 0x238   : > { %12300 = vst [vmem:[#allocation132_spill] sm:$0xff] %v7956_v42 }
 0x23b   : > { %1460 = vrot.lane.b32.xlu1 %v1453_v59, %s6336_s21  ;;  %1458 = vrot.lane.b32.xlu0 %v1452_v5, %s6336_s21  ;;  %v7890_v59 = vstv %s5967_s26  ;;  %v7892_v5 = vstv %s6033_s27  ;;  %s8102_s26 = sld [smem:[#allocation10 + $0x48]] }
 0x23c   : > { %1770 = vrot.lane.b32.xlu2 %v1765_v14, %s6336_s21  ;;  %12291 = vst [vmem:[#allocation123_spill] sm:$0xff] %v7892_v5  ;;  %v1823_v14 = vsel %vm494_vm0, %v11968_v58, %v1822_v3  ;;  %v7901_v44 = vmul.f32 %v7827_v15, %v7890_v59  ;;  %v7905_v35 = vmul.f32 %v7892_v5, %v7884_v22  ;;  %v7920_v3 = vstv %s6035_s29  ;;  %s8140_s27 = sld [smem:[#allocation10 + $0x1a]] }
 0x23d   : > { %12295 = vst [vmem:[#allocation127_spill] sm:$0xff] %v7920_v3  ;;  %v7926_v58 = vmul.f32 %v7920_v3, %v7884_v22  ;;  %s8194_s29 = sld [smem:[#allocation10 + $0x62]] }
 0x23e   : > { %v7858_v8 = vpop.permute.xlu2 %1422  ;;  %12292 = vst [vmem:[#allocation124_spill] sm:$0xff] %v7905_v35  ;;  %v12301_v19 = vrot.slane %v7901_v44, 1  ;;  %v12302_v60 = vrot.slane %v7905_v35, 1 }
 0x23f   : > { %12296 = vst [vmem:[#allocation128_spill] sm:$0xff] %v7926_v58 }
 0x243   : > { %1480 = vrot.lane.b32.xlu1 %v1473_v54, %s6336_s21  ;;  %1478 = vrot.lane.b32.xlu0 %v1472_v20, %s6336_s21  ;;  %v7909_v54 = vld [vmem:[#allocation2 + $0x48] sm:$0xff]  ;;  %v1841_v20 = vmul.f32 %v7834_v57, %v7890_v59 }
 0x244   : > { %1799 = vrot.lane.b32.xlu2 %v1794_v62, %s6337_s22  ;;  %v7916_v62 = vmul.f32 %v7907_v47, %v7884_v22  ;;  %v7941_v50 = vmul.f32 %v7907_v47, %v7909_v54  ;;  %v7976_v47 = vmul.f32 %v7920_v3, %v7909_v54 }
 0x245   : > { %v1851_v38 = vrot.slane %v1841_v20, 1  ;;  %v7952_v20 = vmul.f32 %v7827_v15, %v7936_v23 }
 0x246   : > { %v7881_v28 = vpop.permute.xlu2 %1442  ;;  %12294 = vst [vmem:[#allocation126_spill] sm:$0xff] %v7916_v62 }
 0x247   : > { %12298 = vst [vmem:[#allocation130_spill] sm:$0xff] %v7941_v50 }
 0x248   : > { %12305 = vst [vmem:[#allocation134_spill] sm:$0xff] %v7976_v47 }
 0x24b   : > { %1500 = vrot.lane.b32.xlu1 %v1493_v1, %s6337_s22  ;;  %1498 = vrot.lane.b32.xlu0 %v1492_v2, %s6337_s22  ;;  %v1513_v2 = vmul.f32 %v7861_v11, %v7749_v46  ;;  %v1512_v1 = vmul.f32 %v7749_v46, %v7794_v29  ;;  %v1852_v46 = vsel %vm494_vm0, %v12301_v19, %v1851_v38  ;;  %v7981_v38 = vstv %s6037_s12  ;;  %s5985_s12 = sld [smem:[#allocation10 + $0xa]] }
 0x24c   : > { %1828 = vrot.lane.b32.xlu2 %v1823_v14, %s6337_s22  ;;  %v7932_v14 = vmul.f32 %v7892_v5, %v7909_v54  ;;  %v1870_v19 = vmul.f32 %v7834_v57, %v7936_v23  ;;  %12306 = vst [vmem:[#allocation135_spill] sm:$0xff] %v7981_v38 }
 0x24e   : > { %v7918_v31 = vpop.permute.xlu2 %1462  ;;  %12297 = vst [vmem:[#allocation129_spill] sm:$0xff] %v7932_v14  ;;  %v12303_v48 = vrot.slane %v7932_v14, 1  ;;  %v8020_v14 = vstv %s7934_s14  ;;  %s5987_s14 = sld [smem:[#allocation10 + $0x52]] }
 0x24f   : > { %12315 = vst [vmem:[#allocation141_spill] sm:$0xff] %v8020_v14  ;;  %v1382_v3 = vmul.f32 %v7827_v15, %v8020_v14 }
 0x250   : > { %v7972_v26 = vsel %vm494_vm0, %v12303_v48, %v12302_v60  ;;  %v7994_v60 = vmul.f32 %v7981_v38, %v7884_v22  ;;  %v11988_v48 = vrot.slane %v7976_v47, 1  ;;  %v1532_v47 = vmul.f32 %v7762_v51, %v7794_v29 }
 0x251   : > { %12304 = vst [vmem:[#allocation133_spill] sm:$0xff] %v7972_v26 }
 0x252   : > { %12310 = vst [vmem:[#allocation137_spill] sm:$0xff] %v7994_v60 }
 0x253   : > { %1520 = vrot.lane.b32.xlu1 %v1513_v2, %s6337_s22  ;;  %1518 = vrot.lane.b32.xlu0 %v1512_v1, %s6337_s22  ;;  %v12307_v1 = vrot.slane %v7916_v62, 1  ;;  %v12308_v2 = vrot.slane %v7941_v50, 1  ;;  %v8004_v50 = vmul.f32 %v7947_v32, %v7909_v54 }
 0x254   : > { %1857 = vrot.lane.b32.xlu2 %v1852_v46, %s6337_s22  ;;  %v1880_v46 = vrot.slane %v1870_v19, 1  ;;  %v8036_v19 = vmul.f32 %v7981_v38, %v7909_v54  ;;  %v8055_v38 = vld [vmem:[#allocation2 + $0x58] sm:$0x3] }
 0x255   : > { %v7988_v5 = vsel %vm494_vm0, %v12308_v2, %v12307_v1  ;;  %12311 = vst [vmem:[#allocation138_spill] sm:$0xff] %v8004_v50  ;;  %v8008_v2 = vstv %s7928_s13  ;;  %v11994_v1 = vrot.slane %v8004_v50, 1  ;;  %s5986_s13 = sld [smem:[#allocation10 + $0x2e]] }
 0x256   : > { %12309 = vst [vmem:[#allocation136_spill] sm:$0xff] %v7988_v5  ;;  %v7999_v57 = vpop.permute.xlu2 %1482  ;;  %v12313_v5 = vrot.slane %v7926_v58, 1  ;;  %v8024_v32 = vmul.f32 %v8008_v2, %v7884_v22  ;;  %v1533_v58 = vmul.f32 %v7861_v11, %v7762_v51  ;;  %v12320_v51 = vrot.slane %v7952_v20, 1 }
 0x257   : > { %12312 = vst [vmem:[#allocation139_spill] sm:$0xff] %v8008_v2 }
 0x258   : > { %v8017_v26 = vsel %vm494_vm0, %v11988_v48, %v12313_v5  ;;  %12316 = vst [vmem:[#allocation142_spill] sm:$0xff] %v8024_v32  ;;  %v12318_v48 = vrot.slane %v7956_v42, 1  ;;  %v1881_v62 = vsel %vm494_vm0, %v12320_v51, %v1880_v46  ;;  %v11999_v5 = vrot.slane %v8036_v19, 1 }
 0x259   : > { %12314 = vst [vmem:[#allocation140_spill] sm:$0xff] %v8017_v26  ;;  %v8064_v46 = vstv %s7990_s16  ;;  %v8071_v51 = vstv %s7996_s17  ;;  %v1552_v42 = vmul.f32 %v7771_v61, %v7794_v29  ;;  %s5989_s16 = sld [smem:[#allocation10 + $0xb]] }
 0x25a   : > { %12317 = vst [vmem:[#allocation143_spill] sm:$0xff] %v8036_v19  ;;  %v8043_v26 = vsel %vm494_vm0, %v11994_v1, %v12318_v48  ;;  %v8061_v1 = vmul.f32 %v8008_v2, %v7909_v54  ;;  %v8093_v50 = vmul.f32 %v8064_v46, %v7884_v22  ;;  %s5990_s17 = sld [smem:[#allocation10 + $0x2f]] }
 0x25b   : > { %12319 = vst [vmem:[#allocation144_spill] sm:$0xff] %v8043_v26  ;;  %1540 = vrot.lane.b32.xlu1 %v1533_v58, %s6337_s22  ;;  %1538 = vrot.lane.b32.xlu0 %v1532_v47, %s6337_s22  ;;  %v1429_v58 = vadd.f32 %v7858_v8, %v1382_v3  ;;  %v8068_v47 = vstv %s7959_s6  ;;  %v1553_v26 = vmul.f32 %v7861_v11, %v7771_v61  ;;  %v8109_v3 = vstv %s8026_s19  ;;  %s5988_s6 = sld [smem:[#allocation10 + $0x76]] }
 0x25c   : > { %1886 = vrot.lane.b32.xlu2 %v1881_v62, %s6337_s22  ;;  %12321 = vst [vmem:[#allocation145_spill] sm:$0xff] %v8061_v1  ;;  %v12323_v62 = vrot.slane %v7994_v60, 1  ;;  %v8086_v8 = vmul.f32 %v8071_v51, %v7884_v22  ;;  %v12328_v60 = vrot.slane %v8024_v32, 1  ;;  %v8126_v30 = vmul.f32 %v8109_v3, %v7884_v22  ;;  %s5992_s19 = sld [smem:[#allocation10 + $0x77]] }
 0x25d   : > { %12322 = vst [vmem:[#allocation146_spill] sm:$0xff] %v8068_v47  ;;  %v8138_v61 = vstv %s8052_s23  ;;  %s5984_s23 = sld [smem:[#allocation10 + $0x75]] }
 0x25e   : > { %v8080_v48 = vsel %vm494_vm0, %v11999_v5, %v12323_v62  ;;  %v1503_v14 = vpop.permute.xlu2 %1502  ;;  %12325 = vst [vmem:[#allocation148_spill] sm:$0xff] %v8093_v50  ;;  %v1664_v62 = vmul.f32 %v6896_v33, %v7794_v29  ;;  %v8098_v5 = vstv %s8010_s18  ;;  %s5991_s18 = sld [smem:[#allocation10 + $0x53]] }
 0x25f   : > { %12324 = vst [vmem:[#allocation147_spill] sm:$0xff] %v8080_v48  ;;  %v1509_v19 = vadd.f32 %v1503_v14, %v1429_v58  ;;  %v3332_v48 = vmul.f32 %v8064_v46, %v8055_v38  ;;  %v8106_v2 = vmul.f32 %v8098_v5, %v7884_v22  ;;  %v12329_v14 = vrot.slane %v8061_v1, 1 }
 0x260   : > { %12326 = vst [vmem:[#allocation149_spill] sm:$0xff] %v8098_v5  ;;  %v12007_v58 = vrot.slane %v8093_v50, 1  ;;  %v8175_v50 = vstv %s8088_s20  ;;  %s6070_s20 = sld [smem:[#allocation10 + $0x43]] }
 0x261   : > { %12327 = vst [vmem:[#allocation150_spill] sm:$0xff] %v8109_v3  ;;  %v8116_v33 = vsel %vm494_vm0, %v12329_v14, %v12328_v60  ;;  %v8122_v35 = vadd.f32 %v7088_v24, %v1509_v19  ;;  %v3342_v56 = vrot.slane %v3332_v48, 1  ;;  %v8131_v60 = vmul.f32 %v8071_v51, %v7909_v54 }
 0x262   : > { %12330 = vst [vmem:[#allocation151_spill] sm:$0xff] %v8116_v33  ;;  %v1390_v14 = vmul.f32 %v7827_v15, %v8068_v47  ;;  %v1672_v24 = vrot.slane %v1664_v62, 1  ;;  %v8157_v62 = vmul.f32 %v8098_v5, %v7909_v54  ;;  %v12335_v47 = vrot.slane %v8086_v8, 1 }
 0x263   : > { %12331 = vst [vmem:[#allocation152_spill] sm:$0xff] %v8131_v60  ;;  %1560 = vrot.lane.b32.xlu1 %v1553_v26, %s6337_s22  ;;  %1558 = vrot.lane.b32.xlu0 %v1552_v42, %s6337_s22  ;;  %v8145_v19 = vsel %vm494_vm0, %v12007_v58, %v3342_v56  ;;  %v8152_v26 = vmul.f32 %v8138_v61, %v7884_v22  ;;  %v8162_v58 = vstv %s8073_s25  ;;  %s6069_s25 = sld [smem:[#allocation10 + $0x1f]] }
 0x264   : > { %12332 = vst [vmem:[#allocation153_spill] sm:$0xff] %v8145_v19  ;;  %2007 = vrot.lane.b32.xlu2 %v6996_v12, %s6336_s21  ;;  %v1449_v32 = vadd.f32 %v7881_v28, %v1390_v14  ;;  %v8168_v12 = vmul.f32 %v8109_v3, %v7909_v54  ;;  %v8172_v42 = vmul.f32 %v8162_v58, %v7884_v22  ;;  %v12336_v28 = vrot.slane %v8131_v60, 1 }
 0x265   : > { %12333 = vst [vmem:[#allocation154_spill] sm:$0xff] %v8157_v62  ;;  %v12018_v56 = vrot.slane %v8157_v62, 1  ;;  %v8187_v1 = vmul.f32 %v8175_v50, %v7884_v22  ;;  %v8191_v3 = vstv %s8102_s26  ;;  %v12339_v60 = vrot.slane %v8106_v2, 1  ;;  %s6071_s26 = sld [smem:[#allocation10 + $0x67]] }
 0x266   : > { %12334 = vst [vmem:[#allocation155_spill] sm:$0xff] %v8168_v12  ;;  %v1523_v48 = vpop.permute.xlu2 %1522  ;;  %v8182_v14 = vsel %vm494_vm0, %v12336_v28, %v12335_v47  ;;  %v1694_v5 = vmul.f32 %v7861_v11, %v7780_v9  ;;  %v12343_v62 = vrot.slane %v8168_v12, 2 }
 0x267   : > { %12337 = vst [vmem:[#allocation156_spill] sm:$0xff] %v8182_v14  ;;  %v1529_v33 = vadd.f32 %v1523_v48, %v1449_v32  ;;  %v8201_v47 = vsel %vm494_vm0, %v12018_v56, %v12339_v60  ;;  %v8205_v32 = vmul.f32 %v8138_v61, %v7909_v54  ;;  %v12341_v48 = vrot.slane %v6967_v52, 1 }
 0x268   : > { %12338 = vst [vmem:[#allocation157_spill] sm:$0xff] %v8191_v3  ;;  %v12342_v14 = vrot.slane %v8126_v30, 2  ;;  %v1693_v56 = vmul.f32 %v7780_v9, %v7794_v29  ;;  %v8237_v9 = vstv %s8140_s27  ;;  %v8261_v52 = vstv %s8164_s28  ;;  %s6072_s27 = sld [smem:[#allocation10 + $0x8b]] }
 0x269   : > { %12340 = vst [vmem:[#allocation158_spill] sm:$0xff] %v8205_v32  ;;  %v1674_v28 = vsel %vm494_vm0, %v1672_v24, %v12341_v48  ;;  %v8213_v19 = vadd.f32 %v7110_v39, %v1529_v33  ;;  %v12022_v24 = vrot.slane %v8205_v32, 2  ;;  %v8228_v48 = vmul.f32 %v8162_v58, %v7909_v54  ;;  %s6073_s28 = sld [smem:[#allocation10 + $0x20]] }
 0x26a   : > { %v8220_v60 = vsel %vm576_vm1, %v12343_v62, %v12342_v14  ;;  %v1398_v39 = vmul.f32 %v7827_v15, %v8191_v3  ;;  %v8245_v62 = vmul.f32 %v8237_v9, %v7884_v22  ;;  %v12346_v15 = vrot.slane %v8152_v26, 2 }
 0x26b   : > { %12344 = vst [vmem:[#allocation159_spill] sm:$0xff] %v8220_v60  ;;  %1681 = vrot.lane.b32.xlu1 %v7010_v16, %s6336_s21  ;;  %1679 = vrot.lane.b32.xlu0 %v1674_v28, %s6336_s21  ;;  %v12025_v14 = vrot.slane %v8228_v48, 2  ;;  %v8257_v28 = vmul.f32 %v8175_v50, %v7909_v54  ;;  %v1702_v33 = vrot.slane %v1694_v5, 1  ;;  %v1701_v60 = vrot.slane %v1693_v56, 1 }
 0x26c   : > { %12345 = vst [vmem:[#allocation160_spill] sm:$0xff] %v8228_v48  ;;  %2036 = vrot.lane.b32.xlu2 %v7003_v13, %s6336_s21  ;;  %v8252_v16 = vsel %vm576_vm1, %v12022_v24, %v12346_v15  ;;  %v1469_v13 = vadd.f32 %v7918_v31, %v1398_v39  ;;  %v8265_v32 = vmul.f32 %v8261_v52, %v7884_v22  ;;  %v12349_v15 = vrot.slane %v8172_v42, 2 }
 0x26d   : > { %12347 = vst [vmem:[#allocation161_spill] sm:$0xff] %v8252_v16  ;;  %v12027_v16 = vrot.slane %v8257_v28, 2  ;;  %v1723_v31 = vmul.f32 %v7861_v11, %v7801_v53  ;;  %v8279_v56 = vstv %s8194_s29  ;;  %v12351_v39 = vrot.slane %v8187_v1, 2  ;;  %s6085_s29 = sld [smem:[#allocation10 + $0x23]] }
 0x26e   : > { %12348 = vst [vmem:[#allocation162_spill] sm:$0xff] %v8257_v28  ;;  %v1543_v3 = vpop.permute.xlu2 %1542  ;;  %v8272_v24 = vsel %vm576_vm1, %v12025_v14, %v12349_v15  ;;  %v8290_v15 = vmul.f32 %v8237_v9, %v7909_v54  ;;  %v1722_v14 = vmul.f32 %v7801_v53, %v7794_v29  ;;  %v8302_v28 = vmul.f32 %v8279_v56, %v7884_v22 }
 0x26f   : > { %12350 = vst [vmem:[#allocation163_spill] sm:$0xff] %v8272_v24  ;;  %v1549_v12 = vadd.f32 %v1543_v3, %v1469_v13  ;;  %v8286_v48 = vsel %vm576_vm1, %v12027_v16, %v12351_v39  ;;  %v12354_v3 = vrot.slane %v7789_v4, 1  ;;  %v1703_v39 = vsel %vm494_vm0, %v1701_v60, %v1702_v33 }
 0x270   : > { %12352 = vst [vmem:[#allocation164_spill] sm:$0xff] %v8286_v48  ;;  %v12028_v48 = vrot.slane %v8290_v15, 2  ;;  %v8309_v4 = vmul.f32 %v8261_v52, %v7909_v54  ;;  %v8316_v53 = vstv %s8239_s30  ;;  %v12358_v24 = vrot.slane %v8265_v32, 2  ;;  %s6082_s30 = sld [smem:[#allocation10 + $0x46]] }
 0x271   : > { %12353 = vst [vmem:[#allocation165_spill] sm:$0xff] %v8290_v15  ;;  %v1705_v13 = vsel %vm494_vm0, %v1702_v33, %v12354_v3  ;;  %v8298_v5 = vadd.f32 %v7148_v10, %v1549_v12  ;;  %v1731_v10 = vrot.slane %v1723_v31, 1  ;;  %v12356_v12 = vrot.slane %v8245_v62, 2 }
 0x272   : > { %12355 = vst [vmem:[#allocation166_spill] sm:$0xff] %v8309_v4  ;;  %v12031_v33 = vrot.slane %v8309_v4, 2  ;;  %v3652_v3 = vstv %s6044_s10  ;;  %v1752_v31 = vmul.f32 %v7861_v11, %v7820_v25  ;;  %s6086_s10 = sld [smem:[#allocation10 + $0x47]] }
 0x273   : > { %1710 = vrot.lane.b32.xlu1 %v1705_v13, %s6336_s21  ;;  %1708 = vrot.lane.b32.xlu0 %v1703_v39, %s6336_s21  ;;  %v8323_v60 = vsel %vm576_vm1, %v12028_v48, %v12356_v12  ;;  %v1489_v13 = vadd.f32 %v7999_v57, %v6924_v45  ;;  %v1730_v39 = vrot.slane %v1722_v14, 1  ;;  %v8341_v48 = vmul.f32 %v3652_v3, %v7884_v22 }
 0x274   : > { %2065 = vrot.lane.b32.xlu2 %v7026_v37, %s6336_s21  ;;  %12357 = vst [vmem:[#allocation167_spill] sm:$0xff] %v8323_v60  ;;  %v8331_v37 = vmul.f32 %v8316_v53, %v7884_v22  ;;  %v8338_v12 = vsel %vm576_vm1, %v12031_v33, %v12358_v24  ;;  %v3656_v45 = vmul.f32 %v3652_v3, %v8055_v38 }
 0x275   : > { %12359 = vst [vmem:[#allocation168_spill] sm:$0xff] %v8341_v48  ;;  %v8346_v57 = vmul.f32 %v8279_v56, %v7909_v54  ;;  %v12032_v60 = vrot.slane %v8341_v48, 2  ;;  %v1751_v24 = vmul.f32 %v7820_v25, %v7794_v29  ;;  %v8360_v33 = vmul.f32 %v8316_v53, %v7909_v54 }
 0x276   : > { %v1563_v16 = vpop.permute.xlu2 %1562  ;;  %v3666_v15 = vrot.slane %v3656_v45, 2  ;;  %v12038_v38 = vrot.slane %v8331_v37, 2  ;;  %v1732_v45 = vsel %vm494_vm0, %v1730_v39, %v1731_v10  ;;  %v1760_v39 = vrot.slane %v1752_v31, 1 }
 0x277   : > { %12360 = vst [vmem:[#allocation169_spill] sm:$0xff] %v8346_v57  ;;  %v1569_v14 = vadd.f32 %v1563_v16, %v1489_v13  ;;  %v12362_v16 = vrot.slane %v7810_v21, 1  ;;  %v12364_v25 = vrot.slane %v8346_v57, 2  ;;  %v12035_v21 = vrot.slane %v8360_v33, 2 }
 0x278   : > { %12361 = vst [vmem:[#allocation170_spill] sm:$0xff] %v8360_v33  ;;  %v8369_v4 = vsel %vm576_vm1, %v12032_v60, %v3666_v15  ;;  %v1780_v31 = vmul.f32 %v7844_v43, %v7794_v29 }
 0x279   : > { %v8355_v22 = vadd.f32 %v7169_v36, %v1569_v14  ;;  %v1734_v13 = vsel %vm494_vm0, %v1731_v10, %v12362_v16  ;;  %v12363_v36 = vrot.slane %v8302_v28, 2  ;;  %v3062_v16 = vld [vmem:[#allocation2 + $0x40] sm:$0xff]  ;;  %v8388_v15 = vsel %vm576_vm1, %v12035_v21, %v12038_v38 }
 0x27a   : > { %12366 = vst [vmem:[#allocation172_spill] sm:$0xff] %v8388_v15  ;;  %v1781_v21 = vmul.f32 %v7861_v11, %v7844_v43  ;;  %v12406_v38 = vld [vmem:[#allocation26_spill] sm:$0xff] }
 0x27b   : > { %v8376_v14 = vsel %vm576_vm1, %v12364_v25, %v12363_v36  ;;  %1739 = vrot.lane.b32.xlu1 %v1734_v13, %s6336_s21  ;;  %1737 = vrot.lane.b32.xlu0 %v1732_v45, %s6336_s21  ;;  %v1759_v36 = vrot.slane %v1751_v24, 1  ;;  %v8392_v13 = vmul.f32 %v8064_v46, %v7909_v54  ;;  %v3329_v45 = vmul.f32 %v8064_v46, %v3062_v16 }
 0x27c   : > { %12365 = vst [vmem:[#allocation171_spill] sm:$0xff] %v8376_v14  ;;  %2094 = vrot.lane.b32.xlu2 %v7062_v55, %s6336_s21  ;;  %v12368_v55 = vrot.slane %v7831_v0, 1  ;;  %v8414_v0 = vmul.f32 %v3652_v3, %v7909_v54  ;;  %v3653_v24 = vmul.f32 %v3652_v3, %v3062_v16  ;;  %v1810_v54 = vmul.f32 %v7861_v11, %v7867_v7 }
 0x27d   : > { %12367 = vst [vmem:[#allocation173_spill] sm:$0xff] %v8392_v13  ;;  %v12037_v25 = vrot.slane %v8392_v13, 1  ;;  %v3337_v60 = vrot.slane %v3329_v45, 1  ;;  %v1761_v33 = vsel %vm494_vm0, %v1759_v36, %v1760_v39  ;;  %v1789_v36 = vrot.slane %v1781_v21, 1 }
 0x27e   : > { %v1684_v10 = vpop.permute.xlu2 %1683  ;;  %v1763_v48 = vsel %vm494_vm0, %v1760_v39, %v12368_v55  ;;  %12370 = vst [vmem:[#allocation175_spill] sm:$0xff] %v8414_v0  ;;  %v1788_v45 = vrot.slane %v1780_v31, 1  ;;  %v12036_v43 = vrot.slane %v8414_v0, 2  ;;  %v1809_v3 = vmul.f32 %v7867_v7, %v7794_v29 }
 0x27f   : > { %v8409_v46 = vsel %vm494_vm0, %v3337_v60, %v12037_v25  ;;  %v12372_v60 = vrot.slane %v7853_v63, 1  ;;  %v1818_v16 = vrot.slane %v1810_v54, 1  ;;  %v12373_v31 = vrot.slane %v7876_v18, 1 }
 0x280   : > { %12369 = vst [vmem:[#allocation174_spill] sm:$0xff] %v8409_v46  ;;  %v1817_v63 = vrot.slane %v1809_v3, 1  ;;  %v1838_v7 = vmul.f32 %v7890_v59, %v7794_v29  ;;  %v1867_v3 = vmul.f32 %v7936_v23, %v7794_v29 }
 0x281   : > { %v1792_v55 = vsel %vm494_vm0, %v1789_v36, %v12372_v60 }
 0x283   : > { %1768 = vrot.lane.b32.xlu1 %v1763_v48, %s6336_s21  ;;  %1766 = vrot.lane.b32.xlu0 %v1761_v33, %s6336_s21  ;;  %v3661_v48 = vrot.slane %v3653_v24, 2  ;;  %v1821_v24 = vsel %vm494_vm0, %v1818_v16, %v12373_v31 }
 0x284   : > { %2123 = vrot.lane.b32.xlu2 %v7093_v41, %s6337_s22  ;;  %v1790_v41 = vsel %vm494_vm0, %v1788_v45, %v1789_v36  ;;  %v1819_v36 = vsel %vm494_vm0, %v1817_v63, %v1818_v16  ;;  %v1839_v45 = vmul.f32 %v7861_v11, %v7890_v59  ;;  %v12374_v59 = vrot.slane %v7901_v44, 1 }
 0x285   : > { %v8420_v33 = vsel %vm576_vm1, %v3661_v48, %v12036_v43  ;;  %v1690_v16 = vadd.f32 %v1684_v10, %v8122_v35  ;;  %v12378_v10 = vrot.slane %v7952_v20, 1 }
 0x286   : > { %v1713_v39 = vpop.permute.xlu2 %1712  ;;  %12371 = vst [vmem:[#allocation176_spill] sm:$0xff] %v8420_v33  ;;  %v1847_v60 = vrot.slane %v1839_v45, 1 }
 0x28b   : > { %1797 = vrot.lane.b32.xlu1 %v1792_v55, %s6337_s22  ;;  %1795 = vrot.lane.b32.xlu0 %v1790_v41, %s6337_s22  ;;  %v1846_v55 = vrot.slane %v1838_v7, 1  ;;  %v1850_v41 = vsel %vm494_vm0, %v1847_v60, %v12374_v59  ;;  %v8467_v7 = vstv %s5985_s12  ;;  %s6083_s12 = sld [smem:[#allocation10 + $0x6a]] }
 0x28c   : > { %2152 = vrot.lane.b32.xlu2 %v7126_v49, %s6337_s22 }
 0x28d   : > { %v1848_v54 = vsel %vm494_vm0, %v1846_v55, %v1847_v60  ;;  %v1988_v55 = vmul.f32 %v6885_v27, %v7794_v29 }
 0x28e   : > { %v1742_v21 = vpop.permute.xlu2 %1741 }
 0x293   : > { %1826 = vrot.lane.b32.xlu1 %v1821_v24, %s6337_s22  ;;  %1824 = vrot.lane.b32.xlu0 %v1819_v36, %s6337_s22  ;;  %v1875_v36 = vrot.slane %v1867_v3, 1 }
 0x294   : > { %2181 = vrot.lane.b32.xlu2 %v7153_v40, %s6337_s22  ;;  %v1868_v40 = vmul.f32 %v7861_v11, %v7936_v23  ;;  %v1989_v23 = vmul.f32 %v7861_v11, %v6885_v27  ;;  %v2018_v27 = vmul.f32 %v7861_v11, %v6899_v34 }
 0x295   : > { %v1364_v49 = vpop.permute.xlu1 %1363  ;;  %v1362_v48 = vpop.permute.xlu0 %1361 }
 0x296   : > { %v8446_v18 = vpop.permute.xlu2 %1770  ;;  %1372 = vst.msk [vmem:[#allocation2 + $0x69] sm:$0xff] %vm668_vm4, %v1364_v49  ;;  %v1876_v24 = vrot.slane %v1868_v40, 1  ;;  %v1996_v40 = vrot.slane %v1988_v55, 2 }
 0x297   : > { %1371 = vst.msk [vmem:[#allocation2 + $0x61] sm:$0xff] %vm668_vm4, %v1362_v48 }
 0x298   : > { %v1879_v48 = vsel %vm494_vm0, %v1876_v24, %v12378_v10  ;;  %v1877_v60 = vsel %vm494_vm0, %v1875_v36, %v1876_v24  ;;  %v1748_v10 = vadd.f32 %v1742_v21, %v8298_v5  ;;  %v12390_v21 = vld [vmem:[#allocation23_spill] sm:$0xff] }
 0x29b   : > { %1855 = vrot.lane.b32.xlu1 %v1850_v41, %s6337_s22  ;;  %1853 = vrot.lane.b32.xlu0 %v1848_v54, %s6337_s22  ;;  %v1997_v54 = vrot.slane %v1989_v23, 2 }
 0x29c   : > { %2210 = vrot.lane.b32.xlu2 %v7176_v6, %s6337_s22  ;;  %v8474_v6 = vld [vmem:[#allocation2 + $0x30] sm:$0xff] }
 0x29d   : > { %v8463_v44 = vpop.permute.xlu1 %1420  ;;  %v8465_v63 = vpop.permute.xlu0 %1418  ;;  %v2258_v35 = vmul.f32 %v8474_v6, %v8467_v7  ;;  %v1998_v23 = vsel %vm576_vm1, %v1996_v40, %v1997_v54 }
 0x29e   : > { %12375 = vst [vmem:[#allocation177_spill] sm:$0xff] %v8463_v44  ;;  %v1800_v31 = vpop.permute.xlu2 %1799 }
 0x29f   : > { %12376 = vst [vmem:[#allocation178_spill] sm:$0xff] %v8465_v63  ;;  %v1806_v45 = vadd.f32 %v1800_v31, %v1690_v16  ;;  %v8492_v16 = vstv %s5986_s13  ;;  %v12381_v31 = vld [vmem:[#allocation47_spill] sm:$0xff]  ;;  %s6087_s13 = sld [smem:[#allocation10 + $0x6b]] }
 0x2a1   : > { %v8472_v49 = vadd.f32 %v7228_v17, %v1806_v45  ;;  %v1719_v17 = vadd.f32 %v1713_v39, %v8213_v19  ;;  %v2278_v19 = vmul.f32 %v8474_v6, %v8492_v16  ;;  %v12383_v39 = vld [vmem:[#allocation22_spill] sm:$0xff] }
 0x2a2   : > { %v12384_v36 = vrot.slane %v12383_v39, 2 }
 0x2a3   : > { %12377 = vst [vmem:[#allocation179_spill] sm:$0xff] %v8472_v49  ;;  %1884 = vrot.lane.b32.xlu1 %v1879_v48, %s6337_s22  ;;  %1882 = vrot.lane.b32.xlu0 %v1877_v60, %s6337_s22 }
 0x2a4   : > { %2266 = vrot.lane.b32.xlu2 %v2258_v35, %s6336_s21  ;;  %v2000_v45 = vsel %vm576_vm1, %v1997_v54, %v12384_v36  ;;  %v2017_v35 = vmul.f32 %v6899_v34, %v7794_v29  ;;  %v8515_v54 = vstv %s5987_s14  ;;  %v12387_v34 = vld [vmem:[#allocation18_spill] sm:$0xff]  ;;  %s6076_s14 = sld [smem:[#allocation10 + $0x8c]] }
 0x2a5   : > { %v8488_v59 = vpop.permute.xlu1 %1440  ;;  %v8490_v41 = vpop.permute.xlu0 %1438  ;;  %v2047_v40 = vmul.f32 %v7861_v11, %v12387_v34  ;;  %v2298_v5 = vmul.f32 %v8474_v6, %v8515_v54  ;;  %v9014_v15 = vstv %s6087_s13  ;;  %s6060_s13 = sld [smem:[#allocation10 + $0x88]] }
 0x2a6   : > { %12379 = vst [vmem:[#allocation180_spill] sm:$0xff] %v8488_v59  ;;  %v1829_v20 = vpop.permute.xlu2 %1828 }
 0x2a7   : > { %12380 = vst [vmem:[#allocation181_spill] sm:$0xff] %v8490_v41  ;;  %v1835_v3 = vadd.f32 %v1829_v20, %v1719_v17  ;;  %v2026_v17 = vrot.slane %v2018_v27, 2  ;;  %v2025_v20 = vrot.slane %v2017_v35, 2 }
 0x2a8   : > { %12530 = vst [vmem:[#allocation211_spill] sm:$0xff] %v9014_v15 }
 0x2a9   : > { %v8497_v24 = vadd.f32 %v12381_v31, %v1835_v3  ;;  %v12388_v31 = vld [vmem:[#allocation49_spill] sm:$0xff]  ;;  %v2027_v27 = vsel %vm576_vm1, %v2025_v20, %v2026_v17  ;;  %v8539_v20 = vstv %s5988_s6  ;;  %s6084_s6 = sld [smem:[#allocation10 + $0x8e]] }
 0x2ab   : > { %12382 = vst [vmem:[#allocation47_spill] sm:$0xff] %v8497_v24  ;;  %2005 = vrot.lane.b32.xlu1 %v2000_v45, %s6336_s21  ;;  %2003 = vrot.lane.b32.xlu0 %v1998_v23, %s6336_s21  ;;  %v2046_v45 = vmul.f32 %v12387_v34, %v7794_v29  ;;  %v1777_v23 = vadd.f32 %v8446_v18, %v8355_v22  ;;  %v12393_v34 = vld [vmem:[#allocation19_spill] sm:$0xff]  ;;  %v12395_v18 = vld [vmem:[#allocation24_spill] sm:$0xff]  ;;  %v12485_v24 = vld [vmem:[#allocation82_spill] sm:$0xff] }
 0x2ac   : > { %2286 = vrot.lane.b32.xlu2 %v2278_v19, %s6336_s21  ;;  %v12391_v19 = vrot.slane %v12390_v21, 2  ;;  %v2076_v21 = vmul.f32 %v7861_v11, %v12393_v34  ;;  %v2318_v22 = vmul.f32 %v8474_v6, %v8539_v20 }
 0x2ad   : > { %v8511_v48 = vpop.permute.xlu1 %1460  ;;  %v8513_v60 = vpop.permute.xlu0 %1458 }
 0x2ae   : > { %12385 = vst [vmem:[#allocation22_spill] sm:$0xff] %v8511_v48  ;;  %v1858_v55 = vpop.permute.xlu2 %1857  ;;  %v2029_v36 = vsel %vm576_vm1, %v2026_v17, %v12391_v19  ;;  %v12394_v19 = vld [vmem:[#allocation50_spill] sm:$0xff] }
 0x2af   : > { %12386 = vst [vmem:[#allocation182_spill] sm:$0xff] %v8513_v60  ;;  %v1864_v3 = vadd.f32 %v1858_v55, %v1748_v10 }
 0x2b1   : > { %v8520_v39 = vadd.f32 %v12388_v31, %v1864_v3  ;;  %v2055_v3 = vrot.slane %v2047_v40, 2  ;;  %v2054_v31 = vrot.slane %v2046_v45, 2  ;;  %v2075_v45 = vmul.f32 %v12393_v34, %v7794_v29 }
 0x2b3   : > { %12389 = vst [vmem:[#allocation18_spill] sm:$0xff] %v8520_v39  ;;  %2034 = vrot.lane.b32.xlu1 %v2029_v36, %s6336_s21  ;;  %2032 = vrot.lane.b32.xlu0 %v2027_v27, %s6336_s21  ;;  %v2056_v40 = vsel %vm576_vm1, %v2054_v31, %v2055_v3 }
 0x2b4   : > { %2306 = vrot.lane.b32.xlu2 %v2298_v5, %s6336_s21  ;;  %v12396_v5 = vrot.slane %v12395_v18, 2  ;;  %v2083_v18 = vrot.slane %v2075_v45, 2 }
 0x2b5   : > { %v8535_v35 = vpop.permute.xlu1 %1480  ;;  %v8537_v10 = vpop.permute.xlu0 %1478 }
 0x2b6   : > { %12392 = vst [vmem:[#allocation49_spill] sm:$0xff] %v8535_v35  ;;  %v1887_v55 = vpop.permute.xlu2 %1886  ;;  %v2058_v27 = vsel %vm576_vm1, %v2055_v3, %v12396_v5  ;;  %v8563_v5 = vstv %s5989_s16  ;;  %v12400_v3 = vld [vmem:[#allocation28_spill] sm:$0xff]  ;;  %v8632_v35 = vstv %s5992_s19  ;;  %s6088_s16 = sld [smem:[#allocation10 + $0x8f]] }
 0x2b7   : > { %v1893_v17 = vadd.f32 %v1887_v55, %v1777_v23  ;;  %v12401_v31 = vrot.slane %v12400_v3, 2  ;;  %s6022_s19 = sld [smem:[#allocation10 + $0x37]] }
 0x2b9   : > { %v8544_v36 = vadd.f32 %v12394_v19, %v1893_v17  ;;  %v2084_v17 = vrot.slane %v2076_v21, 2 }
 0x2bb   : > { %2063 = vrot.lane.b32.xlu1 %v2058_v27, %s6336_s21  ;;  %2061 = vrot.lane.b32.xlu0 %v2056_v40, %s6336_s21  ;;  %v2087_v34 = vsel %vm576_vm1, %v2084_v17, %v12401_v31  ;;  %v2338_v27 = vmul.f32 %v8474_v6, %v8563_v5  ;;  %v12402_v40 = vld [vmem:[#allocation21_spill] sm:$0xff] }
 0x2bc   : > { %2326 = vrot.lane.b32.xlu2 %v2318_v22, %s6336_s21  ;;  %v2085_v22 = vsel %vm576_vm1, %v2083_v18, %v2084_v17  ;;  %v2105_v43 = vmul.f32 %v7861_v11, %v12402_v40  ;;  %v2104_v21 = vmul.f32 %v12402_v40, %v7794_v29  ;;  %v8584_v18 = vstv %s5990_s17  ;;  %s6080_s17 = sld [smem:[#allocation10 + $0x8d]] }
 0x2bd   : > { %v8557_v23 = vpop.permute.xlu1 %1500  ;;  %v8559_v55 = vpop.permute.xlu0 %1498  ;;  %v2134_v40 = vmul.f32 %v7861_v11, %v12406_v38 }
 0x2be   : > { %12397 = vst [vmem:[#allocation23_spill] sm:$0xff] %v8557_v23  ;;  %v8561_v19 = vpop.permute.xlu2 %2007  ;;  %v2113_v25 = vrot.slane %v2105_v43, 2  ;;  %v2112_v17 = vrot.slane %v2104_v21, 2 }
 0x2bf   : > { %12398 = vst [vmem:[#allocation19_spill] sm:$0xff] %v8559_v55 }
 0x2c0   : > { %12399 = vst [vmem:[#allocation50_spill] sm:$0xff] %v8561_v19  ;;  %v2114_v55 = vsel %vm576_vm1, %v2112_v17, %v2113_v25  ;;  %v12414_v17 = vld [vmem:[#allocation17_spill] sm:$0xff] }
 0x2c3   : > { %2092 = vrot.lane.b32.xlu1 %v2087_v34, %s6336_s21  ;;  %2090 = vrot.lane.b32.xlu0 %v2085_v22, %s6336_s21  ;;  %v2358_v34 = vmul.f32 %v8474_v6, %v8584_v18  ;;  %v12407_v22 = vld [vmem:[#allocation31_spill] sm:$0xff] }
 0x2c4   : > { %2346 = vrot.lane.b32.xlu2 %v2338_v27, %s6337_s22  ;;  %v12408_v41 = vrot.slane %v12407_v22, 2  ;;  %v2142_v22 = vrot.slane %v2134_v40, 2 }
 0x2c5   : > { %v8578_v45 = vpop.permute.xlu1 %1520  ;;  %v8580_v3 = vpop.permute.xlu0 %1518 }
 0x2c6   : > { %12403 = vst [vmem:[#allocation24_spill] sm:$0xff] %v8578_v45  ;;  %v8582_v31 = vpop.permute.xlu2 %2036  ;;  %v2116_v27 = vsel %vm576_vm1, %v2113_v25, %v12408_v41  ;;  %v8605_v41 = vstv %s5991_s18  ;;  %v12412_v25 = vld [vmem:[#allocation32_spill] sm:$0xff]  ;;  %s6021_s18 = sld [smem:[#allocation10 + $0x13]] }
 0x2c7   : > { %12404 = vst [vmem:[#allocation28_spill] sm:$0xff] %v8580_v3  ;;  %v2133_v3 = vmul.f32 %v12406_v38, %v7794_v29  ;;  %v8609_v38 = vmul.f32 %v7861_v11, %v12412_v25  ;;  %v2378_v40 = vmul.f32 %v8474_v6, %v8605_v41 }
 0x2c8   : > { %12405 = vst [vmem:[#allocation21_spill] sm:$0xff] %v8582_v31 }
 0x2c9   : > { %v2141_v23 = vrot.slane %v2133_v3, 2  ;;  %12413 = vst [vmem:[#allocation32_spill] sm:$0xff] %v8609_v38  ;;  %v12416_v3 = vld [vmem:[#allocation35_spill] sm:$0xff] }
 0x2ca   : > { %v12417_v0 = vrot.slane %v12416_v3, 2 }
 0x2cb   : > { %2121 = vrot.lane.b32.xlu1 %v2116_v27, %s6337_s22  ;;  %2119 = vrot.lane.b32.xlu0 %v2114_v55, %s6337_s22  ;;  %v1641_v55 = vmul.f32 %v12412_v25, %v7794_v29  ;;  %v12415_v27 = vld [vmem:[#allocation29_spill] sm:$0xff]  ;;  %v12041_v25 = vrot.slane %v8609_v38, 1  ;;  %v12428_v38 = vld [vmem:[#allocation52_spill] sm:$0xff] }
 0x2cc   : > { %2366 = vrot.lane.b32.xlu2 %v2358_v34, %s6337_s22  ;;  %v1404_v34 = vmul.f32 %v12414_v17, %v7794_v29  ;;  %v2163_v44 = vmul.f32 %v7861_v11, %v12415_v27  ;;  %v2145_v13 = vsel %vm576_vm1, %v2142_v22, %v12417_v0  ;;  %v2162_v60 = vmul.f32 %v12415_v27, %v7794_v29 }
 0x2cd   : > { %v8599_v43 = vpop.permute.xlu1 %1540  ;;  %v8601_v21 = vpop.permute.xlu0 %1538 }
 0x2ce   : > { %12409 = vst [vmem:[#allocation26_spill] sm:$0xff] %v8599_v43  ;;  %v8603_v63 = vpop.permute.xlu2 %2065  ;;  %v1649_v43 = vrot.slane %v1641_v55, 1  ;;  %v1487_v48 = vadd.f32 %v8537_v10, %v1404_v34  ;;  %v2171_v0 = vrot.slane %v2163_v44, 2  ;;  %v12419_v55 = vld [vmem:[#allocation37_spill] sm:$0xff]  ;;  %v2398_v34 = vmul.f32 %v8474_v6, %v8632_v35 }
 0x2cf   : > { %12410 = vst [vmem:[#allocation31_spill] sm:$0xff] %v8601_v21  ;;  %v2143_v21 = vsel %vm576_vm1, %v2141_v23, %v2142_v22  ;;  %v2170_v22 = vrot.slane %v2162_v60, 2  ;;  %v12420_v27 = vrot.slane %v12419_v55, 2 }
 0x2d0   : > { %12411 = vst [vmem:[#allocation183_spill] sm:$0xff] %v8603_v63 }
 0x2d1   : > { %v2174_v10 = vsel %vm576_vm1, %v2171_v0, %v12420_v27  ;;  %v2172_v44 = vsel %vm576_vm1, %v2170_v22, %v2171_v0 }
 0x2d3   : > { %2150 = vrot.lane.b32.xlu1 %v2145_v13, %s6337_s22  ;;  %2148 = vrot.lane.b32.xlu0 %v2143_v21, %s6337_s22  ;;  %v1651_v13 = vsel %vm494_vm0, %v1649_v43, %v12041_v25  ;;  %v8651_v43 = vld [vmem:[#allocation2 + $0x38] sm:$0x3] }
 0x2d4   : > { %2386 = vrot.lane.b32.xlu2 %v2378_v40, %s6337_s22  ;;  %v12421_v40 = vld [vmem:[#allocation34_spill] sm:$0xff] }
 0x2d5   : > { %v8630_v45 = vpop.permute.xlu1 %1560  ;;  %v1559_v3 = vpop.permute.xlu0 %1558  ;;  %v2191_v60 = vmul.f32 %v12421_v40, %v7794_v29 }
 0x2d6   : > { %12418 = vst [vmem:[#allocation29_spill] sm:$0xff] %v8630_v45  ;;  %v2095_v59 = vpop.permute.xlu2 %2094  ;;  %v1567_v23 = vadd.f32 %v1559_v3, %v1487_v48  ;;  %v2192_v48 = vmul.f32 %v7861_v11, %v12421_v40  ;;  %v12422_v3 = vld [vmem:[#allocation51_spill] sm:$0xff]  ;;  %v12429_v45 = vrot.slane %v12428_v38, 1  ;;  %v8684_v38 = vld [vmem:[#allocation2 + $0x20] sm:$0xff] }
 0x2d7   : > { %v2199_v27 = vrot.slane %v2191_v60, 2  ;;  %v12426_v40 = vld [vmem:[#allocation39_spill] sm:$0xff] }
 0x2d8   : > { %v8637_v21 = vadd.f32 %v1651_v13, %v1567_v23  ;;  %v2511_v23 = vmul.f32 %v8651_v43, %v12422_v3  ;;  %v2200_v55 = vrot.slane %v2192_v48, 2 }
 0x2da   : > { %v2521_v29 = vrot.slane %v2511_v23, 1  ;;  %v2201_v25 = vsel %vm576_vm1, %v2199_v27, %v2200_v55  ;;  %v8680_v27 = vld [vmem:[#allocation2 + $0x28] sm:$0xff] }
 0x2db   : > { %2179 = vrot.lane.b32.xlu1 %v2174_v10, %s6337_s22  ;;  %2177 = vrot.lane.b32.xlu0 %v2172_v44, %s6337_s22  ;;  %v12427_v10 = vrot.slane %v12426_v40, 2 }
 0x2dc   : > { %2406 = vrot.lane.b32.xlu2 %v2398_v34, %s6337_s22  ;;  %v2522_v17 = vsel %vm494_vm0, %v12429_v45, %v2521_v29  ;;  %v12430_v34 = vld [vmem:[#allocation53_spill] sm:$0xff]  ;;  %v2257_v45 = vmul.f32 %v8680_v27, %v8467_v7  ;;  %v12434_v29 = vld [vmem:[#allocation54_spill] sm:$0xff] }
 0x2dd   : > { %v8656_v13 = vpop.permute.xlu1 %1681  ;;  %v8658_v0 = vpop.permute.xlu0 %1679  ;;  %v2203_v44 = vsel %vm576_vm1, %v2200_v55, %v12427_v10  ;;  %v12435_v40 = vrot.slane %v12434_v29, 1  ;;  %v12436_v10 = vld [vmem:[#allocation56_spill] sm:$0xff] }
 0x2de   : > { %12423 = vst [vmem:[#allocation35_spill] sm:$0xff] %v8656_v13  ;;  %v8660_v22 = vpop.permute.xlu2 %2123 }
 0x2df   : > { %12424 = vst [vmem:[#allocation37_spill] sm:$0xff] %v8658_v0  ;;  %v2540_v0 = vmul.f32 %v8651_v43, %v12430_v34 }
 0x2e0   : > { %12425 = vst [vmem:[#allocation34_spill] sm:$0xff] %v8660_v22  ;;  %v2864_v22 = vmul.f32 %v8651_v43, %v12485_v24 }
 0x2e1   : > { %v2550_v55 = vrot.slane %v2540_v0, 1  ;;  %v2569_v0 = vmul.f32 %v8651_v43, %v12436_v10 }
 0x2e3   : > { %2208 = vrot.lane.b32.xlu1 %v2203_v44, %s6337_s22  ;;  %2206 = vrot.lane.b32.xlu0 %v2201_v25, %s6337_s22  ;;  %v2256_v25 = vmul.f32 %v8684_v38, %v8467_v7  ;;  %v2579_v7 = vrot.slane %v2569_v0, 1  ;;  %v8714_v0 = vstv %s5984_s23  ;;  %s6023_s23 = sld [smem:[#allocation10 + $0x5b]] }
 0x2e4   : > { %2527 = vrot.lane.b32.xlu2 %v2522_v17, %s6336_s21  ;;  %v2551_v17 = vsel %vm494_vm0, %v12435_v40, %v2550_v55  ;;  %v2277_v55 = vmul.f32 %v8680_v27, %v8492_v16 }
 0x2e5   : > { %v8674_v48 = vpop.permute.xlu1 %1710  ;;  %v8676_v60 = vpop.permute.xlu0 %1708 }
 0x2e6   : > { %12431 = vst [vmem:[#allocation51_spill] sm:$0xff] %v8674_v48  ;;  %v8678_v23 = vpop.permute.xlu2 %2152 }
 0x2e7   : > { %12432 = vst [vmem:[#allocation39_spill] sm:$0xff] %v8676_v60 }
 0x2e8   : > { %12433 = vst [vmem:[#allocation52_spill] sm:$0xff] %v8678_v23  ;;  %v12483_v23 = vld [vmem:[#allocation81_spill] sm:$0xff] }
 0x2eb   : > { %2264 = vrot.lane.b32.xlu1 %v2257_v45, %s6336_s21  ;;  %2262 = vrot.lane.b32.xlu0 %v2256_v25, %s6336_s21  ;;  %v2276_v45 = vmul.f32 %v8684_v38, %v8492_v16  ;;  %v12440_v25 = vld [vmem:[#allocation58_spill] sm:$0xff] }
 0x2ec   : > { %2556 = vrot.lane.b32.xlu2 %v2551_v17, %s6336_s21  ;;  %v12441_v29 = vrot.slane %v12440_v25, 1  ;;  %v12442_v17 = vld [vmem:[#allocation60_spill] sm:$0xff]  ;;  %12443 = vst [vmem:[#allocation58_spill] sm:$0xff] %v8714_v0 }
 0x2ed   : > { %v8696_v44 = vpop.permute.xlu1 %1739  ;;  %v8698_v60 = vpop.permute.xlu0 %1737 }
 0x2ee   : > { %12437 = vst [vmem:[#allocation53_spill] sm:$0xff] %v8696_v44  ;;  %v8700_v13 = vpop.permute.xlu2 %2181  ;;  %v2580_v40 = vsel %vm494_vm0, %v12441_v29, %v2579_v7  ;;  %v2101_v44 = vadd.f32 %v2095_v59, %v8544_v36  ;;  %v2250_v7 = vmul.f32 %v8474_v6, %v8714_v0 }
 0x2ef   : > { %12438 = vst [vmem:[#allocation54_spill] sm:$0xff] %v8698_v60  ;;  %v2598_v60 = vmul.f32 %v8651_v43, %v12442_v17 }
 0x2f0   : > { %12439 = vst [vmem:[#allocation56_spill] sm:$0xff] %v8700_v13 }
 0x2f1   : > { %v2608_v13 = vrot.slane %v2598_v60, 1 }
 0x2f3   : > { %2284 = vrot.lane.b32.xlu1 %v2277_v55, %s6336_s21  ;;  %2282 = vrot.lane.b32.xlu0 %v2276_v45, %s6336_s21  ;;  %v2297_v55 = vmul.f32 %v8680_v27, %v8515_v54  ;;  %v2296_v45 = vmul.f32 %v8684_v38, %v8515_v54 }
 0x2f4   : > { %2585 = vrot.lane.b32.xlu2 %v2580_v40, %s6336_s21  ;;  %v12445_v40 = vld [vmem:[#allocation63_spill] sm:$0xff] }
 0x2f5   : > { %v8717_v48 = vpop.permute.xlu1 %1768  ;;  %v1767_v16 = vpop.permute.xlu0 %1766  ;;  %v12446_v63 = vrot.slane %v12445_v40, 1 }
 0x2f6   : > { %12444 = vst [vmem:[#allocation60_spill] sm:$0xff] %v8717_v48  ;;  %v2211_v33 = vpop.permute.xlu2 %2210  ;;  %v12463_v48 = vld [vmem:[#allocation45_spill] sm:$0xff] }
 0x2f7   : > { %v2217_v25 = vadd.f32 %v2211_v33, %v2101_v44  ;;  %v2609_v59 = vsel %vm494_vm0, %v12446_v63, %v2608_v13  ;;  %v12447_v33 = vld [vmem:[#allocation64_spill] sm:$0xff]  ;;  %v2316_v63 = vmul.f32 %v8684_v38, %v8539_v20  ;;  %v12451_v13 = vld [vmem:[#allocation65_spill] sm:$0xff] }
 0x2f8   : > { %v2627_v36 = vmul.f32 %v8651_v43, %v12447_v33 }
 0x2f9   : > { %v8725_v29 = vadd.f32 %v2250_v7, %v2217_v25  ;;  %v2317_v25 = vmul.f32 %v8680_v27, %v8539_v20  ;;  %v12452_v7 = vrot.slane %v12451_v13, 1  ;;  %v2337_v13 = vmul.f32 %v8680_v27, %v8563_v5 }
 0x2fa   : > { %v2637_v44 = vrot.slane %v2627_v36, 1 }
 0x2fb   : > { %2304 = vrot.lane.b32.xlu1 %v2297_v55, %s6336_s21  ;;  %2302 = vrot.lane.b32.xlu0 %v2296_v45, %s6336_s21  ;;  %v12453_v45 = vld [vmem:[#allocation68_spill] sm:$0xff] }
 0x2fc   : > { %2614 = vrot.lane.b32.xlu2 %v2609_v59, %s6336_s21  ;;  %v2638_v55 = vsel %vm494_vm0, %v12452_v7, %v2637_v44  ;;  %v2656_v40 = vmul.f32 %v8651_v43, %v12453_v45  ;;  %v2336_v44 = vmul.f32 %v8684_v38, %v8563_v5 }
 0x2fd   : > { %v8735_v6 = vpop.permute.xlu1 %1797  ;;  %v8737_v60 = vpop.permute.xlu0 %1795 }
 0x2fe   : > { %12448 = vst [vmem:[#allocation63_spill] sm:$0xff] %v8735_v6  ;;  %v8739_v54 = vpop.permute.xlu2 %2266  ;;  %v2666_v20 = vrot.slane %v2656_v40, 1 }
 0x2ff   : > { %12449 = vst [vmem:[#allocation64_spill] sm:$0xff] %v8737_v60 }
 0x300   : > { %12450 = vst [vmem:[#allocation184_spill] sm:$0xff] %v8739_v54  ;;  %v12484_v54 = vrot.slane %v12483_v23, 2 }
 0x303   : > { %2324 = vrot.lane.b32.xlu1 %v2317_v25, %s6336_s21  ;;  %2322 = vrot.lane.b32.xlu0 %v2316_v63, %s6336_s21  ;;  %v12457_v25 = vld [vmem:[#allocation70_spill] sm:$0xff] }
 0x304   : > { %2643 = vrot.lane.b32.xlu2 %v2638_v55, %s6337_s22  ;;  %v12458_v63 = vrot.slane %v12457_v25, 1  ;;  %v12459_v55 = vld [vmem:[#allocation72_spill] sm:$0xff]  ;;  %v8779_v25 = vmul.f32 %v7861_v11, %v12463_v48  ;;  %v12467_v11 = vld [vmem:[#allocation74_spill] sm:$0xff] }
 0x305   : > { %v8753_v59 = vpop.permute.xlu1 %1826  ;;  %v8755_v36 = vpop.permute.xlu0 %1824 }
 0x306   : > { %12454 = vst [vmem:[#allocation65_spill] sm:$0xff] %v8753_v59  ;;  %v8757_v60 = vpop.permute.xlu2 %2286  ;;  %v2667_v7 = vsel %vm494_vm0, %v12458_v63, %v2666_v20  ;;  %v6213_v20 = vld [vmem:[#allocation2] sm:$0xff]  ;;  %v2356_v63 = vmul.f32 %v8684_v38, %v8584_v18 }
 0x307   : > { %12455 = vst [vmem:[#allocation68_spill] sm:$0xff] %v8755_v36  ;;  %v2685_v36 = vmul.f32 %v8651_v43, %v12459_v55 }
 0x308   : > { %12456 = vst [vmem:[#allocation185_spill] sm:$0xff] %v8757_v60 }
 0x309   : > { %v2695_v5 = vrot.slane %v2685_v36, 1  ;;  %12464 = vst [vmem:[#allocation45_spill] sm:$0xff] %v8779_v25  ;;  %v2714_v36 = vmul.f32 %v8651_v43, %v12467_v11 }
 0x30b   : > { %2344 = vrot.lane.b32.xlu1 %v2337_v13, %s6337_s22  ;;  %2342 = vrot.lane.b32.xlu0 %v2336_v44, %s6337_s22  ;;  %v1965_v13 = vmul.f32 %v6213_v20, %v12463_v48  ;;  %v2357_v44 = vmul.f32 %v8680_v27, %v8584_v18  ;;  %v12044_v48 = vrot.slane %v8779_v25, 2 }
 0x30c   : > { %2672 = vrot.lane.b32.xlu2 %v2667_v7, %s6337_s22  ;;  %v12465_v7 = vld [vmem:[#allocation76_spill] sm:$0xff] }
 0x30d   : > { %v8771_v40 = vpop.permute.xlu1 %1855  ;;  %v8773_v6 = vpop.permute.xlu0 %1853  ;;  %v1973_v20 = vrot.slane %v1965_v13, 2 }
 0x30e   : > { %12460 = vst [vmem:[#allocation70_spill] sm:$0xff] %v8771_v40  ;;  %v8775_v59 = vpop.permute.xlu2 %2306  ;;  %v12466_v40 = vrot.slane %v12465_v7, 1 }
 0x30f   : > { %12461 = vst [vmem:[#allocation72_spill] sm:$0xff] %v8773_v6 }
 0x310   : > { %12462 = vst [vmem:[#allocation186_spill] sm:$0xff] %v8775_v59  ;;  %v2696_v6 = vsel %vm494_vm0, %v12466_v40, %v2695_v5  ;;  %v1775_v59 = vadd.f32 %v1767_v16, %v8637_v21  ;;  %v2724_v5 = vrot.slane %v2714_v36, 1  ;;  %v2377_v21 = vmul.f32 %v8680_v27, %v8605_v41  ;;  %v12471_v36 = vld [vmem:[#allocation78_spill] sm:$0xff] }
 0x311   : > { %v2376_v16 = vmul.f32 %v8684_v38, %v8605_v41  ;;  %v8826_v41 = vld [vmem:[#allocation2 + $0x68] sm:$0xff] }
 0x313   : > { %2364 = vrot.lane.b32.xlu1 %v2357_v44, %s6337_s22  ;;  %2362 = vrot.lane.b32.xlu0 %v2356_v63, %s6337_s22  ;;  %v1975_v44 = vsel %vm576_vm1, %v1973_v20, %v12044_v48  ;;  %v8803_v63 = vld [vmem:[#allocation2 + $0x70] sm:$0xff]  ;;  %v2396_v48 = vmul.f32 %v8684_v38, %v8632_v35 }
 0x314   : > { %2701 = vrot.lane.b32.xlu2 %v2696_v6, %s6337_s22  ;;  %v12469_v6 = vld [vmem:[#allocation77_spill] sm:$0xff] }
 0x315   : > { %v8796_v18 = vpop.permute.xlu1 %1884  ;;  %v1883_v7 = vpop.permute.xlu0 %1882 }
 0x316   : > { %12468 = vst [vmem:[#allocation76_spill] sm:$0xff] %v8796_v18  ;;  %v8798_v60 = vpop.permute.xlu2 %2326  ;;  %v1891_v40 = vadd.f32 %v1883_v7, %v1775_v59  ;;  %v2835_v18 = vmul.f32 %v8651_v43, %v12469_v6  ;;  %v8813_v59 = vstv %s6069_s25  ;;  %v12472_v7 = vrot.slane %v12471_v36, 1  ;;  %s6024_s25 = sld [smem:[#allocation10 + $0x7f]] }
 0x317   : > { %12470 = vst [vmem:[#allocation74_spill] sm:$0xff] %v8813_v59  ;;  %v8822_v20 = vmul.f32 %v8813_v59, %v8803_v63 }
 0x318   : > { %v8805_v13 = vadd.f32 %v1975_v44, %v1891_v40  ;;  %v2725_v25 = vsel %vm494_vm0, %v12472_v7, %v2724_v5  ;;  %v8824_v40 = vstv %s6070_s20  ;;  %v2845_v36 = vrot.slane %v2835_v18, 2  ;;  %s6025_s20 = sld [smem:[#allocation10 + $0x14]] }
 0x319   : > { %12473 = vst [vmem:[#allocation77_spill] sm:$0xff] %v8822_v20  ;;  %v8831_v44 = vmul.f32 %v8824_v40, %v8803_v63  ;;  %v8839_v7 = vstv %s6071_s26  ;;  %v2397_v18 = vmul.f32 %v8680_v27, %v8632_v35  ;;  %v8871_v27 = vstv %s6072_s27  ;;  %s6026_s26 = sld [smem:[#allocation10 + $0x38]] }
 0x31a   : > { %12474 = vst [vmem:[#allocation78_spill] sm:$0xff] %v8824_v40  ;;  %v8844_v39 = vmul.f32 %v8839_v7, %v8803_v63  ;;  %v2846_v31 = vsel %vm576_vm1, %v12484_v54, %v2845_v36  ;;  %v12487_v23 = vrot.slane %v8822_v20, 1  ;;  %v9032_v20 = vmul.f32 %v9014_v15, %v8803_v63  ;;  %s6027_s27 = sld [smem:[#allocation10 + $0x5c]] }
 0x31b   : > { %2384 = vrot.lane.b32.xlu1 %v2377_v21, %s6337_s22  ;;  %2382 = vrot.lane.b32.xlu0 %v2376_v16, %s6337_s22  ;;  %12475 = vst [vmem:[#allocation187_spill] sm:$0xff] %v8831_v44  ;;  %v12491_v36 = vrot.slane %v8831_v44, 1 }
 0x31c   : > { %2730 = vrot.lane.b32.xlu2 %v2725_v25, %s6337_s22  ;;  %12479 = vst [vmem:[#allocation191_spill] sm:$0xff] %v8839_v7  ;;  %v8848_v25 = vmul.f32 %v8813_v59, %v8826_v41 }
 0x31d   : > { %v8833_v5 = vpop.permute.xlu1 %2005  ;;  %v8835_v21 = vpop.permute.xlu0 %2003  ;;  %12480 = vst [vmem:[#allocation192_spill] sm:$0xff] %v8844_v39 }
 0x31e   : > { %12476 = vst [vmem:[#allocation188_spill] sm:$0xff] %v8833_v5  ;;  %v8837_v16 = vpop.permute.xlu2 %2346  ;;  %v2508_v5 = vmul.f32 %v8684_v38, %v12422_v3  ;;  %v8882_v3 = vmul.f32 %v8839_v7, %v8826_v41  ;;  %v2874_v7 = vrot.slane %v2864_v22, 2 }
 0x31f   : > { %12477 = vst [vmem:[#allocation189_spill] sm:$0xff] %v8835_v21  ;;  %v8853_v21 = vmul.f32 %v8824_v40, %v8826_v41 }
 0x320   : > { %12478 = vst [vmem:[#allocation190_spill] sm:$0xff] %v8837_v16  ;;  %v12047_v16 = vrot.slane %v8848_v25, 1  ;;  %v12056_v35 = vrot.slane %v8882_v3, 1 }
 0x321   : > { %12481 = vst [vmem:[#allocation193_spill] sm:$0xff] %v8848_v25  ;;  %v12053_v40 = vrot.slane %v8853_v21, 1  ;;  %v8903_v25 = vstv %s6073_s28  ;;  %s6028_s28 = sld [smem:[#allocation10 + $0x80]] }
 0x322   : > { %12482 = vst [vmem:[#allocation194_spill] sm:$0xff] %v8853_v21  ;;  %v8878_v54 = vsel %vm494_vm0, %v12047_v16, %v12487_v23  ;;  %v8907_v44 = vmul.f32 %v8903_v25, %v8803_v63  ;;  %v12498_v21 = vrot.slane %v8844_v39, 1 }
 0x323   : > { %2404 = vrot.lane.b32.xlu1 %v2397_v18, %s6337_s22  ;;  %2402 = vrot.lane.b32.xlu0 %v2396_v48, %s6337_s22  ;;  %12486 = vst [vmem:[#allocation81_spill] sm:$0xff] %v8871_v27  ;;  %v8887_v48 = vmul.f32 %v8871_v27, %v8803_v63  ;;  %v8894_v18 = vsel %vm494_vm0, %v12053_v40, %v12491_v36  ;;  %v12506_v40 = vld [vmem:[#allocation86_spill] sm:$0xff] }
 0x324   : > { %12488 = vst [vmem:[#allocation82_spill] sm:$0xff] %v8878_v54  ;;  %2851 = vrot.lane.b32.xlu2 %v2846_v31, %s6336_s21  ;;  %v2516_v31 = vrot.slane %v2508_v5, 1  ;;  %v8914_v36 = vsel %vm494_vm0, %v12056_v35, %v12498_v21  ;;  %v12501_v5 = vld [vmem:[#allocation55_spill] sm:$0xff] }
 0x325   : > { %12489 = vst [vmem:[#allocation195_spill] sm:$0xff] %v8882_v3  ;;  %v8896_v23 = vpop.permute.xlu1 %2034  ;;  %v8898_v16 = vpop.permute.xlu0 %2032  ;;  %v12503_v3 = vld [vmem:[#allocation85_spill] sm:$0xff]  ;;  %v12505_v35 = vld [vmem:[#allocation59_spill] sm:$0xff] }
 0x326   : > { %12490 = vst [vmem:[#allocation196_spill] sm:$0xff] %v8887_v48  ;;  %v8901_v54 = vpop.permute.xlu2 %2366  ;;  %v12504_v39 = vrot.slane %v12503_v3, 2  ;;  %v8943_v3 = vstv %s6085_s29  ;;  %s6020_s29 = sld [smem:[#allocation10 + $0x7e]] }
 0x327   : > { %12492 = vst [vmem:[#allocation197_spill] sm:$0xff] %v8894_v18  ;;  %v2537_v18 = vmul.f32 %v8684_v38, %v12430_v34  ;;  %v8938_v34 = vmul.f32 %v8903_v25, %v8826_v41 }
 0x328   : > { %12493 = vst [vmem:[#allocation198_spill] sm:$0xff] %v8896_v23  ;;  %v12502_v23 = vrot.slane %v12501_v5, 1  ;;  %v2875_v21 = vsel %vm576_vm1, %v12504_v39, %v2874_v7  ;;  %v2893_v5 = vmul.f32 %v8651_v43, %v12506_v40  ;;  %v12509_v39 = vrot.slane %v8887_v48, 1  ;;  %v12520_v48 = vld [vmem:[#allocation91_spill] sm:$0xff] }
 0x329   : > { %12494 = vst [vmem:[#allocation199_spill] sm:$0xff] %v8898_v16  ;;  %v8919_v16 = vmul.f32 %v8871_v27, %v8826_v41 }
 0x32a   : > { %12495 = vst [vmem:[#allocation200_spill] sm:$0xff] %v8901_v54  ;;  %v2518_v22 = vsel %vm494_vm0, %v2516_v31, %v12502_v23  ;;  %v8940_v31 = vld [vmem:[#allocation2 + $0x78] sm:$0x3]  ;;  %v8958_v23 = vmul.f32 %v8943_v3, %v8803_v63  ;;  %v2903_v27 = vrot.slane %v2893_v5, 2 }
 0x32b   : > { %12496 = vst [vmem:[#allocation201_spill] sm:$0xff] %v8903_v25  ;;  %v12062_v54 = vrot.slane %v8919_v16, 1  ;;  %2525 = vrot.lane.b32.xlu1 %v12505_v35, %s6336_s21  ;;  %2523 = vrot.lane.b32.xlu0 %v2518_v22, %s6336_s21  ;;  %v2545_v25 = vrot.slane %v2537_v18, 1  ;;  %v12519_v18 = vld [vmem:[#allocation88_spill] sm:$0xff] }
 0x32c   : > { %12497 = vst [vmem:[#allocation202_spill] sm:$0xff] %v8907_v44  ;;  %2880 = vrot.lane.b32.xlu2 %v2875_v21, %s6336_s21  ;;  %v12066_v21 = vrot.slane %v8938_v34, 1  ;;  %v2922_v5 = vmul.f32 %v8651_v43, %v12519_v18 }
 0x32d   : > { %12499 = vst [vmem:[#allocation203_spill] sm:$0xff] %v8914_v36  ;;  %v8950_v7 = vsel %vm494_vm0, %v12062_v54, %v12509_v39  ;;  %v8952_v35 = vpop.permute.xlu1 %2063  ;;  %v8954_v22 = vpop.permute.xlu0 %2061  ;;  %v4639_v54 = vmul.f32 %v8943_v3, %v8940_v31 }
 0x32e   : > { %12500 = vst [vmem:[#allocation204_spill] sm:$0xff] %v8919_v16  ;;  %v8961_v36 = vpop.permute.xlu2 %2386  ;;  %v12515_v16 = vrot.slane %v8907_v44, 1  ;;  %v2566_v44 = vmul.f32 %v8684_v38, %v12436_v10  ;;  %v2333_v10 = vadd.f32 %v8798_v60, %v8725_v29  ;;  %v4577_v60 = vstv %s6083_s12  ;;  %s6059_s12 = sld [smem:[#allocation10 + $0x64]] }
 0x32f   : > { %12507 = vst [vmem:[#allocation55_spill] sm:$0xff] %v8938_v34  ;;  %v4548_v34 = vstv %s6082_s30  ;;  %v9012_v49 = vmul.f32 %v4577_v60, %v8803_v63  ;;  %v9058_v57 = vmul.f32 %v4577_v60, %v8826_v41  ;;  %s6057_s30 = sld [smem:[#allocation10 + $0x1c]] }
 0x330   : > { %12508 = vst [vmem:[#allocation85_spill] sm:$0xff] %v8943_v3  ;;  %v8968_v39 = vsel %vm494_vm0, %v12066_v21, %v12515_v16  ;;  %v12521_v16 = vrot.slane %v12520_v48, 2  ;;  %v2574_v3 = vrot.slane %v2566_v44, 1 }
 0x331   : > { %12510 = vst [vmem:[#allocation59_spill] sm:$0xff] %v8950_v7 }
 0x332   : > { %12511 = vst [vmem:[#allocation86_spill] sm:$0xff] %v8952_v35  ;;  %v12517_v35 = vld [vmem:[#allocation57_spill] sm:$0xff]  ;;  %v2904_v21 = vsel %vm576_vm1, %v12521_v16, %v2903_v27  ;;  %v2932_v16 = vrot.slane %v2922_v5, 2 }
 0x333   : > { %12512 = vst [vmem:[#allocation205_spill] sm:$0xff] %v8954_v22  ;;  %v12518_v7 = vrot.slane %v12517_v35, 1  ;;  %v8987_v35 = vmul.f32 %v4548_v34, %v8803_v63 }
 0x334   : > { %12513 = vst [vmem:[#allocation206_spill] sm:$0xff] %v8958_v23  ;;  %2909 = vrot.lane.b32.xlu2 %v2904_v21, %s6336_s21 }
 0x335   : > { %12514 = vst [vmem:[#allocation207_spill] sm:$0xff] %v8961_v36  ;;  %v2547_v36 = vsel %vm494_vm0, %v2545_v25, %v12518_v7  ;;  %v4649_v25 = vrot.slane %v4639_v54, 2  ;;  %v8990_v7 = vstv %s6086_s10  ;;  %v8994_v22 = vpop.permute.xlu1 %2092  ;;  %v8996_v48 = vpop.permute.xlu0 %2090  ;;  %v4552_v54 = vmul.f32 %v4548_v34, %v8940_v31  ;;  %s6058_s10 = sld [smem:[#allocation10 + $0x40]] }
 0x336   : > { %12516 = vst [vmem:[#allocation208_spill] sm:$0xff] %v8968_v39  ;;  %v12522_v39 = vld [vmem:[#allocation61_spill] sm:$0xff]  ;;  %2552 = vrot.lane.b32.xlu0 %v2547_v36, %s6336_s21  ;;  %v9000_v27 = vmul.f32 %v8990_v7, %v8803_v63  ;;  %v12527_v36 = vrot.slane %v8958_v23, 2  ;;  %v2407_v21 = vpop.permute.xlu2 %2406  ;;  %v12531_v23 = vld [vmem:[#allocation84_spill] sm:$0xff] }
 0x337   : > { %2554 = vrot.lane.b32.xlu1 %v12522_v39, %s6336_s21  ;;  %12523 = vst [vmem:[#allocation57_spill] sm:$0xff] %v8987_v35  ;;  %v2413_v19 = vadd.f32 %v2407_v21, %v2333_v10  ;;  %v4562_v5 = vrot.slane %v4552_v54, 2  ;;  %v9023_v10 = vld [vmem:[#allocation2 + $0x60] sm:$0xff] }
 0x338   : > { %12524 = vst [vmem:[#allocation88_spill] sm:$0xff] %v8990_v7  ;;  %v9005_v39 = vsel %vm576_vm1, %v12527_v36, %v4649_v25  ;;  %v9020_v36 = vmul.f32 %v4548_v34, %v8826_v41  ;;  %v12533_v21 = vld [vmem:[#allocation62_spill] sm:$0xff] }
 0x339   : > { %12525 = vst [vmem:[#allocation91_spill] sm:$0xff] %v8994_v22  ;;  %v4668_v22 = vmul.f32 %v8990_v7, %v8940_v31  ;;  %v9017_v25 = vadd.f32 %v12531_v23, %v2413_v19  ;;  %v12534_v29 = vrot.slane %v12533_v21, 1  ;;  %v2595_v7 = vmul.f32 %v8684_v38, %v12442_v17  ;;  %v12536_v23 = vld [vmem:[#allocation95_spill] sm:$0xff]  ;;  %v12538_v54 = vld [vmem:[#allocation66_spill] sm:$0xff]  ;;  %v12539_v21 = vld [vmem:[#allocation92_spill] sm:$0xff] }
 0x33a   : > { %12526 = vst [vmem:[#allocation61_spill] sm:$0xff] %v9000_v27  ;;  %v4581_v19 = vmul.f32 %v4577_v60, %v8940_v31  ;;  %v12537_v59 = vrot.slane %v12536_v23, 2  ;;  %v12540_v17 = vrot.slane %v8987_v35, 2 }
 0x33b   : > { %12528 = vst [vmem:[#allocation209_spill] sm:$0xff] %v9005_v39  ;;  %v2576_v39 = vsel %vm494_vm0, %v2574_v3, %v12534_v29  ;;  %v2951_v3 = vmul.f32 %v8651_v43, %v12539_v21  ;;  %v4678_v14 = vrot.slane %v4668_v22, 2  ;;  %v12545_v22 = vrot.slane %v9000_v27, 2 }
 0x33c   : > { %12529 = vst [vmem:[#allocation210_spill] sm:$0xff] %v9012_v49  ;;  %v2933_v44 = vsel %vm576_vm1, %v12537_v59, %v2932_v16  ;;  %v9046_v29 = vsel %vm576_vm1, %v12540_v17, %v4562_v5  ;;  %v4697_v59 = vmul.f32 %v9014_v15, %v8940_v31  ;;  %v4549_v5 = vmul.f32 %v4548_v34, %v9023_v10 }
 0x33d   : > { %12532 = vst [vmem:[#allocation84_spill] sm:$0xff] %v9020_v36  ;;  %2938 = vrot.lane.b32.xlu2 %v2933_v44, %s6336_s21  ;;  %v9052_v16 = vpop.permute.xlu1 %2121  ;;  %v9064_v44 = vsel %vm576_vm1, %v12545_v22, %v4678_v14  ;;  %v2603_v23 = vrot.slane %v2595_v7, 1  ;;  %v2961_v15 = vrot.slane %v2951_v3, 2  ;;  %v12550_v27 = vrot.slane %v9020_v36, 2  ;;  %v12552_v22 = vld [vmem:[#allocation67_spill] sm:$0xff] }
 0x33e   : > { %12535 = vst [vmem:[#allocation62_spill] sm:$0xff] %v9032_v20  ;;  %2581 = vrot.lane.b32.xlu0 %v2576_v39, %s6336_s21  ;;  %v9066_v17 = vpop.permute.xlu2 %2527  ;;  %v12548_v39 = vrot.slane %v9012_v49, 2  ;;  %v4707_v46 = vrot.slane %v4697_v59, 2  ;;  %v4578_v7 = vmul.f32 %v4577_v60, %v9023_v10  ;;  %v2624_v3 = vmul.f32 %v8684_v38, %v12447_v33  ;;  %v12559_v60 = vld [vmem:[#allocation99_spill] sm:$0xff]  ;;  %v12585_v49 = vld [vmem:[#allocation80_spill] sm:$0xff] }
 0x33f   : > { %2583 = vrot.lane.b32.xlu1 %v12538_v54, %s6336_s21  ;;  %12541 = vst [vmem:[#allocation95_spill] sm:$0xff] %v9046_v29  ;;  %v9054_v54 = vpop.permute.xlu0 %2119  ;;  %v12553_v29 = vrot.slane %v12552_v22, 1 }
 0x340   : > { %12542 = vst [vmem:[#allocation66_spill] sm:$0xff] %v9052_v16  ;;  %v4591_v16 = vrot.slane %v4581_v19, 2 }
 0x341   : > { %12543 = vst [vmem:[#allocation92_spill] sm:$0xff] %v9054_v54  ;;  %v4557_v54 = vrot.slane %v4549_v5, 2  ;;  %v2605_v19 = vsel %vm494_vm0, %v2603_v23, %v12553_v29  ;;  %v2980_v29 = vmul.f32 %v8651_v43, %v12559_v60  ;;  %v4586_v23 = vrot.slane %v4578_v7, 2 }
 0x342   : > { %12544 = vst [vmem:[#allocation212_spill] sm:$0xff] %v9058_v57  ;;  %v9072_v35 = vsel %vm576_vm1, %v12548_v39, %v4591_v16  ;;  %v12554_v16 = vrot.slane %v9032_v20, 2  ;;  %v12556_v39 = vld [vmem:[#allocation96_spill] sm:$0xff] }
 0x343   : > { %12546 = vst [vmem:[#allocation213_spill] sm:$0xff] %v9064_v44  ;;  %v9078_v14 = vsel %vm576_vm1, %v4557_v54, %v12550_v27  ;;  %v12557_v5 = vrot.slane %v12556_v39, 2  ;;  %v12558_v27 = vld [vmem:[#allocation71_spill] sm:$0xff]  ;;  %v12565_v39 = vld [vmem:[#allocation106_spill] sm:$0xff] }
 0x344   : > { %12547 = vst [vmem:[#allocation214_spill] sm:$0xff] %v9066_v17  ;;  %v9089_v59 = vsel %vm576_vm1, %v12554_v16, %v4707_v46  ;;  %v2990_v16 = vrot.slane %v2980_v29, 2  ;;  %v3009_v7 = vmul.f32 %v8651_v43, %v12565_v39  ;;  %v12581_v44 = vld [vmem:[#allocation75_spill] sm:$0xff] }
 0x345   : > { %12549 = vst [vmem:[#allocation215_spill] sm:$0xff] %v9072_v35  ;;  %v2962_v34 = vsel %vm576_vm1, %v12557_v5, %v2961_v15  ;;  %v9100_v33 = vpop.permute.xlu1 %2150  ;;  %v12562_v15 = vrot.slane %v9058_v57, 2  ;;  %v12566_v5 = vld [vmem:[#allocation69_spill] sm:$0xff]  ;;  %v2682_v57 = vmul.f32 %v8684_v38, %v12459_v55 }
 0x346   : > { %12551 = vst [vmem:[#allocation216_spill] sm:$0xff] %v9078_v14  ;;  %2610 = vrot.lane.b32.xlu0 %v2605_v19, %s6336_s21  ;;  %2967 = vrot.lane.b32.xlu2 %v2962_v34, %s6337_s22  ;;  %v9109_v22 = vpop.permute.xlu2 %2556  ;;  %v2632_v19 = vrot.slane %v2624_v3, 1  ;;  %v2653_v34 = vmul.f32 %v8684_v38, %v12453_v45  ;;  %v3019_v3 = vrot.slane %v3009_v7, 2  ;;  %v12582_v14 = vrot.slane %v12581_v44, 1 }
 0x347   : > { %12555 = vst [vmem:[#allocation67_spill] sm:$0xff] %v9089_v59  ;;  %2612 = vrot.lane.b32.xlu1 %v12558_v27, %s6336_s21  ;;  %v9102_v46 = vpop.permute.xlu0 %2148  ;;  %v9107_v54 = vsel %vm576_vm1, %v4586_v23, %v12562_v15  ;;  %v12567_v27 = vrot.slane %v12566_v5, 1  ;;  %v12568_v59 = vld [vmem:[#allocation103_spill] sm:$0xff]  ;;  %v12570_v15 = vld [vmem:[#allocation73_spill] sm:$0xff]  ;;  %v4606_v5 = vstv %s6084_s6  ;;  %s6062_s6 = sld [smem:[#allocation10 + $0x41]] }
 0x348   : > { %12560 = vst [vmem:[#allocation96_spill] sm:$0xff] %v9100_v33  ;;  %v12569_v35 = vrot.slane %v12568_v59, 2  ;;  %v2661_v29 = vrot.slane %v2653_v34, 1  ;;  %v12584_v33 = vld [vmem:[#allocation108_spill] sm:$0xff]  ;;  %v4610_v44 = vmul.f32 %v4606_v5, %v8940_v31  ;;  %v4607_v55 = vmul.f32 %v4606_v5, %v9023_v10 }
 0x349   : > { %12561 = vst [vmem:[#allocation71_spill] sm:$0xff] %v9102_v46  ;;  %v2634_v46 = vsel %vm494_vm0, %v2632_v19, %v12567_v27  ;;  %v12579_v27 = vld [vmem:[#allocation110_spill] sm:$0xff]  ;;  %v3038_v20 = vmul.f32 %v8651_v43, %v12584_v33 }
 0x34a   : > { %12563 = vst [vmem:[#allocation99_spill] sm:$0xff] %v9107_v54  ;;  %v2991_v23 = vsel %vm576_vm1, %v12569_v35, %v2990_v16  ;;  %v4398_v54 = vstv %s6076_s14  ;;  %v9136_v16 = vmul.f32 %v4606_v5, %v8803_v63  ;;  %s6061_s14 = sld [smem:[#allocation10 + $0x1d]] }
 0x34b   : > { %12564 = vst [vmem:[#allocation217_spill] sm:$0xff] %v9109_v22  ;;  %v9126_v45 = vmul.f32 %v4398_v54, %v8826_v41  ;;  %v9129_v19 = vmul.f32 %v4398_v54, %v8803_v63 }
 0x34c   : > { %12575 = vst [vmem:[#allocation218_spill] sm:$0xff] %v9136_v16 }
 0x34d   : > { %12571 = vst [vmem:[#allocation106_spill] sm:$0xff] %v9126_v45  ;;  %v9131_v59 = vpop.permute.xlu1 %2179 }
 0x34e   : > { %2639 = vrot.lane.b32.xlu0 %v2634_v46, %s6337_s22  ;;  %2996 = vrot.lane.b32.xlu2 %v2991_v23, %s6337_s22  ;;  %12572 = vst [vmem:[#allocation69_spill] sm:$0xff] %v9129_v19  ;;  %v9138_v46 = vstv %s6088_s16  ;;  %v9140_v7 = vpop.permute.xlu2 %2585  ;;  %v12580_v23 = vrot.slane %v12579_v27, 2  ;;  %s6063_s16 = sld [smem:[#allocation10 + $0x65]] }
 0x34f   : > { %2641 = vrot.lane.b32.xlu1 %v12570_v15, %s6337_s22  ;;  %12573 = vst [vmem:[#allocation103_spill] sm:$0xff] %v9131_v59  ;;  %v9133_v35 = vpop.permute.xlu0 %2177  ;;  %v9144_v34 = vmul.f32 %v9138_v46, %v8803_v63  ;;  %v2663_v59 = vsel %vm494_vm0, %v2661_v29, %v12582_v14  ;;  %v4399_v14 = vmul.f32 %v4398_v54, %v9023_v10 }
 0x350   : > { %12574 = vst [vmem:[#allocation73_spill] sm:$0xff] %v9133_v35  ;;  %v3020_v15 = vsel %vm576_vm1, %v12580_v23, %v3019_v3  ;;  %v9153_v35 = vmul.f32 %v4606_v5, %v8826_v41  ;;  %v4402_v3 = vmul.f32 %v4398_v54, %v8940_v31  ;;  %v4496_v23 = vstv %s6080_s17  ;;  %s6064_s17 = sld [smem:[#allocation10 + $0x89]] }
 0x351   : > { %12576 = vst [vmem:[#allocation219_spill] sm:$0xff] %v9138_v46  ;;  %v4726_v43 = vmul.f32 %v9138_v46, %v8940_v31  ;;  %v4407_v22 = vrot.slane %v4399_v14, 1  ;;  %v2099_v54 = vadd.f32 %v8996_v48, %v8805_v13  ;;  %v9177_v29 = vmul.f32 %v4496_v23, %v8826_v41 }
 0x352   : > { %12577 = vst [vmem:[#allocation220_spill] sm:$0xff] %v9140_v7  ;;  %v4412_v36 = vrot.slane %v4402_v3, 1  ;;  %v4620_v7 = vrot.slane %v4610_v44, 2  ;;  %v4615_v5 = vrot.slane %v4607_v55, 2  ;;  %v12589_v3 = vrot.slane %v9129_v19, 1 }
 0x353   : > { %12578 = vst [vmem:[#allocation221_spill] sm:$0xff] %v9144_v34  ;;  %v4736_v46 = vrot.slane %v4726_v43, 2  ;;  %v12591_v13 = vrot.slane %v9136_v16, 2  ;;  %v12593_v41 = vrot.slane %v9126_v45, 1  ;;  %v2690_v55 = vrot.slane %v2682_v57, 1  ;;  %v12666_v16 = vld [vmem:[#allocation131_spill] sm:$0xff] }
 0x354   : > { %12583 = vst [vmem:[#allocation110_spill] sm:$0xff] %v9153_v35  ;;  %v9187_v44 = vsel %vm494_vm0, %v12589_v3, %v4412_v36  ;;  %v12595_v27 = vrot.slane %v9144_v34, 2  ;;  %v3048_v3 = vrot.slane %v3038_v20, 2 }
 0x355   : > { %12586 = vst [vmem:[#allocation75_spill] sm:$0xff] %v9177_v29  ;;  %v9179_v17 = vpop.permute.xlu1 %2208  ;;  %v9192_v48 = vsel %vm576_vm1, %v12591_v13, %v4620_v7  ;;  %v12597_v7 = vrot.slane %v9153_v35, 2 }
 0x356   : > { %2668 = vrot.lane.b32.xlu0 %v2663_v59, %s6337_s22  ;;  %3025 = vrot.lane.b32.xlu2 %v3020_v15, %s6337_s22  ;;  %12587 = vst [vmem:[#allocation108_spill] sm:$0xff] %v9179_v17  ;;  %v9182_v59 = vmul.f32 %v4496_v23, %v8803_v63  ;;  %v9197_v15 = vsel %vm494_vm0, %v4407_v22, %v12593_v41  ;;  %v2615_v14 = vpop.permute.xlu2 %2614 }
 0x357   : > { %2670 = vrot.lane.b32.xlu1 %v12585_v49, %s6337_s22  ;;  %v2207_v49 = vpop.permute.xlu0 %2206  ;;  %12590 = vst [vmem:[#allocation222_spill] sm:$0xff] %v9187_v44  ;;  %v2248_v63 = vmul.f32 %v8684_v38, %v8714_v0  ;;  %v9204_v36 = vsel %vm576_vm1, %v12595_v27, %v4736_v46  ;;  %v9209_v13 = vsel %vm576_vm1, %v4615_v5, %v12597_v7  ;;  %v9301_v44 = vstv %s6024_s25  ;;  %s5982_s25 = sld [smem:[#allocation10 + $0x2d]] }
 0x358   : > { %12588 = vst [vmem:[#allocation80_spill] sm:$0xff] %v9182_v59  ;;  %v2215_v43 = vadd.f32 %v2207_v49, %v2099_v54  ;;  %v12086_v54 = vrot.slane %v9177_v29, 2  ;;  %v12087_v57 = vrot.slane %v9182_v59, 2  ;;  %v4500_v49 = vmul.f32 %v4496_v23, %v8940_v31 }
 0x359   : > { %12592 = vst [vmem:[#allocation223_spill] sm:$0xff] %v9192_v48  ;;  %v4497_v41 = vmul.f32 %v4496_v23, %v9023_v10  ;;  %v2711_v27 = vmul.f32 %v8684_v38, %v12467_v11 }
 0x35a   : > { %12594 = vst [vmem:[#allocation224_spill] sm:$0xff] %v9197_v15  ;;  %v9211_v22 = vadd.f32 %v2248_v63, %v2215_v43  ;;  %v12599_v15 = vld [vmem:[#allocation83_spill] sm:$0xff]  ;;  %v12603_v63 = vld [vmem:[#allocation89_spill] sm:$0xff]  ;;  %v4510_v7 = vrot.slane %v4500_v49, 2  ;;  %v9247_v49 = vld [vmem:[#allocation2 + $0x50] sm:$0xff] }
 0x35b   : > { %12596 = vst [vmem:[#allocation225_spill] sm:$0xff] %v9204_v36  ;;  %v12600_v46 = vrot.slane %v12599_v15, 1  ;;  %v12601_v36 = vld [vmem:[#allocation111_spill] sm:$0xff]  ;;  %v4505_v31 = vrot.slane %v4497_v41, 2 }
 0x35c   : > { %12598 = vst [vmem:[#allocation226_spill] sm:$0xff] %v9209_v13  ;;  %v12602_v5 = vrot.slane %v12601_v36, 2  ;;  %v9236_v11 = vsel %vm576_vm1, %v12087_v57, %v4510_v7  ;;  %v2719_v36 = vrot.slane %v2711_v27, 1 }
 0x35d   : > { %v2692_v20 = vsel %vm494_vm0, %v2690_v55, %v12600_v46  ;;  %v9229_v10 = vpop.permute.xlu1 %2264  ;;  %12606 = vst [vmem:[#allocation89_spill] sm:$0xff] %v9236_v11  ;;  %v9241_v15 = vsel %vm576_vm1, %v4505_v31, %v12086_v54  ;;  %v12608_v46 = vld [vmem:[#allocation87_spill] sm:$0xff] }
 0x35e   : > { %v3049_v43 = vsel %vm576_vm1, %v12602_v5, %v3048_v3  ;;  %2697 = vrot.lane.b32.xlu0 %v2692_v20, %s6337_s22  ;;  %12604 = vst [vmem:[#allocation83_spill] sm:$0xff] %v9229_v10  ;;  %v9243_v55 = vpop.permute.xlu2 %2643  ;;  %v9245_v3 = vstv %s6021_s18  ;;  %v12609_v20 = vrot.slane %v12608_v46, 1  ;;  %v9266_v46 = vstv %s6022_s19  ;;  %s5981_s18 = sld [smem:[#allocation10 + $0x9]] }
 0x35f   : > { %2699 = vrot.lane.b32.xlu1 %v12603_v63, %s6337_s22  ;;  %3054 = vrot.lane.b32.xlu2 %v3049_v43, %s6337_s22  ;;  %v9231_v23 = vpop.permute.xlu0 %2262  ;;  %12607 = vst [vmem:[#allocation227_spill] sm:$0xff] %v9241_v15  ;;  %v3102_v41 = vmul.f32 %v9247_v49, %v9245_v3  ;;  %v2832_v43 = vmul.f32 %v8684_v38, %v12469_v6  ;;  %v12610_v63 = vld [vmem:[#allocation93_spill] sm:$0xff]  ;;  %s5993_s19 = sld [smem:[#allocation10 + $0xc]] }
 0x360   : > { %12605 = vst [vmem:[#allocation111_spill] sm:$0xff] %v9231_v23  ;;  %v2721_v5 = vsel %vm494_vm0, %v2719_v36, %v12609_v20  ;;  %v3122_v6 = vmul.f32 %v9247_v49, %v9266_v46  ;;  %v12613_v36 = vld [vmem:[#allocation90_spill] sm:$0xff] }
 0x361   : > { %v2840_v54 = vrot.slane %v2832_v43, 2  ;;  %v12614_v20 = vrot.slane %v12613_v36, 2  ;;  %v9285_v36 = vstv %s6023_s23  ;;  %s5994_s23 = sld [smem:[#allocation10 + $0x30]] }
 0x365   : > { %v9260_v27 = vpop.permute.xlu1 %2284 }
 0x366   : > { %2726 = vrot.lane.b32.xlu0 %v2721_v5, %s6337_s22  ;;  %12611 = vst [vmem:[#allocation87_spill] sm:$0xff] %v9260_v27  ;;  %v9264_v31 = vpop.permute.xlu2 %2672  ;;  %v12615_v5 = vld [vmem:[#allocation97_spill] sm:$0xff] }
 0x367   : > { %2728 = vrot.lane.b32.xlu1 %v12610_v63, %s6337_s22  ;;  %3110 = vrot.lane.b32.xlu2 %v3102_v41, %s6336_s21  ;;  %v9262_v7 = vpop.permute.xlu0 %2282  ;;  %v2842_v63 = vsel %vm576_vm1, %v2840_v54, %v12614_v20  ;;  %v2861_v41 = vmul.f32 %v8684_v38, %v12485_v24  ;;  %v3142_v24 = vmul.f32 %v9247_v49, %v9285_v36  ;;  %v12618_v54 = vld [vmem:[#allocation94_spill] sm:$0xff] }
 0x368   : > { %12612 = vst [vmem:[#allocation93_spill] sm:$0xff] %v9262_v7  ;;  %v12619_v20 = vrot.slane %v12618_v54, 2 }
 0x369   : > { %v2869_v11 = vrot.slane %v2861_v41, 2  ;;  %v2621_v41 = vadd.f32 %v2615_v14, %v9017_v25  ;;  %v2919_v25 = vmul.f32 %v8684_v38, %v12519_v18  ;;  %v12625_v14 = vld [vmem:[#allocation104_spill] sm:$0xff] }
 0x36d   : > { %v9279_v43 = vpop.permute.xlu1 %2304 }
 0x36e   : > { %2847 = vrot.lane.b32.xlu0 %v2842_v63, %s6336_s21  ;;  %12616 = vst [vmem:[#allocation90_spill] sm:$0xff] %v9279_v43  ;;  %v9283_v15 = vpop.permute.xlu2 %2701  ;;  %v12620_v63 = vld [vmem:[#allocation100_spill] sm:$0xff]  ;;  %v9377_v43 = vstv %s6028_s28  ;;  %s9932_s28 = sld [smem:[#allocation10 + $0x87]] }
 0x36f   : > { %2849 = vrot.lane.b32.xlu1 %v12615_v5, %s6336_s21  ;;  %3130 = vrot.lane.b32.xlu2 %v3122_v6, %s6336_s21  ;;  %v9281_v57 = vpop.permute.xlu0 %2302  ;;  %v2871_v5 = vsel %vm576_vm1, %v2869_v11, %v12619_v20  ;;  %v2890_v6 = vmul.f32 %v8684_v38, %v12506_v40  ;;  %v12622_v11 = vld [vmem:[#allocation116_spill] sm:$0xff]  ;;  %v3162_v20 = vmul.f32 %v9247_v49, %v9301_v44 }
 0x370   : > { %12617 = vst [vmem:[#allocation97_spill] sm:$0xff] %v9281_v57 }
 0x371   : > { %v2898_v48 = vrot.slane %v2890_v6, 2 }
 0x375   : > { %v9299_v29 = vpop.permute.xlu1 %2324 }
 0x376   : > { %2876 = vrot.lane.b32.xlu0 %v2871_v5, %s6336_s21  ;;  %12621 = vst [vmem:[#allocation94_spill] sm:$0xff] %v9299_v29  ;;  %v2731_v13 = vpop.permute.xlu2 %2730  ;;  %v12623_v5 = vld [vmem:[#allocation98_spill] sm:$0xff] }
 0x377   : > { %2878 = vrot.lane.b32.xlu1 %v12620_v63, %s6336_s21  ;;  %3150 = vrot.lane.b32.xlu2 %v3142_v24, %s6336_s21  ;;  %v2323_v59 = vpop.permute.xlu0 %2322  ;;  %v2737_v54 = vadd.f32 %v2731_v13, %v2621_v41  ;;  %v12624_v63 = vrot.slane %v12623_v5, 2 }
 0x379   : > { %v9304_v40 = vadd.f32 %v12622_v11, %v2737_v54  ;;  %v2900_v24 = vsel %vm576_vm1, %v2898_v48, %v12624_v63  ;;  %v2927_v54 = vrot.slane %v2919_v25, 2  ;;  %v9323_v11 = vstv %s6025_s20  ;;  %v12628_v48 = vld [vmem:[#allocation101_spill] sm:$0xff]  ;;  %s9898_s20 = sld [smem:[#allocation10 + $0xf]] }
 0x37a   : > { %v3182_v18 = vmul.f32 %v9247_v49, %v9323_v11  ;;  %v12629_v5 = vrot.slane %v12628_v48, 2  ;;  %v9342_v48 = vstv %s6026_s26  ;;  %s9912_s26 = sld [smem:[#allocation10 + $0x51]] }
 0x37c   : > { %v2929_v63 = vsel %vm576_vm1, %v2927_v54, %v12629_v5  ;;  %v12633_v54 = vld [vmem:[#allocation102_spill] sm:$0xff] }
 0x37d   : > { %v9317_v13 = vpop.permute.xlu1 %2344  ;;  %v12634_v5 = vrot.slane %v12633_v54, 2  ;;  %v9361_v54 = vstv %s6027_s27  ;;  %s9922_s27 = sld [smem:[#allocation10 + $0x54]] }
 0x37e   : > { %2905 = vrot.lane.b32.xlu0 %v2900_v24, %s6336_s21  ;;  %12626 = vst [vmem:[#allocation100_spill] sm:$0xff] %v9317_v13  ;;  %v9321_v41 = vpop.permute.xlu2 %2851  ;;  %v12630_v24 = vld [vmem:[#allocation105_spill] sm:$0xff] }
 0x37f   : > { %2907 = vrot.lane.b32.xlu1 %v12625_v14, %s6336_s21  ;;  %3170 = vrot.lane.b32.xlu2 %v3162_v20, %s6336_s21  ;;  %v9319_v6 = vpop.permute.xlu0 %2342  ;;  %v2948_v20 = vmul.f32 %v8684_v38, %v12539_v21  ;;  %v3202_v21 = vmul.f32 %v9247_v49, %v9342_v48 }
 0x380   : > { %12627 = vst [vmem:[#allocation116_spill] sm:$0xff] %v9319_v6 }
 0x381   : > { %v2956_v6 = vrot.slane %v2948_v20, 2 }
 0x385   : > { %v9336_v25 = vpop.permute.xlu1 %2364 }
 0x386   : > { %2934 = vrot.lane.b32.xlu0 %v2929_v63, %s6336_s21  ;;  %12631 = vst [vmem:[#allocation98_spill] sm:$0xff] %v9336_v25  ;;  %v9340_v7 = vpop.permute.xlu2 %2880  ;;  %v12635_v63 = vld [vmem:[#allocation107_spill] sm:$0xff] }
 0x387   : > { %2936 = vrot.lane.b32.xlu1 %v12630_v24, %s6336_s21  ;;  %3190 = vrot.lane.b32.xlu2 %v3182_v18, %s6337_s22  ;;  %v9338_v14 = vpop.permute.xlu0 %2362  ;;  %v2958_v24 = vsel %vm576_vm1, %v2956_v6, %v12634_v5  ;;  %v2977_v18 = vmul.f32 %v8684_v38, %v12559_v60  ;;  %v3222_v60 = vmul.f32 %v9247_v49, %v9361_v54  ;;  %v12638_v6 = vld [vmem:[#allocation109_spill] sm:$0xff] }
 0x388   : > { %12632 = vst [vmem:[#allocation104_spill] sm:$0xff] %v9338_v14  ;;  %v12639_v5 = vrot.slane %v12638_v6, 2 }
 0x389   : > { %v2985_v13 = vrot.slane %v2977_v18, 2  ;;  %v2331_v18 = vadd.f32 %v2323_v59, %v9211_v22  ;;  %v3035_v22 = vmul.f32 %v8684_v38, %v12584_v33  ;;  %v12649_v33 = vld [vmem:[#allocation115_spill] sm:$0xff] }
 0x38d   : > { %v9355_v20 = vpop.permute.xlu1 %2384 }
 0x38e   : > { %2963 = vrot.lane.b32.xlu0 %v2958_v24, %s6337_s22  ;;  %12636 = vst [vmem:[#allocation101_spill] sm:$0xff] %v9355_v20  ;;  %v9359_v23 = vpop.permute.xlu2 %2909  ;;  %v12640_v24 = vld [vmem:[#allocation113_spill] sm:$0xff] }
 0x38f   : > { %2965 = vrot.lane.b32.xlu1 %v12635_v63, %s6337_s22  ;;  %3210 = vrot.lane.b32.xlu2 %v3202_v21, %s6337_s22  ;;  %v9357_v14 = vpop.permute.xlu0 %2382  ;;  %v2987_v63 = vsel %vm576_vm1, %v2985_v13, %v12639_v5  ;;  %v3006_v21 = vmul.f32 %v8684_v38, %v12565_v39  ;;  %v12642_v13 = vld [vmem:[#allocation120_spill] sm:$0xff]  ;;  %v3242_v39 = vmul.f32 %v9247_v49, %v9377_v43 }
 0x390   : > { %12637 = vst [vmem:[#allocation105_spill] sm:$0xff] %v9357_v14 }
 0x391   : > { %v3014_v6 = vrot.slane %v3006_v21, 2  ;;  %v9397_v21 = vld [vmem:[#allocation2 + $0x58] sm:$0x3] }
 0x395   : > { %v9375_v10 = vpop.permute.xlu1 %2404 }
 0x396   : > { %2992 = vrot.lane.b32.xlu0 %v2987_v63, %s6337_s22  ;;  %12641 = vst [vmem:[#allocation102_spill] sm:$0xff] %v9375_v10  ;;  %v12684_v10 = vld [vmem:[#allocation122_spill] sm:$0xff] }
 0x397   : > { %2994 = vrot.lane.b32.xlu1 %v12640_v24, %s6337_s22  ;;  %3230 = vrot.lane.b32.xlu2 %v3222_v60, %s6337_s22  ;;  %v2403_v14 = vpop.permute.xlu0 %2402  ;;  %v2939_v57 = vpop.permute.xlu2 %2938  ;;  %v12643_v24 = vld [vmem:[#allocation114_spill] sm:$0xff]  ;;  %v12645_v60 = vld [vmem:[#allocation117_spill] sm:$0xff] }
 0x398   : > { %v2411_v20 = vadd.f32 %v2403_v14, %v2331_v18  ;;  %v12644_v63 = vrot.slane %v12643_v24, 2  ;;  %v12648_v18 = vld [vmem:[#allocation123_spill] sm:$0xff]  ;;  %v3043_v24 = vrot.slane %v3035_v22, 2  ;;  %v12656_v22 = vld [vmem:[#allocation125_spill] sm:$0xff] }
 0x39a   : > { %v9380_v5 = vadd.f32 %v12642_v13, %v2411_v20  ;;  %v3016_v59 = vsel %vm576_vm1, %v3014_v6, %v12644_v63  ;;  %v3355_v13 = vmul.f32 %v9397_v21, %v12648_v18  ;;  %v12650_v63 = vrot.slane %v12649_v33, 2 }
 0x39c   : > { %v3365_v38 = vrot.slane %v3355_v13, 1  ;;  %v3384_v13 = vmul.f32 %v9397_v21, %v12656_v22 }
 0x39d   : > { %v9393_v14 = vpop.permute.xlu1 %2525 }
 0x39e   : > { %3021 = vrot.lane.b32.xlu0 %v3016_v59, %s6337_s22  ;;  %12646 = vst [vmem:[#allocation107_spill] sm:$0xff] %v9393_v14  ;;  %v12651_v59 = vld [vmem:[#allocation124_spill] sm:$0xff]  ;;  %v12653_v14 = vld [vmem:[#allocation118_spill] sm:$0xff] }
 0x39f   : > { %3023 = vrot.lane.b32.xlu1 %v12645_v60, %s6337_s22  ;;  %3250 = vrot.lane.b32.xlu2 %v3242_v39, %s6337_s22  ;;  %v9395_v20 = vpop.permute.xlu0 %2523  ;;  %v3045_v60 = vsel %vm576_vm1, %v3043_v24, %v12650_v63  ;;  %v12652_v34 = vrot.slane %v12651_v59, 1  ;;  %v3394_v24 = vrot.slane %v3384_v13, 1  ;;  %v9421_v63 = vld [vmem:[#allocation2 + $0x48] sm:$0xff] }
 0x3a0   : > { %12647 = vst [vmem:[#allocation109_spill] sm:$0xff] %v9395_v20  ;;  %v9401_v6 = vpop.permute.xlu2 %2967 }
 0x3a1   : > { %v3366_v39 = vsel %vm494_vm0, %v12652_v34, %v3365_v38  ;;  %v3101_v34 = vmul.f32 %v9421_v63, %v9245_v3 }
 0x3a6   : > { %3050 = vrot.lane.b32.xlu0 %v3045_v60, %s6337_s22  ;;  %v12657_v60 = vld [vmem:[#allocation126_spill] sm:$0xff] }
 0x3a7   : > { %3052 = vrot.lane.b32.xlu1 %v12653_v14, %s6337_s22  ;;  %3371 = vrot.lane.b32.xlu2 %v3366_v39, %s6336_s21  ;;  %v9425_v14 = vld [vmem:[#allocation2 + $0x40] sm:$0xff]  ;;  %v12658_v59 = vrot.slane %v12657_v60, 1 }
 0x3a8   : > { %v9415_v25 = vpop.permute.xlu0 %2552  ;;  %v9419_v33 = vpop.permute.xlu2 %2996  ;;  %v3100_v38 = vmul.f32 %v9425_v14, %v9245_v3 }
 0x3a9   : > { %v9413_v20 = vpop.permute.xlu1 %2554  ;;  %12655 = vst [vmem:[#allocation120_spill] sm:$0xff] %v9415_v25  ;;  %v3395_v39 = vsel %vm494_vm0, %v12658_v59, %v3394_v24  ;;  %v3121_v24 = vmul.f32 %v9421_v63, %v9266_v46 }
 0x3aa   : > { %12654 = vst [vmem:[#allocation113_spill] sm:$0xff] %v9413_v20  ;;  %v12661_v20 = vld [vmem:[#allocation127_spill] sm:$0xff] }
 0x3ab   : > { %v3413_v27 = vmul.f32 %v9397_v21, %v12661_v20 }
 0x3ad   : > { %v3423_v3 = vrot.slane %v3413_v27, 1  ;;  %v2945_v27 = vadd.f32 %v2939_v57, %v9304_v40  ;;  %v12667_v57 = vld [vmem:[#allocation132_spill] sm:$0xff] }
 0x3ae   : > { %3106 = vrot.lane.b32.xlu0 %v3100_v38, %s6336_s21  ;;  %v12662_v38 = vld [vmem:[#allocation128_spill] sm:$0xff]  ;;  %v12668_v40 = vrot.slane %v12667_v57, 1 }
 0x3af   : > { %3108 = vrot.lane.b32.xlu1 %v3101_v34, %s6336_s21  ;;  %3400 = vrot.lane.b32.xlu2 %v3395_v39, %s6336_s21  ;;  %v3120_v34 = vmul.f32 %v9425_v14, %v9266_v46  ;;  %v12663_v60 = vrot.slane %v12662_v38, 1  ;;  %v9453_v39 = vstv %s6020_s29  ;;  %v3442_v46 = vmul.f32 %v9397_v21, %v12666_v16  ;;  %s9946_s29 = sld [smem:[#allocation10 + $0x33]] }
 0x3b0   : > { %v9437_v25 = vpop.permute.xlu0 %2581  ;;  %v9441_v35 = vpop.permute.xlu2 %3025  ;;  %12664 = vst [vmem:[#allocation123_spill] sm:$0xff] %v9453_v39 }
 0x3b1   : > { %v9435_v13 = vpop.permute.xlu1 %2583  ;;  %12660 = vst [vmem:[#allocation117_spill] sm:$0xff] %v9437_v25  ;;  %v3424_v59 = vsel %vm494_vm0, %v12663_v60, %v3423_v3  ;;  %v3094_v3 = vmul.f32 %v9247_v49, %v9453_v39  ;;  %v3140_v60 = vmul.f32 %v9425_v14, %v9285_v36 }
 0x3b2   : > { %12659 = vst [vmem:[#allocation114_spill] sm:$0xff] %v9435_v13 }
 0x3b6   : > { %3126 = vrot.lane.b32.xlu0 %v3120_v34, %s6336_s21  ;;  %v3141_v34 = vmul.f32 %v9421_v63, %v9285_v36 }
 0x3b7   : > { %3128 = vrot.lane.b32.xlu1 %v3121_v24, %s6336_s21  ;;  %3429 = vrot.lane.b32.xlu2 %v3424_v59, %s6336_s21  ;;  %v3452_v24 = vrot.slane %v3442_v46, 1 }
 0x3b8   : > { %v2611_v13 = vpop.permute.xlu0 %2610 }
 0x3b9   : > { %v9456_v25 = vpop.permute.xlu1 %2612  ;;  %v3055_v45 = vpop.permute.xlu2 %3054 }
 0x3ba   : > { %12665 = vst [vmem:[#allocation115_spill] sm:$0xff] %v9456_v25  ;;  %v3061_v38 = vadd.f32 %v3055_v45, %v2945_v27  ;;  %v3453_v25 = vsel %vm494_vm0, %v12668_v40, %v3452_v24  ;;  %v12671_v27 = vld [vmem:[#allocation135_spill] sm:$0xff]  ;;  %v3160_v24 = vmul.f32 %v9425_v14, %v9301_v44 }
 0x3bb   : > { %v3471_v46 = vmul.f32 %v9397_v21, %v12671_v27 }
 0x3bc   : > { %v9466_v59 = vadd.f32 %v3094_v3, %v3061_v38  ;;  %v3161_v3 = vmul.f32 %v9421_v63, %v9301_v44 }
 0x3bd   : > { %v3481_v38 = vrot.slane %v3471_v46, 1  ;;  %v12676_v46 = vld [vmem:[#allocation139_spill] sm:$0xff] }
 0x3be   : > { %3146 = vrot.lane.b32.xlu0 %v3140_v60, %s6336_s21 }
 0x3bf   : > { %3148 = vrot.lane.b32.xlu1 %v3141_v34, %s6336_s21  ;;  %3458 = vrot.lane.b32.xlu2 %v3453_v25, %s6336_s21  ;;  %v12672_v34 = vld [vmem:[#allocation137_spill] sm:$0xff] }
 0x3c0   : > { %v9476_v49 = vpop.permute.xlu0 %2639  ;;  %v12673_v60 = vrot.slane %v12672_v34, 1  ;;  %v3181_v34 = vmul.f32 %v9421_v63, %v9323_v11 }
 0x3c1   : > { %v9474_v45 = vpop.permute.xlu1 %2641  ;;  %12670 = vst [vmem:[#allocation118_spill] sm:$0xff] %v9476_v49  ;;  %v9480_v36 = vpop.permute.xlu2 %3110  ;;  %v3500_v49 = vmul.f32 %v9397_v21, %v12676_v46 }
 0x3c2   : > { %12669 = vst [vmem:[#allocation124_spill] sm:$0xff] %v9474_v45  ;;  %v3482_v25 = vsel %vm494_vm0, %v12673_v60, %v3481_v38  ;;  %v3180_v38 = vmul.f32 %v9425_v14, %v9323_v11 }
 0x3c3   : > { %v3510_v44 = vrot.slane %v3500_v49, 1  ;;  %v3529_v49 = vmul.f32 %v9397_v21, %v8071_v51 }
 0x3c5   : > { %v3539_v11 = vrot.slane %v3529_v49, 1 }
 0x3c6   : > { %3166 = vrot.lane.b32.xlu0 %v3160_v24, %s6336_s21 }
 0x3c7   : > { %3168 = vrot.lane.b32.xlu1 %v3161_v3, %s6336_s21  ;;  %3487 = vrot.lane.b32.xlu2 %v3482_v25, %s6337_s22  ;;  %v12677_v3 = vld [vmem:[#allocation142_spill] sm:$0xff] }
 0x3c8   : > { %v9494_v40 = vpop.permute.xlu0 %2668  ;;  %v12678_v24 = vrot.slane %v12677_v3, 1  ;;  %v3201_v3 = vmul.f32 %v9421_v63, %v9342_v48 }
 0x3c9   : > { %v9492_v57 = vpop.permute.xlu1 %2670  ;;  %12675 = vst [vmem:[#allocation126_spill] sm:$0xff] %v9494_v40  ;;  %v9498_v45 = vpop.permute.xlu2 %3130 }
 0x3ca   : > { %12674 = vst [vmem:[#allocation125_spill] sm:$0xff] %v9492_v57  ;;  %v3511_v60 = vsel %vm494_vm0, %v12678_v24, %v3510_v44  ;;  %v3200_v44 = vmul.f32 %v9425_v14, %v9342_v48  ;;  %v2619_v24 = vadd.f32 %v2611_v13, %v9380_v5  ;;  %v3220_v5 = vmul.f32 %v9425_v14, %v9361_v54 }
 0x3cb   : > { %v12685_v13 = vrot.slane %v8106_v2, 1  ;;  %v3241_v2 = vmul.f32 %v9421_v63, %v9377_v43 }
 0x3ce   : > { %3186 = vrot.lane.b32.xlu0 %v3180_v38, %s6337_s22 }
 0x3cf   : > { %3188 = vrot.lane.b32.xlu1 %v3181_v34, %s6337_s22  ;;  %3516 = vrot.lane.b32.xlu2 %v3511_v60, %s6337_s22  ;;  %v12681_v34 = vrot.slane %v8086_v8, 1 }
 0x3d0   : > { %v9512_v40 = vpop.permute.xlu0 %2697 }
 0x3d1   : > { %v9510_v25 = vpop.permute.xlu1 %2699  ;;  %12680 = vst [vmem:[#allocation128_spill] sm:$0xff] %v9512_v40  ;;  %v9516_v57 = vpop.permute.xlu2 %3150  ;;  %v3540_v38 = vsel %vm494_vm0, %v12681_v34, %v3539_v11  ;;  %v12683_v40 = vld [vmem:[#allocation149_spill] sm:$0xff] }
 0x3d2   : > { %12679 = vst [vmem:[#allocation127_spill] sm:$0xff] %v9510_v25  ;;  %v3558_v25 = vmul.f32 %v9397_v21, %v12683_v40 }
 0x3d4   : > { %v3568_v11 = vrot.slane %v3558_v25, 1  ;;  %v12688_v25 = vld [vmem:[#allocation150_spill] sm:$0xff] }
 0x3d6   : > { %3206 = vrot.lane.b32.xlu0 %v3200_v44, %s6337_s22  ;;  %v3569_v44 = vsel %vm494_vm0, %v12685_v13, %v3568_v11  ;;  %v12689_v11 = vrot.slane %v8126_v30, 2  ;;  %v12692_v30 = vld [vmem:[#allocation129_spill] sm:$0xff] }
 0x3d7   : > { %3208 = vrot.lane.b32.xlu1 %v3201_v3, %s6337_s22  ;;  %3545 = vrot.lane.b32.xlu2 %v3540_v38, %s6337_s22  ;;  %v3221_v3 = vmul.f32 %v9421_v63, %v9361_v54  ;;  %v3679_v38 = vmul.f32 %v9397_v21, %v12688_v25 }
 0x3d8   : > { %v2727_v49 = vpop.permute.xlu0 %2726 }
 0x3d9   : > { %v9529_v60 = vpop.permute.xlu1 %2728  ;;  %v3171_v19 = vpop.permute.xlu2 %3170  ;;  %v2735_v48 = vadd.f32 %v2727_v49, %v2619_v24  ;;  %v3689_v54 = vrot.slane %v3679_v38, 2  ;;  %v3240_v49 = vmul.f32 %v9425_v14, %v9377_v43  ;;  %v3708_v43 = vmul.f32 %v9397_v21, %v8138_v61 }
 0x3da   : > { %12682 = vst [vmem:[#allocation131_spill] sm:$0xff] %v9529_v60  ;;  %v12693_v38 = vrot.slane %v12692_v30, 1 }
 0x3db   : > { %v9534_v8 = vadd.f32 %v12684_v10, %v2735_v48  ;;  %v3352_v48 = vmul.f32 %v9425_v14, %v12648_v18 }
 0x3dd   : > { %v3360_v18 = vrot.slane %v3352_v48, 1 }
 0x3de   : > { %3226 = vrot.lane.b32.xlu0 %v3220_v5, %s6337_s22 }
 0x3df   : > { %3228 = vrot.lane.b32.xlu1 %v3221_v3, %s6337_s22  ;;  %3574 = vrot.lane.b32.xlu2 %v3569_v44, %s6337_s22  ;;  %v3690_v3 = vsel %vm576_vm1, %v12689_v11, %v3689_v54  ;;  %v3718_v44 = vrot.slane %v3708_v43, 2  ;;  %v3362_v54 = vsel %vm494_vm0, %v3360_v18, %v12693_v38  ;;  %v3737_v18 = vmul.f32 %v9397_v21, %v8162_v58  ;;  %v12698_v38 = vld [vmem:[#allocation130_spill] sm:$0xff] }
 0x3e0   : > { %v9548_v10 = vpop.permute.xlu0 %2847 }
 0x3e1   : > { %v9546_v34 = vpop.permute.xlu1 %2849  ;;  %12687 = vst [vmem:[#allocation135_spill] sm:$0xff] %v9548_v10  ;;  %v9552_v24 = vpop.permute.xlu2 %3190 }
 0x3e2   : > { %12686 = vst [vmem:[#allocation132_spill] sm:$0xff] %v9546_v34 }
 0x3e6   : > { %3246 = vrot.lane.b32.xlu0 %v3240_v49, %s6337_s22  ;;  %v12694_v49 = vrot.slane %v8152_v26, 2  ;;  %v3747_v26 = vrot.slane %v3737_v18, 2 }
 0x3e7   : > { %3248 = vrot.lane.b32.xlu1 %v3241_v2, %s6337_s22  ;;  %3695 = vrot.lane.b32.xlu2 %v3690_v3, %s6336_s21  ;;  %v3381_v2 = vmul.f32 %v9425_v14, %v12656_v22  ;;  %v12695_v3 = vld [vmem:[#allocation133_spill] sm:$0xff] }
 0x3e8   : > { %v9568_v13 = vpop.permute.xlu0 %2876  ;;  %v3719_v11 = vsel %vm576_vm1, %v12694_v49, %v3718_v44  ;;  %v12699_v44 = vrot.slane %v12698_v38, 1 }
 0x3e9   : > { %v9566_v5 = vpop.permute.xlu1 %2878  ;;  %12691 = vst [vmem:[#allocation139_spill] sm:$0xff] %v9568_v13  ;;  %v9572_v63 = vpop.permute.xlu2 %3210  ;;  %v3389_v22 = vrot.slane %v3381_v2, 1  ;;  %v12701_v13 = vld [vmem:[#allocation136_spill] sm:$0xff]  ;;  %v3177_v2 = vadd.f32 %v3171_v19, %v9466_v59  ;;  %v3439_v19 = vmul.f32 %v9425_v14, %v12666_v16  ;;  %v12706_v59 = vrot.slane %v8187_v1, 2 }
 0x3ea   : > { %12690 = vst [vmem:[#allocation137_spill] sm:$0xff] %v9566_v5  ;;  %v9918_v5 = vld [vmem:[#allocation2 + $0x38] sm:$0x3] }
 0x3eb   : > { %v3391_v49 = vsel %vm494_vm0, %v3389_v22, %v12699_v44  ;;  %v3766_v22 = vmul.f32 %v9397_v21, %v8175_v50  ;;  %v3447_v16 = vrot.slane %v3439_v19, 1 }
 0x3ed   : > { %v3776_v10 = vrot.slane %v3766_v22, 2 }
 0x3ee   : > { %3367 = vrot.lane.b32.xlu0 %v3362_v54, %s6336_s21  ;;  %v3410_v54 = vmul.f32 %v9425_v14, %v12661_v20 }
 0x3ef   : > { %3369 = vrot.lane.b32.xlu1 %v12695_v3, %s6336_s21  ;;  %3724 = vrot.lane.b32.xlu2 %v3719_v11, %s6336_s21  ;;  %v12700_v11 = vrot.slane %v8172_v42, 2 }
 0x3f0   : > { %v9588_v43 = vpop.permute.xlu0 %2905  ;;  %v3418_v44 = vrot.slane %v3410_v54, 1 }
 0x3f1   : > { %v9586_v48 = vpop.permute.xlu1 %2907  ;;  %12697 = vst [vmem:[#allocation149_spill] sm:$0xff] %v9588_v43  ;;  %v9592_v30 = vpop.permute.xlu2 %3230  ;;  %v3748_v3 = vsel %vm576_vm1, %v12700_v11, %v3747_v26  ;;  %v12703_v26 = vld [vmem:[#allocation153_spill] sm:$0xff]  ;;  %v12707_v43 = vld [vmem:[#allocation140_spill] sm:$0xff] }
 0x3f2   : > { %12696 = vst [vmem:[#allocation142_spill] sm:$0xff] %v9586_v48 }
 0x3f6   : > { %3396 = vrot.lane.b32.xlu0 %v3391_v49, %s6336_s21 }
 0x3f7   : > { %3398 = vrot.lane.b32.xlu1 %v12701_v13, %s6336_s21  ;;  %3753 = vrot.lane.b32.xlu2 %v3748_v3, %s6336_s21  ;;  %v12704_v13 = vld [vmem:[#allocation134_spill] sm:$0xff]  ;;  %v3777_v3 = vsel %vm576_vm1, %v12706_v59, %v3776_v10  ;;  %v3824_v59 = vmul.f32 %v9397_v21, %v8261_v52 }
 0x3f8   : > { %v2935_v38 = vpop.permute.xlu0 %2934  ;;  %v12705_v34 = vrot.slane %v12704_v13, 1  ;;  %v12713_v13 = vld [vmem:[#allocation144_spill] sm:$0xff] }
 0x3f9   : > { %v9607_v18 = vpop.permute.xlu1 %2936  ;;  %v3251_v20 = vpop.permute.xlu2 %3250 }
 0x3fa   : > { %12702 = vst [vmem:[#allocation122_spill] sm:$0xff] %v9607_v18  ;;  %v3257_v42 = vadd.f32 %v3251_v20, %v3177_v2  ;;  %v3420_v49 = vsel %vm494_vm0, %v3418_v44, %v12705_v34  ;;  %v3795_v34 = vmul.f32 %v9397_v21, %v8237_v9  ;;  %v12710_v20 = vld [vmem:[#allocation138_spill] sm:$0xff] }
 0x3fb   : > { %v12711_v10 = vrot.slane %v12710_v20, 1  ;;  %v3497_v20 = vmul.f32 %v9425_v14, %v12676_v46 }
 0x3fc   : > { %v9612_v11 = vadd.f32 %v12703_v26, %v3257_v42  ;;  %v3805_v1 = vrot.slane %v3795_v34, 2  ;;  %v12712_v42 = vrot.slane %v8245_v62, 2  ;;  %v3834_v62 = vrot.slane %v3824_v59, 2  ;;  %v12716_v34 = vld [vmem:[#allocation143_spill] sm:$0xff] }
 0x3fd   : > { %v3449_v44 = vsel %vm494_vm0, %v3447_v16, %v12711_v10  ;;  %v12717_v16 = vrot.slane %v12716_v34, 1  ;;  %v12718_v10 = vrot.slane %v8265_v32, 2  ;;  %v3505_v46 = vrot.slane %v3497_v20, 1 }
 0x3fe   : > { %3425 = vrot.lane.b32.xlu0 %v3420_v49, %s6336_s21  ;;  %v3806_v26 = vsel %vm576_vm1, %v12712_v42, %v3805_v1  ;;  %v12719_v42 = vld [vmem:[#allocation147_spill] sm:$0xff] }
 0x3ff   : > { %3427 = vrot.lane.b32.xlu1 %v12707_v43, %s6336_s21  ;;  %3782 = vrot.lane.b32.xlu2 %v3777_v3, %s6336_s21  ;;  %v3468_v43 = vmul.f32 %v9425_v14, %v12671_v27 }
 0x400   : > { %v9628_v2 = vpop.permute.xlu0 %2963 }
 0x401   : > { %v9626_v54 = vpop.permute.xlu1 %2965  ;;  %12709 = vst [vmem:[#allocation129_spill] sm:$0xff] %v9628_v2  ;;  %v9632_v22 = vpop.permute.xlu2 %3371  ;;  %v3476_v27 = vrot.slane %v3468_v43, 1 }
 0x402   : > { %12708 = vst [vmem:[#allocation150_spill] sm:$0xff] %v9626_v54 }
 0x403   : > { %v3478_v1 = vsel %vm494_vm0, %v3476_v27, %v12717_v16  ;;  %v12722_v27 = vld [vmem:[#allocation145_spill] sm:$0xff]  ;;  %v3526_v16 = vmul.f32 %v9425_v14, %v8071_v51 }
 0x406   : > { %3454 = vrot.lane.b32.xlu0 %v3449_v44, %s6336_s21  ;;  %v3835_v44 = vsel %vm576_vm1, %v12718_v10, %v3834_v62  ;;  %v12723_v62 = vrot.slane %v12722_v27, 1 }
 0x407   : > { %3456 = vrot.lane.b32.xlu1 %v12713_v13, %s6336_s21  ;;  %3811 = vrot.lane.b32.xlu2 %v3806_v26, %s6337_s22  ;;  %v3853_v13 = vmul.f32 %v9397_v21, %v8279_v56 }
 0x408   : > { %v9648_v19 = vpop.permute.xlu0 %2992  ;;  %v3507_v34 = vsel %vm494_vm0, %v3505_v46, %v12723_v62  ;;  %v3882_v46 = vmul.f32 %v9397_v21, %v8316_v53 }
 0x409   : > { %v9646_v49 = vpop.permute.xlu1 %2994  ;;  %12715 = vst [vmem:[#allocation130_spill] sm:$0xff] %v9648_v19  ;;  %v9652_v3 = vpop.permute.xlu2 %3400  ;;  %v3863_v32 = vrot.slane %v3853_v13, 2 }
 0x40a   : > { %12714 = vst [vmem:[#allocation133_spill] sm:$0xff] %v9646_v49  ;;  %v9908_v49 = vld [vmem:[#allocation2 + $0x60] sm:$0xff] }
 0x40e   : > { %3483 = vrot.lane.b32.xlu0 %v3478_v1, %s6337_s22  ;;  %v12724_v1 = vrot.slane %v8302_v28, 2  ;;  %v3534_v28 = vrot.slane %v3526_v16, 1  ;;  %v12730_v16 = vld [vmem:[#allocation156_spill] sm:$0xff] }
 0x40f   : > { %3485 = vrot.lane.b32.xlu1 %v12719_v42, %s6337_s22  ;;  %3840 = vrot.lane.b32.xlu2 %v3835_v44, %s6337_s22  ;;  %v12725_v44 = vld [vmem:[#allocation151_spill] sm:$0xff]  ;;  %v2943_v42 = vadd.f32 %v2935_v38, %v9534_v8 }
 0x410   : > { %v9668_v26 = vpop.permute.xlu0 %3021  ;;  %v3864_v10 = vsel %vm576_vm1, %v12724_v1, %v3863_v32  ;;  %v3092_v32 = vmul.f32 %v9425_v14, %v9453_v39  ;;  %v12727_v1 = vld [vmem:[#allocation152_spill] sm:$0xff] }
 0x411   : > { %v9666_v43 = vpop.permute.xlu1 %3023  ;;  %12721 = vst [vmem:[#allocation153_spill] sm:$0xff] %v9668_v26  ;;  %v9672_v59 = vpop.permute.xlu2 %3429  ;;  %v12728_v8 = vrot.slane %v12727_v1, 1  ;;  %v9769_v26 = vstv %s6060_s13  ;;  %s10068_s13 = sld [smem:[#allocation10 + $0x36]] }
 0x412   : > { %12720 = vst [vmem:[#allocation136_spill] sm:$0xff] %v9666_v43 }
 0x413   : > { %v3536_v38 = vsel %vm494_vm0, %v3534_v28, %v12728_v8  ;;  %v9713_v28 = vstv %s6057_s30  ;;  %s9996_s30 = sld [smem:[#allocation10 + $0x57]] }
 0x416   : > { %3512 = vrot.lane.b32.xlu0 %v3507_v34, %s6337_s22  ;;  %v3892_v34 = vrot.slane %v3882_v46, 2 }
 0x417   : > { %3514 = vrot.lane.b32.xlu1 %v12725_v44, %s6337_s22  ;;  %3869 = vrot.lane.b32.xlu2 %v3864_v10, %s6337_s22  ;;  %v3555_v10 = vmul.f32 %v9425_v14, %v12683_v40  ;;  %v12729_v44 = vrot.slane %v8331_v37, 2  ;;  %v9715_v37 = vld [vmem:[#allocation2 + $0x70] sm:$0xff] }
 0x418   : > { %v3051_v13 = vpop.permute.xlu0 %3050  ;;  %v3946_v40 = vmul.f32 %v9715_v37, %v9713_v28 }
 0x419   : > { %v9687_v20 = vpop.permute.xlu1 %3052  ;;  %v3459_v51 = vpop.permute.xlu2 %3458  ;;  %v3059_v27 = vadd.f32 %v3051_v13, %v2943_v42  ;;  %v3893_v19 = vsel %vm576_vm1, %v12729_v44, %v3892_v34 }
 0x41a   : > { %12726 = vst [vmem:[#allocation134_spill] sm:$0xff] %v9687_v20  ;;  %v12790_v20 = vld [vmem:[#allocation47_spill] sm:$0xff] }
 0x41b   : > { %v9693_v62 = vadd.f32 %v3092_v32, %v3059_v27  ;;  %v3563_v27 = vrot.slane %v3555_v10, 1  ;;  %v12733_v32 = vld [vmem:[#allocation154_spill] sm:$0xff] }
 0x41c   : > { %v12734_v34 = vrot.slane %v12733_v32, 1 }
 0x41e   : > { %3541 = vrot.lane.b32.xlu0 %v3536_v38, %s6337_s22  ;;  %v3565_v1 = vsel %vm494_vm0, %v3563_v27, %v12734_v34  ;;  %v12737_v27 = vld [vmem:[#allocation155_spill] sm:$0xff] }
 0x41f   : > { %3543 = vrot.lane.b32.xlu1 %v12730_v16, %s6337_s22  ;;  %3898 = vrot.lane.b32.xlu2 %v3893_v19, %s6337_s22  ;;  %v3676_v19 = vmul.f32 %v9425_v14, %v12688_v25  ;;  %v9734_v16 = vstv %s6058_s10  ;;  %v12738_v32 = vrot.slane %v12737_v27, 2  ;;  %v12739_v34 = vld [vmem:[#allocation159_spill] sm:$0xff]  ;;  %v9753_v27 = vstv %s6059_s12  ;;  %s10011_s10 = sld [smem:[#allocation10 + $0x12]] }
 0x420   : > { %v9709_v13 = vpop.permute.xlu0 %3106  ;;  %v3966_v25 = vmul.f32 %v9715_v37, %v9734_v16  ;;  %s10028_s12 = sld [smem:[#allocation10 + $0x15]] }
 0x421   : > { %v9707_v42 = vpop.permute.xlu1 %3108  ;;  %12732 = vst [vmem:[#allocation138_spill] sm:$0xff] %v9709_v13  ;;  %v9711_v46 = vpop.permute.xlu2 %3487  ;;  %v3684_v44 = vrot.slane %v3676_v19, 2 }
 0x422   : > { %12731 = vst [vmem:[#allocation140_spill] sm:$0xff] %v9707_v42 }
 0x426   : > { %3570 = vrot.lane.b32.xlu0 %v3565_v1, %s6337_s22 }
 0x427   : > { %3572 = vrot.lane.b32.xlu1 %v8201_v47, %s6337_s22  ;;  %3954 = vrot.lane.b32.xlu2 %v3946_v40, %s6336_s21  ;;  %v3686_v47 = vsel %vm576_vm1, %v3684_v44, %v12738_v32  ;;  %v3705_v40 = vmul.f32 %v9425_v14, %v8138_v61  ;;  %v3986_v61 = vmul.f32 %v9715_v37, %v9753_v27  ;;  %v12742_v44 = vld [vmem:[#allocation158_spill] sm:$0xff] }
 0x428   : > { %v9730_v38 = vpop.permute.xlu0 %3126  ;;  %v12743_v32 = vrot.slane %v12742_v44, 2 }
 0x429   : > { %v9728_v8 = vpop.permute.xlu1 %3128  ;;  %12736 = vst [vmem:[#allocation143_spill] sm:$0xff] %v9730_v38  ;;  %v9732_v10 = vpop.permute.xlu2 %3516  ;;  %v3713_v13 = vrot.slane %v3705_v40, 2  ;;  %v3465_v40 = vadd.f32 %v3459_v51, %v9612_v11  ;;  %v3763_v11 = vmul.f32 %v9425_v14, %v8175_v50  ;;  %v12748_v51 = vld [vmem:[#allocation163_spill] sm:$0xff] }
 0x42a   : > { %12735 = vst [vmem:[#allocation144_spill] sm:$0xff] %v9728_v8  ;;  %v12778_v8 = vld [vmem:[#allocation179_spill] sm:$0xff] }
 0x42e   : > { %3691 = vrot.lane.b32.xlu0 %v3686_v47, %s6336_s21  ;;  %v12744_v47 = vld [vmem:[#allocation161_spill] sm:$0xff] }
 0x42f   : > { %3693 = vrot.lane.b32.xlu1 %v12739_v34, %s6336_s21  ;;  %3974 = vrot.lane.b32.xlu2 %v3966_v25, %s6336_s21  ;;  %v3715_v34 = vsel %vm576_vm1, %v3713_v13, %v12743_v32  ;;  %v3734_v25 = vmul.f32 %v9425_v14, %v8162_v58  ;;  %v4006_v13 = vmul.f32 %v9715_v37, %v9769_v26  ;;  %v12746_v32 = vld [vmem:[#allocation160_spill] sm:$0xff] }
 0x430   : > { %v9749_v19 = vpop.permute.xlu0 %3146 }
 0x431   : > { %v9747_v1 = vpop.permute.xlu1 %3148  ;;  %12741 = vst [vmem:[#allocation145_spill] sm:$0xff] %v9749_v19  ;;  %v9751_v38 = vpop.permute.xlu2 %3545  ;;  %v3742_v19 = vrot.slane %v3734_v25, 2 }
 0x432   : > { %12740 = vst [vmem:[#allocation147_spill] sm:$0xff] %v9747_v1 }
 0x436   : > { %3720 = vrot.lane.b32.xlu0 %v3715_v34, %s6336_s21  ;;  %v12747_v34 = vrot.slane %v12746_v32, 2 }
 0x437   : > { %3722 = vrot.lane.b32.xlu1 %v12744_v47, %s6336_s21  ;;  %3994 = vrot.lane.b32.xlu2 %v3986_v61, %s6336_s21  ;;  %v3771_v47 = vrot.slane %v3763_v11, 2 }
 0x438   : > { %v3167_v42 = vpop.permute.xlu0 %3166  ;;  %v3744_v61 = vsel %vm576_vm1, %v3742_v19, %v12747_v34  ;;  %v12751_v19 = vld [vmem:[#allocation162_spill] sm:$0xff]  ;;  %v12753_v34 = vld [vmem:[#allocation164_spill] sm:$0xff] }
 0x439   : > { %v9767_v2 = vpop.permute.xlu1 %3168  ;;  %v3575_v54 = vpop.permute.xlu2 %3574 }
 0x43a   : > { %12745 = vst [vmem:[#allocation151_spill] sm:$0xff] %v9767_v2  ;;  %v3581_v44 = vadd.f32 %v3575_v54, %v3465_v40  ;;  %v9791_v40 = vstv %s6061_s14  ;;  %s10075_s14 = sld [smem:[#allocation10 + $0x39]] }
 0x43b   : > { %v4026_v50 = vmul.f32 %v9715_v37, %v9791_v40 }
 0x43c   : > { %v9772_v58 = vadd.f32 %v8369_v4, %v3581_v44  ;;  %v12752_v44 = vrot.slane %v12751_v19, 2  ;;  %v9810_v19 = vstv %s6062_s6  ;;  %s10086_s6 = sld [smem:[#allocation10 + $0x18]] }
 0x43e   : > { %3749 = vrot.lane.b32.xlu0 %v3744_v61, %s6336_s21  ;;  %v3773_v32 = vsel %vm576_vm1, %v3771_v47, %v12752_v44  ;;  %v12756_v47 = vld [vmem:[#allocation165_spill] sm:$0xff] }
 0x43f   : > { %3751 = vrot.lane.b32.xlu1 %v12748_v51, %s6336_s21  ;;  %4014 = vrot.lane.b32.xlu2 %v4006_v13, %s6336_s21  ;;  %v3792_v13 = vmul.f32 %v9425_v14, %v8237_v9  ;;  %v4046_v9 = vmul.f32 %v9715_v37, %v9810_v19  ;;  %v12757_v44 = vrot.slane %v12756_v47, 2  ;;  %v9829_v47 = vstv %s6063_s16  ;;  %s10122_s16 = sld [smem:[#allocation10 + $0x5d]] }
 0x440   : > { %v9787_v4 = vpop.permute.xlu0 %3186 }
 0x441   : > { %v9785_v54 = vpop.permute.xlu1 %3188  ;;  %12750 = vst [vmem:[#allocation156_spill] sm:$0xff] %v9787_v4  ;;  %v9789_v25 = vpop.permute.xlu2 %3695  ;;  %v3800_v4 = vrot.slane %v3792_v13, 2 }
 0x442   : > { %12749 = vst [vmem:[#allocation152_spill] sm:$0xff] %v9785_v54 }
 0x446   : > { %3778 = vrot.lane.b32.xlu0 %v3773_v32, %s6336_s21  ;;  %v12758_v32 = vld [vmem:[#allocation167_spill] sm:$0xff] }
 0x447   : > { %3780 = vrot.lane.b32.xlu1 %v12753_v34, %s6336_s21  ;;  %4034 = vrot.lane.b32.xlu2 %v4026_v50, %s6337_s22  ;;  %v3802_v34 = vsel %vm576_vm1, %v3800_v4, %v12757_v44  ;;  %v3821_v50 = vmul.f32 %v9425_v14, %v8261_v52  ;;  %v4066_v52 = vmul.f32 %v9715_v37, %v9829_v47  ;;  %v12762_v4 = vld [vmem:[#allocation166_spill] sm:$0xff] }
 0x448   : > { %v9806_v11 = vpop.permute.xlu0 %3206  ;;  %v12763_v44 = vrot.slane %v12762_v4, 2 }
 0x449   : > { %v9804_v61 = vpop.permute.xlu1 %3208  ;;  %12755 = vst [vmem:[#allocation155_spill] sm:$0xff] %v9806_v11  ;;  %v9808_v51 = vpop.permute.xlu2 %3724  ;;  %v3829_v1 = vrot.slane %v3821_v50, 2 }
 0x44a   : > { %12754 = vst [vmem:[#allocation154_spill] sm:$0xff] %v9804_v61 }
 0x44e   : > { %3807 = vrot.lane.b32.xlu0 %v3802_v34, %s6337_s22  ;;  %v3175_v34 = vadd.f32 %v3167_v42, %v9693_v62  ;;  %v3879_v42 = vmul.f32 %v9425_v14, %v8316_v53 }
 0x44f   : > { %3809 = vrot.lane.b32.xlu1 %v12758_v32, %s6337_s22  ;;  %4054 = vrot.lane.b32.xlu2 %v4046_v9, %s6337_s22  ;;  %v3831_v32 = vsel %vm576_vm1, %v3829_v1, %v12763_v44  ;;  %v3850_v9 = vmul.f32 %v9425_v14, %v8279_v56  ;;  %v9847_v1 = vstv %s6064_s17  ;;  %v12766_v44 = vld [vmem:[#allocation174_spill] sm:$0xff]  ;;  %s10131_s17 = sld [smem:[#allocation10 + $0x5a]] }
 0x450   : > { %v9825_v11 = vpop.permute.xlu0 %3226  ;;  %12765 = vst [vmem:[#allocation163_spill] sm:$0xff] %v9847_v1  ;;  %v3887_v53 = vrot.slane %v3879_v42, 2  ;;  %v12779_v42 = vld [vmem:[#allocation50_spill] sm:$0xff] }
 0x451   : > { %v9823_v13 = vpop.permute.xlu1 %3228  ;;  %12760 = vst [vmem:[#allocation158_spill] sm:$0xff] %v9825_v11  ;;  %v9827_v54 = vpop.permute.xlu2 %3753  ;;  %v3858_v61 = vrot.slane %v3850_v9, 2  ;;  %v2014_v48 = vadd.f32 %v12779_v42, %v12778_v8 }
 0x452   : > { %12759 = vst [vmem:[#allocation159_spill] sm:$0xff] %v9823_v13 }
 0x453   : > { %12761 = vst [vmem:[#allocation161_spill] sm:$0xff] %v9827_v54 }
 0x456   : > { %3836 = vrot.lane.b32.xlu0 %v3831_v32, %s6337_s22  ;;  %v12767_v32 = vld [vmem:[#allocation169_spill] sm:$0xff] }
 0x457   : > { %3838 = vrot.lane.b32.xlu1 %v8338_v12, %s6337_s22  ;;  %4074 = vrot.lane.b32.xlu2 %v4066_v52, %s6337_s22  ;;  %v4086_v12 = vmul.f32 %v9715_v37, %v9847_v1  ;;  %v12768_v43 = vrot.slane %v12767_v32, 2  ;;  %v12769_v52 = vld [vmem:[#allocation171_spill] sm:$0xff]  ;;  %v9988_v1 = vstv %s9922_s27  ;;  %s6066_s27 = sld [smem:[#allocation10 + $0x42]] }
 0x458   : > { %v3247_v11 = vpop.permute.xlu0 %3246 }
 0x459   : > { %v9843_v50 = vpop.permute.xlu1 %3248  ;;  %v9845_v13 = vpop.permute.xlu2 %3782  ;;  %v3255_v4 = vadd.f32 %v3247_v11, %v3175_v34  ;;  %v3860_v62 = vsel %vm576_vm1, %v3858_v61, %v12768_v43  ;;  %v9867_v34 = vld [vmem:[#allocation2 + $0x78] sm:$0x3]  ;;  %v12773_v61 = vld [vmem:[#allocation170_spill] sm:$0xff] }
 0x45a   : > { %12764 = vst [vmem:[#allocation160_spill] sm:$0xff] %v9843_v50  ;;  %v12774_v32 = vrot.slane %v12773_v61, 2  ;;  %v12787_v50 = vld [vmem:[#allocation187_spill] sm:$0xff] }
 0x45b   : > { %v9850_v56 = vadd.f32 %v12766_v44, %v3255_v4  ;;  %v12772_v4 = vld [vmem:[#allocation74_spill] sm:$0xff]  ;;  %v12788_v2 = vrot.slane %v12787_v50, 1 }
 0x45c   : > { %v4199_v44 = vmul.f32 %v9867_v34, %v12772_v4 }
 0x45e   : > { %3865 = vrot.lane.b32.xlu0 %v3860_v62, %s6337_s22  ;;  %v4209_v14 = vrot.slane %v4199_v44, 1  ;;  %v3889_v62 = vsel %vm576_vm1, %v3887_v53, %v12774_v32  ;;  %v12782_v53 = vld [vmem:[#allocation78_spill] sm:$0xff] }
 0x45f   : > { %3867 = vrot.lane.b32.xlu1 %v12769_v52, %s6337_s22  ;;  %4094 = vrot.lane.b32.xlu2 %v4086_v12, %s6337_s22  ;;  %v12775_v12 = vld [vmem:[#allocation77_spill] sm:$0xff]  ;;  %v4228_v32 = vmul.f32 %v9867_v34, %v12782_v53 }
 0x460   : > { %v9865_v9 = vpop.permute.xlu0 %3367  ;;  %v12776_v52 = vrot.slane %v12775_v12, 1  ;;  %v9891_v12 = vstv %s5981_s18  ;;  %s10155_s18 = sld [smem:[#allocation10 + $0x3c]] }
 0x461   : > { %v9863_v11 = vpop.permute.xlu1 %3369  ;;  %12771 = vst [vmem:[#allocation164_spill] sm:$0xff] %v9865_v9  ;;  %v9871_v43 = vpop.permute.xlu2 %3811  ;;  %v12777_v9 = vld [vmem:[#allocation172_spill] sm:$0xff]  ;;  %v4238_v42 = vrot.slane %v4228_v32, 1 }
 0x462   : > { %12770 = vst [vmem:[#allocation162_spill] sm:$0xff] %v9863_v11  ;;  %v4210_v11 = vsel %vm494_vm0, %v12776_v52, %v4209_v14  ;;  %v9896_v52 = vstv %s5993_s19  ;;  %s10195_s19 = sld [smem:[#allocation10 + $0x1b]] }
 0x463   : > { %12783 = vst [vmem:[#allocation166_spill] sm:$0xff] %v9891_v12  ;;  %v2419_v32 = vmul.f32 %v9918_v5, %v9896_v52  ;;  %v4239_v39 = vsel %vm494_vm0, %v12788_v2, %v4238_v42  ;;  %v12795_v2 = vld [vmem:[#allocation191_spill] sm:$0xff]  ;;  %v9943_v42 = vstv %s5982_s25  ;;  %s10246_s25 = sld [smem:[#allocation10 + $0x3f]] }
 0x464   : > { %12785 = vst [vmem:[#allocation174_spill] sm:$0xff] %v9896_v52 }
 0x465   : > { %12796 = vst [vmem:[#allocation172_spill] sm:$0xff] %v9943_v42 }
 0x466   : > { %3894 = vrot.lane.b32.xlu0 %v3889_v62, %s6337_s22 }
 0x467   : > { %3896 = vrot.lane.b32.xlu1 %v12777_v9, %s6337_s22  ;;  %4215 = vrot.lane.b32.xlu2 %v4210_v11, %s6336_s21  ;;  %v12784_v9 = vld [vmem:[#allocation34_spill] sm:$0xff]  ;;  %v9900_v11 = vld [vmem:[#allocation2 + $0x30] sm:$0xff] }
 0x468   : > { %v9887_v61 = vpop.permute.xlu0 %3396  ;;  %v2130_v62 = vadd.f32 %v12784_v9, %v2014_v48  ;;  %v2226_v8 = vmul.f32 %v9900_v11, %v9891_v12  ;;  %v3944_v48 = vmul.f32 %v9908_v49, %v9713_v28  ;;  %v9916_v9 = vmul.f32 %v9900_v11, %v9896_v52  ;;  %v12791_v52 = vld [vmem:[#allocation21_spill] sm:$0xff] }
 0x469   : > { %v9885_v44 = vpop.permute.xlu1 %3398  ;;  %12781 = vst [vmem:[#allocation167_spill] sm:$0xff] %v9887_v61  ;;  %v9893_v14 = vpop.permute.xlu2 %3840  ;;  %v9904_v61 = vld [vmem:[#allocation2 + $0x68] sm:$0xff] }
 0x46a   : > { %12780 = vst [vmem:[#allocation165_spill] sm:$0xff] %v9885_v44  ;;  %v3945_v44 = vmul.f32 %v9904_v61, %v9713_v28  ;;  %v2229_v12 = vadd.f32 %v2226_v8, %v2130_v62  ;;  %v9929_v28 = vstv %s5994_s23  ;;  %v2043_v62 = vadd.f32 %v12791_v52, %v12790_v20  ;;  %v12792_v8 = vld [vmem:[#allocation184_spill] sm:$0xff]  ;;  %s10213_s23 = sld [smem:[#allocation10 + $0x60]] }
 0x46b   : > { %12786 = vst [vmem:[#allocation169_spill] sm:$0xff] %v9916_v9  ;;  %v12798_v20 = vld [vmem:[#allocation52_spill] sm:$0xff]  ;;  %v2442_v0 = vmul.f32 %v9918_v5, %v9929_v28  ;;  %v3965_v17 = vmul.f32 %v9904_v61, %v9734_v16 }
 0x46c   : > { %12789 = vst [vmem:[#allocation171_spill] sm:$0xff] %v9929_v28  ;;  %v2273_v18 = vadd.f32 %v12792_v8, %v2229_v12  ;;  %v2159_v52 = vadd.f32 %v12798_v20, %v2043_v62  ;;  %v12799_v12 = vld [vmem:[#allocation190_spill] sm:$0xff]  ;;  %v9968_v62 = vstv %s9912_s26  ;;  %v12803_v20 = vrot.slane %v9916_v9, 1  ;;  %s6068_s26 = sld [smem:[#allocation10 + $0x8a]] }
 0x46d   : > { %12802 = vst [vmem:[#allocation187_spill] sm:$0xff] %v9968_v62  ;;  %v2452_v4 = vrot.slane %v2442_v0, 1  ;;  %v12814_v0 = vld [vmem:[#allocation81_spill] sm:$0xff] }
 0x46e   : > { %3950 = vrot.lane.b32.xlu0 %v3944_v48, %s6336_s21  ;;  %v2353_v8 = vadd.f32 %v12799_v12, %v2273_v18  ;;  %v3964_v18 = vmul.f32 %v9908_v49, %v9734_v16  ;;  %12809 = vst [vmem:[#allocation21_spill] sm:$0xff] %v9988_v1 }
 0x46f   : > { %3952 = vrot.lane.b32.xlu1 %v3945_v44, %s6336_s21  ;;  %4244 = vrot.lane.b32.xlu2 %v4239_v39, %s6336_s21  ;;  %v4257_v44 = vmul.f32 %v9867_v34, %v12795_v2  ;;  %v2429_v39 = vrot.slane %v2419_v32, 1  ;;  %v2234_v32 = vmul.f32 %v9900_v11, %v9943_v42 }
 0x470   : > { %v9939_v50 = vpop.permute.xlu0 %3425 }
 0x471   : > { %v9937_v60 = vpop.permute.xlu1 %3427  ;;  %12794 = vst [vmem:[#allocation77_spill] sm:$0xff] %v9939_v50  ;;  %v9948_v29 = vpop.permute.xlu2 %3869  ;;  %v9954_v50 = vmul.f32 %v9900_v11, %v9929_v28  ;;  %v4267_v48 = vrot.slane %v4257_v44, 1  ;;  %v2430_v12 = vsel %vm494_vm0, %v12803_v20, %v2429_v39  ;;  %v2237_v42 = vadd.f32 %v2234_v32, %v2159_v52  ;;  %v12807_v39 = vld [vmem:[#allocation18_spill] sm:$0xff]  ;;  %v12808_v20 = vld [vmem:[#allocation183_spill] sm:$0xff] }
 0x472   : > { %12793 = vst [vmem:[#allocation170_spill] sm:$0xff] %v9937_v60  ;;  %v9957_v60 = vstv %s9898_s20  ;;  %v2436_v2 = vadd.f32 %v2430_v12, %v2353_v8  ;;  %v2072_v9 = vadd.f32 %v12808_v20, %v12807_v39  ;;  %v9992_v52 = vstv %s9932_s28  ;;  %v12811_v8 = vld [vmem:[#allocation185_spill] sm:$0xff]  ;;  %v12815_v39 = vld [vmem:[#allocation56_spill] sm:$0xff]  ;;  %s6055_s20 = sld [smem:[#allocation10 + $0x63]] }
 0x473   : > { %12797 = vst [vmem:[#allocation179_spill] sm:$0xff] %v9948_v29  ;;  %v9975_v28 = vmul.f32 %v9900_v11, %v9957_v60  ;;  %v2743_v44 = vmul.f32 %v9918_v5, %v9957_v60  ;;  %v12805_v29 = vld [vmem:[#allocation192_spill] sm:$0xff]  ;;  %v2293_v32 = vadd.f32 %v12811_v8, %v2237_v42  ;;  %v10009_v42 = vstv %s9946_s29  ;;  %s10415_s28 = sld [smem:[#allocation10 + $0x66]] }
 0x474   : > { %12800 = vst [vmem:[#allocation50_spill] sm:$0xff] %v9954_v50  ;;  %v12806_v54 = vrot.slane %v12805_v29, 1  ;;  %v12812_v29 = vld [vmem:[#allocation214_spill] sm:$0xff]  ;;  %v12817_v8 = vld [vmem:[#allocation200_spill] sm:$0xff]  ;;  %s10465_s29 = sld [smem:[#allocation10 + $0x22]] }
 0x475   : > { %12801 = vst [vmem:[#allocation34_spill] sm:$0xff] %v9957_v60  ;;  %v2534_v12 = vadd.f32 %v12812_v29, %v2436_v2  ;;  %v12117_v20 = vrot.slane %v9975_v28, 2  ;;  %v2753_v53 = vrot.slane %v2743_v44, 2  ;;  %v2373_v29 = vadd.f32 %v12817_v8, %v2293_v32 }
 0x476   : > { %12804 = vst [vmem:[#allocation47_spill] sm:$0xff] %v9975_v28  ;;  %v4268_v16 = vsel %vm494_vm0, %v12806_v54, %v4267_v48  ;;  %3970 = vrot.lane.b32.xlu0 %v3964_v18, %s6336_s21  ;;  %v4286_v18 = vmul.f32 %v9867_v34, %v12814_v0  ;;  %v3938_v60 = vmul.f32 %v9715_v37, %v9992_v52 }
 0x477   : > { %3972 = vrot.lane.b32.xlu1 %v3965_v17, %s6336_s21  ;;  %4273 = vrot.lane.b32.xlu2 %v4268_v16, %s6336_s21  ;;  %12810 = vst [vmem:[#allocation184_spill] sm:$0xff] %v9992_v52  ;;  %v3789_v17 = vadd.f32 %v9845_v13, %v9772_v58  ;;  %v2188_v16 = vadd.f32 %v12815_v39, %v2072_v9  ;;  %v12818_v9 = vrot.slane %v9954_v50, 1 }
 0x478   : > { %v10002_v48 = vpop.permute.xlu0 %3454  ;;  %12816 = vst [vmem:[#allocation190_spill] sm:$0xff] %v10009_v42  ;;  %v2650_v58 = vadd.f32 %v9243_v55, %v2534_v12  ;;  %v10024_v39 = vmul.f32 %v9900_v11, %v9988_v1  ;;  %v2465_v32 = vmul.f32 %v9918_v5, %v9988_v1  ;;  %v4296_v55 = vrot.slane %v4286_v18, 1 }
 0x479   : > { %v10000_v54 = vpop.permute.xlu1 %3456  ;;  %v3899_v2 = vpop.permute.xlu2 %3898  ;;  %v2453_v44 = vsel %vm494_vm0, %v12818_v9, %v2452_v4  ;;  %v3985_v12 = vmul.f32 %v9904_v61, %v9753_v27  ;;  %v2754_v4 = vsel %vm576_vm1, %v12117_v20, %v2753_v53  ;;  %v10041_v9 = vmul.f32 %v9900_v11, %v10009_v42 }
 0x47a   : > { %12813 = vst [vmem:[#allocation52_spill] sm:$0xff] %v10000_v54  ;;  %v3905_v13 = vadd.f32 %v3899_v2, %v3789_v17  ;;  %v2242_v54 = vmul.f32 %v9900_v11, %v9968_v62  ;;  %v3984_v17 = vmul.f32 %v9908_v49, %v9753_v27  ;;  %v2766_v18 = vmul.f32 %v9918_v5, %v10009_v42  ;;  %v12819_v62 = vld [vmem:[#allocation196_spill] sm:$0xff] }
 0x47b   : > { %v2459_v50 = vadd.f32 %v2453_v44, %v2373_v29  ;;  %v2760_v1 = vadd.f32 %v2754_v4, %v2650_v58  ;;  %v12820_v52 = vrot.slane %v12819_v62, 1  ;;  %v12118_v27 = vrot.slane %v10024_v39, 1  ;;  %v12823_v58 = vld [vmem:[#allocation217_spill] sm:$0xff] }
 0x47c   : > { %v10034_v2 = vadd.f32 %v3938_v60, %v3905_v13  ;;  %v2245_v8 = vadd.f32 %v2242_v54, %v2188_v16  ;;  %v2475_v53 = vrot.slane %v2465_v32, 1  ;;  %v12821_v54 = vld [vmem:[#allocation201_spill] sm:$0xff]  ;;  %v12822_v13 = vld [vmem:[#allocation186_spill] sm:$0xff]  ;;  %v10058_v4 = vstv %s9996_s30  ;;  %s10562_s30 = sld [smem:[#allocation10 + $0x44]] }
 0x47d   : > { %v4297_v60 = vsel %vm494_vm0, %v12820_v52, %v4296_v55  ;;  %v4315_v16 = vmul.f32 %v9867_v34, %v12821_v54  ;;  %v2563_v44 = vadd.f32 %v12823_v58, %v2459_v50  ;;  %v2858_v62 = vadd.f32 %v9321_v41, %v2760_v1 }
 0x47e   : > { %3990 = vrot.lane.b32.xlu0 %v3984_v17, %s6336_s21  ;;  %v2313_v29 = vadd.f32 %v12822_v13, %v2245_v8  ;;  %v2776_v32 = vrot.slane %v2766_v18, 2  ;;  %v10066_v17 = vstv %s10011_s10  ;;  %v12827_v8 = vld [vmem:[#allocation207_spill] sm:$0xff]  ;;  %v2476_v13 = vsel %vm494_vm0, %v12118_v27, %v2475_v53  ;;  %v12832_v27 = vld [vmem:[#allocation85_spill] sm:$0xff]  ;;  %s10727_s10 = sld [smem:[#allocation10 + $0x68]] }
 0x47f   : > { %3992 = vrot.lane.b32.xlu1 %v3985_v12, %s6336_s21  ;;  %4302 = vrot.lane.b32.xlu2 %v4297_v60, %s6336_s21  ;;  %v12121_v12 = vrot.slane %v10041_v9, 2  ;;  %12826 = vst [vmem:[#allocation183_spill] sm:$0xff] %v10066_v17  ;;  %v2679_v41 = vadd.f32 %v9264_v31, %v2563_v44  ;;  %v2974_v1 = vadd.f32 %v9401_v6, %v2858_v62  ;;  %v10093_v6 = vstv %s10028_s12  ;;  %v12830_v44 = vld [vmem:[#allocation202_spill] sm:$0xff]  ;;  %s6065_s12 = sld [smem:[#allocation10 + $0x1e]] }
 0x480   : > { %v10062_v55 = vpop.permute.xlu0 %3483  ;;  %v2393_v50 = vadd.f32 %v12827_v8, %v2313_v29  ;;  %v10082_v18 = vmul.f32 %v9900_v11, %v10058_v4  ;;  %v2789_v58 = vmul.f32 %v9918_v5, %v10058_v4  ;;  %v4325_v29 = vrot.slane %v4315_v16, 1  ;;  %v10088_v8 = vld [vmem:[#allocation2 + $0x50] sm:$0xff]  ;;  %12828 = vst [vmem:[#allocation185_spill] sm:$0xff] %v10093_v6 }
 0x481   : > { %v10060_v52 = vpop.permute.xlu1 %3485  ;;  %12825 = vst [vmem:[#allocation18_spill] sm:$0xff] %v10062_v55  ;;  %v10070_v60 = vpop.permute.xlu2 %3954  ;;  %v3070_v31 = vmul.f32 %v10088_v8, %v10066_v17  ;;  %v4005_v53 = vmul.f32 %v9904_v61, %v9769_v26  ;;  %v4004_v11 = vmul.f32 %v9908_v49, %v9769_v26  ;;  %v2777_v5 = vsel %vm576_vm1, %v12121_v12, %v2776_v32 }
 0x482   : > { %12824 = vst [vmem:[#allocation192_spill] sm:$0xff] %v10060_v52  ;;  %v10104_v16 = vmul.f32 %v10088_v8, %v10093_v6  ;;  %v12831_v62 = vrot.slane %v12830_v44, 1  ;;  %v10111_v55 = vmul.f32 %v9904_v61, %v12832_v27  ;;  %v2482_v52 = vadd.f32 %v2476_v13, %v2393_v50 }
 0x483   : > { %v2783_v17 = vadd.f32 %v2777_v5, %v2679_v41  ;;  %v3073_v26 = vadd.f32 %v3070_v31, %v2974_v1  ;;  %v12123_v32 = vrot.slane %v10082_v18, 2  ;;  %v2799_v12 = vrot.slane %v2789_v58, 2 }
 0x484   : > { %12829 = vst [vmem:[#allocation214_spill] sm:$0xff] %v10104_v16  ;;  %v4326_v20 = vsel %vm494_vm0, %v12831_v62, %v4325_v29  ;;  %v3263_v44 = vmul.f32 %v9397_v21, %v10093_v6  ;;  %v12833_v29 = vld [vmem:[#allocation220_spill] sm:$0xff]  ;;  %v10129_v13 = vstv %s10068_s13  ;;  %v10147_v5 = vstv %s10086_s6  ;;  %s6077_s13 = sld [smem:[#allocation10 + $0x21]] }
 0x485   : > { %v2592_v62 = vadd.f32 %v12833_v29, %v2482_v52  ;;  %v2887_v28 = vadd.f32 %v9340_v7, %v2783_v17  ;;  %v3117_v50 = vadd.f32 %v9480_v36, %v3073_v26  ;;  %v4645_v52 = vrot.slane %v10111_v55, 2  ;;  %12835 = vst [vmem:[#allocation56_spill] sm:$0xff] %v10147_v5  ;;  %s6078_s6 = sld [smem:[#allocation10 + $0x45]] }
 0x486   : > { %4010 = vrot.lane.b32.xlu0 %v4004_v11, %s6336_s21  ;;  %v2800_v31 = vsel %vm576_vm1, %v12123_v32, %v2799_v12  ;;  %v10144_v11 = vstv %s10075_s14  ;;  %v3078_v26 = vmul.f32 %v10088_v8, %v10129_v13  ;;  %v12837_v12 = vld [vmem:[#allocation206_spill] sm:$0xff]  ;;  %s4750_s14 = sld [smem:[#allocation11]] }
 0x487   : > { %4012 = vrot.lane.b32.xlu1 %v4005_v53, %s6336_s21  ;;  %4331 = vrot.lane.b32.xlu2 %v4326_v20, %s6337_s22  ;;  %v12124_v20 = vrot.slane %v10104_v16, 1  ;;  %v2708_v7 = vadd.f32 %v9283_v15, %v2592_v62  ;;  %v3003_v36 = vadd.f32 %v9419_v33, %v2887_v28  ;;  %v3197_v17 = vadd.f32 %v9552_v24, %v3117_v50  ;;  %v10461_v16 = vld [vmem:[#allocation2 + $0x28] sm:$0xff] }
 0x488   : > { %v10126_v1 = vpop.permute.xlu0 %3512  ;;  %v3273_v53 = vrot.slane %v3263_v44, 1  ;;  %v10153_v55 = vmul.f32 %v10088_v8, %v10144_v11  ;;  %v4025_v15 = vmul.f32 %v9904_v61, %v9791_v40  ;;  %v4024_v33 = vmul.f32 %v9908_v49, %v9791_v40 }
 0x489   : > { %v10124_v41 = vpop.permute.xlu1 %3514  ;;  %12834 = vst [vmem:[#allocation81_spill] sm:$0xff] %v10126_v1  ;;  %v10134_v58 = vpop.permute.xlu2 %3974  ;;  %v10166_v28 = vmul.f32 %v10088_v8, %v10147_v5  ;;  %v12838_v44 = vrot.slane %v12837_v12, 2  ;;  %v4636_v62 = vmul.f32 %v9908_v49, %v12832_v27  ;;  %v2806_v50 = vadd.f32 %v2800_v31, %v2708_v7 }
 0x48a   : > { %v3274_v24 = vsel %vm494_vm0, %v12124_v20, %v3273_v53  ;;  %v3081_v32 = vadd.f32 %v3078_v26, %v3003_v36  ;;  %v3286_v53 = vmul.f32 %v9397_v21, %v10144_v11  ;;  %v3587_v20 = vmul.f32 %v9397_v21, %v10147_v5 }
 0x48b   : > { %12836 = vst [vmem:[#allocation200_spill] sm:$0xff] %v10166_v28  ;;  %v4648_v29 = vsel %vm576_vm1, %v4645_v52, %v12838_v44  ;;  %v3280_v40 = vadd.f32 %v3274_v24, %v3197_v17  ;;  %v2916_v12 = vadd.f32 %v9359_v23, %v2806_v50  ;;  %v10184_v7 = vstv %s10122_s16  ;;  %s6089_s16 = sld [smem:[#allocation11 + $0x1]] }
 0x48c   : > { %v3137_v44 = vadd.f32 %v9498_v45, %v3081_v32  ;;  %v10191_v31 = vstv %s10131_s17  ;;  %v4644_v45 = vrot.slane %v4636_v62, 2  ;;  %v3296_v24 = vrot.slane %v3286_v53, 1  ;;  %s6079_s17 = sld [smem:[#allocation10 + $0x69]] }
 0x48d   : > { %v3378_v27 = vadd.f32 %v9632_v22, %v3280_v40  ;;  %v3032_v22 = vadd.f32 %v9441_v35, %v2916_v12  ;;  %v3309_v50 = vmul.f32 %v9397_v21, %v10184_v7  ;;  %v3597_v40 = vrot.slane %v3587_v20, 2 }
 0x48e   : > { %4030 = vrot.lane.b32.xlu0 %v4024_v33, %s6337_s22  ;;  %v3217_v32 = vadd.f32 %v9572_v63, %v3137_v44  ;;  %v10211_v26 = vstv %s10155_s18  ;;  %v4045_v35 = vmul.f32 %v9904_v61, %v9810_v19  ;;  %v4044_v63 = vmul.f32 %v9908_v49, %v9810_v19  ;;  %s6090_s18 = sld [smem:[#allocation11 + $0x2]] }
 0x48f   : > { %4032 = vrot.lane.b32.xlu1 %v4025_v15, %s6337_s22  ;;  %4653 = vrot.lane.b32.xlu2 %v4648_v29, %s6337_s22  ;;  %v3494_v33 = vadd.f32 %v9711_v46, %v3378_v27  ;;  %v10204_v29 = vmul.f32 %v10088_v8, %v10184_v7  ;;  %v3086_v15 = vmul.f32 %v10088_v8, %v10191_v31  ;;  %v12840_v46 = vrot.slane %v10153_v55, 1 }
 0x490   : > { %v10188_v17 = vpop.permute.xlu0 %3541  ;;  %v12841_v21 = vrot.slane %v10166_v28, 2  ;;  %v10227_v53 = vmul.f32 %v10088_v8, %v10211_v26  ;;  %v4646_v12 = vsel %vm576_vm1, %v4644_v45, %v4645_v52 }
 0x491   : > { %v10186_v36 = vpop.permute.xlu1 %3543  ;;  %12839 = vst [vmem:[#allocation196_spill] sm:$0xff] %v10188_v17  ;;  %v10197_v23 = vpop.permute.xlu2 %3994  ;;  %v3297_v62 = vsel %vm494_vm0, %v12840_v46, %v3296_v24  ;;  %v3089_v44 = vadd.f32 %v3086_v15, %v3032_v22  ;;  %v12127_v19 = vrot.slane %v10204_v29, 1  ;;  %v6225_v24 = vld [vmem:[#allocation2 + $0x58] sm:$0x3] }
 0x492   : > { %v3598_v20 = vsel %vm576_vm1, %v12841_v21, %v3597_v40  ;;  %v3303_v27 = vadd.f32 %v3297_v62, %v3217_v32  ;;  %v3610_v46 = vmul.f32 %v6225_v24, %v10211_v26  ;;  %v3463_v40 = vadd.f32 %v10002_v48, %v9850_v56  ;;  %v12843_v21 = vld [vmem:[#allocation176_spill] sm:$0xff] }
 0x493   : > { %v3604_v1 = vadd.f32 %v3598_v20, %v3494_v33  ;;  %v3157_v52 = vadd.f32 %v9516_v57, %v3089_v44  ;;  %v3319_v33 = vrot.slane %v3309_v50, 1 }
 0x494   : > { %v3407_v15 = vadd.f32 %v9652_v3, %v3303_v27  ;;  %v3620_v50 = vrot.slane %v3610_v46, 2  ;;  %v12844_v27 = vld [vmem:[#allocation57_spill] sm:$0xff] }
 0x495   : > { %v3702_v45 = vadd.f32 %v9789_v25, %v3604_v1  ;;  %v3237_v62 = vadd.f32 %v9592_v30, %v3157_v52  ;;  %v3320_v1 = vsel %vm494_vm0, %v12127_v19, %v3319_v33  ;;  %v12845_v46 = vrot.slane %v12844_v27, 2 }
 0x496   : > { %4050 = vrot.lane.b32.xlu0 %v4044_v63, %s6337_s22  ;;  %v10244_v63 = vstv %s10195_s19  ;;  %v3523_v57 = vadd.f32 %v9732_v10, %v3407_v15  ;;  %v4065_v10 = vmul.f32 %v9904_v61, %v9829_v47  ;;  %s6091_s19 = sld [smem:[#allocation11 + $0x3]] }
 0x497   : > { %4052 = vrot.lane.b32.xlu1 %v4045_v35, %s6337_s22  ;;  %4651 = vrot.lane.b32.xlu2 %v4646_v12, %s6337_s22  ;;  %v12126_v35 = vrot.slane %v10227_v53, 2  ;;  %12842 = vst [vmem:[#allocation201_spill] sm:$0xff] %v10244_v63  ;;  %v3818_v3 = vadd.f32 %v9871_v43, %v3702_v45  ;;  %v10261_v12 = vstv %s10213_s23  ;;  %v3914_v30 = vmul.f32 %v9715_v37, %v10244_v63  ;;  %v12848_v45 = vld [vmem:[#allocation88_spill] sm:$0xff]  ;;  %s6093_s23 = sld [smem:[#allocation13 + $0x2]] }
 0x498   : > { %v3571_v32 = vpop.permute.xlu0 %3570  ;;  %v4064_v43 = vmul.f32 %v9908_v49, %v9829_v47  ;;  %v10274_v44 = vmul.f32 %v10088_v8, %v10261_v12  ;;  %v3326_v33 = vadd.f32 %v3320_v1, %v3237_v62  ;;  %v3633_v8 = vmul.f32 %v6225_v24, %v10261_v12 }
 0x499   : > { %v10240_v22 = vpop.permute.xlu1 %3572  ;;  %v4015_v56 = vpop.permute.xlu2 %4014  ;;  %v3579_v48 = vadd.f32 %v3571_v32, %v3463_v40  ;;  %v12846_v40 = vld [vmem:[#allocation84_spill] sm:$0xff]  ;;  %v4666_v32 = vmul.f32 %v9904_v61, %v12848_v45 }
 0x49a   : > { %v10252_v25 = vadd.f32 %v4015_v56, %v10034_v2  ;;  %v3621_v2 = vsel %vm576_vm1, %v12126_v35, %v3620_v50  ;;  %v12847_v52 = vrot.slane %v12846_v40, 2  ;;  %v3917_v56 = vadd.f32 %v3914_v30, %v3818_v3 }
 0x49b   : > { %v10258_v20 = vadd.f32 %v12843_v21, %v3579_v48  ;;  %v3627_v47 = vadd.f32 %v3621_v2, %v3523_v57  ;;  %v3436_v48 = vadd.f32 %v9672_v59, %v3326_v33  ;;  %v12125_v62 = vrot.slane %v10274_v44, 2  ;;  %v12854_v33 = vld [vmem:[#allocation61_spill] sm:$0xff] }
 0x49c   : > { %v4561_v15 = vsel %vm576_vm1, %v12847_v52, %v12845_v46  ;;  %v3961_v21 = vadd.f32 %v10070_v60, %v3917_v56  ;;  %v10296_v57 = vstv %s10246_s25  ;;  %v4674_v59 = vrot.slane %v4666_v32, 2  ;;  %s6092_s25 = sld [smem:[#allocation13 + $0x1]] }
 0x49d   : > { %v3731_v50 = vadd.f32 %v9808_v51, %v3627_v47  ;;  %v3552_v24 = vadd.f32 %v9751_v38, %v3436_v48  ;;  %v3643_v51 = vrot.slane %v3633_v8, 2  ;;  %v3922_v60 = vmul.f32 %v9715_v37, %v10296_v57  ;;  %v12856_v8 = vld [vmem:[#allocation161_spill] sm:$0xff] }
 0x49e   : > { %4070 = vrot.lane.b32.xlu0 %v4064_v43, %s6337_s22  ;;  %v4665_v38 = vmul.f32 %v9908_v49, %v12848_v45  ;;  %v12855_v47 = vrot.slane %v12854_v33, 2 }
 0x49f   : > { %4072 = vrot.lane.b32.xlu1 %v4065_v10, %s6337_s22  ;;  %4566 = vrot.lane.b32.xlu2 %v4561_v15, %s6336_s21  ;;  %v3847_v1 = vadd.f32 %v9893_v14, %v3731_v50  ;;  %v12852_v10 = vld [vmem:[#allocation163_spill] sm:$0xff]  ;;  %v3644_v40 = vsel %vm576_vm1, %v12125_v62, %v3643_v51  ;;  %v12853_v14 = vld [vmem:[#allocation74_spill] sm:$0xff] }
 0x4a0   : > { %v10292_v46 = vpop.permute.xlu0 %3691  ;;  %v4085_v43 = vmul.f32 %v9904_v61, %v12852_v10  ;;  %v4084_v2 = vmul.f32 %v9908_v49, %v12852_v10  ;;  %v4196_v52 = vmul.f32 %v9908_v49, %v12853_v14  ;;  %v3650_v15 = vadd.f32 %v3644_v40, %v3552_v24  ;;  %v12859_v51 = vld [vmem:[#allocation179_spill] sm:$0xff]  ;;  %v12860_v40 = vld [vmem:[#allocation193_spill] sm:$0xff] }
 0x4a1   : > { %v10290_v27 = vpop.permute.xlu1 %3693  ;;  %12850 = vst [vmem:[#allocation217_spill] sm:$0xff] %v10292_v46  ;;  %v4035_v3 = vpop.permute.xlu2 %4034  ;;  %v3925_v32 = vadd.f32 %v3922_v60, %v3847_v1  ;;  %v4677_v56 = vsel %vm576_vm1, %v4674_v59, %v12855_v47  ;;  %v12861_v14 = vrot.slane %v12860_v40, 1  ;;  %v12863_v47 = vld [vmem:[#allocation82_spill] sm:$0xff]  ;;  %v12869_v40 = vld [vmem:[#allocation29_spill] sm:$0xff] }
 0x4a2   : > { %12849 = vst [vmem:[#allocation186_spill] sm:$0xff] %v10290_v27  ;;  %v10300_v30 = vadd.f32 %v4035_v3, %v3961_v21  ;;  %v3760_v48 = vadd.f32 %v12856_v8, %v3650_v15  ;;  %v10327_v3 = vstv %s6055_s20  ;;  %v4204_v1 = vrot.slane %v4196_v52, 1  ;;  %v12862_v15 = vld [vmem:[#allocation78_spill] sm:$0xff]  ;;  %s6095_s20 = sld [smem:[#allocation13 + $0x4]] }
 0x4a3   : > { %v3981_v50 = vadd.f32 %v10134_v58, %v3925_v32  ;;  %12858 = vst [vmem:[#allocation85_spill] sm:$0xff] %v10327_v3  ;;  %v4225_v32 = vmul.f32 %v9908_v49, %v12862_v15  ;;  %v12871_v15 = vld [vmem:[#allocation194_spill] sm:$0xff] }
 0x4a4   : > { %12851 = vst [vmem:[#allocation207_spill] sm:$0xff] %v10300_v30  ;;  %v3876_v60 = vadd.f32 %v12859_v51, %v3760_v48  ;;  %v4206_v58 = vsel %vm494_vm0, %v4204_v1, %v12861_v14  ;;  %v12867_v1 = vld [vmem:[#allocation49_spill] sm:$0xff]  ;;  %v12888_v46 = vld [vmem:[#allocation146_spill] sm:$0xff] }
 0x4a6   : > { %4090 = vrot.lane.b32.xlu0 %v4084_v2, %s6337_s22  ;;  %v3930_v2 = vmul.f32 %v9715_v37, %v10327_v3  ;;  %v10636_v3 = vld [vmem:[#allocation2 + $0x70] sm:$0xff] }
 0x4a7   : > { %4092 = vrot.lane.b32.xlu1 %v4085_v43, %s6337_s22  ;;  %4682 = vrot.lane.b32.xlu2 %v4677_v56, %s6337_s22  ;;  %v4673_v43 = vrot.slane %v4665_v38, 2  ;;  %v10343_v38 = vld [vmem:[#allocation2 + $0x8] sm:$0xff]  ;;  %v12864_v56 = vld [vmem:[#allocation17_spill] sm:$0xff] }
 0x4a8   : > { %v10325_v21 = vpop.permute.xlu0 %3720  ;;  %v3933_v33 = vadd.f32 %v3930_v2, %v3876_v60  ;;  %v1405_v8 = vmul.f32 %v10343_v38, %v12864_v56  ;;  %v4233_v2 = vrot.slane %v4225_v32, 1  ;;  %v12874_v56 = vld [vmem:[#allocation38_spill] sm:$0xff]  ;;  %v1389_v63 = vmul.f32 %v10343_v38, %v12888_v46 }
 0x4a9   : > { %v10323_v45 = vpop.permute.xlu1 %3722  ;;  %12857 = vst [vmem:[#allocation202_spill] sm:$0xff] %v10325_v21  ;;  %v4055_v24 = vpop.permute.xlu2 %4054  ;;  %v4675_v52 = vsel %vm576_vm1, %v4673_v43, %v4674_v59  ;;  %v10356_v43 = vstv %s6068_s26  ;;  %v12885_v21 = vld [vmem:[#allocation25_spill] sm:$0xff]  ;;  %s6096_s26 = sld [smem:[#allocation13 + $0x5]] }
 0x4aa   : > { %v10330_v10 = vadd.f32 %v4055_v24, %v3981_v50  ;;  %v4001_v48 = vadd.f32 %v10197_v23, %v3933_v33  ;;  %v1488_v51 = vadd.f32 %v12867_v1, %v1405_v8  ;;  %12868 = vst [vmem:[#allocation176_spill] sm:$0xff] %v10356_v43  ;;  %v12872_v23 = vrot.slane %v12871_v15, 1  ;;  %v12881_v15 = vld [vmem:[#allocation212_spill] sm:$0xff] }
 0x4ab   : > { %v4176_v32 = vmul.f32 %v9867_v34, %v10356_v43  ;;  %v12875_v8 = vrot.slane %v12874_v56, 1  ;;  %v12882_v35 = vrot.slane %v12881_v15, 2  ;;  %v10395_v30 = vmul.f32 %v10343_v38, %v12885_v21 }
 0x4ac   : > { %v1568_v14 = vadd.f32 %v12869_v40, %v1488_v51  ;;  %v4235_v33 = vsel %vm494_vm0, %v4233_v2, %v12872_v23  ;;  %v12879_v40 = vld [vmem:[#allocation210_spill] sm:$0xff]  ;;  %v12883_v23 = vld [vmem:[#allocation211_spill] sm:$0xff] }
 0x4ad   : > { %v12880_v62 = vrot.slane %v12879_v40, 2  ;;  %12886 = vst [vmem:[#allocation84_spill] sm:$0xff] %v10395_v30 }
 0x4ae   : > { %4211 = vrot.lane.b32.xlu0 %v4206_v58, %s6336_s21  ;;  %v10361_v58 = vmul.f32 %v9715_v37, %v10356_v43  ;;  %v12919_v43 = vld [vmem:[#allocation59_spill] sm:$0xff] }
 0x4af   : > { %4213 = vrot.lane.b32.xlu1 %v12863_v47, %s6336_s21  ;;  %4680 = vrot.lane.b32.xlu2 %v4675_v52, %s6337_s22  ;;  %v12873_v47 = vld [vmem:[#allocation191_spill] sm:$0xff]  ;;  %v4590_v2 = vsel %vm576_vm1, %v12882_v35, %v12880_v62  ;;  %v4186_v35 = vrot.slane %v4176_v32, 1 }
 0x4b0   : > { %v10351_v24 = vpop.permute.xlu0 %3749  ;;  %12870 = vst [vmem:[#allocation57_spill] sm:$0xff] %v10361_v58  ;;  %v4254_v52 = vmul.f32 %v9908_v49, %v12873_v47  ;;  %v4695_v47 = vmul.f32 %v9904_v61, %v12883_v23 }
 0x4b1   : > { %v10349_v50 = vpop.permute.xlu1 %3751  ;;  %12866 = vst [vmem:[#allocation206_spill] sm:$0xff] %v10351_v24  ;;  %v4075_v60 = vpop.permute.xlu2 %4074 }
 0x4b2   : > { %12865 = vst [vmem:[#allocation220_spill] sm:$0xff] %v10349_v50  ;;  %v10354_v59 = vadd.f32 %v4075_v60, %v4001_v48  ;;  %v12876_v48 = vld [vmem:[#allocation32_spill] sm:$0xff]  ;;  %v12878_v60 = vld [vmem:[#allocation197_spill] sm:$0xff]  ;;  %v4262_v19 = vrot.slane %v4254_v52, 1 }
 0x4b3   : > { %v12877_v1 = vrot.slane %v12876_v48, 1  ;;  %v12889_v52 = vld [vmem:[#allocation48_spill] sm:$0xff]  ;;  %v12993_v50 = vld [vmem:[#allocation101_spill] sm:$0xff] }
 0x4b4   : > { %v12890_v32 = vrot.slane %v12889_v52, 2 }
 0x4b5   : > { %v1653_v51 = vsel %vm494_vm0, %v12877_v1, %v12875_v8  ;;  %v12131_v8 = vrot.slane %v10361_v58, 1  ;;  %v12910_v58 = vld [vmem:[#allocation108_spill] sm:$0xff] }
 0x4b6   : > { %4240 = vrot.lane.b32.xlu0 %v4235_v33, %s6336_s21  ;;  %v1660_v56 = vadd.f32 %v1653_v51, %v1568_v14  ;;  %v4703_v33 = vrot.slane %v4695_v47, 2  ;;  %v12887_v14 = vld [vmem:[#allocation76_spill] sm:$0xff] }
 0x4b7   : > { %4242 = vrot.lane.b32.xlu1 %v12878_v60, %s6336_s21  ;;  %4595 = vrot.lane.b32.xlu2 %v4590_v2, %s6336_s21  ;;  %v12884_v60 = vld [vmem:[#allocation60_spill] sm:$0xff]  ;;  %v4187_v2 = vsel %vm494_vm0, %v12131_v8, %v4186_v35 }
 0x4b8   : > { %v10389_v1 = vpop.permute.xlu0 %3778  ;;  %v1776_v40 = vadd.f32 %v12884_v60, %v1660_v56  ;;  %v12891_v60 = vld [vmem:[#allocation45_spill] sm:$0xff]  ;;  %v12895_v35 = vld [vmem:[#allocation180_spill] sm:$0xff] }
 0x4b9   : > { %v10387_v48 = vpop.permute.xlu1 %3780  ;;  %v4095_v15 = vpop.permute.xlu2 %4094 }
 0x4ba   : > { %v4101_v62 = vadd.f32 %v4095_v15, %v10252_v25  ;;  %v1892_v51 = vadd.f32 %v12887_v14, %v1776_v40  ;;  %v12892_v25 = vrot.slane %v12891_v60, 2  ;;  %v12893_v15 = vld [vmem:[#allocation195_spill] sm:$0xff]  ;;  %v4283_v40 = vmul.f32 %v9908_v49, %v12814_v0  ;;  %v12907_v0 = vld [vmem:[#allocation33_spill] sm:$0xff] }
 0x4bb   : > { %v12894_v27 = vrot.slane %v12893_v15, 1  ;;  %v1448_v14 = vadd.f32 %v12895_v35, %v1389_v63 }
 0x4bc   : > { %v10403_v56 = vadd.f32 %v4187_v2, %v4101_v62  ;;  %v1977_v47 = vsel %vm576_vm1, %v12892_v25, %v12890_v32  ;;  %v12896_v62 = vld [vmem:[#allocation203_spill] sm:$0xff]  ;;  %v12897_v2 = vld [vmem:[#allocation62_spill] sm:$0xff]  ;;  %v4694_v32 = vmul.f32 %v9908_v49, %v12883_v23  ;;  %v12901_v25 = vld [vmem:[#allocation24_spill] sm:$0xff] }
 0x4bd   : > { %v4264_v28 = vsel %vm494_vm0, %v4262_v19, %v12894_v27  ;;  %v12898_v52 = vrot.slane %v12897_v2, 2  ;;  %v10426_v19 = vstv %s6066_s27  ;;  %v1984_v27 = vadd.f32 %v1977_v47, %v1892_v51  ;;  %v12906_v47 = vld [vmem:[#allocation27_spill] sm:$0xff]  ;;  %s6098_s27 = sld [smem:[#allocation13 + $0x7]] }
 0x4be   : > { %4269 = vrot.lane.b32.xlu0 %v4264_v28, %s6336_s21  ;;  %12899 = vst [vmem:[#allocation88_spill] sm:$0xff] %v10426_v19  ;;  %v10432_v63 = vmul.f32 %v9715_v37, %v10426_v19  ;;  %v1528_v15 = vadd.f32 %v12901_v25, %v1448_v14  ;;  %v12904_v28 = vld [vmem:[#allocation91_spill] sm:$0xff]  ;;  %v4130_v51 = vmul.f32 %v9867_v34, %v10426_v19  ;;  %v4702_v8 = vrot.slane %v4694_v32, 2  ;;  %v12912_v19 = vld [vmem:[#allocation42_spill] sm:$0xff] }
 0x4bf   : > { %4271 = vrot.lane.b32.xlu1 %v12896_v62, %s6336_s21  ;;  %v4706_v60 = vsel %vm576_vm1, %v4703_v33, %v12898_v52  ;;  %v2100_v2 = vadd.f32 %v12904_v28, %v1984_v27  ;;  %v4291_v52 = vrot.slane %v4283_v40, 1  ;;  %v12908_v14 = vrot.slane %v12907_v0, 1  ;;  %v12911_v40 = vld [vmem:[#allocation157_spill] sm:$0xff]  ;;  %v12914_v32 = vld [vmem:[#allocation58_spill] sm:$0xff] }
 0x4c0   : > { %4711 = vrot.lane.b32.xlu2 %v4706_v60, %s6337_s22  ;;  %12900 = vst [vmem:[#allocation163_spill] sm:$0xff] %v10432_v63  ;;  %v10437_v62 = vpop.permute.xlu0 %3807  ;;  %v10446_v60 = vmul.f32 %v10343_v38, %v12906_v47  ;;  %v12909_v25 = vrot.slane %v10395_v30, 1  ;;  %v10459_v5 = vmul.f32 %v10343_v38, %v12912_v19  ;;  %v2249_v0 = vmul.f32 %v10461_v16, %v12914_v32  ;;  %v12936_v30 = vld [vmem:[#allocation55_spill] sm:$0xff] }
 0x4c1   : > { %v10435_v35 = vpop.permute.xlu1 %3809  ;;  %12903 = vst [vmem:[#allocation61_spill] sm:$0xff] %v10437_v62  ;;  %v10440_v23 = vpop.permute.xlu2 %4215  ;;  %v2216_v27 = vadd.f32 %v12910_v58, %v2100_v2  ;;  %v4140_v2 = vrot.slane %v4130_v51, 1  ;;  %v4312_v28 = vmul.f32 %v9908_v49, %v12821_v54  ;;  %v4704_v32 = vsel %vm576_vm1, %v4702_v8, %v4703_v33 }
 0x4c2   : > { %12902 = vst [vmem:[#allocation74_spill] sm:$0xff] %v10435_v35  ;;  %v1607_v62 = vsel %vm494_vm0, %v12909_v25, %v12908_v14  ;;  %v12915_v14 = vld [vmem:[#allocation204_spill] sm:$0xff]  ;;  %v12921_v54 = vrot.slane %v10432_v63, 1 }
 0x4c3   : > { %12905 = vst [vmem:[#allocation161_spill] sm:$0xff] %v10440_v23  ;;  %v1397_v23 = vmul.f32 %v10343_v38, %v12911_v40  ;;  %v1614_v35 = vadd.f32 %v1607_v62, %v1528_v15  ;;  %v12916_v25 = vrot.slane %v12915_v14, 1  ;;  %v10473_v15 = vstv %s10415_s28  ;;  %v12918_v62 = vld [vmem:[#allocation22_spill] sm:$0xff]  ;;  %v12920_v14 = vld [vmem:[#allocation51_spill] sm:$0xff]  ;;  %s6099_s28 = sld [smem:[#allocation13 + $0x8]] }
 0x4c4   : > { %12913 = vst [vmem:[#allocation179_spill] sm:$0xff] %v10459_v5  ;;  %v4141_v51 = vsel %vm494_vm0, %v12921_v54, %v4140_v2  ;;  %v12926_v2 = vld [vmem:[#allocation94_spill] sm:$0xff]  ;;  %v4320_v54 = vrot.slane %v4312_v28, 1  ;;  %v12935_v28 = vrot.slane %v10459_v5, 2 }
 0x4c5   : > { %v4293_v58 = vsel %vm494_vm0, %v4291_v52, %v12916_v25  ;;  %12917 = vst [vmem:[#allocation193_spill] sm:$0xff] %v10473_v15  ;;  %v1468_v24 = vadd.f32 %v12918_v62, %v1397_v23  ;;  %v1718_v17 = vadd.f32 %v12920_v14, %v1614_v35  ;;  %v2252_v52 = vadd.f32 %v2249_v0, %v2216_v27  ;;  %v12923_v25 = vld [vmem:[#allocation26_spill] sm:$0xff]  ;;  %v12925_v0 = vld [vmem:[#allocation65_spill] sm:$0xff] }
 0x4c6   : > { %4298 = vrot.lane.b32.xlu0 %v4293_v58, %s6336_s21  ;;  %v10488_v23 = vmul.f32 %v9715_v37, %v10473_v15  ;;  %v4147_v8 = vadd.f32 %v4141_v51, %v10330_v10  ;;  %v4153_v27 = vmul.f32 %v9867_v34, %v10473_v15  ;;  %v12930_v10 = vrot.slane %v10446_v60, 1 }
 0x4c7   : > { %4300 = vrot.lane.b32.xlu1 %v12919_v43, %s6336_s21  ;;  %v1548_v62 = vadd.f32 %v12923_v25, %v1468_v24  ;;  %v1834_v58 = vadd.f32 %v12925_v0, %v1718_v17  ;;  %v12928_v24 = vld [vmem:[#allocation36_spill] sm:$0xff]  ;;  %v12931_v43 = vld [vmem:[#allocation43_spill] sm:$0xff] }
 0x4c8   : > { %4709 = vrot.lane.b32.xlu2 %v4704_v32, %s6337_s22  ;;  %12922 = vst [vmem:[#allocation78_spill] sm:$0xff] %v10488_v23  ;;  %v10495_v35 = vpop.permute.xlu0 %3836  ;;  %v2332_v32 = vadd.f32 %v12926_v2, %v2252_v52  ;;  %v12929_v25 = vrot.slane %v12928_v24, 1  ;;  %v10510_v63 = vmul.f32 %v10343_v38, %v12931_v43  ;;  %v12933_v52 = vld [vmem:[#allocation44_spill] sm:$0xff]  ;;  %v4519_v24 = vstv %s10465_s29  ;;  %v12941_v17 = vld [vmem:[#allocation119_spill] sm:$0xff]  ;;  %s6102_s29 = sld [smem:[#allocation13 + $0xb]] }
 0x4c9   : > { %v10493_v33 = vpop.permute.xlu1 %3838  ;;  %12924 = vst [vmem:[#allocation82_spill] sm:$0xff] %v10495_v35  ;;  %v4245_v14 = vpop.permute.xlu2 %4244  ;;  %v12932_v35 = vld [vmem:[#allocation102_spill] sm:$0xff]  ;;  %v12934_v2 = vrot.slane %v12933_v52, 2  ;;  %v4522_v19 = vmul.f32 %v9715_v37, %v4519_v24  ;;  %v12942_v5 = vrot.slane %v12941_v17, 1  ;;  %v12949_v17 = vrot.slane %v10488_v23, 1 }
 0x4ca   : > { %v10501_v6 = vadd.f32 %v4245_v14, %v4147_v8  ;;  %v1630_v51 = vsel %vm494_vm0, %v12930_v10, %v12929_v25  ;;  %v2412_v15 = vadd.f32 %v12932_v35, %v2332_v32  ;;  %v4163_v14 = vrot.slane %v4153_v27, 1  ;;  %v12938_v32 = vld [vmem:[#allocation53_spill] sm:$0xff]  ;;  %v12943_v27 = vld [vmem:[#allocation208_spill] sm:$0xff] }
 0x4cb   : > { %v1637_v0 = vadd.f32 %v1630_v51, %v1548_v62  ;;  %v1931_v8 = vsel %vm576_vm1, %v12935_v28, %v12934_v2  ;;  %v12937_v25 = vrot.slane %v12936_v30, 1  ;;  %v10525_v35 = vmul.f32 %v9904_v61, %v4519_v24  ;;  %v12939_v51 = vld [vmem:[#allocation79_spill] sm:$0xff]  ;;  %v12946_v28 = vld [vmem:[#allocation106_spill] sm:$0xff] }
 0x4cc   : > { %12927 = vst [vmem:[#allocation17_spill] sm:$0xff] %v10501_v6  ;;  %v1938_v6 = vadd.f32 %v1931_v8, %v1834_v58  ;;  %v12940_v52 = vrot.slane %v12939_v51, 1  ;;  %v12944_v58 = vld [vmem:[#allocation69_spill] sm:$0xff]  ;;  %v12948_v8 = vld [vmem:[#allocation198_spill] sm:$0xff] }
 0x4cd   : > { %v4322_v10 = vsel %vm494_vm0, %v4320_v54, %v12937_v25  ;;  %v1747_v62 = vadd.f32 %v12938_v32, %v1637_v0  ;;  %v12945_v30 = vrot.slane %v12944_v58, 1  ;;  %v12947_v54 = vrot.slane %v12946_v28, 1  ;;  %v12950_v51 = vld [vmem:[#allocation70_spill] sm:$0xff] }
 0x4ce   : > { %v2497_v2 = vsel %vm494_vm0, %v12942_v5, %v12940_v52  ;;  %4327 = vrot.lane.b32.xlu0 %v4322_v10, %s6337_s22  ;;  %v2042_v25 = vadd.f32 %v12948_v8, %v1938_v6  ;;  %v4164_v5 = vsel %vm494_vm0, %v12949_v17, %v4163_v14  ;;  %v4523_v32 = vmul.f32 %v9867_v34, %v4519_v24  ;;  %v12953_v6 = vld [vmem:[#allocation96_spill] sm:$0xff] }
 0x4cf   : > { %4329 = vrot.lane.b32.xlu1 %v12943_v27, %s6337_s22  ;;  %v4411_v37 = vsel %vm494_vm0, %v12947_v54, %v12945_v30  ;;  %v2504_v0 = vadd.f32 %v2497_v2, %v2412_v15  ;;  %v1863_v52 = vadd.f32 %v12950_v51, %v1747_v62  ;;  %v4170_v58 = vadd.f32 %v4164_v5, %v10354_v59  ;;  %v12954_v2 = vld [vmem:[#allocation115_spill] sm:$0xff]  ;;  %v12956_v17 = vld [vmem:[#allocation172_spill] sm:$0xff]  ;;  %v12958_v5 = vld [vmem:[#allocation46_spill] sm:$0xff] }
 0x4d0   : > { %4416 = vrot.lane.b32.xlu2 %v4411_v37, %s6337_s22  ;;  %v10552_v10 = vpop.permute.xlu0 %3865  ;;  %v2158_v15 = vadd.f32 %v12953_v6, %v2042_v25  ;;  %v4531_v37 = vrot.slane %v4522_v19, 2  ;;  %v4529_v14 = vrot.slane %v10525_v35, 2  ;;  %v2233_v62 = vmul.f32 %v10461_v16, %v12956_v17  ;;  %v12957_v51 = vld [vmem:[#allocation131_spill] sm:$0xff] }
 0x4d1   : > { %v10550_v30 = vpop.permute.xlu1 %3867  ;;  %12952 = vst [vmem:[#allocation29_spill] sm:$0xff] %v10552_v10  ;;  %v2620_v28 = vadd.f32 %v12954_v2, %v2504_v0  ;;  %v4274_v54 = vpop.permute.xlu2 %4273  ;;  %v4533_v59 = vrot.slane %v4523_v32, 2  ;;  %v12959_v23 = vrot.slane %v12958_v5, 2  ;;  %v12960_v25 = vrot.slane %v10510_v63, 2  ;;  %v12961_v6 = vld [vmem:[#allocation171_spill] sm:$0xff] }
 0x4d2   : > { %12951 = vst [vmem:[#allocation49_spill] sm:$0xff] %v10550_v30  ;;  %v10557_v8 = vadd.f32 %v4274_v54, %v4170_v58  ;;  %v10571_v19 = vmul.f32 %v10461_v16, %v12961_v6  ;;  %v4520_v35 = vmul.f32 %v9908_v49, %v4519_v24  ;;  %v2236_v2 = vadd.f32 %v2233_v62, %v2158_v15  ;;  %v12969_v6 = vld [vmem:[#allocation110_spill] sm:$0xff] }
 0x4d3   : > { %v2736_v27 = vadd.f32 %v12957_v51, %v2620_v28  ;;  %v1954_v0 = vsel %vm576_vm1, %v12960_v25, %v12959_v23  ;;  %v4534_v54 = vsel %vm576_vm1, %v4531_v37, %v4533_v59  ;;  %v4532_v32 = vsel %vm576_vm1, %v4529_v14, %v4531_v37  ;;  %v12963_v28 = vld [vmem:[#allocation112_spill] sm:$0xff]  ;;  %v12967_v23 = vld [vmem:[#allocation218_spill] sm:$0xff]  ;;  %v12973_v59 = vld [vmem:[#allocation87_spill] sm:$0xff] }
 0x4d4   : > { %12955 = vst [vmem:[#allocation194_spill] sm:$0xff] %v10557_v8  ;;  %v1961_v58 = vadd.f32 %v1954_v0, %v1863_v52  ;;  %v12964_v51 = vrot.slane %v12963_v28, 2  ;;  %v12965_v8 = vld [vmem:[#allocation121_spill] sm:$0xff]  ;;  %v12968_v25 = vrot.slane %v12967_v23, 2  ;;  %v12970_v10 = vrot.slane %v12969_v6, 2  ;;  %v12971_v52 = vld [vmem:[#allocation219_spill] sm:$0xff] }
 0x4d5   : > { %12962 = vst [vmem:[#allocation191_spill] sm:$0xff] %v10571_v19  ;;  %v12966_v5 = vrot.slane %v12965_v8, 2  ;;  %v10590_v15 = vmul.f32 %v9904_v61, %v12971_v52  ;;  %v12972_v37 = vld [vmem:[#allocation86_spill] sm:$0xff]  ;;  %v2292_v8 = vadd.f32 %v12973_v59, %v2236_v2  ;;  %v12975_v23 = vld [vmem:[#allocation103_spill] sm:$0xff] }
 0x4d6   : > { %v4619_v24 = vsel %vm576_vm1, %v12970_v10, %v12968_v25  ;;  %4537 = vrot.lane.b32.xlu0 %v4532_v32, %s6336_s21  ;;  %v2071_v62 = vadd.f32 %v12972_v37, %v1961_v58  ;;  %v4528_v32 = vrot.slane %v4520_v35, 2  ;;  %v12976_v25 = vld [vmem:[#allocation98_spill] sm:$0xff]  ;;  %v12978_v59 = vld [vmem:[#allocation187_spill] sm:$0xff] }
 0x4d7   : > { %v2821_v17 = vsel %vm576_vm1, %v12966_v5, %v12964_v51  ;;  %4539 = vrot.lane.b32.xlu1 %v4534_v54, %s6336_s21  ;;  %v3787_v54 = vadd.f32 %v10389_v1, %v10258_v20  ;;  %v12974_v51 = vld [vmem:[#allocation184_spill] sm:$0xff]  ;;  %v2372_v2 = vadd.f32 %v12976_v25, %v2292_v8  ;;  %v10605_v1 = vld [vmem:[#allocation2] sm:$0xff]  ;;  %v2241_v6 = vmul.f32 %v10461_v16, %v12978_v59 }
 0x4d8   : > { %v2828_v0 = vadd.f32 %v2821_v17, %v2736_v27  ;;  %4624 = vrot.lane.b32.xlu2 %v4619_v24, %s6336_s21  ;;  %v3895_v10 = vpop.permute.xlu0 %3894  ;;  %v3936_v5 = vmul.f32 %v9908_v49, %v12974_v51  ;;  %v2187_v58 = vadd.f32 %v12975_v23, %v2071_v62  ;;  %v12977_v27 = vld [vmem:[#allocation122_spill] sm:$0xff]  ;;  %v1618_v24 = vmul.f32 %v10605_v1, %v12906_v47  ;;  %v12980_v62 = vld [vmem:[#allocation21_spill] sm:$0xff] }
 0x4d9   : > { %v10598_v28 = vpop.permute.xlu1 %3896  ;;  %v4303_v37 = vpop.permute.xlu2 %4302  ;;  %v3903_v20 = vadd.f32 %v3895_v10, %v3787_v54  ;;  %v4732_v46 = vrot.slane %v10590_v15, 2  ;;  %v10617_v8 = vmul.f32 %v10461_v16, %v12980_v62  ;;  %v4340_v54 = vstv %s10562_s30  ;;  %v12982_v25 = vld [vmem:[#allocation50_spill] sm:$0xff]  ;;  %v10632_v15 = vld [vmem:[#allocation2 + $0x48] sm:$0xff]  ;;  %s6104_s30 = sld [smem:[#allocation13 + $0xd]] }
 0x4da   : > { %v2944_v17 = vadd.f32 %v12977_v27, %v2828_v0  ;;  %v10612_v35 = vadd.f32 %v4303_v37, %v10403_v56  ;;  %v12981_v0 = vld [vmem:[#allocation134_spill] sm:$0xff]  ;;  %v12983_v27 = vrot.slane %v12982_v25, 1  ;;  %v12984_v47 = vrot.slane %v10571_v19, 1  ;;  %v12985_v37 = vld [vmem:[#allocation123_spill] sm:$0xff]  ;;  %v12986_v19 = vld [vmem:[#allocation221_spill] sm:$0xff] }
 0x4db   : > { %v10621_v10 = vadd.f32 %v3936_v5, %v3903_v20  ;;  %v10630_v56 = vmul.f32 %v10461_v16, %v10009_v42  ;;  %v4343_v5 = vmul.f32 %v10636_v3, %v4340_v54  ;;  %v10641_v25 = vmul.f32 %v9904_v61, %v4340_v54  ;;  %v12990_v61 = vld [vmem:[#allocation113_spill] sm:$0xff] }
 0x4dc   : > { %12979 = vst [vmem:[#allocation38_spill] sm:$0xff] %v10612_v35  ;;  %v3060_v23 = vadd.f32 %v12981_v0, %v2944_v17  ;;  %v2451_v21 = vsel %vm494_vm0, %v12984_v47, %v12983_v27  ;;  %v3093_v35 = vmul.f32 %v10632_v15, %v12985_v37  ;;  %v2244_v17 = vadd.f32 %v2241_v6, %v2187_v58  ;;  %v12988_v37 = vld [vmem:[#allocation209_spill] sm:$0xff] }
 0x4dd   : > { %v2458_v20 = vadd.f32 %v2451_v21, %v2372_v2  ;;  %v4530_v0 = vsel %vm576_vm1, %v4528_v32, %v4529_v14  ;;  %v1396_v27 = vmul.f32 %v10605_v1, %v12911_v40  ;;  %v1626_v47 = vrot.slane %v1618_v24, 1  ;;  %v12989_v14 = vld [vmem:[#allocation90_spill] sm:$0xff] }
 0x4de   : > { %v12987_v42 = vrot.slane %v12986_v19, 2  ;;  %4655 = vrot.lane.b32.xlu0 %v12988_v37, %s6337_s22  ;;  %v4723_v21 = vmul.f32 %v9908_v49, %v12971_v52  ;;  %v2312_v6 = vadd.f32 %v12989_v14, %v2244_v17  ;;  %v3096_v58 = vadd.f32 %v3093_v35, %v3060_v23  ;;  %v12991_v19 = vld [vmem:[#allocation182_spill] sm:$0xff]  ;;  %v12994_v14 = vld [vmem:[#allocation125_spill] sm:$0xff]  ;;  %v12995_v35 = vld [vmem:[#allocation151_spill] sm:$0xff] }
 0x4df   : > { %4535 = vrot.lane.b32.xlu1 %v4530_v0, %s6336_s21  ;;  %v2562_v32 = vadd.f32 %v12990_v61, %v2458_v20  ;;  %v4344_v40 = vmul.f32 %v9867_v34, %v4340_v54  ;;  %v1467_v2 = vadd.f32 %v12991_v19, %v1396_v27  ;;  %v4352_v52 = vrot.slane %v4343_v5, 1  ;;  %v12996_v34 = vld [vmem:[#allocation31_spill] sm:$0xff]  ;;  %v12997_v27 = vld [vmem:[#allocation20_spill] sm:$0xff] }
 0x4e0   : > { %v4735_v30 = vsel %vm576_vm1, %v4732_v46, %v12987_v42  ;;  %v10662_v37 = vpop.permute.xlu0 %3950  ;;  %v2392_v17 = vadd.f32 %v12993_v50, %v2312_v6  ;;  %v3176_v23 = vadd.f32 %v12995_v35, %v3096_v58  ;;  %v10671_v19 = vmul.f32 %v10343_v38, %v12997_v27  ;;  %v12999_v5 = vld [vmem:[#allocation160_spill] sm:$0xff] }
 0x4e1   : > { %4740 = vrot.lane.b32.xlu2 %v4735_v30, %s6337_s22  ;;  %v10660_v0 = vpop.permute.xlu1 %3952  ;;  %12992 = vst [vmem:[#allocation32_spill] sm:$0xff] %v10662_v37  ;;  %v2678_v20 = vadd.f32 %v12994_v14, %v2562_v32  ;;  %v4350_v30 = vrot.slane %v10641_v25, 1  ;;  %v1547_v61 = vadd.f32 %v12996_v34, %v1467_v2  ;;  %v4731_v24 = vrot.slane %v4723_v21, 2  ;;  %v13004_v34 = vld [vmem:[#allocation148_spill] sm:$0xff] }
 0x4e2   : > { %v12998_v42 = vrot.slane %v10446_v60, 1  ;;  %v1942_v50 = vmul.f32 %v10605_v1, %v12931_v43  ;;  %v3256_v6 = vadd.f32 %v12999_v5, %v3176_v23  ;;  %v4354_v32 = vrot.slane %v4344_v40, 1 }
 0x4e3   : > { %v13000_v58 = vrot.slane %v10024_v39, 1  ;;  %v13001_v25 = vrot.slane %v10617_v8, 1  ;;  %v13002_v14 = vrot.slane %v10041_v9, 2  ;;  %v13003_v21 = vrot.slane %v10630_v56, 2  ;;  %v13006_v9 = vld [vmem:[#allocation173_spill] sm:$0xff] }
 0x4e4   : > { %v1628_v37 = vsel %vm494_vm0, %v1626_v47, %v12998_v42  ;;  %v10691_v47 = vmul.f32 %v10461_v16, %v10058_v4  ;;  %v4341_v43 = vmul.f32 %v9908_v49, %v4340_v54  ;;  %v4355_v39 = vsel %vm494_vm0, %v4352_v52, %v4354_v32  ;;  %v13008_v49 = vld [vmem:[#allocation114_spill] sm:$0xff] }
 0x4e5   : > { %v2474_v2 = vsel %vm494_vm0, %v13001_v25, %v13000_v58  ;;  %v2775_v60 = vsel %vm576_vm1, %v13003_v21, %v13002_v14  ;;  %v4353_v35 = vsel %vm494_vm0, %v4350_v30, %v4352_v52  ;;  %v1636_v23 = vadd.f32 %v1628_v37, %v1547_v61  ;;  %v13010_v52 = vld [vmem:[#allocation54_spill] sm:$0xff] }
 0x4e6   : > { %v2481_v42 = vadd.f32 %v2474_v2, %v2392_v17  ;;  %v2782_v40 = vadd.f32 %v2775_v60, %v2678_v20  ;;  %v13005_v5 = vrot.slane %v13004_v34, 1  ;;  %v13007_v58 = vrot.slane %v13006_v9, 1  ;;  %4358 = vrot.lane.b32.xlu0 %v4353_v35, %s6337_s22  ;;  %v13009_v17 = vld [vmem:[#allocation137_spill] sm:$0xff]  ;;  %v13014_v34 = vld [vmem:[#allocation52_spill] sm:$0xff] }
 0x4e7   : > { %v4733_v14 = vsel %vm576_vm1, %v4731_v24, %v4732_v46  ;;  %4360 = vrot.lane.b32.xlu1 %v4355_v39, %s6337_s22  ;;  %v12154_v37 = vrot.slane %v10671_v19, 1  ;;  %v1746_v61 = vadd.f32 %v13010_v52, %v1636_v23  ;;  %v1950_v2 = vrot.slane %v1942_v50, 2  ;;  %v13012_v24 = vld [vmem:[#allocation127_spill] sm:$0xff]  ;;  %v13013_v35 = vld [vmem:[#allocation133_spill] sm:$0xff] }
 0x4e8   : > { %v3341_v25 = vsel %vm494_vm0, %v13007_v58, %v13005_v5  ;;  %v2591_v54 = vadd.f32 %v13008_v49, %v2481_v42  ;;  %v2886_v20 = vadd.f32 %v13009_v17, %v2782_v40  ;;  %v12152_v21 = vrot.slane %v10691_v47, 2  ;;  %v10712_v46 = vpop.permute.xlu0 %3970  ;;  %v13015_v5 = vld [vmem:[#allocation72_spill] sm:$0xff]  ;;  %v13016_v58 = vld [vmem:[#allocation141_spill] sm:$0xff] }
 0x4e9   : > { %v3348_v32 = vadd.f32 %v3341_v25, %v3256_v6  ;;  %4738 = vrot.lane.b32.xlu2 %v4733_v14, %s6337_s22  ;;  %v10710_v60 = vpop.permute.xlu1 %3972  ;;  %13011 = vst [vmem:[#allocation197_spill] sm:$0xff] %v10712_v46  ;;  %v4349_v6 = vrot.slane %v4341_v43, 1  ;;  %v1862_v9 = vadd.f32 %v13015_v5, %v1746_v61  ;;  %v1381_v25 = vmul.f32 %v10343_v38, %v13016_v58  ;;  %v13017_v43 = vld [vmem:[#allocation30_spill] sm:$0xff]  ;;  %v13022_v5 = vld [vmem:[#allocation168_spill] sm:$0xff]  ;;  %v13043_v46 = vld [vmem:[#allocation159_spill] sm:$0xff] }
 0x4ea   : > { %v2707_v39 = vadd.f32 %v13012_v24, %v2591_v54  ;;  %v3002_v42 = vadd.f32 %v13013_v35, %v2886_v20  ;;  %v10722_v50 = vmul.f32 %v10605_v1, %v12997_v27  ;;  %v3077_v23 = vmul.f32 %v10632_v15, %v10129_v13 }
 0x4eb   : > { %v3464_v40 = vadd.f32 %v13014_v34, %v3348_v32  ;;  %v1380_v49 = vmul.f32 %v10605_v1, %v13016_v58  ;;  %v13018_v54 = vrot.slane %v13017_v43, 1  ;;  %v13019_v20 = vrot.slane %v10082_v18, 2  ;;  %v13021_v34 = vld [vmem:[#allocation40_spill] sm:$0xff]  ;;  %v13024_v43 = vld [vmem:[#allocation175_spill] sm:$0xff] }
 0x4ec   : > { %v13020_v32 = vrot.slane %v10510_v63, 2  ;;  %v3080_v24 = vadd.f32 %v3077_v23, %v3002_v42  ;;  %v4351_v35 = vsel %vm494_vm0, %v4349_v6, %v4350_v30  ;;  %v13023_v58 = vrot.slane %v13022_v5, 2  ;;  %v13026_v63 = vld [vmem:[#allocation95_spill] sm:$0xff]  ;;  %v13028_v42 = vld [vmem:[#allocation144_spill] sm:$0xff]  ;;  %v13029_v23 = vld [vmem:[#allocation177_spill] sm:$0xff] }
 0x4ed   : > { %v3580_v14 = vadd.f32 %v10240_v22, %v3464_v40  ;;  %v1584_v17 = vsel %vm494_vm0, %v12154_v37, %v13018_v54  ;;  %v2798_v27 = vsel %vm576_vm1, %v12152_v21, %v13019_v20  ;;  %v10743_v22 = vmul.f32 %v10632_v15, %v10144_v11  ;;  %v13039_v37 = vld [vmem:[#allocation147_spill] sm:$0xff] }
 0x4ee   : > { %v1952_v52 = vsel %vm576_vm1, %v1950_v2, %v13020_v32  ;;  %v2805_v61 = vadd.f32 %v2798_v27, %v2707_v39  ;;  %v10751_v40 = vmul.f32 %v10343_v38, %v13021_v34  ;;  %v13025_v54 = vrot.slane %v13024_v43, 2  ;;  %4568 = vrot.lane.b32.xlu0 %v13026_v63, %s6336_s21  ;;  %v13027_v39 = vld [vmem:[#allocation142_spill] sm:$0xff]  ;;  %v13030_v27 = vld [vmem:[#allocation205_spill] sm:$0xff] }
 0x4ef   : > { %v1960_v18 = vadd.f32 %v1952_v52, %v1862_v9  ;;  %4356 = vrot.lane.b32.xlu1 %v4351_v35, %s6337_s22  ;;  %v1580_v2 = vrot.slane %v10722_v50, 1  ;;  %v3136_v6 = vadd.f32 %v13028_v42, %v3080_v24  ;;  %v1428_v9 = vadd.f32 %v13029_v23, %v1381_v25  ;;  %v10766_v52 = vld [vmem:[#allocation2 + $0x20] sm:$0xff]  ;;  %v13034_v63 = vld [vmem:[#allocation73_spill] sm:$0xff] }
 0x4f0   : > { %v3665_v20 = vsel %vm576_vm1, %v13025_v54, %v13023_v58  ;;  %v2915_v30 = vadd.f32 %v13027_v39, %v2805_v61  ;;  %v2462_v35 = vmul.f32 %v10766_v52, %v12980_v62  ;;  %v12153_v5 = vrot.slane %v10743_v22, 1  ;;  %v10773_v50 = vpop.permute.xlu0 %3990  ;;  %v13031_v61 = vld [vmem:[#allocation136_spill] sm:$0xff]  ;;  %v13032_v24 = vld [vmem:[#allocation154_spill] sm:$0xff]  ;;  %v13033_v54 = vld [vmem:[#allocation23_spill] sm:$0xff] }
 0x4f1   : > { %v3672_v38 = vadd.f32 %v3665_v20, %v3580_v14  ;;  %v2070_v32 = vadd.f32 %v13030_v27, %v1960_v18  ;;  %v10771_v58 = vpop.permute.xlu1 %3992  ;;  %v3216_v14 = vadd.f32 %v13032_v24, %v3136_v6  ;;  %v10779_v25 = vmul.f32 %v10632_v15, %v10184_v7  ;;  %v13038_v62 = vld [vmem:[#allocation213_spill] sm:$0xff] }
 0x4f2   : > { %v3031_v43 = vadd.f32 %v13031_v61, %v2915_v30  ;;  %v1508_v20 = vadd.f32 %v13033_v54, %v1428_v9  ;;  %v10787_v42 = vmul.f32 %v10632_v15, %v10211_v26  ;;  %v2240_v30 = vmul.f32 %v10766_v52, %v12978_v59  ;;  %v10801_v61 = vld [vmem:[#allocation2 + $0x68] sm:$0xff] }
 0x4f3   : > { %v3788_v18 = vadd.f32 %v10387_v48, %v3672_v38  ;;  %v2186_v39 = vadd.f32 %v13034_v63, %v2070_v32  ;;  %v3085_v6 = vmul.f32 %v10632_v15, %v10191_v31  ;;  %v4369_v27 = vstv %s10727_s10  ;;  %v10817_v63 = vld [vmem:[#allocation2 + $0x78] sm:$0x3]  ;;  %s6105_s10 = sld [smem:[#allocation13 + $0xe]] }
 0x4f4   : > { %v2470_v48 = vrot.slane %v2462_v35, 1  ;;  %v13035_v38 = vrot.slane %v10153_v55, 1  ;;  %v4372_v32 = vmul.f32 %v10636_v3, %v4369_v27  ;;  %v10804_v24 = vmul.f32 %v10801_v61, %v4369_v27  ;;  %v13036_v35 = vld [vmem:[#allocation178_spill] sm:$0xff] }
 0x4f5   : > { %v3904_v23 = vadd.f32 %v10598_v28, %v3788_v18  ;;  %v3088_v59 = vadd.f32 %v3085_v6, %v3031_v43  ;;  %v3937_v28 = vmul.f32 %v10801_v61, %v12974_v51  ;;  %v1427_v55 = vadd.f32 %v13036_v35, %v1380_v49  ;;  %v13041_v49 = vld [vmem:[#allocation35_spill] sm:$0xff] }
 0x4f6   : > { %v3295_v9 = vsel %vm494_vm0, %v12153_v5, %v13035_v38  ;;  %v1591_v18 = vadd.f32 %v1584_v17, %v1508_v20  ;;  %v2243_v21 = vadd.f32 %v2240_v30, %v2186_v39  ;;  %v13037_v5 = vld [vmem:[#allocation216_spill] sm:$0xff]  ;;  %4684 = vrot.lane.b32.xlu0 %v13038_v62, %s6337_s22  ;;  %v4373_v51 = vmul.f32 %v10817_v63, %v4369_v27  ;;  %v13042_v20 = vld [vmem:[#allocation97_spill] sm:$0xff] }
 0x4f7   : > { %v3302_v54 = vadd.f32 %v3295_v9, %v3216_v14  ;;  %4564 = vrot.lane.b32.xlu1 %v13037_v5, %s6336_s21  ;;  %v3156_v43 = vadd.f32 %v13039_v37, %v3088_v59  ;;  %v13040_v14 = vld [vmem:[#allocation165_spill] sm:$0xff]  ;;  %v3940_v9 = vadd.f32 %v3937_v28, %v3904_v23  ;;  %v4381_v38 = vrot.slane %v4372_v32, 1 }
 0x4f8   : > { %v1689_v17 = vadd.f32 %v13041_v49, %v1591_v18  ;;  %v2311_v39 = vadd.f32 %v13042_v20, %v2243_v21  ;;  %v4011_v35 = vpop.permute.xlu0 %4010  ;;  %v4379_v5 = vrot.slane %v10804_v24, 1  ;;  %v13045_v18 = vrot.slane %v10671_v19, 1  ;;  %v13047_v24 = vld [vmem:[#allocation41_spill] sm:$0xff] }
 0x4f9   : > { %v3406_v6 = vadd.f32 %v13040_v14, %v3302_v54  ;;  %v4013_v30 = vpop.permute.xlu1 %4012  ;;  %v3236_v62 = vadd.f32 %v13043_v46, %v3156_v43  ;;  %v10828_v23 = vadd.f32 %v4011_v35, %v10621_v10  ;;  %v13044_v54 = vld [vmem:[#allocation19_spill] sm:$0xff]  ;;  %v1896_v32 = vmul.f32 %v10605_v1, %v13021_v34 }
 0x4fa   : > { %v10825_v59 = vadd.f32 %v4013_v30, %v3940_v9  ;;  %v1507_v28 = vadd.f32 %v13044_v54, %v1427_v55  ;;  %v1582_v21 = vsel %vm494_vm0, %v1580_v2, %v13045_v18  ;;  %v13046_v14 = vld [vmem:[#allocation63_spill] sm:$0xff]  ;;  %v13048_v46 = vrot.slane %v13047_v24, 2 }
 0x4fb   : > { %v3522_v37 = vadd.f32 %v10124_v41, %v3406_v6  ;;  %v1805_v49 = vadd.f32 %v13046_v14, %v1689_v17  ;;  %v13049_v41 = vrot.slane %v10751_v40, 2  ;;  %v13050_v6 = vld [vmem:[#allocation105_spill] sm:$0xff]  ;;  %v13051_v9 = vrot.slane %v10617_v8, 1  ;;  %v10860_v8 = vld [vmem:[#allocation2 + $0x60] sm:$0xff] }
 0x4fc   : > { %v2391_v10 = vadd.f32 %v13050_v6, %v2311_v39  ;;  %v4383_v19 = vrot.slane %v4373_v51, 1  ;;  %v13052_v2 = vrot.slane %v10204_v29, 1  ;;  %v13053_v17 = vrot.slane %v10779_v25, 1 }
 0x4fd   : > { %v1908_v43 = vsel %vm576_vm1, %v13049_v41, %v13048_v46  ;;  %v2472_v55 = vsel %vm494_vm0, %v2470_v48, %v13051_v9  ;;  %v13054_v34 = vrot.slane %v10227_v53, 2  ;;  %v13055_v30 = vrot.slane %v10787_v42, 2  ;;  %v13056_v41 = vld [vmem:[#allocation170_spill] sm:$0xff]  ;;  %v13058_v9 = vld [vmem:[#allocation188_spill] sm:$0xff] }
 0x4fe   : > { %v3318_v20 = vsel %vm494_vm0, %v13053_v17, %v13052_v2  ;;  %v10858_v39 = vmul.f32 %v10632_v15, %v10261_v12  ;;  %v4370_v48 = vmul.f32 %v10860_v8, %v4369_v27  ;;  %v4384_v54 = vsel %vm494_vm0, %v4381_v38, %v4383_v19  ;;  %v13060_v17 = vld [vmem:[#allocation64_spill] sm:$0xff] }
 0x4ff   : > { %v3619_v35 = vsel %vm576_vm1, %v13055_v30, %v13054_v34  ;;  %v3325_v51 = vadd.f32 %v3318_v20, %v3236_v62  ;;  %v4382_v18 = vsel %vm494_vm0, %v4379_v5, %v4381_v38  ;;  %v1590_v14 = vadd.f32 %v1582_v21, %v1507_v28  ;;  %4389 = vrot.lane.b32.xlu1 %v4384_v54, %s6337_s22  ;;  %v13057_v62 = vld [vmem:[#allocation37_spill] sm:$0xff]  ;;  %v13061_v34 = vld [vmem:[#allocation66_spill] sm:$0xff] }
 0x500   : > { %v3626_v29 = vadd.f32 %v3619_v35, %v3522_v37  ;;  %v1915_v53 = vadd.f32 %v1908_v43, %v1805_v49  ;;  %v2786_v24 = vmul.f32 %v10766_v52, %v10058_v4  ;;  %4387 = vrot.lane.b32.xlu0 %v4382_v18, %s6337_s22  ;;  %v2480_v46 = vadd.f32 %v2472_v55, %v2391_v10  ;;  %v10876_v21 = vpop.permute.xlu0 %4030  ;;  %v13059_v4 = vld [vmem:[#allocation117_spill] sm:$0xff]  ;;  %v13062_v35 = vld [vmem:[#allocation128_spill] sm:$0xff] }
 0x501   : > { %v3435_v6 = vadd.f32 %v13056_v41, %v3325_v51  ;;  %v1688_v37 = vadd.f32 %v13057_v62, %v1590_v14  ;;  %v1904_v2 = vrot.slane %v1896_v32, 2  ;;  %v3639_v38 = vrot.slane %v10858_v39, 2  ;;  %v10874_v28 = vpop.permute.xlu1 %4032  ;;  %v13066_v41 = vld [vmem:[#allocation174_spill] sm:$0xff] }
 0x502   : > { %v3730_v27 = vadd.f32 %v10323_v45, %v3626_v29  ;;  %v2013_v19 = vadd.f32 %v13058_v9, %v1915_v53  ;;  %v2590_v49 = vadd.f32 %v13059_v4, %v2480_v46  ;;  %v4378_v55 = vrot.slane %v4370_v48, 1  ;;  %v13069_v9 = vld [vmem:[#allocation220_spill] sm:$0xff]  ;;  %v13115_v39 = vld [vmem:[#allocation206_spill] sm:$0xff] }
 0x503   : > { %v3551_v43 = vadd.f32 %v10186_v36, %v3435_v6  ;;  %v1804_v45 = vadd.f32 %v13060_v17, %v1688_v37  ;;  %v2794_v20 = vrot.slane %v2786_v24, 2  ;;  %v3921_v51 = vmul.f32 %v10801_v61, %v10296_v57 }
 0x504   : > { %v3846_v10 = vadd.f32 %v10493_v33, %v3730_v27  ;;  %v2129_v30 = vadd.f32 %v13061_v34, %v2013_v19  ;;  %v2706_v32 = vadd.f32 %v13062_v35, %v2590_v49  ;;  %v13063_v29 = vrot.slane %v10751_v40, 2  ;;  %v13065_v33 = vld [vmem:[#allocation166_spill] sm:$0xff]  ;;  %v13074_v35 = vld [vmem:[#allocation92_spill] sm:$0xff] }
 0x505   : > { %v13064_v18 = vrot.slane %v10274_v44, 2  ;;  %v2225_v48 = vmul.f32 %v10461_v16, %v13065_v33  ;;  %v4380_v24 = vsel %vm494_vm0, %v4378_v55, %v4379_v5  ;;  %v2417_v6 = vmul.f32 %v10461_v16, %v13066_v41  ;;  %v13068_v44 = vld [vmem:[#allocation215_spill] sm:$0xff]  ;;  %v13070_v5 = vld [vmem:[#allocation189_spill] sm:$0xff] }
 0x506   : > { %v1906_v54 = vsel %vm576_vm1, %v1904_v2, %v13063_v29  ;;  %v3924_v53 = vadd.f32 %v3921_v51, %v3846_v10  ;;  %v13067_v40 = vrot.slane %v10691_v47, 2  ;;  %v13071_v10 = vld [vmem:[#allocation83_spill] sm:$0xff]  ;;  %v13072_v55 = vld [vmem:[#allocation149_spill] sm:$0xff]  ;;  %v13075_v51 = vld [vmem:[#allocation100_spill] sm:$0xff] }
 0x507   : > { %v3642_v36 = vsel %vm576_vm1, %v3639_v38, %v13064_v18  ;;  %v1914_v46 = vadd.f32 %v1906_v54, %v1804_v45  ;;  %4385 = vrot.lane.b32.xlu1 %v4380_v24, %s6337_s22  ;;  %v2228_v62 = vadd.f32 %v2225_v48, %v2129_v30  ;;  %v13073_v45 = vld [vmem:[#allocation49_spill] sm:$0xff]  ;;  %v2416_v24 = vmul.f32 %v10766_v52, %v13066_v41 }
 0x508   : > { %v3649_v14 = vadd.f32 %v3642_v36, %v3551_v43  ;;  %v2796_v27 = vsel %vm576_vm1, %v2794_v20, %v13067_v40  ;;  %4597 = vrot.lane.b32.xlu0 %v13068_v44, %s6336_s21  ;;  %v3980_v2 = vadd.f32 %v10710_v60, %v3924_v53  ;;  %v10908_v43 = vpop.permute.xlu0 %4050  ;;  %v13076_v54 = vld [vmem:[#allocation153_spill] sm:$0xff]  ;;  %v2224_v53 = vmul.f32 %v10766_v52, %v13065_v33  ;;  %v10930_v44 = vld [vmem:[#allocation2 + $0x40] sm:$0xff] }
 0x509   : > { %v2804_v37 = vadd.f32 %v2796_v27, %v2706_v32  ;;  %v2012_v4 = vadd.f32 %v13070_v5, %v1914_v46  ;;  %v4053_v49 = vpop.permute.xlu1 %4052  ;;  %v2272_v47 = vadd.f32 %v13071_v10, %v2228_v62  ;;  %v2425_v32 = vrot.slane %v2417_v6, 1  ;;  %v13077_v18 = vld [vmem:[#allocation85_spill] sm:$0xff]  ;;  %v13079_v46 = vld [vmem:[#allocation146_spill] sm:$0xff]  ;;  %v13083_v5 = vld [vmem:[#allocation99_spill] sm:$0xff] }
 0x50a   : > { %v3759_v19 = vadd.f32 %v13069_v9, %v3649_v14  ;;  %v10913_v34 = vadd.f32 %v4053_v49, %v3980_v2  ;;  %v3929_v36 = vmul.f32 %v10801_v61, %v13077_v18  ;;  %v13078_v48 = vld [vmem:[#allocation25_spill] sm:$0xff]  ;;  %v1388_v40 = vmul.f32 %v10605_v1, %v13079_v46  ;;  %v13080_v6 = vld [vmem:[#allocation34_spill] sm:$0xff]  ;;  %v13090_v46 = vld [vmem:[#allocation116_spill] sm:$0xff] }
 0x50b   : > { %v2914_v17 = vadd.f32 %v13072_v55, %v2804_v37  ;;  %v2128_v30 = vadd.f32 %v13074_v35, %v2012_v4  ;;  %v2352_v29 = vadd.f32 %v13075_v51, %v2272_v47  ;;  %v1595_v14 = vmul.f32 %v10605_v1, %v13078_v48  ;;  %v13084_v4 = vld [vmem:[#allocation67_spill] sm:$0xff] }
 0x50c   : > { %v3875_v20 = vadd.f32 %v13073_v45, %v3759_v19  ;;  %v2741_v27 = vmul.f32 %v10461_v16, %v13080_v6  ;;  %v3084_v62 = vmul.f32 %v10930_v44, %v10191_v31  ;;  %v13081_v19 = vld [vmem:[#allocation169_spill] sm:$0xff]  ;;  %v3306_v41 = vmul.f32 %v10930_v44, %v10184_v7  ;;  %v13087_v7 = vld [vmem:[#allocation107_spill] sm:$0xff] }
 0x50d   : > { %v3030_v60 = vadd.f32 %v13076_v54, %v2914_v17  ;;  %v2227_v9 = vadd.f32 %v2224_v53, %v2128_v30  ;;  %v13082_v2 = vrot.slane %v13081_v19, 1  ;;  %v13085_v31 = vld [vmem:[#allocation181_spill] sm:$0xff]  ;;  %v1603_v55 = vrot.slane %v1595_v14, 1  ;;  %v13086_v17 = vld [vmem:[#allocation111_spill] sm:$0xff] }
 0x50e   : > { %v3932_v37 = vadd.f32 %v3929_v36, %v3875_v20  ;;  %v1447_v47 = vadd.f32 %v13085_v31, %v1388_v40  ;;  %v2424_v20 = vrot.slane %v2416_v24, 1  ;;  %v2749_v54 = vrot.slane %v2741_v27, 2  ;;  %v13088_v36 = vld [vmem:[#allocation145_spill] sm:$0xff]  ;;  %v13091_v40 = vld [vmem:[#allocation124_spill] sm:$0xff]  ;;  %v13093_v24 = vld [vmem:[#allocation42_spill] sm:$0xff] }
 0x50f   : > { %v2428_v33 = vsel %vm494_vm0, %v2425_v32, %v13082_v2  ;;  %4593 = vrot.lane.b32.xlu1 %v13083_v5, %s6336_s21  ;;  %v3087_v49 = vadd.f32 %v3084_v62, %v3030_v60  ;;  %v2271_v45 = vadd.f32 %v13086_v17, %v2227_v9  ;;  %v3314_v62 = vrot.slane %v3306_v41, 1  ;;  %v13094_v2 = vld [vmem:[#allocation84_spill] sm:$0xff] }
 0x510   : > { %4713 = vrot.lane.b32.xlu0 %v13084_v4, %s6337_s22  ;;  %v2435_v16 = vadd.f32 %v2428_v33, %v2352_v29  ;;  %v4000_v10 = vadd.f32 %v10771_v58, %v3932_v37  ;;  %v10946_v30 = vpop.permute.xlu0 %4070  ;;  %v13089_v29 = vld [vmem:[#allocation28_spill] sm:$0xff]  ;;  %v13092_v37 = vld [vmem:[#allocation158_spill] sm:$0xff]  ;;  %v1919_v19 = vmul.f32 %v10605_v1, %v13093_v24  ;;  %v13095_v33 = vrot.slane %v13094_v2, 1  ;;  %v13096_v4 = vld [vmem:[#allocation47_spill] sm:$0xff] }
 0x511   : > { %v4073_v35 = vpop.permute.xlu1 %4072  ;;  %v3155_v48 = vadd.f32 %v13088_v36, %v3087_v49  ;;  %v1527_v60 = vadd.f32 %v13089_v29, %v1447_v47  ;;  %v2351_v58 = vadd.f32 %v13090_v46, %v2271_v45  ;;  %v2426_v5 = vsel %vm494_vm0, %v2424_v20, %v2425_v32  ;;  %v13099_v32 = vld [vmem:[#allocation39_spill] sm:$0xff]  ;;  %v13101_v29 = vld [vmem:[#allocation132_spill] sm:$0xff]  ;;  %v13102_v46 = vld [vmem:[#allocation77_spill] sm:$0xff] }
 0x512   : > { %v2533_v51 = vadd.f32 %v13087_v7, %v2435_v16  ;;  %v10950_v53 = vadd.f32 %v4073_v35, %v4000_v10  ;;  %v1605_v27 = vsel %vm494_vm0, %v1603_v55, %v13095_v33  ;;  %v13097_v16 = vrot.slane %v13096_v4, 2  ;;  %v10972_v35 = vpop.permute.xlu2 %4331  ;;  %v13106_v33 = vld [vmem:[#allocation196_spill] sm:$0xff] }
 0x513   : > { %v3235_v9 = vadd.f32 %v13092_v37, %v3155_v48  ;;  %v2740_v41 = vmul.f32 %v10766_v52, %v13080_v6  ;;  %v1613_v10 = vadd.f32 %v1605_v27, %v1527_v60  ;;  %v2434_v31 = vadd.f32 %v2426_v5, %v2351_v58  ;;  %v13107_v5 = vld [vmem:[#allocation176_spill] sm:$0xff] }
 0x514   : > { %v2649_v14 = vadd.f32 %v13091_v40, %v2533_v51  ;;  %v2752_v49 = vsel %vm576_vm1, %v2749_v54, %v13097_v16  ;;  %v13098_v47 = vrot.slane %v10779_v25, 1  ;;  %v3630_v1 = vmul.f32 %v10930_v44, %v10261_v12  ;;  %v13100_v51 = vld [vmem:[#allocation109_spill] sm:$0xff]  ;;  %v13108_v16 = vld [vmem:[#allocation179_spill] sm:$0xff] }
 0x515   : > { %v1717_v20 = vadd.f32 %v13099_v32, %v1613_v10  ;;  %v1927_v7 = vrot.slane %v1919_v19, 2  ;;  %v2532_v36 = vadd.f32 %v13100_v51, %v2434_v31  ;;  %v13105_v19 = vld [vmem:[#allocation150_spill] sm:$0xff]  ;;  %v10988_v4 = vmul.f32 %v10801_v61, %v13107_v5  ;;  %v13110_v10 = vld [vmem:[#allocation183_spill] sm:$0xff]  ;;  %v13111_v31 = vld [vmem:[#allocation185_spill] sm:$0xff] }
 0x516   : > { %v3316_v17 = vsel %vm494_vm0, %v3314_v62, %v13098_v47  ;;  %v2759_v45 = vadd.f32 %v2752_v49, %v2649_v14  ;;  %v13103_v62 = vld [vmem:[#allocation68_spill] sm:$0xff]  ;;  %v2748_v14 = vrot.slane %v2740_v41, 2  ;;  %v3638_v37 = vrot.slane %v3630_v1, 2  ;;  %v13112_v51 = vld [vmem:[#allocation199_spill] sm:$0xff] }
 0x517   : > { %v3324_v55 = vadd.f32 %v3316_v17, %v3235_v9  ;;  %v1833_v40 = vadd.f32 %v13103_v62, %v1717_v20  ;;  %v13104_v9 = vld [vmem:[#allocation118_spill] sm:$0xff]  ;;  %v13109_v49 = vrot.slane %v13108_v16, 2  ;;  %v3069_v41 = vmul.f32 %v10632_v15, %v13110_v10  ;;  %v13121_v16 = vld [vmem:[#allocation171_spill] sm:$0xff] }
 0x518   : > { %v4091_v6 = vpop.permute.xlu0 %4090  ;;  %v2857_v60 = vadd.f32 %v13101_v29, %v2759_v45  ;;  %v2648_v24 = vadd.f32 %v13104_v9, %v2532_v36  ;;  %v3261_v47 = vmul.f32 %v10632_v15, %v13111_v31  ;;  %v2750_v1 = vsel %vm576_vm1, %v2748_v14, %v2749_v54  ;;  %v13116_v14 = vld [vmem:[#allocation71_spill] sm:$0xff]  ;;  %v13117_v9 = vld [vmem:[#allocation129_spill] sm:$0xff] }
 0x519   : > { %v4093_v48 = vpop.permute.xlu1 %4092  ;;  %v3434_v25 = vadd.f32 %v13102_v46, %v3324_v55  ;;  %v4099_v12 = vadd.f32 %v4091_v6, %v10828_v23  ;;  %v1929_v23 = vsel %vm576_vm1, %v1927_v7, %v13109_v49  ;;  %v3640_v45 = vsel %vm576_vm1, %v3638_v37, %v3639_v38 }
 0x51a   : > { %v10979_v58 = vadd.f32 %v4093_v48, %v10825_v59  ;;  %v2973_v2 = vadd.f32 %v13105_v19, %v2857_v60  ;;  %v4173_v59 = vmul.f32 %v10860_v8, %v13107_v5  ;;  %v1937_v17 = vadd.f32 %v1929_v23, %v1833_v40  ;;  %v13113_v60 = vld [vmem:[#allocation135_spill] sm:$0xff]  ;;  %v11012_v38 = vpop.permute.xlu2 %4653  ;;  %v13118_v19 = vld [vmem:[#allocation152_spill] sm:$0xff] }
 0x51b   : > { %v3550_v27 = vadd.f32 %v13106_v33, %v3434_v25  ;;  %v2758_v55 = vadd.f32 %v2750_v1, %v2648_v24  ;;  %v4182_v6 = vrot.slane %v10988_v4, 1  ;;  %v13114_v25 = vld [vmem:[#allocation140_spill] sm:$0xff]  ;;  %v3269_v62 = vrot.slane %v3261_v47, 1  ;;  %v13119_v33 = vld [vmem:[#allocation29_spill] sm:$0xff]  ;;  %v13122_v47 = vld [vmem:[#allocation214_spill] sm:$0xff] }
 0x51c   : > { %v3072_v32 = vadd.f32 %v3069_v41, %v2973_v2  ;;  %v2041_v36 = vadd.f32 %v13112_v51, %v1937_v17  ;;  %v4181_v29 = vrot.slane %v4173_v59, 1  ;;  %v13120_v5 = vld [vmem:[#allocation172_spill] sm:$0xff]  ;;  %v2439_v49 = vmul.f32 %v10766_v52, %v13121_v16 }
 0x51d   : > { %v3648_v20 = vadd.f32 %v3640_v45, %v3550_v27  ;;  %v2856_v46 = vadd.f32 %v13113_v60, %v2758_v55  ;;  %v2232_v59 = vmul.f32 %v10766_v52, %v13120_v5  ;;  %v3068_v23 = vmul.f32 %v10930_v44, %v13110_v10  ;;  %v13124_v51 = vld [vmem:[#allocation56_spill] sm:$0xff] }
 0x51e   : > { %v3116_v54 = vadd.f32 %v13114_v25, %v3072_v32  ;;  %v2157_v37 = vadd.f32 %v13116_v14, %v2041_v36  ;;  %v4183_v41 = vsel %vm494_vm0, %v4181_v29, %v4182_v6  ;;  %v13123_v17 = vrot.slane %v13122_v47, 1  ;;  %v13125_v36 = vld [vmem:[#allocation193_spill] sm:$0xff]  ;;  %v13127_v14 = vld [vmem:[#allocation138_spill] sm:$0xff]  ;;  %v13129_v5 = vld [vmem:[#allocation104_spill] sm:$0xff] }
 0x51f   : > { %v3758_v40 = vadd.f32 %v13115_v39, %v3648_v20  ;;  %v2972_v24 = vadd.f32 %v13117_v9, %v2856_v46  ;;  %v3260_v45 = vmul.f32 %v10930_v44, %v13111_v31  ;;  %v3928_v55 = vmul.f32 %v10860_v8, %v13077_v18  ;;  %v13126_v31 = vld [vmem:[#allocation93_spill] sm:$0xff] }
 0x520   : > { %v11006_v7 = vpop.permute.xlu0 %4211  ;;  %v3196_v2 = vadd.f32 %v13118_v19, %v3116_v54  ;;  %v3272_v1 = vsel %vm494_vm0, %v3269_v62, %v13123_v17  ;;  %v11034_v32 = vadd.f32 %v4183_v41, %v4099_v12  ;;  %v2235_v20 = vadd.f32 %v2232_v59, %v2157_v37 }
 0x521   : > { %v11004_v48 = vpop.permute.xlu1 %4213  ;;  %v3874_v27 = vadd.f32 %v13119_v33, %v3758_v40  ;;  %v3585_v10 = vmul.f32 %v10632_v15, %v13124_v51  ;;  %v11040_v60 = vmul.f32 %v10801_v61, %v13125_v36  ;;  %v4150_v29 = vmul.f32 %v10860_v8, %v13125_v36  ;;  %v13128_v15 = vld [vmem:[#allocation162_spill] sm:$0xff] }
 0x522   : > { %v3071_v46 = vadd.f32 %v3068_v23, %v2972_v24  ;;  %v3279_v25 = vadd.f32 %v3272_v1, %v3196_v2  ;;  %v2291_v39 = vadd.f32 %v13126_v31, %v2235_v20  ;;  %v2447_v40 = vrot.slane %v2439_v49, 1  ;;  %v13131_v49 = vld [vmem:[#allocation192_spill] sm:$0xff]  ;;  %v11056_v47 = vpop.permute.xlu2 %4651  ;;  %v13132_v1 = vld [vmem:[#allocation190_spill] sm:$0xff] }
 0x523   : > { %v3931_v54 = vadd.f32 %v3928_v55, %v3874_v27  ;;  %v3268_v19 = vrot.slane %v3260_v45, 1  ;;  %v3593_v16 = vrot.slane %v3585_v10, 2  ;;  %v4159_v24 = vrot.slane %v11040_v60, 1  ;;  %v13130_v27 = vld [vmem:[#allocation156_spill] sm:$0xff]  ;;  %v13133_v45 = vld [vmem:[#allocation191_spill] sm:$0xff] }
 0x524   : > { %v3115_v37 = vadd.f32 %v13127_v14, %v3071_v46  ;;  %v3377_v9 = vadd.f32 %v13128_v15, %v3279_v25  ;;  %v2371_v59 = vadd.f32 %v13129_v5, %v2291_v39  ;;  %v4158_v2 = vrot.slane %v4150_v29, 1  ;;  %v13135_v46 = vld [vmem:[#allocation200_spill] sm:$0xff] }
 0x525   : > { %v3999_v33 = vadd.f32 %v10773_v50, %v3931_v54  ;;  %v2763_v55 = vmul.f32 %v10766_v52, %v13132_v1  ;;  %v13134_v20 = vrot.slane %v13133_v45, 1  ;;  %v3584_v10 = vmul.f32 %v10930_v44, %v13124_v51  ;;  %v13137_v14 = vld [vmem:[#allocation120_spill] sm:$0xff]  ;;  %v13141_v1 = vld [vmem:[#allocation18_spill] sm:$0xff] }
 0x526   : > { %v3195_v23 = vadd.f32 %v13130_v27, %v3115_v37  ;;  %v3493_v41 = vadd.f32 %v13131_v49, %v3377_v9  ;;  %v3270_v29 = vsel %vm494_vm0, %v3268_v19, %v3269_v62  ;;  %v13136_v25 = vrot.slane %v13135_v46, 2  ;;  %v13138_v9 = vld [vmem:[#allocation164_spill] sm:$0xff]  ;;  %v13139_v62 = vld [vmem:[#allocation186_spill] sm:$0xff] }
 0x527   : > { %v4079_v17 = vadd.f32 %v10946_v30, %v3999_v33  ;;  %v2449_v50 = vsel %vm494_vm0, %v2447_v40, %v13134_v20  ;;  %v4160_v30 = vsel %vm494_vm0, %v4158_v2, %v4159_v24  ;;  %v2771_v37 = vrot.slane %v2763_v55, 2  ;;  %v13140_v27 = vld [vmem:[#allocation126_spill] sm:$0xff] }
 0x528   : > { %v11047_v12 = vpop.permute.xlu0 %4240  ;;  %v2457_v36 = vadd.f32 %v2449_v50, %v2371_v59  ;;  %v3596_v54 = vsel %vm576_vm1, %v3593_v16, %v13136_v25  ;;  %v3278_v52 = vadd.f32 %v3270_v29, %v3195_v23  ;;  %v3592_v5 = vrot.slane %v3584_v10, 2  ;;  %v13142_v23 = vld [vmem:[#allocation74_spill] sm:$0xff]  ;;  %v13144_v50 = vld [vmem:[#allocation201_spill] sm:$0xff] }
 0x529   : > { %v11045_v18 = vpop.permute.xlu1 %4242  ;;  %v3603_v31 = vadd.f32 %v3596_v54, %v3493_v41  ;;  %v4168_v39 = vadd.f32 %v4160_v30, %v4079_v17  ;;  %v13143_v17 = vrot.slane %v10630_v56, 2  ;;  %v4103_v20 = vstv %s6065_s12  ;;  %v13145_v54 = vld [vmem:[#allocation57_spill] sm:$0xff]  ;;  %s6107_s12 = sld [smem:[#allocation13 + $0x10]] }
 0x52a   : > { %v2561_v40 = vadd.f32 %v13137_v14, %v2457_v36  ;;  %v3376_v33 = vadd.f32 %v13138_v9, %v3278_v52  ;;  %v3594_v45 = vsel %vm576_vm1, %v3592_v5, %v3593_v16  ;;  %v3913_v36 = vmul.f32 %v10801_v61, %v13144_v50  ;;  %v11089_v29 = vpop.permute.xlu2 %4566 }
 0x52b   : > { %v3701_v19 = vadd.f32 %v13139_v62, %v3603_v31  ;;  %v2773_v55 = vsel %vm576_vm1, %v2771_v37, %v13143_v17  ;;  %v4106_v46 = vmul.f32 %v10636_v3, %v4103_v20  ;;  %v4105_v25 = vmul.f32 %v10801_v61, %v4103_v20 }
 0x52c   : > { %v2677_v49 = vadd.f32 %v13140_v27, %v2561_v40  ;;  %v3492_v2 = vadd.f32 %v13141_v1, %v3376_v33  ;;  %v13146_v30 = vrot.slane %v13145_v54, 1  ;;  %v13151_v54 = vld [vmem:[#allocation143_spill] sm:$0xff] }
 0x52d   : > { %v3817_v41 = vadd.f32 %v13142_v23, %v3701_v19  ;;  %v4115_v4 = vrot.slane %v4106_v46, 1  ;;  %v4113_v5 = vrot.slane %v4105_v25, 1  ;;  %v3283_v23 = vmul.f32 %v10930_v44, %v10144_v11 }
 0x52e   : > { %v2781_v10 = vadd.f32 %v2773_v55, %v2677_v49  ;;  %v4185_v56 = vsel %vm494_vm0, %v4182_v6, %v13146_v30  ;;  %v3602_v52 = vadd.f32 %v3594_v45, %v3492_v2  ;;  %v13149_v6 = vld [vmem:[#allocation130_spill] sm:$0xff]  ;;  %v13150_v49 = vld [vmem:[#allocation61_spill] sm:$0xff]  ;;  %v3076_v2 = vmul.f32 %v10930_v44, %v10129_v13 }
 0x52f   : > { %v3916_v16 = vadd.f32 %v3913_v36, %v3817_v41  ;;  %v4192_v31 = vadd.f32 %v4185_v56, %v10979_v58  ;;  %v4427_v41 = vstv %s6077_s13  ;;  %v4116_v17 = vsel %vm494_vm0, %v4113_v5, %v4115_v4  ;;  %s6108_s13 = sld [smem:[#allocation13 + $0x11]] }
 0x530   : > { %v4270_v51 = vpop.permute.xlu0 %4269  ;;  %v4104_v55 = vmul.f32 %v10860_v8, %v4103_v20  ;;  %v4430_v45 = vmul.f32 %v10636_v3, %v4427_v41  ;;  %v3291_v56 = vrot.slane %v3283_v23, 1 }
 0x531   : > { %v11074_v15 = vpop.permute.xlu1 %4271  ;;  %v11078_v59 = vadd.f32 %v4270_v51, %v4168_v39  ;;  %v13147_v39 = vld [vmem:[#allocation139_spill] sm:$0xff]  ;;  %v13148_v51 = vld [vmem:[#allocation217_spill] sm:$0xff]  ;;  %v3960_v33 = vadd.f32 %v10660_v0, %v3916_v16  ;;  %v4107_v0 = vmul.f32 %v10817_v63, %v4103_v20 }
 0x532   : > { %v2885_v14 = vadd.f32 %v13147_v39, %v2781_v10  ;;  %v3700_v9 = vadd.f32 %v13148_v51, %v3602_v52  ;;  %v11121_v13 = vpop.permute.xlu2 %4682  ;;  %v4112_v20 = vrot.slane %v4104_v55, 1  ;;  %v4439_v39 = vrot.slane %v4430_v45, 2 }
 0x533   : > { %v4040_v58 = vadd.f32 %v10874_v28, %v3960_v33  ;;  %v4429_v28 = vmul.f32 %v10801_v61, %v4427_v41 }
 0x534   : > { %v3001_v27 = vadd.f32 %v13149_v6, %v2885_v14  ;;  %v3816_v1 = vadd.f32 %v13150_v49, %v3700_v9  ;;  %v13154_v6 = vrot.slane %v10743_v22, 1  ;;  %v3607_v49 = vmul.f32 %v10930_v44, %v10211_v26 }
 0x535   : > { %v4123_v46 = vadd.f32 %v4116_v17, %v4040_v58  ;;  %v4437_v14 = vrot.slane %v4429_v28, 2  ;;  %v4114_v58 = vsel %vm494_vm0, %v4112_v20, %v4113_v5  ;;  %v13157_v28 = vld [vmem:[#allocation167_spill] sm:$0xff] }
 0x536   : > { %v3079_v36 = vadd.f32 %v3076_v2, %v3001_v27  ;;  %v3293_v27 = vsel %vm494_vm0, %v3291_v56, %v13154_v6  ;;  %v4431_v2 = vmul.f32 %v10817_v63, %v4427_v41 }
 0x537   : > { %v4221_v16 = vadd.f32 %v11004_v48, %v4123_v46  ;;  %v13155_v48 = vld [vmem:[#allocation207_spill] sm:$0xff]  ;;  %v4440_v23 = vsel %vm576_vm1, %v4437_v14, %v4439_v39  ;;  %v3615_v46 = vrot.slane %v3607_v49, 2  ;;  %v13161_v49 = vld [vmem:[#allocation202_spill] sm:$0xff] }
 0x538   : > { %v4299_v37 = vpop.permute.xlu0 %4298  ;;  %v3135_v30 = vadd.f32 %v13151_v54, %v3079_v36  ;;  %v4751_v54 = vstv %s4750_s14  ;;  %s6110_s14 = sld [smem:[#allocation13 + $0x13]] }
 0x539   : > { %v4301_v40 = vpop.permute.xlu1 %4300  ;;  %v11105_v19 = vadd.f32 %v4299_v37, %v11034_v32  ;;  %v3912_v32 = vmul.f32 %v10860_v8, %v13144_v50  ;;  %v13152_v50 = vld [vmem:[#allocation32_spill] sm:$0xff] }
 0x53a   : > { %v11102_v62 = vadd.f32 %v4301_v40, %v4192_v31  ;;  %v4117_v31 = vrot.slane %v4107_v0, 1  ;;  %v13153_v40 = vld [vmem:[#allocation155_spill] sm:$0xff]  ;;  %v11142_v44 = vpop.permute.xlu2 %4680 }
 0x53b   : > { %v3915_v10 = vadd.f32 %v3912_v32, %v3816_v1  ;;  %v3215_v37 = vadd.f32 %v13153_v40, %v3135_v30  ;;  %v13156_v32 = vld [vmem:[#allocation161_spill] sm:$0xff] }
 0x53c   : > { %v4118_v33 = vsel %vm494_vm0, %v4115_v4, %v4117_v31  ;;  %v13158_v30 = vld [vmem:[#allocation81_spill] sm:$0xff] }
 0x53d   : > { %v3959_v52 = vadd.f32 %v13152_v50, %v3915_v10  ;;  %v4124_v1 = vadd.f32 %v4118_v33, %v13155_v48  ;;  %v3301_v0 = vadd.f32 %v3293_v27, %v3215_v37 }
 0x53f   : > { %v4039_v51 = vadd.f32 %v10876_v21, %v3959_v52  ;;  %v4428_v21 = vmul.f32 %v10860_v8, %v4427_v41  ;;  %v4222_v4 = vadd.f32 %v13156_v32, %v4124_v1  ;;  %v3405_v36 = vadd.f32 %v13157_v28, %v3301_v0 }
 0x540   : > { %v4328_v25 = vpop.permute.xlu0 %4327 }
 0x541   : > { %v4330_v11 = vpop.permute.xlu1 %4329  ;;  %v4122_v17 = vadd.f32 %v4114_v58, %v4039_v51  ;;  %v4338_v26 = vadd.f32 %v10972_v35, %v4222_v4  ;;  %v4436_v41 = vrot.slane %v4428_v21, 2  ;;  %v3521_v56 = vadd.f32 %v13158_v30, %v3405_v36  ;;  %v13162_v58 = vld [vmem:[#allocation82_spill] sm:$0xff] }
 0x542   : > { %v4337_v9 = vadd.f32 %v4330_v11, %v4221_v16  ;;  %v4441_v11 = vrot.slane %v4431_v2, 2  ;;  %v13159_v35 = vrot.slane %v10787_v42, 2  ;;  %v4450_v4 = vstv %s6078_s6  ;;  %v13166_v30 = vld [vmem:[#allocation222_spill] sm:$0xff]  ;;  %s4849_s6 = sld [smem:[#allocation13]] }
 0x543   : > { %v4220_v5 = vadd.f32 %v11006_v7, %v4122_v17  ;;  %v13160_v7 = vld [vmem:[#allocation88_spill] sm:$0xff]  ;;  %v4438_v51 = vsel %vm576_vm1, %v4436_v41, %v4437_v14  ;;  %v3920_v14 = vmul.f32 %v10860_v8, %v10296_v57  ;;  %v13163_v17 = vld [vmem:[#allocation163_spill] sm:$0xff]  ;;  %v4452_v28 = vmul.f32 %v10801_v61, %v4450_v4 }
 0x544   : > { %v4447_v22 = vadd.f32 %v4440_v23, %v4337_v9  ;;  %v4442_v16 = vsel %vm576_vm1, %v4439_v39, %v4441_v11  ;;  %v3617_v40 = vsel %vm576_vm1, %v3615_v46, %v13159_v35  ;;  %v4128_v37 = vmul.f32 %v10801_v61, %v13160_v7  ;;  %v11157_v23 = vpop.permute.xlu2 %4595 }
 0x545   : > { %v4336_v50 = vadd.f32 %v4328_v25, %v4220_v5  ;;  %v4448_v31 = vadd.f32 %v4442_v16, %v4338_v26  ;;  %v3625_v9 = vadd.f32 %v3617_v40, %v3521_v56  ;;  %v4453_v36 = vmul.f32 %v10636_v3, %v4450_v4 }
 0x546   : > { %v4136_v42 = vrot.slane %v4128_v37, 1 }
 0x547   : > { %v4446_v25 = vadd.f32 %v4438_v51, %v4336_v50  ;;  %v3729_v39 = vadd.f32 %v13161_v49, %v3625_v9  ;;  %v4460_v50 = vrot.slane %v4452_v28, 2 }
 0x548   : > { %v4538_v45 = vpop.permute.xlu0 %4537 }
 0x549   : > { %v4540_v55 = vpop.permute.xlu1 %4539  ;;  %v4545_v10 = vadd.f32 %v4538_v45, %v4447_v22  ;;  %v3845_v2 = vadd.f32 %v13162_v58, %v3729_v39  ;;  %v13164_v22 = vrot.slane %v13163_v17, 1  ;;  %v4127_v45 = vmul.f32 %v10860_v8, %v13160_v7 }
 0x54a   : > { %v4546_v33 = vadd.f32 %v4540_v55, %v4448_v31  ;;  %v4451_v7 = vmul.f32 %v10860_v8, %v4450_v4  ;;  %v4473_v17 = vstv %s6079_s17  ;;  %s6113_s17 = sld [smem:[#allocation13 + $0x16]] }
 0x54b   : > { %v4661_v52 = vadd.f32 %v11012_v38, %v4545_v10  ;;  %v4139_v55 = vsel %vm494_vm0, %v4136_v42, %v13164_v22  ;;  %v3923_v26 = vadd.f32 %v3920_v14, %v3845_v2  ;;  %v13165_v10 = vld [vmem:[#allocation197_spill] sm:$0xff]  ;;  %v4135_v56 = vrot.slane %v4127_v45, 1 }
 0x54c   : > { %v4146_v5 = vadd.f32 %v4139_v55, %v10913_v34  ;;  %v4475_v22 = vmul.f32 %v10801_v61, %v4473_v17  ;;  %v4476_v55 = vmul.f32 %v10636_v3, %v4473_v17 }
 0x54d   : > { %v4753_v20 = vadd.f32 %v4751_v54, %v4661_v52  ;;  %v3979_v46 = vadd.f32 %v13165_v10, %v3923_v26  ;;  %v4462_v52 = vrot.slane %v4453_v36, 2  ;;  %v4137_v35 = vsel %vm494_vm0, %v4135_v56, %v4136_v42  ;;  %v13171_v36 = vld [vmem:[#allocation78_spill] sm:$0xff] }
 0x54e   : > { %v4250_v11 = vadd.f32 %v11045_v18, %v4146_v5  ;;  %v13172_v26 = vrot.slane %v13171_v36, 1 }
 0x54f   : > { %v4756_v6 = vmax.f32 %v4753_v20, 0.0  ;;  %v4059_v16 = vadd.f32 %v10908_v43, %v3979_v46  ;;  %v11176_v20 = vpop.permute.xlu2 %4711  ;;  %v4463_v40 = vsel %vm576_vm1, %v4460_v50, %v4462_v52  ;;  %v13167_v43 = vld [vmem:[#allocation223_spill] sm:$0xff]  ;;  %v4483_v46 = vrot.slane %v4475_v22, 2 }
 0x550   : > { %v4656_v38 = vpop.permute.xlu0 %4655  ;;  %v4162_v5 = vsel %vm494_vm0, %v4159_v24, %v13172_v26 }
 0x551   : > { %v4536_v27 = vpop.permute.xlu1 %4535  ;;  %v4662_v1 = vadd.f32 %v4656_v38, %v4546_v33  ;;  %4763 = vrot.lane.b32.xlu0 %v4756_v6, %s6338_s24  ;;  %v4145_v18 = vadd.f32 %v4137_v35, %v4059_v16  ;;  %v4454_v33 = vmul.f32 %v10817_v63, %v4450_v4  ;;  %v4459_v6 = vrot.slane %v4451_v7, 2  ;;  %v13168_v38 = vld [vmem:[#allocation17_spill] sm:$0xff] }
 0x552   : > { %v4544_v48 = vadd.f32 %v4536_v27, %v4446_v25  ;;  %v13170_v4 = vld [vmem:[#allocation225_spill] sm:$0xff]  ;;  %v4474_v35 = vmul.f32 %v10860_v8, %v4473_v17 }
 0x553   : > { %v4754_v21 = vadd.f32 %v4751_v54, %v4662_v1  ;;  %v4249_v9 = vadd.f32 %v11047_v12, %v4145_v18  ;;  %v4464_v39 = vrot.slane %v4454_v33, 2  ;;  %v13169_v12 = vld [vmem:[#allocation224_spill] sm:$0xff] }
 0x554   : > { %v4660_v0 = vadd.f32 %v11056_v47, %v4544_v48  ;;  %v4461_v48 = vsel %vm576_vm1, %v4459_v6, %v4460_v50 }
 0x555   : > { %v4757_v32 = vmax.f32 %v4754_v21, 0.0  ;;  %v4465_v2 = vsel %vm576_vm1, %v4462_v52, %v4464_v39  ;;  %v4774_v21 = vstv %s6089_s16  ;;  %s6111_s16 = sld [smem:[#allocation13 + $0x14]] }
 0x556   : > { %v4752_v41 = vadd.f32 %v4751_v54, %v4660_v0 }
 0x557   : > { %4765 = vrot.lane.b32.xlu1 %v4757_v32, %s6338_s24  ;;  %v11189_v1 = vpop.permute.xlu2 %4709 }
 0x558   : > { %v4359_v47 = vpop.permute.xlu0 %4358  ;;  %v4755_v34 = vmax.f32 %v4752_v41, 0.0  ;;  %v13173_v41 = vld [vmem:[#allocation226_spill] sm:$0xff] }
 0x559   : > { %v4361_v57 = vpop.permute.xlu1 %4360  ;;  %4418 = vrot.lane.b32.xlu0 %v13166_v30, %s6337_s22  ;;  %v4366_v31 = vadd.f32 %v4359_v47, %v4250_v11  ;;  %v4485_v11 = vrot.slane %v4476_v55, 2 }
 0x55a   : > { %v4367_v49 = vadd.f32 %v4361_v57, %v13168_v38  ;;  %v4169_v57 = vadd.f32 %v4162_v5, %v10950_v53  ;;  %v13177_v38 = vld [vmem:[#allocation75_spill] sm:$0xff] }
 0x55b   : > { %v4470_v54 = vadd.f32 %v4463_v40, %v4366_v31  ;;  %v4486_v24 = vsel %vm576_vm1, %v4483_v46, %v4485_v11  ;;  %v4477_v31 = vmul.f32 %v10817_v63, %v4473_v17 }
 0x55c   : > { %v4279_v61 = vadd.f32 %v11074_v15, %v4169_v57 }
 0x55d   : > { %v4574_v25 = vadd.f32 %v11089_v29, %v4470_v54  ;;  %v4471_v29 = vadd.f32 %v4465_v2, %v4367_v49  ;;  %v13174_v54 = vld [vmem:[#allocation194_spill] sm:$0xff]  ;;  %v13178_v49 = vrot.slane %v13177_v38, 2 }
 0x55f   : > { %4761 = vrot.lane.b32.xlu1 %v4755_v34, %s6338_s24  ;;  %v4690_v42 = vadd.f32 %v11121_v13, %v4574_v25  ;;  %v4417_v53 = vpop.permute.xlu2 %4416  ;;  %v4798_v34 = vstv %s6090_s18  ;;  %s6114_s18 = sld [smem:[#allocation13 + $0x17]] }
 0x560   : > { %v4569_v51 = vpop.permute.xlu0 %4568  ;;  %v4424_v33 = vadd.f32 %v4417_v53, %v11102_v62 }
 0x561   : > { %v4357_v37 = vpop.permute.xlu1 %4356  ;;  %4626 = vrot.lane.b32.xlu0 %v13167_v43, %s6336_s21  ;;  %v4575_v13 = vadd.f32 %v4569_v51, %v4471_v29  ;;  %v4776_v28 = vadd.f32 %v4774_v21, %v4690_v42  ;;  %v4482_v43 = vrot.slane %v4474_v35, 2 }
 0x562   : > { %v4365_v27 = vadd.f32 %v4357_v37, %v4249_v9  ;;  %v4487_v9 = vrot.slane %v4477_v31, 2 }
 0x564   : > { %v4469_v58 = vadd.f32 %v4461_v48, %v4365_v27  ;;  %v4488_v25 = vsel %vm576_vm1, %v4485_v11, %v4487_v9  ;;  %v4484_v48 = vsel %vm576_vm1, %v4482_v43, %v4483_v46  ;;  %v13180_v46 = vld [vmem:[#allocation89_spill] sm:$0xff] }
 0x567   : > { %4414 = vrot.lane.b32.xlu1 %v13169_v12, %s6337_s22  ;;  %v4625_v63 = vpop.permute.xlu2 %4624 }
 0x568   : > { %v4685_v0 = vpop.permute.xlu0 %4684 }
 0x569   : > { %v4565_v14 = vpop.permute.xlu1 %4564  ;;  %4742 = vrot.lane.b32.xlu0 %v13170_v4, %s6337_s22  ;;  %v4691_v10 = vadd.f32 %v4685_v0, %v4575_v13  ;;  %v11230_v13 = vstv %s6091_s19  ;;  %s6116_s19 = sld [smem:[#allocation13 + $0x19]] }
 0x56a   : > { %v4573_v32 = vadd.f32 %v4565_v14, %v4469_v58 }
 0x56b   : > { %v4777_v50 = vadd.f32 %v4774_v21, %v4691_v10 }
 0x56c   : > { %v4689_v45 = vadd.f32 %v11142_v44, %v4573_v32  ;;  %v4779_v44 = vmax.f32 %v4776_v28, 0.0 }
 0x56d   : > { %v4780_v16 = vmax.f32 %v4777_v50, 0.0 }
 0x56e   : > { %v4775_v47 = vadd.f32 %v4774_v21, %v4689_v45 }
 0x56f   : > { %4622 = vrot.lane.b32.xlu1 %v13173_v41, %s6336_s21  ;;  %v4741_v17 = vpop.permute.xlu2 %4740 }
 0x570   : > { %v4778_v3 = vmax.f32 %v4775_v47, 0.0  ;;  %v13179_v47 = vld [vmem:[#allocation38_spill] sm:$0xff] }
 0x571   : > { %v4390_v30 = vpop.permute.xlu1 %4389  ;;  %4786 = vrot.lane.b32.xlu0 %v4779_v44, %s6338_s24 }
 0x572   : > { %v4388_v56 = vpop.permute.xlu0 %4387  ;;  %4784 = vrot.lane.b32.xlu2 %v4778_v3, %s6338_s24  ;;  %v4396_v37 = vadd.f32 %v4390_v30, %v13174_v54  ;;  %v4858_v3 = vstv %s6092_s25  ;;  %s6117_s25 = sld [smem:[#allocation13 + $0x1a]] }
 0x573   : > { %v4395_v60 = vadd.f32 %v4388_v56, %v4279_v61  ;;  %v4878_v61 = vstv %s6093_s23  ;;  %s6094_s23 = sld [smem:[#allocation13 + $0x3]] }
 0x574   : > { %v4494_v8 = vadd.f32 %v4488_v25, %v4396_v37  ;;  %v4921_v37 = vstv %s6095_s20  ;;  %s6097_s20 = sld [smem:[#allocation13 + $0x6]] }
 0x575   : > { %v4493_v52 = vadd.f32 %v4486_v24, %v4395_v60 }
 0x577   : > { %v4603_v15 = vadd.f32 %v11157_v23, %v4493_v52  ;;  %4788 = vrot.lane.b32.xlu1 %v4780_v16, %s6338_s24  ;;  %v4739_v36 = vpop.permute.xlu2 %4738 }
 0x579   : > { %v4719_v40 = vadd.f32 %v11176_v20, %v4603_v15  ;;  %v4386_v7 = vpop.permute.xlu1 %4385  ;;  %v13175_v20 = vld [vmem:[#allocation80_spill] sm:$0xff] }
 0x57a   : > { %v4598_v18 = vpop.permute.xlu0 %4597  ;;  %v4394_v23 = vadd.f32 %v4386_v7, %v11078_v59  ;;  %v13176_v27 = vrot.slane %v13175_v20, 2 }
 0x57b   : > { %v4800_v51 = vadd.f32 %v4798_v34, %v4719_v40  ;;  %v4604_v12 = vadd.f32 %v4598_v18, %v4494_v8  ;;  %v13181_v40 = vld [vmem:[#allocation227_spill] sm:$0xff] }
 0x57c   : > { %v4509_v39 = vsel %vm576_vm1, %v13178_v49, %v13176_v27  ;;  %v4492_v62 = vadd.f32 %v4484_v48, %v4394_v23  ;;  %v4950_v48 = vstv %s6096_s26  ;;  %s6119_s26 = sld [smem:[#allocation13 + $0x1c]] }
 0x57d   : > { %v4803_v6 = vmax.f32 %v4800_v51, 0.0  ;;  %v4516_v42 = vadd.f32 %v4509_v39, %v4424_v33 }
 0x57f   : > { %4810 = vrot.lane.b32.xlu0 %v4803_v6, %s6338_s24  ;;  %v4632_v14 = vadd.f32 %v4625_v63, %v4516_v42 }
 0x581   : > { %v4594_v59 = vpop.permute.xlu1 %4593  ;;  %v4748_v22 = vadd.f32 %v4741_v17, %v4632_v14 }
 0x582   : > { %v4714_v58 = vpop.permute.xlu0 %4713  ;;  %v4602_v2 = vadd.f32 %v4594_v59, %v4492_v62  ;;  %v5002_v62 = vstv %s6098_s27  ;;  %s6100_s27 = sld [smem:[#allocation13 + $0x9]] }
 0x583   : > { %v4720_v21 = vadd.f32 %v4714_v58, %v4604_v12  ;;  %v4824_v45 = vadd.f32 %v11230_v13, %v4748_v22 }
 0x584   : > { %v4718_v0 = vadd.f32 %v11189_v1, %v4602_v2 }
 0x585   : > { %v4801_v29 = vadd.f32 %v4798_v34, %v4720_v21  ;;  %v4827_v28 = vmax.f32 %v4824_v45, 0.0 }
 0x586   : > { %v4799_v32 = vadd.f32 %v4798_v34, %v4718_v0 }
 0x587   : > { %v4804_v4 = vmax.f32 %v4801_v29, 0.0 }
 0x588   : > { %v4802_v55 = vmax.f32 %v4799_v32, 0.0 }
 0x589   : > { %4812 = vrot.lane.b32.xlu1 %v4804_v4, %s6338_s24 }
 0x58a   : > { %4808 = vrot.lane.b32.xlu2 %v4802_v55, %s6338_s24 }
 0x592   : > { %4834 = vrot.lane.b32.xlu2 %v4827_v28, %s6338_s24 }
 0x5c3   : > { %v4764_v26 = vpop.permute.xlu0 %4763 }
 0x5c4   : > { %4771 = vst.msk [vmem:[#allocation3 + $0x9] sm:$0xff] %vm668_vm4, %v4764_v26 }
 0x5c9   : > { %v4766_v1 = vpop.permute.xlu1 %4765 }
 0x5ca   : > { %4772 = vst.msk [vmem:[#allocation3 + $0x11] sm:$0xff] %vm668_vm4, %v4766_v1 }
 0x5cb   : > { %v4419_v57 = vpop.permute.xlu0 %4418 }
 0x5cc   : > { %v4785_v5 = vpop.permute.xlu2 %4784  ;;  %v4425_v10 = vadd.f32 %v4419_v57, %v13179_v47 }
 0x5cd   : > { %4794 = vst.msk [vmem:[#allocation3 + $0x21] sm:$0xff] %vm668_vm4, %v4785_v5  ;;  %v5031_v5 = vstv %s6099_s28  ;;  %s6120_s28 = sld [smem:[#allocation13 + $0x1d]] }
 0x5ce   : > { %v4517_v11 = vadd.f32 %v13180_v46, %v4425_v10 }
 0x5d1   : > { %v4762_v41 = vpop.permute.xlu1 %4761  ;;  %v11240_v44 = vld [vmem:[#allocation3 + $0x10] sm:$0xff]  ;;  %v11258_v54 = vld [vmem:[#allocation3 + $0x18] sm:$0x3] }
 0x5d2   : > { %4770 = vst.msk [vmem:[#allocation3 + $0x1] sm:$0xff] %vm668_vm4, %v4762_v41  ;;  %v4881_v30 = vmul.f32 %v4878_v61, %v11240_v44  ;;  %v4861_v56 = vmul.f32 %v4858_v3, %v11240_v44  ;;  %v11261_v9 = vmul.f32 %v4921_v37, %v11240_v44  ;;  %v4925_v43 = vmul.f32 %v4921_v37, %v11258_v54 }
 0x5d3   : > { %v4627_v50 = vpop.permute.xlu0 %4626  ;;  %v4953_v2 = vmul.f32 %v4950_v48, %v11240_v44  ;;  %v4954_v21 = vmul.f32 %v4950_v48, %v11258_v54  ;;  %v5005_v0 = vmul.f32 %v5002_v62, %v11240_v44  ;;  %v5006_v29 = vmul.f32 %v5002_v62, %v11258_v54 }
 0x5d4   : > { %4889 = vrot.lane.b32.xlu1 %v4881_v30, %s6337_s22  ;;  %4869 = vrot.lane.b32.xlu0 %v4861_v56, %s6336_s21  ;;  %v4633_v52 = vadd.f32 %v4627_v50, %v4517_v11  ;;  %v4933_v38 = vrot.slane %v11261_v9, 1  ;;  %v4935_v49 = vrot.slane %v4925_v43, 1  ;;  %v5034_v10 = vmul.f32 %v5031_v5, %v11240_v44  ;;  %v11316_v9 = vld [vmem:[#allocation3 + $0x20] sm:$0xff] }
 0x5d5   : > { %v4962_v55 = vrot.slane %v4953_v2, 1  ;;  %v5014_v45 = vrot.slane %v5005_v0, 2  ;;  %v5016_v28 = vrot.slane %v5006_v29, 2  ;;  %v5035_v11 = vmul.f32 %v5031_v5, %v11258_v54 }
 0x5d6   : > { %v4936_v58 = vsel %vm494_vm0, %v4933_v38, %v4935_v49  ;;  %v5043_v41 = vrot.slane %v5034_v10, 2  ;;  %v5245_v10 = vstv %s6108_s13  ;;  %s6106_s13 = sld [smem:[#allocation13 + $0xf]] }
 0x5d7   : > { %v5017_v47 = vsel %vm576_vm1, %v5014_v45, %v5016_v28  ;;  %v5045_v30 = vrot.slane %v5035_v11, 2 }
 0x5d9   : > { %v4415_v60 = vpop.permute.xlu1 %4414  ;;  %v11247_v53 = vld [vmem:[#allocation3] sm:$0xff]  ;;  %v11249_v24 = vld [vmem:[#allocation3 + $0x8] sm:$0xff] }
 0x5da   : > { %v4423_v16 = vadd.f32 %v4415_v60, %v11105_v19  ;;  %v4859_v15 = vmul.f32 %v4858_v3, %v11247_v53  ;;  %v4860_v31 = vmul.f32 %v4858_v3, %v11249_v24  ;;  %v4879_v23 = vmul.f32 %v4878_v61, %v11247_v53 }
 0x5db   : > { %v4743_v34 = vpop.permute.xlu0 %4742  ;;  %v4880_v6 = vmul.f32 %v4878_v61, %v11249_v24  ;;  %v4922_v8 = vmul.f32 %v4921_v37, %v11247_v53  ;;  %v4923_v20 = vmul.f32 %v4921_v37, %v11249_v24  ;;  %v4951_v17 = vmul.f32 %v4950_v48, %v11247_v53 }
 0x5dc   : > { %v4749_v35 = vadd.f32 %v4743_v34, %v4633_v52  ;;  %4865 = vrot.lane.b32.xlu1 %v4859_v15, %s6336_s21  ;;  %4867 = vrot.lane.b32.xlu2 %v4860_v31, %s6336_s21  ;;  %v4515_v7 = vadd.f32 %v13181_v40, %v4423_v16  ;;  %v4952_v22 = vmul.f32 %v4950_v48, %v11249_v24 }
 0x5dd   : > { %v4930_v42 = vrot.slane %v4922_v8, 1  ;;  %v4931_v12 = vrot.slane %v4923_v20, 1  ;;  %v4959_v26 = vrot.slane %v4951_v17, 1  ;;  %v5003_v61 = vmul.f32 %v5002_v62, %v11247_v53 }
 0x5de   : > { %v4825_v18 = vadd.f32 %v11230_v13, %v4749_v35  ;;  %v4960_v1 = vrot.slane %v4952_v22, 1  ;;  %v5004_v3 = vmul.f32 %v5002_v62, %v11249_v24  ;;  %v5046_v16 = vsel %vm576_vm1, %v5043_v41, %v5045_v30 }
 0x5df   : > { %v4932_v4 = vsel %vm494_vm0, %v4930_v42, %v4931_v12  ;;  %v5011_v56 = vrot.slane %v5003_v61, 2  ;;  %v4934_v52 = vsel %vm494_vm0, %v4931_v12, %v4933_v38  ;;  %v5032_v31 = vmul.f32 %v5031_v5, %v11247_v53 }
 0x5e0   : > { %v4828_v19 = vmax.f32 %v4825_v18, 0.0  ;;  %v4961_v46 = vsel %vm494_vm0, %v4959_v26, %v4960_v1  ;;  %v5012_v50 = vrot.slane %v5004_v3, 2  ;;  %v5033_v34 = vmul.f32 %v5031_v5, %v11249_v24 }
 0x5e1   : > { %v4623_v51 = vpop.permute.xlu1 %4622  ;;  %v5040_v35 = vrot.slane %v5032_v31, 2  ;;  %v4963_v18 = vsel %vm494_vm0, %v4960_v1, %v4962_v55  ;;  %v5164_v42 = vstv %s6105_s10  ;;  %s6125_s10 = sld [smem:[#allocation13 + $0x22]] }
 0x5e2   : > { %v4631_v33 = vadd.f32 %v4623_v51, %v4515_v7  ;;  %4836 = vrot.lane.b32.xlu0 %v4828_v19, %s6338_s24  ;;  %v5013_v15 = vsel %vm576_vm1, %v5011_v56, %v5012_v50  ;;  %v5041_v40 = vrot.slane %v5033_v34, 2  ;;  %v5165_v28 = vmul.f32 %v5164_v42, %v11316_v9 }
 0x5e3   : > { %v4787_v25 = vpop.permute.xlu0 %4786  ;;  %v5246_v34 = vmul.f32 %v5245_v10, %v11316_v9 }
 0x5e4   : > { %v4809_v63 = vpop.permute.xlu2 %4808  ;;  %v4747_v27 = vadd.f32 %v4739_v36, %v4631_v33  ;;  %4885 = vrot.lane.b32.xlu1 %v4879_v23, %s6337_s22  ;;  %4887 = vrot.lane.b32.xlu2 %v4880_v6, %s6337_s22  ;;  %4795 = vst.msk [vmem:[#allocation3 + $0x29] sm:$0xff] %vm668_vm4, %v4787_v25  ;;  %v5042_v51 = vsel %vm576_vm1, %v5040_v35, %v5041_v40  ;;  %v5092_v23 = vstv %s6102_s29  ;;  %v5135_v25 = vstv %s6104_s30  ;;  %s6103_s29 = sld [smem:[#allocation13 + $0xc]] }
 0x5e5   : > { %4818 = vst.msk [vmem:[#allocation3 + $0x41] sm:$0xff] %vm668_vm4, %v4809_v63  ;;  %v5015_v33 = vsel %vm576_vm1, %v5012_v50, %v5014_v45  ;;  %v5093_v48 = vmul.f32 %v5092_v23, %v11316_v9  ;;  %v5136_v2 = vmul.f32 %v5135_v25, %v11316_v9  ;;  %s6123_s30 = sld [smem:[#allocation13 + $0x20]] }
 0x5e6   : > { %v4823_v39 = vadd.f32 %v11230_v13, %v4747_v27  ;;  %v4964_v13 = vrot.slane %v4954_v21, 1 }
 0x5e8   : > { %v4826_v14 = vmax.f32 %v4823_v39, 0.0  ;;  %v4965_v57 = vsel %vm494_vm0, %v4962_v55, %v4964_v13  ;;  %v5044_v39 = vsel %vm576_vm1, %v5041_v40, %v5043_v41 }
 0x5e9   : > { %v4789_v59 = vpop.permute.xlu1 %4788 }
 0x5ea   : > { %4796 = vst.msk [vmem:[#allocation3 + $0x31] sm:$0xff] %vm668_vm4, %v4789_v59  ;;  %4941 = vrot.lane.b32.xlu0 %v4936_v58, %s6336_s21 }
 0x5eb   : > { %v11328_v49 = vld [vmem:[#allocation3 + $0x28] sm:$0xff] }
 0x5ec   : > { %v4835_v32 = vpop.permute.xlu2 %4834  ;;  %4832 = vrot.lane.b32.xlu1 %v4826_v14, %s6338_s24  ;;  %4937 = vrot.lane.b32.xlu2 %v4932_v4, %s6336_s21  ;;  %s6101_s24 = sld [smem:[#allocation13 + $0xa]]  ;;  %v5137_v58 = vmul.f32 %v5135_v25, %v11328_v49  ;;  %v5216_v4 = vstv %s6107_s12  ;;  %v5166_v45 = vmul.f32 %v5164_v42, %v11328_v49  ;;  %v5094_v5 = vmul.f32 %v5092_v23, %v11328_v49 }
 0x5ed   : > { %4843 = vst.msk [vmem:[#allocation3 + $0x69] sm:$0xff] %vm668_vm4, %v4835_v32  ;;  %v5144_v32 = vrot.slane %v5136_v2, 1  ;;  %v5218_v3 = vmul.f32 %v5216_v4, %v11328_v49  ;;  %v5217_v41 = vmul.f32 %v5216_v4, %v11316_v9  ;;  %v5247_v31 = vmul.f32 %v5245_v10, %v11328_v49  ;;  %s6126_s12 = sld [smem:[#allocation13 + $0x23]] }
 0x5ee   : > { %v5145_v0 = vrot.slane %v5137_v58, 1  ;;  %v5174_v1 = vrot.slane %v5166_v45, 1 }
 0x5ef   : > { %v5226_v50 = vrot.slane %v5218_v3, 2  ;;  %v5255_v35 = vrot.slane %v5247_v31, 2  ;;  %v5430_v3 = vstv %s6116_s19 }
 0x5f0   : > { %v5146_v13 = vsel %vm494_vm0, %v5144_v32, %v5145_v0 }
 0x5f1   : > { %v4811_v36 = vpop.permute.xlu0 %4810  ;;  %v11308_v7 = vld [vmem:[#allocation3 + $0x30] sm:$0xff]  ;;  %v11318_v43 = vld [vmem:[#allocation3 + $0x38] sm:$0x3] }
 0x5f2   : > { %4819 = vst.msk [vmem:[#allocation3 + $0x49] sm:$0xff] %vm668_vm4, %v4811_v36  ;;  %4970 = vrot.lane.b32.xlu0 %v4965_v57, %s6337_s22  ;;  %v5072_v37 = vstv %s6101_s24  ;;  %v5095_v63 = vmul.f32 %v5092_v23, %v11308_v7  ;;  %v5138_v8 = vmul.f32 %v5135_v25, %v11308_v7  ;;  %v5139_v20 = vmul.f32 %v5135_v25, %v11318_v43  ;;  %s6122_s24 = sld [smem:[#allocation13 + $0x1f]] }
 0x5f3   : > { %v5075_v19 = vmul.f32 %v5072_v37, %v11308_v7  ;;  %v5073_v6 = vmul.f32 %v5072_v37, %v11316_v9  ;;  %v5167_v62 = vmul.f32 %v5164_v42, %v11308_v7  ;;  %v5168_v59 = vmul.f32 %v5164_v42, %v11318_v43 }
 0x5f4   : > { %5022 = vrot.lane.b32.xlu1 %v5017_v47, %s6336_s21  ;;  %4966 = vrot.lane.b32.xlu2 %v4961_v46, %s6337_s22  ;;  %v5147_v27 = vrot.slane %v5138_v8, 1  ;;  %v5149_v38 = vrot.slane %v5139_v20, 1  ;;  %v5074_v29 = vmul.f32 %v5072_v37, %v11328_v49  ;;  %v5219_v17 = vmul.f32 %v5216_v4, %v11308_v7 }
 0x5f5   : > { %v5176_v21 = vrot.slane %v5167_v62, 1  ;;  %v5178_v14 = vrot.slane %v5168_v59, 1  ;;  %v5220_v22 = vmul.f32 %v5216_v4, %v11318_v43  ;;  %v5173_v57 = vrot.slane %v5165_v28, 1 }
 0x5f6   : > { %v5150_v12 = vsel %vm494_vm0, %v5147_v27, %v5149_v38  ;;  %v5228_v36 = vrot.slane %v5219_v17, 2  ;;  %v5248_v11 = vmul.f32 %v5245_v10, %v11308_v7  ;;  %v5249_v61 = vmul.f32 %v5245_v10, %v11318_v43 }
 0x5f7   : > { %v5179_v55 = vsel %vm494_vm0, %v5176_v21, %v5178_v14  ;;  %v5230_v26 = vrot.slane %v5220_v22, 2  ;;  %v5175_v46 = vsel %vm494_vm0, %v5173_v57, %v5174_v1  ;;  %v5254_v37 = vrot.slane %v5246_v34, 2 }
 0x5f8   : > { %v5257_v30 = vrot.slane %v5248_v11, 2  ;;  %v5259_v56 = vrot.slane %v5249_v61, 2  ;;  %v5229_v25 = vsel %vm576_vm1, %v5226_v50, %v5228_v36  ;;  %v5306_v8 = vstv %s6111_s16  ;;  %s6121_s16 = sld [smem:[#allocation13 + $0x1e]] }
 0x5f9   : > { %v5231_v47 = vsel %vm576_vm1, %v5228_v36, %v5230_v26  ;;  %v4850_v20 = vstv %s4849_s6  ;;  %v11394_v14 = vld [vmem:[#allocation3 + $0x48] sm:$0xff]  ;;  %s6118_s6 = sld [smem:[#allocation13 + $0x1b]] }
 0x5fa   : > { %4939 = vrot.lane.b32.xlu0 %v4934_v52, %s6336_s21  ;;  %v5225_v52 = vrot.slane %v5217_v41, 2  ;;  %v4853_v36 = vmul.f32 %v4850_v20, %v11240_v44 }
 0x5fb   : > { %v4813_v60 = vpop.permute.xlu1 %4812 }
 0x5fc   : > { %4820 = vst.msk [vmem:[#allocation3 + $0x51] sm:$0xff] %vm668_vm4, %v4813_v60  ;;  %5051 = vrot.lane.b32.xlu1 %v5046_v16, %s6337_s22  ;;  %5018 = vrot.lane.b32.xlu2 %v5013_v15, %s6336_s21  ;;  %v5148_v60 = vsel %vm494_vm0, %v5145_v0, %v5147_v27  ;;  %v5260_v16 = vsel %vm576_vm1, %v5257_v30, %v5259_v56 }
 0x5fd   : > { %v5227_v15 = vsel %vm576_vm1, %v5225_v52, %v5226_v50  ;;  %v5258_v0 = vsel %vm576_vm1, %v5255_v35, %v5257_v30 }
 0x602   : > { %4968 = vrot.lane.b32.xlu0 %v4963_v18, %s6337_s22  ;;  %v5177_v18 = vsel %vm494_vm0, %v5174_v1, %v5176_v21 }
 0x603   : > { %v11368_v40 = vld [vmem:[#allocation3 + $0x50] sm:$0xff] }
 0x604   : > { %5047 = vrot.lane.b32.xlu2 %v5042_v51, %s6337_s22  ;;  %5083 = vrot.lane.b32.xlu1 %v5075_v19, %s6336_s21  ;;  %v5286_v19 = vstv %s6110_s14  ;;  %v5309_v38 = vmul.f32 %v5306_v8, %v11368_v40  ;;  %v11428_v30 = vmul.f32 %v5430_v3, %v11368_v40  ;;  %s6115_s14 = sld [smem:[#allocation13 + $0x18]] }
 0x605   : > { %v5289_v51 = vmul.f32 %v5286_v19, %v11368_v40  ;;  %v5288_v10 = vmul.f32 %v5286_v19, %v11394_v14 }
 0x60a   : > { %5020 = vrot.lane.b32.xlu0 %v5015_v33, %s6336_s21  ;;  %v5256_v33 = vsel %vm576_vm1, %v5254_v37, %v5255_v35  ;;  %v4898_v35 = vstv %s6094_s23 }
 0x60b   : > { %v4899_v37 = vmul.f32 %v4898_v35, %v11247_v53 }
 0x60c   : > { %5079 = vrot.lane.b32.xlu2 %v5073_v6, %s6336_s21  ;;  %5103 = vrot.lane.b32.xlu1 %v5095_v63, %s6337_s22  ;;  %v11376_v6 = vld [vmem:[#allocation3 + $0x40] sm:$0xff]  ;;  %v11378_v63 = vld [vmem:[#allocation3 + $0x58] sm:$0x3] }
 0x60d   : > { %v5287_v27 = vmul.f32 %v5286_v19, %v11376_v6  ;;  %v5307_v32 = vmul.f32 %v5306_v8, %v11376_v6  ;;  %v5434_v56 = vmul.f32 %v5430_v3, %v11378_v63  ;;  %v11442_v19 = vmul.f32 %v4898_v35, %v11249_v24 }
 0x60f   : > { %v5444_v31 = vrot.slane %v5434_v56, 2 }
 0x612   : > { %5049 = vrot.lane.b32.xlu0 %v5044_v39, %s6337_s22  ;;  %v5349_v39 = vstv %s6113_s17  ;;  %s6124_s17 = sld [smem:[#allocation13 + $0x21]] }
 0x613   : > { %v11386_v42 = vmul.f32 %v5349_v39, %v11368_v40 }
 0x614   : > { %5099 = vrot.lane.b32.xlu2 %v5093_v48, %s6337_s22  ;;  %5155 = vrot.lane.b32.xlu1 %v5150_v12, %s6336_s21  ;;  %v4852_v48 = vmul.f32 %v4850_v20, %v11249_v24  ;;  %v5353_v12 = vmul.f32 %v5349_v39, %v11378_v63 }
 0x615   : > { %v5361_v2 = vrot.slane %v11386_v42, 1 }
 0x616   : > { %v5363_v21 = vrot.slane %v5353_v12, 1 }
 0x618   : > { %v5364_v22 = vsel %vm494_vm0, %v5361_v2, %v5363_v21  ;;  %v4979_v21 = vstv %s6097_s20 }
 0x61a   : > { %5081 = vrot.lane.b32.xlu0 %v5074_v29, %s6336_s21  ;;  %v5378_v29 = vstv %s6114_s18 }
 0x61b   : > { %v11400_v4 = vmul.f32 %v5378_v29, %v11368_v40  ;;  %v5382_v17 = vmul.f32 %v5378_v29, %v11378_v63  ;;  %v11432_v50 = vmul.f32 %v5378_v29, %v11394_v14 }
 0x61c   : > { %5184 = vrot.lane.b32.xlu1 %v5179_v55, %s6337_s22  ;;  %5151 = vrot.lane.b32.xlu2 %v5146_v13, %s6336_s21  ;;  %v11407_v55 = vmul.f32 %v5349_v39, %v11394_v14  ;;  %v5350_v13 = vmul.f32 %v5349_v39, %v11376_v6 }
 0x61d   : > { %v5390_v26 = vrot.slane %v11400_v4, 1  ;;  %v5392_v1 = vrot.slane %v5382_v17, 1  ;;  %v5388_v34 = vrot.slane %v11432_v50, 1 }
 0x61e   : > { %v5359_v57 = vrot.slane %v11407_v55, 1 }
 0x61f   : > { %v5393_v61 = vsel %vm494_vm0, %v5390_v26, %v5392_v1 }
 0x622   : > { %5101 = vrot.lane.b32.xlu0 %v5094_v5, %s6337_s22 }
 0x624   : > { %5236 = vrot.lane.b32.xlu1 %v5231_v47, %s6336_s21  ;;  %5180 = vrot.lane.b32.xlu2 %v5175_v46, %s6337_s22  ;;  %v5358_v46 = vrot.slane %v5350_v13, 1 }
 0x626   : > { %v5360_v41 = vsel %vm494_vm0, %v5358_v46, %v5359_v57 }
 0x62a   : > { %5153 = vrot.lane.b32.xlu0 %v5148_v60, %s6336_s21  ;;  %v5379_v60 = vmul.f32 %v5378_v29, %v11376_v6 }
 0x62c   : > { %5265 = vrot.lane.b32.xlu1 %v5260_v16, %s6337_s22  ;;  %5232 = vrot.lane.b32.xlu2 %v5227_v15, %s6336_s21  ;;  %v5442_v15 = vrot.slane %v11428_v30, 2 }
 0x632   : > { %5182 = vrot.lane.b32.xlu0 %v5177_v18, %s6337_s22  ;;  %v5308_v18 = vmul.f32 %v5306_v8, %v11394_v14  ;;  %v5445_v8 = vsel %vm576_vm1, %v5442_v15, %v5444_v31 }
 0x634   : > { %5261 = vrot.lane.b32.xlu2 %v5256_v33, %s6337_s22  ;;  %5297 = vrot.lane.b32.xlu1 %v5289_v51, %s6336_s21  ;;  %v4851_v51 = vmul.f32 %v4850_v20, %v11247_v53  ;;  %v5387_v33 = vrot.slane %v5379_v60, 1 }
 0x636   : > { %v4868_v23 = vpop.permute.xlu2 %4867  ;;  %v5389_v20 = vsel %vm494_vm0, %v5387_v33, %v5388_v34  ;;  %v4983_v33 = vmul.f32 %v4979_v21, %v11258_v54 }
 0x637   : > { %v4875_v62 = vadd.f32 %v4868_v23, %v4852_v48  ;;  %v5459_v23 = vstv %s6117_s25 }
 0x638   : > { %v11460_v39 = vmul.f32 %v5459_v23, %v11368_v40  ;;  %v5463_v48 = vmul.f32 %v5459_v23, %v11378_v63  ;;  %v11497_v55 = vmul.f32 %v5459_v23, %v11394_v14 }
 0x63a   : > { %5234 = vrot.lane.b32.xlu0 %v5229_v25, %s6336_s21  ;;  %v11447_v25 = vmul.f32 %v5430_v3, %v11394_v14 }
 0x63c   : > { %5293 = vrot.lane.b32.xlu2 %v5287_v27, %s6336_s21  ;;  %5317 = vrot.lane.b32.xlu1 %v5309_v38, %s6337_s22  ;;  %v11450_v27 = vmul.f32 %v4898_v35, %v11240_v44  ;;  %v4902_v38 = vmul.f32 %v4898_v35, %v11258_v54 }
 0x63e   : > { %v4888_v59 = vpop.permute.xlu2 %4887  ;;  %v4912_v1 = vrot.slane %v4902_v38, 1 }
 0x63f   : > { %v11391_v58 = vadd.f32 %v4888_v59, %v4875_v62  ;;  %v4907_v62 = vrot.slane %v4899_v37, 1  ;;  %v4908_v59 = vrot.slane %v11442_v19, 1 }
 0x641   : > { %v4909_v46 = vsel %vm494_vm0, %v4907_v62, %v4908_v59 }
 0x642   : > { %5263 = vrot.lane.b32.xlu0 %v5258_v0, %s6337_s22  ;;  %v5431_v0 = vmul.f32 %v5430_v3, %v11376_v6 }
 0x644   : > { %5313 = vrot.lane.b32.xlu2 %v5307_v32, %s6337_s22  ;;  %5369 = vrot.lane.b32.xlu1 %v5364_v22, %s6336_s21  ;;  %v4980_v32 = vmul.f32 %v4979_v21, %v11247_v53  ;;  %v11470_v22 = vmul.f32 %v4979_v21, %v11249_v24  ;;  %v5439_v53 = vrot.slane %v5431_v0, 2  ;;  %v5362_v24 = vsel %vm494_vm0, %v5359_v57, %v5361_v2 }
 0x646   : > { %v4890_v45 = vpop.permute.xlu1 %4889  ;;  %v11412_v28 = vpop.permute.xlu2 %4937  ;;  %v4988_v3 = vrot.slane %v4980_v32, 2 }
 0x647   : > { %v4870_v5 = vpop.permute.xlu0 %4869 }
 0x648   : > { %v4876_v47 = vadd.f32 %v4870_v5, %v4853_v36  ;;  %v4910_v36 = vrot.slane %v11450_v27, 1 }
 0x64a   : > { %v11418_v11 = vadd.f32 %v4890_v45, %v4876_v47  ;;  %5295 = vrot.lane.b32.xlu0 %v5288_v10, %s6336_s21  ;;  %v5440_v45 = vrot.slane %v11447_v25, 2  ;;  %v5471_v47 = vrot.slane %v11460_v39, 2  ;;  %v5473_v10 = vrot.slane %v5463_v48, 2 }
 0x64b   : > { %v4913_v60 = vsel %vm494_vm0, %v4910_v36, %v4912_v1 }
 0x64c   : > { %5398 = vrot.lane.b32.xlu1 %v5393_v61, %s6337_s22  ;;  %5365 = vrot.lane.b32.xlu2 %v5360_v41, %s6336_s21  ;;  %v4989_v41 = vrot.slane %v11470_v22, 2  ;;  %v5441_v56 = vsel %vm576_vm1, %v5439_v53, %v5440_v45  ;;  %v5474_v42 = vsel %vm576_vm1, %v5471_v47, %v5473_v10  ;;  %v4919_v2 = vadd.f32 %v4913_v60, %v11418_v11 }
 0x64d   : > { %v11506_v11 = vmul.f32 %v4979_v21, %v11240_v44  ;;  %v5391_v44 = vsel %vm494_vm0, %v5388_v34, %v5390_v26  ;;  %v4993_v21 = vrot.slane %v4983_v33, 2 }
 0x64e   : > { %v4866_v52 = vpop.permute.xlu1 %4865  ;;  %v4967_v16 = vpop.permute.xlu2 %4966 }
 0x64f   : > { %v4874_v29 = vadd.f32 %v4866_v52, %v4851_v51  ;;  %v4991_v62 = vrot.slane %v11506_v11, 2 }
 0x651   : > { %v4994_v34 = vsel %vm576_vm1, %v4991_v62, %v4993_v21 }
 0x652   : > { %5315 = vrot.lane.b32.xlu0 %v5308_v18, %s6337_s22  ;;  %v5460_v18 = vmul.f32 %v5459_v23, %v11376_v6  ;;  %v11515_v23 = vstv %s6100_s27 }
 0x653   : > { %v5065_v32 = vmul.f32 %v11515_v23, %v11316_v9  ;;  %v5067_v39 = vmul.f32 %v11515_v23, %v11308_v7 }
 0x654   : > { %5450 = vrot.lane.b32.xlu1 %v5445_v8, %s6336_s21  ;;  %5394 = vrot.lane.b32.xlu2 %v5389_v20, %s6337_s22  ;;  %v4837_v12 = vpop.permute.xlu0 %4836  ;;  %v5469_v8 = vrot.slane %v11497_v55, 2  ;;  %v11513_v20 = vstv %s6119_s26  ;;  %v5468_v54 = vrot.slane %v5460_v18, 2 }
 0x655   : > { %4844 = vst.msk [vmem:[#allocation3 + $0x71] sm:$0xff] %vm668_vm4, %v4837_v12 }
 0x656   : > { %v4886_v17 = vpop.permute.xlu1 %4885  ;;  %v5019_v13 = vpop.permute.xlu2 %5018 }
 0x657   : > { %v4894_v5 = vadd.f32 %v4886_v17, %v4874_v29  ;;  %v5470_v29 = vsel %vm576_vm1, %v5468_v54, %v5469_v8 }
 0x659   : > { %v4917_v61 = vadd.f32 %v4909_v46, %v4894_v5  ;;  %v11536_v46 = vstv %s6120_s28 }
 0x65a   : > { %5367 = vrot.lane.b32.xlu0 %v5362_v24, %s6336_s21 }
 0x65b   : > { %v4946_v52 = vadd.f32 %v11412_v28, %v4917_v61  ;;  %v4990_v28 = vsel %vm576_vm1, %v4988_v3, %v4989_v41  ;;  %v5563_v61 = vstv %s6122_s24  ;;  %v5443_v3 = vsel %vm576_vm1, %v5440_v45, %v5442_v15  ;;  %s5701_s24 = sld [smem:[#allocation5]] }
 0x65c   : > { %5479 = vrot.lane.b32.xlu1 %v5474_v42, %s6337_s22  ;;  %5446 = vrot.lane.b32.xlu2 %v5441_v56, %s6336_s21  ;;  %v4942_v57 = vpop.permute.xlu0 %4941  ;;  %v11538_v53 = vld [vmem:[#allocation3 + $0x78] sm:$0x3]  ;;  %v5112_v45 = vstv %s6103_s29  ;;  %s6134_s29 = sshll.u32 %s13183_s15, 4 }
 0x65d   : > { %v4975_v31 = vadd.f32 %v4967_v16, %v4946_v52  ;;  %v4948_v35 = vadd.f32 %v4942_v57, %v4919_v2  ;;  %v11511_v16 = vld [vmem:[#allocation3 + $0x70] sm:$0xff]  ;;  %v4911_v52 = vsel %vm494_vm0, %v4908_v59, %v4910_v36  ;;  %v5567_v15 = vmul.f32 %v5563_v61, %v11538_v53 }
 0x65e   : > { %v4833_v37 = vpop.permute.xlu1 %4832  ;;  %v5048_v51 = vpop.permute.xlu2 %5047  ;;  %v5503_v12 = vmul.f32 %v11513_v20, %v11511_v16  ;;  %v5523_v60 = vmul.f32 %v11536_v46, %v11511_v16  ;;  %v4918_v30 = vadd.f32 %v4911_v52, %v11391_v58  ;;  %v11557_v25 = vmul.f32 %v5563_v61, %v11511_v16 }
 0x65f   : > { %v4998_v38 = vadd.f32 %v4990_v28, %v4975_v31  ;;  %4842 = vst.msk [vmem:[#allocation3 + $0x61] sm:$0xff] %vm668_vm4, %v4833_v37  ;;  %v11563_v2 = vmul.f32 %v5112_v45, %v11328_v49  ;;  %v5113_v59 = vmul.f32 %v5112_v45, %v11316_v9  ;;  %v5592_v58 = vstv %s6123_s30 }
 0x660   : > { %v5575_v31 = vrot.slane %v11557_v25, 1  ;;  %v5472_v37 = vsel %vm576_vm1, %v5469_v8, %v5471_v47  ;;  %v5116_v11 = vmul.f32 %v5112_v45, %v11318_v43 }
 0x661   : > { %v5027_v48 = vadd.f32 %v5019_v13, %v4998_v38  ;;  %v5122_v18 = vrot.slane %v11563_v2, 1  ;;  %v5121_v33 = vrot.slane %v5113_v59, 1  ;;  %v11577_v38 = vmul.f32 %v5592_v58, %v11511_v16 }
 0x662   : > { %5396 = vrot.lane.b32.xlu0 %v5391_v44, %s6337_s22 }
 0x663   : > { %v5056_v0 = vadd.f32 %v5048_v51, %v5027_v48  ;;  %v5596_v48 = vmul.f32 %v5592_v58, %v11538_v53 }
 0x664   : > { %5475 = vrot.lane.b32.xlu2 %v5470_v29, %s6337_s22  ;;  %5511 = vrot.lane.b32.xlu1 %v5503_v12, %s6336_s21  ;;  %v4971_v4 = vpop.permute.xlu0 %4970  ;;  %v5123_v12 = vsel %vm494_vm0, %v5121_v33, %v5122_v18  ;;  %v5673_v33 = vstv %s6126_s12  ;;  %s397_s12 = scalar_lea.vmem %s11815_s9, %s6134_s29 }
 0x665   : > { %v4977_v26 = vadd.f32 %v4971_v4, %v4948_v35  ;;  %v5068_v50 = vadd.f32 %v5065_v32, %v5056_v0  ;;  %v5577_v35 = vrot.slane %v5567_v15, 1 }
 0x666   : > { %v5023_v17 = vpop.permute.xlu1 %5022  ;;  %v5080_v13 = vpop.permute.xlu2 %5079  ;;  %v11534_v10 = vld [vmem:[#allocation3 + $0x60] sm:$0xff]  ;;  %v11568_v28 = vld [vmem:[#allocation3 + $0x68] sm:$0xff] }
 0x667   : > { %v5000_v1 = vadd.f32 %v4994_v34, %v4977_v26  ;;  %v5088_v5 = vadd.f32 %v5080_v13, %v5068_v50  ;;  %v5501_v56 = vmul.f32 %v11513_v20, %v11534_v10  ;;  %v5521_v51 = vmul.f32 %v11536_v46, %v11534_v10 }
 0x668   : > { %v5578_v44 = vsel %vm494_vm0, %v5575_v31, %v5577_v35  ;;  %v5564_v47 = vmul.f32 %v5563_v61, %v11534_v10  ;;  %v11587_v8 = vmul.f32 %v5563_v61, %v11568_v28  ;;  %v5604_v26 = vrot.slane %v11577_v38, 1 }
 0x669   : > { %v5029_v24 = vadd.f32 %v5023_v17, %v5000_v1  ;;  %v5606_v50 = vrot.slane %v5596_v48, 1  ;;  %v5644_v34 = vstv %s6125_s10  ;;  %v5502_v61 = vmul.f32 %v11513_v20, %v11568_v28 }
 0x66a   : > { %5448 = vrot.lane.b32.xlu0 %v5443_v3, %s6336_s21  ;;  %v5572_v1 = vrot.slane %v5564_v47, 1  ;;  %v4992_v3 = vsel %vm576_vm1, %v4989_v41, %v4991_v62  ;;  %v11614_v15 = vmul.f32 %v5592_v58, %v11568_v28  ;;  %v11619_v41 = vmul.f32 %v5112_v45, %v11308_v7 }
 0x66b   : > { %v5522_v35 = vmul.f32 %v11536_v46, %v11568_v28  ;;  %v5645_v45 = vmul.f32 %v5644_v34, %v11534_v10  ;;  %v5646_v48 = vmul.f32 %v5644_v34, %v11568_v28  ;;  %v5676_v47 = vmul.f32 %v5673_v33, %v11511_v16 }
 0x66c   : > { %5507 = vrot.lane.b32.xlu2 %v5501_v56, %s6336_s21  ;;  %5531 = vrot.lane.b32.xlu1 %v5523_v60, %s6337_s22  ;;  %v4940_v42 = vpop.permute.xlu0 %4939  ;;  %v11608_v56 = vmul.f32 %v5644_v34, %v11511_v16  ;;  %v5648_v60 = vmul.f32 %v5644_v34, %v11538_v53  ;;  %v5677_v46 = vmul.f32 %v5673_v33, %v11538_v53 }
 0x66d   : > { %v4947_v27 = vadd.f32 %v4940_v42, %v4918_v30  ;;  %v5593_v30 = vmul.f32 %v5592_v58, %v11534_v10 }
 0x66e   : > { %v5052_v19 = vpop.permute.xlu1 %5051  ;;  %v5100_v55 = vpop.permute.xlu2 %5099  ;;  %v5687_v34 = vrot.slane %v5677_v46, 2 }
 0x66f   : > { %v5058_v36 = vadd.f32 %v5052_v19, %v5029_v24  ;;  %v5108_v57 = vadd.f32 %v5100_v55, %v5088_v5  ;;  %v5573_v5 = vrot.slane %v11587_v8, 1  ;;  %v5607_v24 = vsel %vm494_vm0, %v5604_v26, %v5606_v50 }
 0x670   : > { %v5656_v19 = vrot.slane %v11608_v56, 2  ;;  %v5658_v55 = vrot.slane %v5648_v60, 2  ;;  %v5601_v58 = vrot.slane %v5593_v30, 1  ;;  %v5685_v50 = vrot.slane %v5676_v47, 2 }
 0x671   : > { %v5070_v0 = vadd.f32 %v5067_v39, %v5058_v36  ;;  %v5131_v29 = vadd.f32 %v5123_v12, %v5108_v57  ;;  %v5574_v20 = vsel %vm494_vm0, %v5572_v1, %v5573_v5  ;;  %v5602_v57 = vrot.slane %v11614_v15, 1 }
 0x672   : > { %5477 = vrot.lane.b32.xlu0 %v5472_v37, %s6337_s22  ;;  %v5124_v37 = vrot.slane %v11619_v41, 1  ;;  %v5659_v39 = vsel %vm576_vm1, %v5656_v19, %v5658_v55  ;;  %v5193_v1 = vstv %s6106_s13 }
 0x674   : > { %5527 = vrot.lane.b32.xlu2 %v5521_v51, %s6337_s22  ;;  %5583 = vrot.lane.b32.xlu1 %v5578_v44, %s6336_s21  ;;  %v4969_v54 = vpop.permute.xlu0 %4968  ;;  %v5126_v51 = vrot.slane %v5116_v11, 1  ;;  %v5603_v44 = vsel %vm494_vm0, %v5601_v58, %v5602_v57 }
 0x675   : > { %v4976_v21 = vadd.f32 %v4969_v54, %v4947_v27 }
 0x676   : > { %v5084_v32 = vpop.permute.xlu1 %5083  ;;  %v5152_v4 = vpop.permute.xlu2 %5151  ;;  %v5127_v54 = vsel %vm494_vm0, %v5124_v37, %v5126_v51  ;;  %v5125_v51 = vsel %vm494_vm0, %v5122_v18, %v5124_v37 }
 0x677   : > { %v5090_v17 = vadd.f32 %v5084_v32, %v5070_v0  ;;  %v5160_v13 = vadd.f32 %v5152_v4, %v5131_v29  ;;  %v4999_v52 = vadd.f32 %v4992_v3, %v4976_v21  ;;  %v5653_v29 = vrot.slane %v5645_v45, 2 }
 0x678   : > { %v5654_v32 = vrot.slane %v5646_v48, 2  ;;  %v5688_v3 = vsel %vm576_vm1, %v5685_v50, %v5687_v34  ;;  %v5194_v34 = vmul.f32 %v5193_v1, %v11316_v9 }
 0x67a   : > { %5509 = vrot.lane.b32.xlu0 %v5502_v61, %s6336_s21 }
 0x67c   : > { %5579 = vrot.lane.b32.xlu2 %v5574_v20, %s6336_s21  ;;  %5612 = vrot.lane.b32.xlu1 %v5607_v24, %s6337_s22  ;;  %v5021_v22 = vpop.permute.xlu0 %5020  ;;  %v5655_v24 = vsel %vm576_vm1, %v5653_v29, %v5654_v32  ;;  %v5675_v20 = vmul.f32 %v5673_v33, %v11568_v28 }
 0x67d   : > { %v5028_v62 = vadd.f32 %v5021_v22, %v4999_v52  ;;  %v5674_v52 = vmul.f32 %v5673_v33, %v11534_v10 }
 0x67e   : > { %v5104_v42 = vpop.permute.xlu1 %5103  ;;  %v5181_v27 = vpop.permute.xlu2 %5180  ;;  %v5683_v22 = vrot.slane %v5675_v20, 2 }
 0x67f   : > { %v5110_v59 = vadd.f32 %v5104_v42, %v5090_v17  ;;  %v11623_v36 = vadd.f32 %v5181_v27, %v5160_v13  ;;  %v5576_v17 = vsel %vm494_vm0, %v5573_v5, %v5575_v31  ;;  %v5066_v13 = vmul.f32 %v11515_v23, %v11328_v49 }
 0x680   : > { %v11656_v23 = vmul.f32 %v5193_v1, %v11308_v7  ;;  %v5197_v31 = vmul.f32 %v5193_v1, %v11318_v43  ;;  %v5682_v41 = vrot.slane %v5674_v52, 2  ;;  %v5605_v42 = vsel %vm494_vm0, %v5602_v57, %v5604_v26 }
 0x681   : > { %v5133_v21 = vadd.f32 %v5127_v54, %v5110_v59  ;;  %v5686_v27 = vsel %vm576_vm1, %v5683_v22, %v5685_v50  ;;  %v5657_v57 = vsel %vm576_vm1, %v5654_v32, %v5656_v19  ;;  %v5195_v50 = vmul.f32 %v5193_v1, %v11328_v49 }
 0x682   : > { %5529 = vrot.lane.b32.xlu0 %v5522_v35, %s6337_s22  ;;  %v5205_v11 = vrot.slane %v11656_v23, 2  ;;  %v5684_v7 = vsel %vm576_vm1, %v5682_v41, %v5683_v22 }
 0x684   : > { %5608 = vrot.lane.b32.xlu2 %v5603_v44, %s6337_s22  ;;  %5664 = vrot.lane.b32.xlu1 %v5659_v39, %s6336_s21  ;;  %v5050_v8 = vpop.permute.xlu0 %5049 }
 0x685   : > { %v5057_v12 = vadd.f32 %v5050_v8, %v5028_v62  ;;  %v5207_v62 = vrot.slane %v5197_v31, 2 }
 0x686   : > { %v5156_v0 = vpop.permute.xlu1 %5155  ;;  %v11646_v61 = vpop.permute.xlu2 %5232 }
 0x687   : > { %v5162_v4 = vadd.f32 %v5156_v0, %v5133_v21  ;;  %v5069_v60 = vadd.f32 %v5066_v13, %v5057_v12  ;;  %v5208_v59 = vsel %vm576_vm1, %v5205_v11, %v5207_v62  ;;  %v5203_v13 = vrot.slane %v5195_v50, 2 }
 0x68a   : > { %5581 = vrot.lane.b32.xlu0 %v5576_v17, %s6336_s21 }
 0x68c   : > { %5660 = vrot.lane.b32.xlu2 %v5655_v24, %s6336_s21  ;;  %5693 = vrot.lane.b32.xlu1 %v5688_v3, %s6337_s22  ;;  %v5082_v25 = vpop.permute.xlu0 %5081 }
 0x68d   : > { %v5089_v5 = vadd.f32 %v5082_v25, %v5069_v60  ;;  %v5202_v60 = vrot.slane %v5194_v34, 2 }
 0x68e   : > { %v5185_v30 = vpop.permute.xlu1 %5184  ;;  %v5262_v55 = vpop.permute.xlu2 %5261 }
 0x68f   : > { %v5191_v15 = vadd.f32 %v5185_v30, %v5162_v4 }
 0x691   : > { %v5214_v38 = vadd.f32 %v5208_v59, %v5191_v15 }
 0x692   : > { %5610 = vrot.lane.b32.xlu0 %v5605_v42, %s6337_s22 }
 0x694   : > { %5691 = vrot.lane.b32.xlu2 %v5686_v27, %s6337_s22  ;;  %5689 = vrot.lane.b32.xlu1 %v5684_v7, %s6337_s22  ;;  %v5102_v43 = vpop.permute.xlu0 %5101  ;;  %s6112_s22 = sld [smem:[#allocation13 + $0x15]] }
 0x695   : > { %v5109_v58 = vadd.f32 %v5102_v43, %v5089_v5  ;;  %v5204_v5 = vsel %vm576_vm1, %v5202_v60, %v5203_v13 }
 0x696   : > { %v5237_v35 = vpop.permute.xlu1 %5236  ;;  %v5294_v44 = vpop.permute.xlu2 %5293  ;;  %v5212_v1 = vadd.f32 %v5204_v5, %v11623_v36  ;;  %v5206_v36 = vsel %vm576_vm1, %v5203_v13, %v5205_v11 }
 0x697   : > { %v5243_v26 = vadd.f32 %v5237_v35, %v5214_v38  ;;  %v5132_v33 = vadd.f32 %v5125_v51, %v5109_v58  ;;  %v5407_v38 = vstv %s6115_s14 }
 0x698   : > { %v5241_v22 = vadd.f32 %v11646_v61, %v5212_v1  ;;  %v11716_v61 = vmul.f32 %v5407_v38, %v11368_v40  ;;  %v5409_v60 = vmul.f32 %v5407_v38, %v11394_v14 }
 0x69a   : > { %5662 = vrot.lane.b32.xlu0 %v5657_v57, %s6336_s21  ;;  %s6109_s21 = sld [smem:[#allocation13 + $0x12]]  ;;  %v5326_v31 = vstv %s6112_s22  ;;  %v5270_v7 = vadd.f32 %v5262_v55, %v5241_v22  ;;  %v5540_v22 = vstv %s6121_s16 }
 0x69b   : > { %v11701_v49 = vmul.f32 %v5326_v31, %v11368_v40  ;;  %v5330_v9 = vmul.f32 %v5326_v31, %v11378_v63  ;;  %v5328_v58 = vmul.f32 %v5326_v31, %v11394_v14 }
 0x69c   : > { %v5154_v45 = vpop.permute.xlu0 %5153 }
 0x69d   : > { %v5161_v48 = vadd.f32 %v5154_v45, %v5132_v33  ;;  %v5338_v62 = vrot.slane %v11701_v49, 1  ;;  %v5340_v42 = vrot.slane %v5330_v9, 1  ;;  %v5327_v45 = vmul.f32 %v5326_v31, %v11376_v6 }
 0x69e   : > { %v5266_v39 = vpop.permute.xlu1 %5265  ;;  %v5314_v54 = vpop.permute.xlu2 %5313  ;;  %v5336_v11 = vrot.slane %v5328_v58, 1  ;;  %v5408_v31 = vmul.f32 %v5407_v38, %v11376_v6  ;;  %v5417_v49 = vrot.slane %v5409_v60, 2  ;;  %v11737_v9 = vstv %s6118_s6 }
 0x69f   : > { %v5272_v3 = vadd.f32 %v5266_v39, %v5243_v26  ;;  %v5341_v35 = vsel %vm494_vm0, %v5338_v62, %v5340_v42  ;;  %v5411_v26 = vmul.f32 %v5407_v38, %v11378_v63  ;;  %v5335_v13 = vrot.slane %v5327_v45, 1 }
 0x6a0   : > { %v5278_v20 = vstv %s6109_s21  ;;  %v11747_v42 = vmul.f32 %v5540_v22, %v11511_v16  ;;  %v5541_v45 = vmul.f32 %v5540_v22, %v11534_v10 }
 0x6a1   : > { %v5281_v25 = vmul.f32 %v5278_v20, %v11368_v40  ;;  %v5279_v59 = vmul.f32 %v5278_v20, %v11376_v6 }
 0x6a3   : > { %v5284_v30 = vadd.f32 %v5281_v25, %v5272_v3  ;;  %v5282_v55 = vadd.f32 %v5279_v59, %v5270_v7  ;;  %v5337_v3 = vsel %vm494_vm0, %v5335_v13, %v5336_v11  ;;  %v5544_v7 = vmul.f32 %v5540_v22, %v11538_v53 }
 0x6a4   : > { %v5183_v47 = vpop.permute.xlu0 %5182 }
 0x6a5   : > { %v5190_v46 = vadd.f32 %v5183_v47, %v5161_v48  ;;  %v5302_v39 = vadd.f32 %v5294_v44, %v5282_v55 }
 0x6a6   : > { %v5298_v8 = vpop.permute.xlu1 %5297  ;;  %v11678_v56 = vpop.permute.xlu2 %5365 }
 0x6a7   : > { %v5304_v41 = vadd.f32 %v5298_v8, %v5284_v30  ;;  %v5213_v51 = vadd.f32 %v5206_v36, %v5190_v46  ;;  %v5419_v8 = vrot.slane %v11716_v61, 2  ;;  %v5322_v50 = vadd.f32 %v5314_v54, %v5302_v39  ;;  %v5723_v36 = vld [vmem:[%s11813_s7 + $0x8] sm:$0xff] }
 0x6a8   : > { %v5280_v46 = vmul.f32 %v5278_v20, %v11394_v14  ;;  %v5552_v61 = vrot.slane %v11747_v42, 1  ;;  %6135 = vmatpush.msra.mxu2 %v5723_v36  ;;  %5744 = vmatpush.msra.mxu0 %v5723_v36  ;;  %v5542_v39 = vmul.f32 %v5540_v22, %v11568_v28 }
 0x6ac   : > { %v5235_v12 = vpop.permute.xlu0 %5234 }
 0x6ad   : > { %v5242_v23 = vadd.f32 %v5235_v12, %v5213_v51  ;;  %v5345_v12 = vadd.f32 %v5337_v3, %v5322_v50  ;;  %v5621_v51 = vstv %s6124_s17  ;;  %v5550_v3 = vrot.slane %v5542_v39, 1 }
 0x6ae   : > { %v5318_v21 = vpop.permute.xlu1 %5317  ;;  %v11680_v29 = vpop.permute.xlu2 %5394 }
 0x6af   : > { %v5324_v43 = vadd.f32 %v5318_v21, %v5304_v41  ;;  %v5421_v21 = vrot.slane %v5411_v26, 2  ;;  %v5416_v41 = vrot.slane %v5408_v31, 2  ;;  %v5554_v26 = vrot.slane %v5544_v7, 1 }
 0x6b1   : > { %v5347_v33 = vadd.f32 %v5341_v35, %v5324_v43  ;;  %v5422_v44 = vsel %vm576_vm1, %v5419_v8, %v5421_v21 }
 0x6b4   : > { %v5264_v19 = vpop.permute.xlu0 %5263 }
 0x6b5   : > { %v5271_v63 = vadd.f32 %v5264_v19, %v5242_v23  ;;  %v5374_v19 = vadd.f32 %v11678_v56, %v5345_v12  ;;  %v5495_v56 = vmul.f32 %v11737_v9, %v11511_v16  ;;  %v5420_v23 = vsel %vm576_vm1, %v5417_v49, %v5419_v8  ;;  %v5722_v8 = vld [vmem:[%s11813_s7] sm:$0xff] }
 0x6b6   : > { %v5370_v0 = vpop.permute.xlu1 %5369  ;;  %v11686_v32 = vpop.permute.xlu2 %5446  ;;  %6136 = vmatpush.msra.mxu2 %v5722_v8  ;;  %5745 = vmatpush.msra.mxu0 %v5722_v8 }
 0x6b7   : > { %v5376_v47 = vadd.f32 %v5370_v0, %v5347_v33  ;;  %v5283_v0 = vadd.f32 %v5280_v46, %v5271_v63  ;;  %v5403_v1 = vadd.f32 %v11680_v29, %v5374_v19  ;;  %v5493_v33 = vmul.f32 %v11737_v9, %v11534_v10  ;;  %v5753_v46 = vld [vmem:[%s11814_s8] sm:$0xff] }
 0x6b8   : > { %v5622_v19 = vmul.f32 %v5621_v51, %v11534_v10 }
 0x6ba   : > { %v5630_v22 = vrot.slane %v5622_v19, 2 }
 0x6bc   : > { %v11682_v2 = vpop.permute.xlu0 %5295 }
 0x6be   : > { %v5399_v18 = vpop.permute.xlu1 %5398  ;;  %v11696_v52 = vpop.permute.xlu2 %5475 }
 0x6bf   : > { %v5405_v34 = vadd.f32 %v5399_v18, %v5376_v47  ;;  %v5303_v18 = vadd.f32 %v11682_v2, %v5283_v0  ;;  %v5418_v2 = vsel %vm576_vm1, %v5416_v41, %v5417_v49  ;;  %v5555_v47 = vsel %vm494_vm0, %v5552_v61, %v5554_v26 }
 0x6c0   : > { %v5426_v29 = vadd.f32 %v5418_v2, %v5403_v1 }
 0x6c1   : > { %v5428_v25 = vadd.f32 %v5422_v44, %v5405_v34 }
 0x6c4   : > { %v11684_v37 = vpop.permute.xlu0 %5315 }
 0x6c5   : > { %v5323_v30 = vadd.f32 %v11684_v37, %v5303_v18  ;;  %v5623_v18 = vmul.f32 %v5621_v51, %v11568_v28 }
 0x6c6   : > { %v11688_v4 = vpop.permute.xlu1 %5450  ;;  %v11719_v57 = vpop.permute.xlu2 %5507 }
 0x6c7   : > { %v5457_v20 = vadd.f32 %v11688_v4, %v5428_v25  ;;  %v5339_v4 = vsel %vm494_vm0, %v5336_v11, %v5338_v62  ;;  %v5754_v62 = vld [vmem:[%s11814_s8 + $0x8] sm:$0xff]  ;;  %v5494_v25 = vmul.f32 %v11737_v9, %v11568_v28  ;;  %v5631_v41 = vrot.slane %v5623_v18, 2 }
 0x6c8   : > { %v5346_v43 = vadd.f32 %v5339_v4, %v5323_v30  ;;  %6137 = vmatpush.msra.mxu3 %v5754_v62  ;;  %5769 = vmatpush.msra.mxu1 %v5754_v62 }
 0x6c9   : > { %v5632_v10 = vsel %vm576_vm1, %v5630_v22, %v5631_v41 }
 0x6ca   : > { %6138 = vmatpush.msra.mxu3 %v5753_v46  ;;  %5770 = vmatpush.msra.mxu1 %v5753_v46 }
 0x6cc   : > { %v11692_v17 = vpop.permute.xlu0 %5367 }
 0x6cd   : > { %v5375_v58 = vadd.f32 %v11692_v17, %v5346_v43  ;;  %v5553_v43 = vsel %vm494_vm0, %v5550_v3, %v5552_v61 }
 0x6ce   : > { %v11694_v24 = vpop.permute.xlu1 %5479  ;;  %v11730_v5 = vpop.permute.xlu2 %5527 }
 0x6cf   : > { %v5486_v6 = vadd.f32 %v11694_v24, %v5457_v20  ;;  %v5455_v24 = vadd.f32 %v11686_v32, %v5426_v29 }
 0x6d1   : > { %v5498_v37 = vadd.f32 %v5495_v56, %v5486_v6  ;;  %v5484_v32 = vadd.f32 %v11696_v52, %v5455_v24  ;;  %v5624_v52 = vmul.f32 %v5621_v51, %v11511_v16  ;;  %v5549_v16 = vrot.slane %v5541_v45, 1 }
 0x6d2   : > { %v5702_v56 = vstv %s5701_s24 }
 0x6d3   : > { %v5496_v11 = vadd.f32 %v5493_v33, %v5484_v32  ;;  %v5551_v31 = vsel %vm494_vm0, %v5549_v16, %v5550_v3 }
 0x6d4   : > { %v11705_v15 = vpop.permute.xlu0 %5396 }
 0x6d5   : > { %v5404_v17 = vadd.f32 %v11705_v15, %v5375_v58  ;;  %v5625_v15 = vmul.f32 %v5621_v51, %v11538_v53  ;;  %v5516_v63 = vadd.f32 %v11719_v57, %v5496_v11  ;;  %v5633_v53 = vrot.slane %v5624_v52, 2 }
 0x6d6   : > { %v5512_v27 = vpop.permute.xlu1 %5511  ;;  %v5580_v35 = vpop.permute.xlu2 %5579 }
 0x6d7   : > { %v5518_v38 = vadd.f32 %v5512_v27, %v5498_v37  ;;  %v5427_v21 = vadd.f32 %v5420_v23, %v5404_v17  ;;  %v5635_v60 = vrot.slane %v5625_v15, 2  ;;  %v5536_v57 = vadd.f32 %v11730_v5, %v5516_v63 }
 0x6d8   : > { %v5634_v32 = vsel %vm576_vm1, %v5631_v41, %v5633_v53 }
 0x6d9   : > { %v5636_v20 = vsel %vm576_vm1, %v5633_v53, %v5635_v60  ;;  %v5559_v49 = vadd.f32 %v5551_v31, %v5536_v57 }
 0x6dc   : > { %v11722_v48 = vpop.permute.xlu0 %5448 }
 0x6dd   : > { %v5456_v34 = vadd.f32 %v11722_v48, %v5427_v21 }
 0x6de   : > { %v5532_v40 = vpop.permute.xlu1 %5531  ;;  %v5609_v0 = vpop.permute.xlu2 %5608 }
 0x6df   : > { %v5538_v27 = vadd.f32 %v5532_v40, %v5518_v38 }
 0x6e1   : > { %v5561_v40 = vadd.f32 %v5555_v47, %v5538_v27 }
 0x6e4   : > { %v11732_v54 = vpop.permute.xlu0 %5477 }
 0x6e5   : > { %v5485_v48 = vadd.f32 %v11732_v54, %v5456_v34  ;;  %v5588_v54 = vadd.f32 %v5580_v35, %v5559_v49 }
 0x6e6   : > { %v5584_v14 = vpop.permute.xlu1 %5583  ;;  %v5661_v28 = vpop.permute.xlu2 %5660 }
 0x6e7   : > { %v5590_v13 = vadd.f32 %v5584_v14, %v5561_v40  ;;  %v5497_v14 = vadd.f32 %v5494_v25, %v5485_v48  ;;  %v5617_v9 = vadd.f32 %v5609_v0, %v5588_v54 }
 0x6e9   : > { %v5640_v37 = vadd.f32 %v5632_v10, %v5617_v9 }
 0x6eb   : > { %v5669_v38 = vadd.f32 %v5661_v28, %v5640_v37 }
 0x6ec   : > { %v5510_v59 = vpop.permute.xlu0 %5509 }
 0x6ed   : > { %v5517_v30 = vadd.f32 %v5510_v59, %v5497_v14 }
 0x6ee   : > { %v5613_v55 = vpop.permute.xlu1 %5612  ;;  %v5692_v39 = vpop.permute.xlu2 %5691 }
 0x6ef   : > { %v5619_v12 = vadd.f32 %v5613_v55, %v5590_v13 }
 0x6f1   : > { %v5642_v5 = vadd.f32 %v5636_v20, %v5619_v12 }
 0x6f4   : > { %v5530_v50 = vpop.permute.xlu0 %5529 }
 0x6f5   : > { %v5537_v4 = vadd.f32 %v5530_v50, %v5517_v30 }
 0x6f6   : > { %v5665_v44 = vpop.permute.xlu1 %5664 }
 0x6f7   : > { %v5671_v6 = vadd.f32 %v5665_v44, %v5642_v5  ;;  %v5560_v24 = vadd.f32 %v5553_v43, %v5537_v4 }
 0x6fc   : > { %v5582_v1 = vpop.permute.xlu0 %5581 }
 0x6fd   : > { %v5589_v36 = vadd.f32 %v5582_v1, %v5560_v24 }
 0x6fe   : > { %v5694_v2 = vpop.permute.xlu1 %5693 }
 0x6ff   : > { %v5700_v7 = vadd.f32 %v5694_v2, %v5671_v6 }
 0x701   : > { %v5705_v29 = vadd.f32 %v5702_v56, %v5700_v7 }
 0x703   : > { %v5708_v59 = vmax.f32 %v5705_v29, 0.0 }
 0x704   : > { %v5611_v58 = vpop.permute.xlu0 %5610 }
 0x705   : > { %5712 = vst.msk [vmem:[#allocation4 + $0x10] sm:$0xff] %vm5709_vm5, %v5708_v59  ;;  %v5618_v35 = vadd.f32 %v5611_v58, %v5589_v36 }
 0x706   : > { %v5690_v62 = vpop.permute.xlu1 %5689 }
 0x707   : > { %v5698_v26 = vadd.f32 %v5690_v62, %v5669_v38  ;;  %v5641_v27 = vadd.f32 %v5634_v32, %v5618_v35 }
 0x709   : > { %v5703_v55 = vadd.f32 %v5702_v56, %v5698_v26 }
 0x70b   : > { %v5706_v17 = vmax.f32 %v5703_v55, 0.0 }
 0x70c   : > { %v5663_v42 = vpop.permute.xlu0 %5662  ;;  %v5715_v51 = vld [vmem:[#allocation4 + $0x10] ss:$2 sm:$0xf]  ;;  %v5719_v61 = vld [vmem:[#allocation4 + $0x11] ss:$2 sm:$0xf] }
 0x70d   : > { %5710 = vst.msk [vmem:[#allocation4] sm:$0xff] %vm5709_vm5, %v5706_v17  ;;  %v5670_v33 = vadd.f32 %v5663_v42, %v5641_v27  ;;  %v5721_v45 = vmax.f32 %v5715_v51, %v5719_v61 }
 0x70f   : > { %v5699_v23 = vadd.f32 %v5692_v39, %v5670_v33  ;;  %6128 = vmatmul.msk.f32.vlgmr.msra.gmra.mxu2 %vm5709_vm5, %v5721_v45  ;;  %6130 = vmatmul.msk.f32.vlgmr.msra.gmra.mxu3 %vm5709_vm5, %v5721_v45 }
 0x711   : > { %v5704_v47 = vadd.f32 %v5702_v56, %v5699_v23 }
 0x713   : > { %v5707_v52 = vmax.f32 %v5704_v47, 0.0 }
 0x715   : > { %5711 = vst.msk [vmem:[#allocation4 + $0x8] sm:$0xff] %vm5709_vm5, %v5707_v52 }
 0x71c   : > { %v5713_v15 = vld [vmem:[#allocation4] ss:$2 sm:$0xff]  ;;  %v5717_v11 = vld [vmem:[#allocation4 + $0x1] ss:$2 sm:$0xff] }
 0x71d   : > { %v5720_v21 = vmax.f32 %v5713_v15, %v5717_v11 }
 0x71f   : > { %6127 = vmatmul.msk.f32.vlgmr.msra.gmra.mxu0 %vm5709_vm5, %v5720_v21  ;;  %6129 = vmatmul.msk.f32.vlgmr.msra.gmra.mxu1 %vm5709_vm5, %v5720_v21 }
 0x792   : > { %v5750_v40 = vpop.f32.mrf.mxu2  ;;  %v5775_v50 = vpop.f32.mrf.mxu3 }
 0x793   : > { %v5779_v63 = vmax.f32 %v5750_v40, %v5775_v50 }
 0x795   : > { %5783 = vst.msk [vmem:[%s397_s12 + $0x8] sm:$0xf] %vm5782_vm6, %v5779_v63 }
 0x79c   : > { %v5747_v34 = vpop.f32.mrf.mxu0  ;;  %v5772_v13 = vpop.f32.mrf.mxu1 }
 0x79d   : > { %v5778_v8 = vmax.f32 %v5747_v34, %v5772_v13 }
 0x79f   : > { %5781 = vst.msk [vmem:[%s397_s12] sm:$0xff] %vm5780_vm7, %v5778_v8 }
 0x7a0 PF: > { %s23_s11 = sadd.s32 1, %s6329_s11  }
 0x7a1   : > { %p20_p7 = scmp.ge.s32.totalorder %s23_s11, 10  }
 0x7a3   :  { %22 = sbr.rel (!%p20_p7) target bundleno = 5 (0x5), region = 116 }
 0x7a8   :  { %5805 = vsyncpa [#allocation7], 1 }
 0x7a9   :  { %5807 = vsyncpa [#allocation7 + $0x1], 1 }
 0x7aa   :  { %5808 = vsyncpa [#allocation9], 1 }
 0x7ab   :  { %5809 = vsyncpa [#allocation12], 1 }

</bundles_post_ra>
